<compile_context>
chip_gen: v7x
topology: tpu7x:2x2x1
jax: 0.10.0
libtpu: 0.0.40
codegen_flags: <defaults>
</compile_context>

<pallas_src>
import functools

import jax
import jax.numpy as jnp
from jax.experimental import pallas as pl
from jax.experimental.pallas import tpu as pltpu


# ---------------------------------------------------------------------------
# Dropout mask generation (counter-based hash; pure int32 VPU ops, portable)
# ---------------------------------------------------------------------------
def _lshr32(x, k):
    """Logical right shift for int32 (arithmetic shift, then mask sign-extended bits)."""
    return jnp.right_shift(x, k) & jnp.int32((1 << (32 - k)) - 1)


def _hash_bits(shape, seed, col_off):
    """One splitmix32-style 32-bit hash per (hidden row, global batch column)."""
    r = jax.lax.broadcasted_iota(jnp.int32, shape, 0)
    c = jax.lax.broadcasted_iota(jnp.int32, shape, 1) + col_off
    x = (r * jnp.int32(-1640531527)) ^ (c * jnp.int32(-2048144789))  # 0x9E3779B9, 0x85EBCA6B
    x = x + seed * jnp.int32(0x27D4EB2F)
    x = x ^ _lshr32(x, 16)
    x = x * jnp.int32(0x7FEB352D)
    x = x ^ _lshr32(x, 15)
    x = x * jnp.int32(-2073254261)                                   # 0x846CA68B
    x = x ^ _lshr32(x, 16)
    return x


def _masks_from_bits(bits, d_prob):
    """Three keep-masks from disjoint 10-bit fields of ONE shared hash (review item:
    do not run the hash 3x).  P(keep) = 1 - round(p*1024)/1024 (exact for p=0.5)."""
    thresh = jnp.int32(int(round(d_prob * 1024.0)))
    return tuple(((bits >> s) & jnp.int32(1023)) >= thresh for s in (0, 10, 20))


# ---------------------------------------------------------------------------
# Hardware heuristics (perf-only; any value is functionally correct)
# ---------------------------------------------------------------------------
def _device_kind():
    try:
        return jax.devices()[0].device_kind.lower()
    except Exception:
        return ""


def _default_act_dtype():
    # bf16 bias/ReLU/dropout between the MXU matmuls only on bf16-native VPUs
    # (v6e / v7x); v5e and older keep the elementwise chain in f32.
    k = _device_kind()
    return jnp.bfloat16 if ("v6" in k or "v7" in k or "7x" in k) else jnp.float32


def _default_num_tiles(batch):
    # v7x has 2 TensorCores per chip -> keep a >=2 "parallel" grid there; on
    # single-TC chips one coarse tile avoids per-grid-step overhead entirely
    # (weights are resident, so pipelining buys nothing).
    k = _device_kind()
    two_tc = ("v7" in k) or ("7x" in k)
    return 2 if (two_tc and batch >= 256) else 1


# ---------------------------------------------------------------------------
# Core math (shared by the kernel and the mirroring pure-JAX reference)
# ---------------------------------------------------------------------------
def _mlp_math(x_row, w1, b1, w2, b2, w3, b3, w4, b4, masks, act_dtype):
    """Transposed forward pass: activations are (hidden, batch), batch on lanes.
    `masks` is None (eval) or a tuple of 3 boolean keep-masks of shape (N, TB)."""
    def drop(h, i):
        return h if masks is None else jnp.where(masks[i], h, 0)

    # Layer 1: Linear(1, N) == outer product -> pure VPU broadcast, no MXU.
    h = jnp.maximum(w1 * x_row + b1, 0.0)                            # (N, TB) f32
    h = drop(h, 0)
    # Layers 2 & 3: W @ h on the MXU, bf16 operands, f32 accumulation.
    h = jnp.maximum(jnp.dot(w2, h.astype(jnp.bfloat16),
                            preferred_element_type=jnp.float32).astype(act_dtype)
                    + b2, 0)
    h = drop(h, 1)
    h = jnp.maximum(jnp.dot(w3, h.astype(jnp.bfloat16),
                            preferred_element_type=jnp.float32).astype(act_dtype)
                    + b3, 0)
    h = drop(h, 2)
    # Layer 4: Linear(N, 1) -> VPU multiply + sublane reduction -> lane-dense row.
    return jnp.sum(h.astype(jnp.float32) * w4, axis=0, keepdims=True) + b4   # (1, TB)


# ---------------------------------------------------------------------------
# Pallas kernel
# ---------------------------------------------------------------------------
def mlp_kernel(seed_ref,                       # scalar prefetch (SMEM): [seed]
               x_ref,                          # (1, 1, TB) f32, batch on lanes
               w1_ref, b1_ref, w2_ref, b2_ref, w3_ref, b3_ref, w4_ref, b4_ref,
               o_ref,                          # (1, 1, TB) f32
               *, d_prob, train, tile_b, hidden, act_dtype, use_hw_prng):
    masks = None
    if train and d_prob > 0.0:
        if use_hw_prng:
            # Optional on-chip PRNG path: random bits off the VALU entirely.
            pltpu.prng_seed(seed_ref[0] + pl.program_id(0))
            thresh = jnp.int32(min(int(d_prob * (1 << 31)), (1 << 31) - 1))
            hw_masks = []
            for _ in range(3):
                bits = pltpu.bitcast(pltpu.prng_random_bits((hidden, tile_b)),
                                     jnp.int32)
                hw_masks.append((bits & jnp.int32(0x7FFFFFFF)) >= thresh)
            masks = tuple(hw_masks)
        else:
            # ONE shared counter hash per tile; 3 masks from disjoint bit fields.
            bits = _hash_bits((hidden, tile_b), seed_ref[0],
                              pl.program_id(0) * tile_b)
            masks = _masks_from_bits(bits, d_prob)

    out_row = _mlp_math(x_ref[0],
                        w1_ref[...], b1_ref[...], w2_ref[...], b2_ref[...],
                        w3_ref[...], b3_ref[...], w4_ref[...], b4_ref[...],
                        masks, act_dtype)
    o_ref[0] = out_row


# ---------------------------------------------------------------------------
# Wrapper
# ---------------------------------------------------------------------------
def _prepare_params(params, *, d_prob, train, act_dtype):
    """Fold the dropout survivor scale 1/(1-p) into the next layer's weights, cast
    the (N,N) weights to bf16 for the MXU, and shape everything for the transposed
    (hidden-on-sublanes, batch-on-lanes) layout.  Done once, outside the kernel."""
    N = params["w2"].shape[0]
    s = 1.0 / (1.0 - d_prob) if (train and d_prob > 0.0) else 1.0
    return dict(
        w1=params["w1"].reshape(N, 1).astype(jnp.float32),
        b1=params["b1"].reshape(N, 1).astype(jnp.float32),
        w2=(params["w2"] * s).astype(jnp.bfloat16),
        b2=params["b2"].reshape(N, 1).astype(act_dtype),
        w3=(params["w3"] * s).astype(jnp.bfloat16),
        b3=params["b3"].reshape(N, 1).astype(act_dtype),
        w4=(params["w4"] * s).reshape(N, 1).astype(jnp.float32),
        b4=params["b4"].reshape(1, 1).astype(jnp.float32),
    )


def mlp_forward(x, params, seed, *, d_prob=0.5, train=False, n_tiles=None,
                act_dtype=None, use_hw_prng=False):
    B = x.shape[0]
    N = params["w2"].shape[0]
    if act_dtype is None:
        act_dtype = _default_act_dtype()

    # ---- batch tiling: coarse, lane-aligned; >=2 "parallel" tiles only on v7x ----
    max_tile_b = 4096                          # keeps per-tile activations << VMEM
    if n_tiles is None:
        n_tiles = max(_default_num_tiles(B), -(-B // max_tile_b))
    tile_b = -(-B // n_tiles)
    tile_b = ((tile_b + 127) // 128) * 128     # lane-dense rows -> unmasked stores
    b_pad = n_tiles * tile_b

    x_rows = jnp.zeros((b_pad,), jnp.float32).at[:B].set(
        x.reshape(B).astype(jnp.float32)).reshape(n_tiles, 1, tile_b)

    p = _prepare_params(params, d_prob=d_prob, train=train, act_dtype=act_dtype)
    weights = (p["w1"], p["b1"], p["w2"], p["b2"], p["w3"], p["b3"], p["w4"], p["b4"])

    kernel = functools.partial(
        mlp_kernel, d_prob=float(d_prob), train=bool(train), tile_b=int(tile_b),
        hidden=int(N), act_dtype=act_dtype, use_hw_prng=bool(use_hw_prng))

    weight_bytes = sum(int(w.size) * w.dtype.itemsize for w in weights)
    flops = 2 * b_pad * (N + N * N + N * N + N)
    bytes_accessed = int(x_rows.size * 4 + b_pad * 4 + weight_bytes)
    # Explicit scoped-VMEM limit: covers (possibly double-buffered) weights plus
    # per-tile activations / masks, and never exceeds v7x's 64 MiB physical VMEM.
    vmem_limit = int(min(64 << 20,
                         max(32 << 20, 2 * weight_bytes + 24 * N * tile_b + (2 << 20))))

    io_spec = pl.BlockSpec((1, 1, tile_b), lambda i, *_: (i, 0, 0))

    def run(single_buffer_weights):
        def resident(arr):
            # Whole-array block + constant index map: the weight stays VMEM-resident
            # and its DMA is not re-issued per batch tile.
            idx = lambda i, *_: (0,) * arr.ndim
            if single_buffer_weights:
                # Block index never changes -> the 2nd pipeline buffer is pure waste.
                return pl.BlockSpec(arr.shape, idx, pipeline_mode=pl.Buffered(1))
            return pl.BlockSpec(arr.shape, idx)

        return pl.pallas_call(
            kernel,
            out_shape=jax.ShapeDtypeStruct((n_tiles, 1, tile_b), jnp.float32),
            grid_spec=pltpu.PrefetchScalarGridSpec(
                num_scalar_prefetch=1,
                grid=(n_tiles,),
                in_specs=[io_spec] + [resident(w) for w in weights],
                out_specs=io_spec,
            ),
            compiler_params=pltpu.CompilerParams(
                dimension_semantics=("parallel",),
                vmem_limit_bytes=vmem_limit),
            cost_estimate=pl.CostEstimate(flops=int(flops), transcendentals=0,
                                          bytes_accessed=bytes_accessed),
        )(jnp.asarray([seed], jnp.int32), x_rows, *weights)

    try:
        out = run(single_buffer_weights=True)
    except Exception:
        # pipeline_mode=pl.Buffered(1) not supported by this jax/libtpu build ->
        # fall back to default double-buffered weight specs (correctness identical).
        out = run(single_buffer_weights=False)

    return out.reshape(b_pad)[:B].reshape(B, 1)


# ---------------------------------------------------------------------------
# Parameters & references
# ---------------------------------------------------------------------------
def init_params(key, neural_num):
    """Deterministic synthetic parameters in PyTorch layout (weight = (out, in))."""
    ks = jax.random.split(key, 8)
    N = neural_num
    s = 0.1
    return {
        "w1": s * jax.random.normal(ks[0], (N, 1), jnp.float32),   # Linear(1, N)
        "b1": s * jax.random.normal(ks[1], (N,), jnp.float32),
        "w2": s * jax.random.normal(ks[2], (N, N), jnp.float32),   # Linear(N, N)
        "b2": s * jax.random.normal(ks[3], (N,), jnp.float32),
        "w3": s * jax.random.normal(ks[4], (N, N), jnp.float32),   # Linear(N, N)
        "b3": s * jax.random.normal(ks[5], (N,), jnp.float32),
        "w4": s * jax.random.normal(ks[6], (1, N), jnp.float32),   # Linear(N, 1)
        "b4": s * jax.random.normal(ks[7], (1,), jnp.float32),
    }


def mlp_reference(x, params, *, d_prob=0.5, train=False, seed=0, act_dtype=None):
    """Pure-JAX reference mirroring the kernel numerics exactly (same transposed
    math, same bf16 casts, same folded scale, same hash masks)."""
    if act_dtype is None:
        act_dtype = _default_act_dtype()
    B = x.shape[0]
    N = params["w2"].shape[0]
    p = _prepare_params(params, d_prob=d_prob, train=train, act_dtype=act_dtype)
    masks = None
    if train and d_prob > 0.0:
        masks = _masks_from_bits(_hash_bits((N, B), jnp.int32(seed), 0), d_prob)
    out_row = _mlp_math(x.reshape(1, B).astype(jnp.float32),
                        p["w1"], p["b1"], p["w2"], p["b2"],
                        p["w3"], p["b3"], p["w4"], p["b4"], masks, act_dtype)
    return out_row.reshape(B, 1)


def mlp_reference_torch_f32(x, params, *, d_prob=0.5, train=False, seed=0):
    """Textbook f32 PyTorch semantics (y = x @ W.T + b, inverted dropout with the
    kernel's keep masks).  Validates the folded 1/(1-p) scaling + zero-masking."""
    B = x.shape[0]
    N = params["w2"].shape[0]
    masks = None
    if train and d_prob > 0.0:
        masks = _masks_from_bits(_hash_bits((N, B), jnp.int32(seed), 0), d_prob)
        inv_keep = 1.0 / (1.0 - d_prob)

    def drop(h, i):
        if masks is None:
            return h
        return jnp.where(masks[i].T, h, 0.0) * inv_keep

    h = jnp.maximum(x @ params["w1"].T + params["b1"], 0.0)
    h = drop(h, 0)
    h = jnp.maximum(h @ params["w2"].T + params["b2"], 0.0)
    h = drop(h, 1)
    h = jnp.maximum(h @ params["w3"].T + params["b3"], 0.0)
    h = drop(h, 2)
    return h @ params["w4"].T + params["b4"]


# ---------------------------------------------------------------------------
# Self-test
# ---------------------------------------------------------------------------
if __name__ == "__main__":
    key = jax.random.PRNGKey(0)
    k_param, k_x = jax.random.split(key)

    B = 1024       # batch: 1 coarse tile (v5e/v6e) or 2 parallel 512-row tiles (v7x)
    N = 128        # neural_num: lane-width / MXU-K aligned
    D_PROB = 0.5

    params = init_params(k_param, N)
    x = jax.random.normal(k_x, (B, 1), jnp.float32)
    act_dtype = _default_act_dtype()

    # ---- eval mode (Dropout inactive) ----
    y_eval = jax.block_until_ready(
        mlp_forward(x, params, seed=0, d_prob=D_PROB, train=False))
    y_eval_mirror = mlp_reference(x, params, d_prob=D_PROB, train=False,
                                  act_dtype=act_dtype)
    y_eval_f32 = mlp_reference_torch_f32(x, params, d_prob=D_PROB, train=False)
    assert y_eval.shape == (B, 1)
    assert jnp.allclose(y_eval, y_eval_mirror, atol=2e-3, rtol=2e-2), \
        float(jnp.max(jnp.abs(y_eval - y_eval_mirror)))
    assert jnp.allclose(y_eval, y_eval_f32, atol=3e-2, rtol=3e-2), \
        float(jnp.max(jnp.abs(y_eval - y_eval_f32)))

    # ---- dropout mask statistics: each bit-field keeps ~ (1 - p) of elements ----
    masks = _masks_from_bits(_hash_bits((N, B), jnp.int32(1234), 0), D_PROB)
    for m in masks:
        rate = float(jnp.mean(m.astype(jnp.float32)))
        assert abs(rate - (1.0 - D_PROB)) < 0.03, rate
    assert not bool(jnp.array_equal(masks[0], masks[1]))   # fields are distinct

    # ---- train mode (Dropout active; deterministic counter-hash masks) ----
    y_tr = jax.block_until_ready(
        mlp_forward(x, params, seed=1234, d_prob=D_PROB, train=True))
    y_tr_again = jax.block_until_ready(
        mlp_forward(x, params, seed=1234, d_prob=D_PROB, train=True))
    y_tr_mirror = mlp_reference(x, params, d_prob=D_PROB, train=True, seed=1234,
                                act_dtype=act_dtype)
    y_tr_f32 = mlp_reference_torch_f32(x, params, d_prob=D_PROB, train=True,
                                       seed=1234)
    assert y_tr.shape == (B, 1) and bool(jnp.all(jnp.isfinite(y_tr)))
    assert jnp.array_equal(y_tr, y_tr_again)               # same seed -> same masks
    assert jnp.allclose(y_tr, y_tr_mirror, atol=2e-3, rtol=2e-2), \
        float(jnp.max(jnp.abs(y_tr - y_tr_mirror)))
    # Folded 1/(1-p) weights + zero-mask == textbook f32 inverted dropout (same masks).
    assert jnp.allclose(y_tr, y_tr_f32, atol=5e-2, rtol=5e-2), \
        float(jnp.max(jnp.abs(y_tr - y_tr_f32)))

    print("KERNEL_OK")
</pallas_src>

<mosaic_0001>
module attributes {stable_mosaic.version = 11 : i64} {
  func.func @mlp_kernel(%arg0: i32, %arg1: memref<1xi32, #tpu.memory_space<smem>>, %arg2: memref<1x1x1024xf32, #tpu.memory_space<vmem>>, %arg3: memref<128x1xf32, #tpu.memory_space<vmem>>, %arg4: memref<128x1xf32, #tpu.memory_space<vmem>>, %arg5: memref<128x128xbf16, #tpu.memory_space<vmem>>, %arg6: memref<128x1xf32, #tpu.memory_space<vmem>>, %arg7: memref<128x128xbf16, #tpu.memory_space<vmem>>, %arg8: memref<128x1xf32, #tpu.memory_space<vmem>>, %arg9: memref<128x1xf32, #tpu.memory_space<vmem>>, %arg10: memref<1x1xf32, #tpu.memory_space<vmem>>, %arg11: memref<1x1x1024xf32, #tpu.memory_space<vmem>>) attributes {dimension_semantics = [#tpu.dimension_semantics<parallel>], iteration_bounds = array<i64: 1>, scalar_prefetch = 1 : i64, scratch_operands = 0 : i64, tpu.core_type = #tpu.core_type<tc>, window_params = [{transform_indices = @transform_0, window_bounds = array<i64: 1, 1, 1024>}, {pipeline_mode = #tpu.pipeline_mode<synchronous>, transform_indices = @transform_1, window_bounds = array<i64: 128, 1>}, {pipeline_mode = #tpu.pipeline_mode<synchronous>, transform_indices = @transform_2, window_bounds = array<i64: 128, 1>}, {pipeline_mode = #tpu.pipeline_mode<synchronous>, transform_indices = @transform_3, window_bounds = array<i64: 128, 128>}, {pipeline_mode = #tpu.pipeline_mode<synchronous>, transform_indices = @transform_4, window_bounds = array<i64: 128, 1>}, {pipeline_mode = #tpu.pipeline_mode<synchronous>, transform_indices = @transform_5, window_bounds = array<i64: 128, 128>}, {pipeline_mode = #tpu.pipeline_mode<synchronous>, transform_indices = @transform_6, window_bounds = array<i64: 128, 1>}, {pipeline_mode = #tpu.pipeline_mode<synchronous>, transform_indices = @transform_7, window_bounds = array<i64: 128, 1>}, {pipeline_mode = #tpu.pipeline_mode<synchronous>, transform_indices = @transform_8, window_bounds = array<i64: 1, 1>}, {transform_indices = @transform_9, window_bounds = array<i64: 1, 1, 1024>}]} {
    %c0 = arith.constant 0 : index
    %c0_0 = arith.constant 0 : index
    %c0_1 = arith.constant 0 : index
    %0 = vector.load %arg2[%c0, %c0_0, %c0_1] : memref<1x1x1024xf32, #tpu.memory_space<vmem>>, vector<1x1x1024xf32>
    %1 = vector.shape_cast %0 : vector<1x1x1024xf32> to vector<1x1024xf32>
    %c0_2 = arith.constant 0 : index
    %c0_3 = arith.constant 0 : index
    %2 = vector.load %arg3[%c0_2, %c0_3] : memref<128x1xf32, #tpu.memory_space<vmem>>, vector<128x1xf32>
    %c0_4 = arith.constant 0 : index
    %c0_5 = arith.constant 0 : index
    %3 = vector.load %arg4[%c0_4, %c0_5] : memref<128x1xf32, #tpu.memory_space<vmem>>, vector<128x1xf32>
    %c0_6 = arith.constant 0 : index
    %c0_7 = arith.constant 0 : index
    %4 = vector.load %arg5[%c0_6, %c0_7] : memref<128x128xbf16, #tpu.memory_space<vmem>>, vector<128x128xbf16>
    %c0_8 = arith.constant 0 : index
    %c0_9 = arith.constant 0 : index
    %5 = vector.load %arg6[%c0_8, %c0_9] : memref<128x1xf32, #tpu.memory_space<vmem>>, vector<128x1xf32>
    %c0_10 = arith.constant 0 : index
    %c0_11 = arith.constant 0 : index
    %6 = vector.load %arg7[%c0_10, %c0_11] : memref<128x128xbf16, #tpu.memory_space<vmem>>, vector<128x128xbf16>
    %c0_12 = arith.constant 0 : index
    %c0_13 = arith.constant 0 : index
    %7 = vector.load %arg8[%c0_12, %c0_13] : memref<128x1xf32, #tpu.memory_space<vmem>>, vector<128x1xf32>
    %c0_14 = arith.constant 0 : index
    %c0_15 = arith.constant 0 : index
    %8 = vector.load %arg9[%c0_14, %c0_15] : memref<128x1xf32, #tpu.memory_space<vmem>>, vector<128x1xf32>
    %c0_16 = arith.constant 0 : index
    %c0_17 = arith.constant 0 : index
    %9 = vector.load %arg10[%c0_16, %c0_17] : memref<1x1xf32, #tpu.memory_space<vmem>>, vector<1x1xf32>
    %10 = vector.broadcast %2 : vector<128x1xf32> to vector<128x1024xf32>
    %11 = vector.broadcast %1 : vector<1x1024xf32> to vector<128x1024xf32>
    %12 = arith.mulf %10, %11 : vector<128x1024xf32>
    %13 = vector.broadcast %3 : vector<128x1xf32> to vector<128x1024xf32>
    %14 = arith.addf %12, %13 : vector<128x1024xf32>
    %cst = arith.constant 0.000000e+00 : f32
    %15 = vector.broadcast %cst : f32 to vector<128x1024xf32>
    %16 = arith.maximumf %14, %15 : vector<128x1024xf32>
    %17 = arith.truncf %16 : vector<128x1024xf32> to vector<128x1024xbf16>
    %cst_18 = arith.constant dense<0.000000e+00> : vector<128x1024xf32>
    %18 = tpu.matmul %4, %17, %cst_18 {dimension_numbers = #tpu.dot_dimension_numbers<[1], [0], [0], [1], [0, 0, 1, 1], [], []>} : vector<128x128xbf16>, vector<128x1024xbf16>, vector<128x1024xf32> -> vector<128x1024xf32>
    %19 = vector.broadcast %5 : vector<128x1xf32> to vector<128x1024xf32>
    %20 = arith.addf %18, %19 : vector<128x1024xf32>
    %cst_19 = arith.constant 0.000000e+00 : f32
    %21 = vector.broadcast %cst_19 : f32 to vector<128x1024xf32>
    %22 = arith.maximumf %20, %21 : vector<128x1024xf32>
    %23 = arith.truncf %22 : vector<128x1024xf32> to vector<128x1024xbf16>
    %cst_20 = arith.constant dense<0.000000e+00> : vector<128x1024xf32>
    %24 = tpu.matmul %6, %23, %cst_20 {dimension_numbers = #tpu.dot_dimension_numbers<[1], [0], [0], [1], [0, 0, 1, 1], [], []>} : vector<128x128xbf16>, vector<128x1024xbf16>, vector<128x1024xf32> -> vector<128x1024xf32>
    %25 = vector.broadcast %7 : vector<128x1xf32> to vector<128x1024xf32>
    %26 = arith.addf %24, %25 : vector<128x1024xf32>
    %cst_21 = arith.constant 0.000000e+00 : f32
    %27 = vector.broadcast %cst_21 : f32 to vector<128x1024xf32>
    %28 = arith.maximumf %26, %27 : vector<128x1024xf32>
    %29 = vector.broadcast %8 : vector<128x1xf32> to vector<128x1024xf32>
    %30 = arith.mulf %28, %29 : vector<128x1024xf32>
    %cst_22 = arith.constant dense<0.000000e+00> : vector<1024xf32>
    %31 = vector.multi_reduction <add>, %30, %cst_22 [0] : vector<128x1024xf32> to vector<1024xf32>
    %32 = vector.shape_cast %31 : vector<1024xf32> to vector<1x1024xf32>
    %33 = vector.broadcast %9 : vector<1x1xf32> to vector<1x1024xf32>
    %34 = arith.addf %32, %33 : vector<1x1024xf32>
    %c0_23 = arith.constant 0 : index
    %c0_24 = arith.constant 0 : index
    %c0_25 = arith.constant 0 : index
    %35 = vector.load %arg11[%c0_23, %c0_24, %c0_25] : memref<1x1x1024xf32, #tpu.memory_space<vmem>>, vector<1x1x1024xf32>
    %36 = vector.shape_cast %35 : vector<1x1x1024xf32> to vector<1x1024xf32>
    %37 = vector.shape_cast %34 : vector<1x1024xf32> to vector<1x1x1024xf32>
    tpu.vector_store %arg11[%c0_23, %c0_24, %c0_25], %37 {strides = array<i32>} : memref<1x1x1024xf32, #tpu.memory_space<vmem>>, vector<1x1x1024xf32>,
    return
  }
  func.func @transform_0(%arg0: i32, %arg1: memref<1xi32, #tpu.memory_space<smem>>) -> (i32, i32, i32) {
    %c0_i32 = arith.constant 0 : i32
    %c0_i32_0 = arith.constant 0 : i32
    %c0_i32_1 = arith.constant 0 : i32
    return %arg0, %c0_i32, %c0_i32_0 : i32, i32, i32
  }
  func.func @transform_1(%arg0: i32, %arg1: memref<1xi32, #tpu.memory_space<smem>>) -> (i32, i32) {
    %c0_i32 = arith.constant 0 : i32
    %c0_i32_0 = arith.constant 0 : i32
    %c0_i32_1 = arith.constant 0 : i32
    return %c0_i32, %c0_i32_0 : i32, i32
  }
  func.func @transform_2(%arg0: i32, %arg1: memref<1xi32, #tpu.memory_space<smem>>) -> (i32, i32) {
    %c0_i32 = arith.constant 0 : i32
    %c0_i32_0 = arith.constant 0 : i32
    %c0_i32_1 = arith.constant 0 : i32
    return %c0_i32, %c0_i32_0 : i32, i32
  }
  func.func @transform_3(%arg0: i32, %arg1: memref<1xi32, #tpu.memory_space<smem>>) -> (i32, i32) {
    %c0_i32 = arith.constant 0 : i32
    %c0_i32_0 = arith.constant 0 : i32
    %c0_i32_1 = arith.constant 0 : i32
    return %c0_i32, %c0_i32_0 : i32, i32
  }
  func.func @transform_4(%arg0: i32, %arg1: memref<1xi32, #tpu.memory_space<smem>>) -> (i32, i32) {
    %c0_i32 = arith.constant 0 : i32
    %c0_i32_0 = arith.constant 0 : i32
    %c0_i32_1 = arith.constant 0 : i32
    return %c0_i32, %c0_i32_0 : i32, i32
  }
  func.func @transform_5(%arg0: i32, %arg1: memref<1xi32, #tpu.memory_space<smem>>) -> (i32, i32) {
    %c0_i32 = arith.constant 0 : i32
    %c0_i32_0 = arith.constant 0 : i32
    %c0_i32_1 = arith.constant 0 : i32
    return %c0_i32, %c0_i32_0 : i32, i32
  }
  func.func @transform_6(%arg0: i32, %arg1: memref<1xi32, #tpu.memory_space<smem>>) -> (i32, i32) {
    %c0_i32 = arith.constant 0 : i32
    %c0_i32_0 = arith.constant 0 : i32
    %c0_i32_1 = arith.constant 0 : i32
    return %c0_i32, %c0_i32_0 : i32, i32
  }
  func.func @transform_7(%arg0: i32, %arg1: memref<1xi32, #tpu.memory_space<smem>>) -> (i32, i32) {
    %c0_i32 = arith.constant 0 : i32
    %c0_i32_0 = arith.constant 0 : i32
    %c0_i32_1 = arith.constant 0 : i32
    return %c0_i32, %c0_i32_0 : i32, i32
  }
  func.func @transform_8(%arg0: i32, %arg1: memref<1xi32, #tpu.memory_space<smem>>) -> (i32, i32) {
    %c0_i32 = arith.constant 0 : i32
    %c0_i32_0 = arith.constant 0 : i32
    %c0_i32_1 = arith.constant 0 : i32
    return %c0_i32, %c0_i32_0 : i32, i32
  }
  func.func @transform_9(%arg0: i32, %arg1: memref<1xi32, #tpu.memory_space<smem>>) -> (i32, i32, i32) {
    %c0_i32 = arith.constant 0 : i32
    %c0_i32_0 = arith.constant 0 : i32
    %c0_i32_1 = arith.constant 0 : i32
    return %arg0, %c0_i32, %c0_i32_0 : i32, i32, i32
  }
}

module attributes {stable_mosaic.version = 11 : i64} {
  func.func @mlp_kernel(%arg0: i32, %arg1: memref<1xi32, #tpu.memory_space<smem>>, %arg2: memref<1x1x1024xf32, #tpu.memory_space<vmem>>, %arg3: memref<128x1xf32, #tpu.memory_space<vmem>>, %arg4: memref<128x1xf32, #tpu.memory_space<vmem>>, %arg5: memref<128x128xbf16, #tpu.memory_space<vmem>>, %arg6: memref<128x1xf32, #tpu.memory_space<vmem>>, %arg7: memref<128x128xbf16, #tpu.memory_space<vmem>>, %arg8: memref<128x1xf32, #tpu.memory_space<vmem>>, %arg9: memref<128x1xf32, #tpu.memory_space<vmem>>, %arg10: memref<1x1xf32, #tpu.memory_space<vmem>>, %arg11: memref<1x1x1024xf32, #tpu.memory_space<vmem>>) attributes {dimension_semantics = [#tpu.dimension_semantics<parallel>], iteration_bounds = array<i64: 1>, scalar_prefetch = 1 : i64, scratch_operands = 0 : i64, tpu.core_type = #tpu.core_type<tc>, window_params = [{transform_indices = @transform_0, window_bounds = array<i64: 1, 1, 1024>}, {pipeline_mode = #tpu.pipeline_mode<synchronous>, transform_indices = @transform_1, window_bounds = array<i64: 128, 1>}, {pipeline_mode = #tpu.pipeline_mode<synchronous>, transform_indices = @transform_2, window_bounds = array<i64: 128, 1>}, {pipeline_mode = #tpu.pipeline_mode<synchronous>, transform_indices = @transform_3, window_bounds = array<i64: 128, 128>}, {pipeline_mode = #tpu.pipeline_mode<synchronous>, transform_indices = @transform_4, window_bounds = array<i64: 128, 1>}, {pipeline_mode = #tpu.pipeline_mode<synchronous>, transform_indices = @transform_5, window_bounds = array<i64: 128, 128>}, {pipeline_mode = #tpu.pipeline_mode<synchronous>, transform_indices = @transform_6, window_bounds = array<i64: 128, 1>}, {pipeline_mode = #tpu.pipeline_mode<synchronous>, transform_indices = @transform_7, window_bounds = array<i64: 128, 1>}, {pipeline_mode = #tpu.pipeline_mode<synchronous>, transform_indices = @transform_8, window_bounds = array<i64: 1, 1>}, {transform_indices = @transform_9, window_bounds = array<i64: 1, 1, 1024>}]} {
    %c0 = arith.constant 0 : index
    %c0_0 = arith.constant 0 : index
    %c0_1 = arith.constant 0 : index
    %0 = vector.load %arg2[%c0, %c0_0, %c0_1] : memref<1x1x1024xf32, #tpu.memory_space<vmem>>, vector<1x1x1024xf32>
    %1 = vector.shape_cast %0 : vector<1x1x1024xf32> to vector<1x1024xf32>
    %c0_2 = arith.constant 0 : index
    %c0_3 = arith.constant 0 : index
    %2 = vector.load %arg3[%c0_2, %c0_3] : memref<128x1xf32, #tpu.memory_space<vmem>>, vector<128x1xf32>
    %c0_4 = arith.constant 0 : index
    %c0_5 = arith.constant 0 : index
    %3 = vector.load %arg4[%c0_4, %c0_5] : memref<128x1xf32, #tpu.memory_space<vmem>>, vector<128x1xf32>
    %c0_6 = arith.constant 0 : index
    %c0_7 = arith.constant 0 : index
    %4 = vector.load %arg5[%c0_6, %c0_7] : memref<128x128xbf16, #tpu.memory_space<vmem>>, vector<128x128xbf16>
    %c0_8 = arith.constant 0 : index
    %c0_9 = arith.constant 0 : index
    %5 = vector.load %arg6[%c0_8, %c0_9] : memref<128x1xf32, #tpu.memory_space<vmem>>, vector<128x1xf32>
    %c0_10 = arith.constant 0 : index
    %c0_11 = arith.constant 0 : index
    %6 = vector.load %arg7[%c0_10, %c0_11] : memref<128x128xbf16, #tpu.memory_space<vmem>>, vector<128x128xbf16>
    %c0_12 = arith.constant 0 : index
    %c0_13 = arith.constant 0 : index
    %7 = vector.load %arg8[%c0_12, %c0_13] : memref<128x1xf32, #tpu.memory_space<vmem>>, vector<128x1xf32>
    %c0_14 = arith.constant 0 : index
    %c0_15 = arith.constant 0 : index
    %8 = vector.load %arg9[%c0_14, %c0_15] : memref<128x1xf32, #tpu.memory_space<vmem>>, vector<128x1xf32>
    %c0_16 = arith.constant 0 : index
    %c0_17 = arith.constant 0 : index
    %9 = vector.load %arg10[%c0_16, %c0_17] : memref<1x1xf32, #tpu.memory_space<vmem>>, vector<1x1xf32>
    %10 = vector.broadcast %2 : vector<128x1xf32> to vector<128x1024xf32>
    %11 = vector.broadcast %1 : vector<1x1024xf32> to vector<128x1024xf32>
    %12 = arith.mulf %10, %11 : vector<128x1024xf32>
    %13 = vector.broadcast %3 : vector<128x1xf32> to vector<128x1024xf32>
    %14 = arith.addf %12, %13 : vector<128x1024xf32>
    %cst = arith.constant 0.000000e+00 : f32
    %15 = vector.broadcast %cst : f32 to vector<128x1024xf32>
    %16 = arith.maximumf %14, %15 : vector<128x1024xf32>
    %17 = arith.truncf %16 : vector<128x1024xf32> to vector<128x1024xbf16>
    %cst_18 = arith.constant dense<0.000000e+00> : vector<128x1024xf32>
    %18 = tpu.matmul %4, %17, %cst_18 {dimension_numbers = #tpu.dot_dimension_numbers<[1], [0], [0], [1], [0, 0, 1, 1], [], []>} : vector<128x128xbf16>, vector<128x1024xbf16>, vector<128x1024xf32> -> vector<128x1024xf32>
    %19 = vector.broadcast %5 : vector<128x1xf32> to vector<128x1024xf32>
    %20 = arith.addf %18, %19 : vector<128x1024xf32>
    %cst_19 = arith.constant 0.000000e+00 : f32
    %21 = vector.broadcast %cst_19 : f32 to vector<128x1024xf32>
    %22 = arith.maximumf %20, %21 : vector<128x1024xf32>
    %23 = arith.truncf %22 : vector<128x1024xf32> to vector<128x1024xbf16>
    %cst_20 = arith.constant dense<0.000000e+00> : vector<128x1024xf32>
    %24 = tpu.matmul %6, %23, %cst_20 {dimension_numbers = #tpu.dot_dimension_numbers<[1], [0], [0], [1], [0, 0, 1, 1], [], []>} : vector<128x128xbf16>, vector<128x1024xbf16>, vector<128x1024xf32> -> vector<128x1024xf32>
    %25 = vector.broadcast %7 : vector<128x1xf32> to vector<128x1024xf32>
    %26 = arith.addf %24, %25 : vector<128x1024xf32>
    %cst_21 = arith.constant 0.000000e+00 : f32
    %27 = vector.broadcast %cst_21 : f32 to vector<128x1024xf32>
    %28 = arith.maximumf %26, %27 : vector<128x1024xf32>
    %29 = vector.broadcast %8 : vector<128x1xf32> to vector<128x1024xf32>
    %30 = arith.mulf %28, %29 : vector<128x1024xf32>
    %cst_22 = arith.constant dense<0.000000e+00> : vector<1024xf32>
    %31 = vector.multi_reduction <add>, %30, %cst_22 [0] : vector<128x1024xf32> to vector<1024xf32>
    %32 = vector.shape_cast %31 : vector<1024xf32> to vector<1x1024xf32>
    %33 = vector.broadcast %9 : vector<1x1xf32> to vector<1x1024xf32>
    %34 = arith.addf %32, %33 : vector<1x1024xf32>
    %c0_23 = arith.constant 0 : index
    %c0_24 = arith.constant 0 : index
    %c0_25 = arith.constant 0 : index
    %35 = vector.load %arg11[%c0_23, %c0_24, %c0_25] : memref<1x1x1024xf32, #tpu.memory_space<vmem>>, vector<1x1x1024xf32>
    %36 = vector.shape_cast %35 : vector<1x1x1024xf32> to vector<1x1024xf32>
    %37 = vector.shape_cast %34 : vector<1x1024xf32> to vector<1x1x1024xf32>
    tpu.vector_store %arg11[%c0_23, %c0_24, %c0_25], %37 {strides = array<i32>} : memref<1x1x1024xf32, #tpu.memory_space<vmem>>, vector<1x1x1024xf32>,
    return
  }
  func.func @transform_0(%arg0: i32, %arg1: memref<1xi32, #tpu.memory_space<smem>>) -> (i32, i32, i32) {
    %c0_i32 = arith.constant 0 : i32
    %c0_i32_0 = arith.constant 0 : i32
    %c0_i32_1 = arith.constant 0 : i32
    return %arg0, %c0_i32, %c0_i32_0 : i32, i32, i32
  }
  func.func @transform_1(%arg0: i32, %arg1: memref<1xi32, #tpu.memory_space<smem>>) -> (i32, i32) {
    %c0_i32 = arith.constant 0 : i32
    %c0_i32_0 = arith.constant 0 : i32
    %c0_i32_1 = arith.constant 0 : i32
    return %c0_i32, %c0_i32_0 : i32, i32
  }
  func.func @transform_2(%arg0: i32, %arg1: memref<1xi32, #tpu.memory_space<smem>>) -> (i32, i32) {
    %c0_i32 = arith.constant 0 : i32
    %c0_i32_0 = arith.constant 0 : i32
    %c0_i32_1 = arith.constant 0 : i32
    return %c0_i32, %c0_i32_0 : i32, i32
  }
  func.func @transform_3(%arg0: i32, %arg1: memref<1xi32, #tpu.memory_space<smem>>) -> (i32, i32) {
    %c0_i32 = arith.constant 0 : i32
    %c0_i32_0 = arith.constant 0 : i32
    %c0_i32_1 = arith.constant 0 : i32
    return %c0_i32, %c0_i32_0 : i32, i32
  }
  func.func @transform_4(%arg0: i32, %arg1: memref<1xi32, #tpu.memory_space<smem>>) -> (i32, i32) {
    %c0_i32 = arith.constant 0 : i32
    %c0_i32_0 = arith.constant 0 : i32
    %c0_i32_1 = arith.constant 0 : i32
    return %c0_i32, %c0_i32_0 : i32, i32
  }
  func.func @transform_5(%arg0: i32, %arg1: memref<1xi32, #tpu.memory_space<smem>>) -> (i32, i32) {
    %c0_i32 = arith.constant 0 : i32
    %c0_i32_0 = arith.constant 0 : i32
    %c0_i32_1 = arith.constant 0 : i32
    return %c0_i32, %c0_i32_0 : i32, i32
  }
  func.func @transform_6(%arg0: i32, %arg1: memref<1xi32, #tpu.memory_space<smem>>) -> (i32, i32) {
    %c0_i32 = arith.constant 0 : i32
    %c0_i32_0 = arith.constant 0 : i32
    %c0_i32_1 = arith.constant 0 : i32
    return %c0_i32, %c0_i32_0 : i32, i32
  }
  func.func @transform_7(%arg0: i32, %arg1: memref<1xi32, #tpu.memory_space<smem>>) -> (i32, i32) {
    %c0_i32 = arith.constant 0 : i32
    %c0_i32_0 = arith.constant 0 : i32
    %c0_i32_1 = arith.constant 0 : i32
    return %c0_i32, %c0_i32_0 : i32, i32
  }
  func.func @transform_8(%arg0: i32, %arg1: memref<1xi32, #tpu.memory_space<smem>>) -> (i32, i32) {
    %c0_i32 = arith.constant 0 : i32
    %c0_i32_0 = arith.constant 0 : i32
    %c0_i32_1 = arith.constant 0 : i32
    return %c0_i32, %c0_i32_0 : i32, i32
  }
  func.func @transform_9(%arg0: i32, %arg1: memref<1xi32, #tpu.memory_space<smem>>) -> (i32, i32, i32) {
    %c0_i32 = arith.constant 0 : i32
    %c0_i32_0 = arith.constant 0 : i32
    %c0_i32_1 = arith.constant 0 : i32
    return %arg0, %c0_i32, %c0_i32_0 : i32, i32, i32
  }
}

</mosaic_0001>

<bundles_post_ra>
// kernel: tpu_custom_call.1
= control target key start
LH: loop header
LB: loop body
LE: loop exit
PB: predicated region body
PF: predicated region fallthrough
CT: control target
= control target key end

     0   :  { %s4336_s0 = inlined_call_operand.<no memory space> [shape: s32[1], index: 0, kind: input, shape index: {}]   ;;  %s4337_s1 = inlined_call_operand.vmem [shape: f32[1,1,1024], index: 1, kind: input, shape index: {}]   ;;  %s4338_s2 = inlined_call_operand.vmem [shape: f32[128,1], index: 2, kind: input, shape index: {}]   ;;  %s4339_s3 = inlined_call_operand.vmem [shape: f32[128,1], index: 3, kind: input, shape index: {}]   ;;  %s4340_s4 = inlined_call_operand.vmem [shape: bf16[128,128], index: 4, kind: input, shape index: {}]   ;;  %s4341_s5 = inlined_call_operand.vmem [shape: f32[128,1], index: 5, kind: input, shape index: {}]   ;;  %s4342_s6 = inlined_call_operand.vmem [shape: bf16[128,128], index: 6, kind: input, shape index: {}]   ;;  %s4343_s7 = inlined_call_operand.vmem [shape: f32[128,1], index: 7, kind: input, shape index: {}]   ;;  %s4344_s8 = inlined_call_operand.vmem [shape: f32[128,1], index: 8, kind: input, shape index: {}]   ;;  %s4345_s9 = inlined_call_operand.<no memory space> [shape: f32[1,1], index: 9, kind: input, shape index: {}]   ;;  %s4346_s10 = inlined_call_operand.hbm [shape: f32[1,1,1024], index: 10, kind: output, shape index: {}]  }
   0x1   :  { %v16_v0 = vstv %s4345_s9 }
   0x2   :  { %17 = vst [vmem:[#allocation4] sm:$0x1] %v16_v0 }
   0x3   :  { %v55_v1 = vld [vmem:[%s4339_s3] sm:$0xff]  ;;  %v2808_v3 = vmov 0   ;;  %v56_v4 = vld [vmem:[%s4339_s3 + $0x8] sm:$0xff]  ;;  %v42_v6 = vld [vmem:[%s4338_s2 + $0x18] sm:$0xff] }
   0x4   :  { %v39_v2 = vld [vmem:[%s4338_s2] sm:$0xff]  ;;  %2767 = vset.pattern.permute.xlu1 %v2808_v3  ;;  %2766 = vset.pattern.permute.xlu0 %v2808_v3  ;;  %v40_v5 = vld [vmem:[%s4338_s2 + $0x8] sm:$0xff]  ;;  %v41_v7 = vld [vmem:[%s4338_s2 + $0x10] sm:$0xff] }
   0x5   :  { %403 = vperm.xlu1 %2767, %v55_v1   ;;  %154 = vperm.xlu0 %2766, %v39_v2   ;;  %v58_v8 = vld [vmem:[%s4339_s3 + $0x18] sm:$0xff]  ;;  %v57_v9 = vld [vmem:[%s4339_s3 + $0x10] sm:$0xff]  ;;  %v44_v10 = vld [vmem:[%s4338_s2 + $0x28] sm:$0xff] }
   0x6   :  { %961 = vmatprep.mubr.bf16.mxu0 %v2808_v3  ;;  %1074 = vmatprep.mubr.bf16.mxu1 %v2808_v3  ;;  %v43_v11 = vld [vmem:[%s4338_s2 + $0x20] sm:$0xff]  ;;  %v60_v12 = vld [vmem:[%s4339_s3 + $0x28] sm:$0xff]  ;;  %v46_v14 = vld [vmem:[%s4338_s2 + $0x38] sm:$0xff] }
   0x7   :  { %v59_v13 = vld [vmem:[%s4339_s3 + $0x20] sm:$0xff]  ;;  %v45_v15 = vld [vmem:[%s4338_s2 + $0x30] sm:$0xff]  ;;  %v62_v16 = vld [vmem:[%s4339_s3 + $0x38] sm:$0xff] }
   0x8   :  { %v61_v17 = vld [vmem:[%s4339_s3 + $0x30] sm:$0xff]  ;;  %v48_v18 = vld [vmem:[%s4338_s2 + $0x48] sm:$0xff]  ;;  %v47_v19 = vld [vmem:[%s4338_s2 + $0x40] sm:$0xff] }
   0x9   :  { %408 = vperm.xlu1 %2767, %v56_v4   ;;  %159 = vperm.xlu0 %2766, %v40_v5   ;;  %v64_v20 = vld [vmem:[%s4339_s3 + $0x48] sm:$0xff]  ;;  %v63_v21 = vld [vmem:[%s4339_s3 + $0x40] sm:$0xff] }
   0xd   :  { %169 = vperm.xlu1 %2767, %v42_v6   ;;  %164 = vperm.xlu0 %2766, %v41_v7  }
  0x11   :  { %418 = vperm.xlu1 %2767, %v58_v8   ;;  %413 = vperm.xlu0 %2766, %v57_v9  }
  0x15   :  { %179 = vperm.xlu1 %2767, %v44_v10   ;;  %174 = vperm.xlu0 %2766, %v43_v11  }
  0x19   :  { %428 = vperm.xlu1 %2767, %v60_v12   ;;  %423 = vperm.xlu0 %2766, %v59_v13  }
  0x1d   :  { %189 = vperm.xlu1 %2767, %v46_v14   ;;  %184 = vperm.xlu0 %2766, %v45_v15  }
  0x21   :  { %438 = vperm.xlu1 %2767, %v62_v16   ;;  %433 = vperm.xlu0 %2766, %v61_v17  }
  0x25   :  { %199 = vperm.xlu1 %2767, %v48_v18   ;;  %194 = vperm.xlu0 %2766, %v47_v19  }
  0x29   :  { %448 = vperm.xlu1 %2767, %v64_v20   ;;  %443 = vperm.xlu0 %2766, %v63_v21  }
  0x2a   :  { %18 = vsyncpa [#allocation6], 0  ;;  %v50_v22 = vld [vmem:[%s4338_s2 + $0x58] sm:$0xff]  ;;  %v49_v23 = vld [vmem:[%s4338_s2 + $0x50] sm:$0xff]  ;;  %v233_v60 = vlaneseq }
  0x2b   :  { %v66_v24 = vld [vmem:[%s4339_s3 + $0x58] sm:$0xff]  ;;  %v65_v25 = vld [vmem:[%s4339_s3 + $0x50] sm:$0xff]  ;;  %v52_v26 = vld [vmem:[%s4338_s2 + $0x68] sm:$0xff] }
  0x2c   :  { %v51_v27 = vld [vmem:[%s4338_s2 + $0x60] sm:$0xff]  ;;  %v68_v28 = vld [vmem:[%s4339_s3 + $0x68] sm:$0xff]  ;;  %v54_v30 = vld [vmem:[%s4338_s2 + $0x78] sm:$0xff]  ;;  %v3053_v63 = vshrl.u32 %v233_v60, 7 }
  0x2d   :  { %209 = vperm.xlu1 %2767, %v50_v22   ;;  %204 = vperm.xlu0 %2766, %v49_v23   ;;  %v67_v29 = vld [vmem:[%s4339_s3 + $0x60] sm:$0xff]  ;;  %v53_v31 = vld [vmem:[%s4338_s2 + $0x70] sm:$0xff]  ;;  %v70_v32 = vld [vmem:[%s4339_s3 + $0x78] sm:$0xff] }
  0x2e   :  { %v69_v33 = vld [vmem:[%s4339_s3 + $0x70] sm:$0xff]  ;;  %v88_v34 = vld [vmem:[%s4341_s5 + $0x8] sm:$0xff]  ;;  %v87_v35 = vld [vmem:[%s4341_s5] sm:$0xff]  ;;  %4350 = vst [vmem:[#allocation8_spill] sm:$0xff] %v3053_v63  ;;  %v239_v2 = vsub.s32 1, %v3053_v63  ;;  %v247_v4 = vsub.s32 3, %v3053_v63 }
  0x2f   :  { %v90_v36 = vld [vmem:[%s4341_s5 + $0x18] sm:$0xff]  ;;  %v89_v37 = vld [vmem:[%s4341_s5 + $0x10] sm:$0xff]  ;;  %v92_v38 = vld [vmem:[%s4341_s5 + $0x28] sm:$0xff]  ;;  %v4347_v5 = vsub.s32 0, %v3053_v63  ;;  %v243_v6 = vsub.s32 2, %v3053_v63  ;;  %v255_v10 = vsub.s32 5, %v3053_v63 }
  0x30   :  { %v91_v39 = vld [vmem:[%s4341_s5 + $0x20] sm:$0xff]  ;;  %v94_v40 = vld [vmem:[%s4341_s5 + $0x38] sm:$0xff]  ;;  %v93_v41 = vld [vmem:[%s4341_s5 + $0x30] sm:$0xff]  ;;  %v263_v11 = vsub.s32 7, %v3053_v63  ;;  %v251_v12 = vsub.s32 4, %v3053_v63  ;;  %v259_v13 = vsub.s32 6, %v3053_v63 }
  0x31   :  { %458 = vperm.xlu1 %2767, %v66_v24   ;;  %453 = vperm.xlu0 %2766, %v65_v25   ;;  %v96_v42 = vld [vmem:[%s4341_s5 + $0x48] sm:$0xff]  ;;  %v95_v43 = vld [vmem:[%s4341_s5 + $0x40] sm:$0xff]  ;;  %v98_v44 = vld [vmem:[%s4341_s5 + $0x58] sm:$0xff] }
  0x32   :  { %v97_v45 = vld [vmem:[%s4341_s5 + $0x50] sm:$0xff]  ;;  %v100_v46 = vld [vmem:[%s4341_s5 + $0x68] sm:$0xff]  ;;  %v99_v47 = vld [vmem:[%s4341_s5 + $0x60] sm:$0xff] }
  0x33   :  { %v102_v48 = vld [vmem:[%s4341_s5 + $0x78] sm:$0xff]  ;;  %v101_v49 = vld [vmem:[%s4341_s5 + $0x70] sm:$0xff]  ;;  %v120_v50 = vld [vmem:[%s4343_s7 + $0x8] sm:$0xff] }
  0x34   :  { %v119_v51 = vld [vmem:[%s4343_s7] sm:$0xff]  ;;  %v122_v52 = vld [vmem:[%s4343_s7 + $0x18] sm:$0xff]  ;;  %v121_v53 = vld [vmem:[%s4343_s7 + $0x10] sm:$0xff] }
  0x35   :  { %219 = vperm.xlu1 %2767, %v52_v26   ;;  %214 = vperm.xlu0 %2766, %v51_v27   ;;  %v136_v54 = vld [vmem:[%s4344_s8 + $0x8] sm:$0xff]  ;;  %v135_v55 = vld [vmem:[%s4344_s8] sm:$0xff]  ;;  %v137_v56 = vld [vmem:[%s4344_s8 + $0x10] sm:$0xff] }
  0x36   :  { %v123_v57 = vld [vmem:[%s4343_s7 + $0x20] sm:$0xff]  ;;  %v138_v58 = vld [vmem:[%s4344_s8 + $0x18] sm:$0xff]  ;;  %v124_v59 = vld [vmem:[%s4343_s7 + $0x28] sm:$0xff] }
  0x37   :  { %v139_v61 = vld [vmem:[%s4344_s8 + $0x20] sm:$0xff]  ;;  %v125_v62 = vld [vmem:[%s4343_s7 + $0x30] sm:$0xff]  ;;  %v140_v0 = vld [vmem:[%s4344_s8 + $0x28] sm:$0xff] }
  0x38   :  { %v126_v1 = vld [vmem:[%s4343_s7 + $0x38] sm:$0xff]  ;;  %v141_v7 = vld [vmem:[%s4344_s8 + $0x30] sm:$0xff]  ;;  %v127_v8 = vld [vmem:[%s4343_s7 + $0x40] sm:$0xff] }
  0x39   :  { %468 = vperm.xlu1 %2767, %v68_v28   ;;  %463 = vperm.xlu0 %2766, %v67_v29   ;;  %v38_v9 = vld [vmem:[%s4337_s1] sm:$0xff]  ;;  %v142_v17 = vld [vmem:[%s4344_s8 + $0x38] sm:$0xff]  ;;  %v128_v18 = vld [vmem:[%s4343_s7 + $0x48] sm:$0xff] }
  0x3a   :  { %v3078_v14 = vrot.slane %v38_v9, %v239_v2  ;;  %v3080_v15 = vrot.slane %v38_v9, %v247_v4  ;;  %v3084_v16 = vrot.slane %v38_v9, %v4347_v5  ;;  %v3092_v19 = vrot.slane %v38_v9, %v243_v6  ;;  %v143_v29 = vld [vmem:[%s4344_s8 + $0x40] sm:$0xff]  ;;  %v145_v6 = vld [vmem:[%s4344_s8 + $0x50] sm:$0xff] }
  0x3b   :  { %v3094_v20 = vrot.slane %v38_v9, %v255_v10  ;;  %v3096_v21 = vrot.slane %v38_v9, %v263_v11  ;;  %v3098_v22 = vrot.slane %v38_v9, %v251_v12  ;;  %v3102_v25 = vrot.slane %v38_v9, %v259_v13 }
  0x3d   :  { %229 = vperm.xlu1 %2767, %v54_v30   ;;  %224 = vperm.xlu0 %2766, %v53_v31   ;;  %v129_v30 = vld [vmem:[%s4343_s7 + $0x50] sm:$0xff] }
  0x41   :  { %478 = vperm.xlu1 %2767, %v70_v32   ;;  %473 = vperm.xlu0 %2766, %v69_v33  }
  0x45   :  { %808 = vperm.xlu1 %2767, %v88_v34   ;;  %803 = vperm.xlu0 %2766, %v87_v35  }
  0x49   :  { %818 = vperm.xlu1 %2767, %v90_v36   ;;  %813 = vperm.xlu0 %2766, %v89_v37  }
  0x4d   :  { %828 = vperm.xlu1 %2767, %v92_v38   ;;  %823 = vperm.xlu0 %2766, %v91_v39  }
  0x51   :  { %838 = vperm.xlu1 %2767, %v94_v40   ;;  %833 = vperm.xlu0 %2766, %v93_v41  }
  0x55   :  { %848 = vperm.xlu1 %2767, %v96_v42   ;;  %843 = vperm.xlu0 %2766, %v95_v43  }
  0x59   :  { %858 = vperm.xlu1 %2767, %v98_v44   ;;  %853 = vperm.xlu0 %2766, %v97_v45  }
  0x5d   :  { %868 = vperm.xlu1 %2767, %v100_v46   ;;  %863 = vperm.xlu0 %2766, %v99_v47   ;;  %v144_v47 = vld [vmem:[%s4344_s8 + $0x48] sm:$0xff] }
  0x61   :  { %878 = vperm.xlu1 %2767, %v102_v48   ;;  %873 = vperm.xlu0 %2766, %v101_v49   ;;  %v130_v48 = vld [vmem:[%s4343_s7 + $0x58] sm:$0xff] }
  0x65   :  { %1580 = vperm.xlu1 %2767, %v120_v50   ;;  %1575 = vperm.xlu0 %2766, %v119_v51  }
  0x69   :  { %1590 = vperm.xlu1 %2767, %v122_v52   ;;  %1585 = vperm.xlu0 %2766, %v121_v53  }
  0x6d   :  { %2288 = vperm.xlu1 %2767, %v136_v54   ;;  %2283 = vperm.xlu0 %2766, %v135_v55  }
  0x71   :  { %2293 = vperm.xlu1 %2767, %v137_v56   ;;  %1595 = vperm.xlu0 %2766, %v123_v57  }
  0x75   :  { %2298 = vperm.xlu1 %2767, %v138_v58   ;;  %1600 = vperm.xlu0 %2766, %v124_v59  }
  0x79   :  { %2303 = vperm.xlu1 %2767, %v139_v61   ;;  %1605 = vperm.xlu0 %2766, %v125_v62  }
  0x7d   :  { %2308 = vperm.xlu1 %2767, %v140_v0   ;;  %1610 = vperm.xlu0 %2766, %v126_v1  }
  0x81   :  { %2313 = vperm.xlu1 %2767, %v141_v7   ;;  %1615 = vperm.xlu0 %2766, %v127_v8   ;;  %v131_v7 = vld [vmem:[%s4343_s7 + $0x60] sm:$0xff] }
  0x84   :  { %v3100_v23 = vpop.permute.xlu1 %403  ;;  %v155_v24 = vpop.permute.xlu0 %154 }
  0x85   :  { %2318 = vperm.xlu1 %2767, %v142_v17   ;;  %1620 = vperm.xlu0 %2766, %v128_v18   ;;  %v274_v26 = vmul.f32 %v3078_v14, %v155_v24  ;;  %v276_v27 = vmul.f32 %v3080_v15, %v155_v24  ;;  %v273_v28 = vmul.f32 %v3084_v16, %v155_v24 }
  0x86   :  { %v275_v31 = vmul.f32 %v3092_v19, %v155_v24  ;;  %v278_v32 = vmul.f32 %v3094_v20, %v155_v24  ;;  %v280_v33 = vmul.f32 %v3096_v21, %v155_v24  ;;  %v277_v34 = vmul.f32 %v3098_v22, %v155_v24 }
  0x87   :  { %v482_v35 = vadd.f32 %v3100_v23, %v274_v26  ;;  %v484_v36 = vadd.f32 %v3100_v23, %v276_v27  ;;  %v481_v37 = vadd.f32 %v3100_v23, %v273_v28  ;;  %v3132_v43 = vmul.f32 %v3102_v25, %v155_v24 }
  0x88   :  { %v3120_v38 = vpop.permute.xlu1 %408  ;;  %v3122_v39 = vpop.permute.xlu0 %159  ;;  %v483_v40 = vadd.f32 %v3100_v23, %v275_v31  ;;  %v3126_v41 = vadd.f32 %v3100_v23, %v278_v32  ;;  %v3129_v42 = vadd.f32 %v3100_v23, %v280_v33  ;;  %v3139_v46 = vadd.f32 %v3100_v23, %v277_v34  ;;  %v146_v34 = vld [vmem:[%s4344_s8 + $0x58] sm:$0xff] }
  0x89   :  { %2323 = vperm.xlu1 %2767, %v143_v29   ;;  %1625 = vperm.xlu0 %2766, %v129_v30   ;;  %v282_v44 = vmul.f32 %v3078_v14, %v3122_v39  ;;  %v284_v45 = vmul.f32 %v3080_v15, %v3122_v39  ;;  %v610_v49 = vmax.f32 %v482_v35, 0.0  ;;  %v612_v50 = vmax.f32 %v484_v36, 0.0  ;;  %v132_v35 = vld [vmem:[%s4343_s7 + $0x68] sm:$0xff] }
  0x8a   :  { %v281_v51 = vmul.f32 %v3084_v16, %v3122_v39  ;;  %v283_v52 = vmul.f32 %v3092_v19, %v3122_v39  ;;  %v609_v55 = vmax.f32 %v481_v37, 0.0  ;;  %v611_v56 = vmax.f32 %v483_v40, 0.0 }
  0x8b   :  { %v490_v53 = vadd.f32 %v3120_v38, %v282_v44  ;;  %v492_v54 = vadd.f32 %v3120_v38, %v284_v45  ;;  %v3161_v61 = vmul.f32 %v3094_v20, %v3122_v39  ;;  %v3165_v62 = vmul.f32 %v3096_v21, %v3122_v39 }
  0x8c   :  { %v3153_v57 = vpop.permute.xlu1 %169  ;;  %v3155_v58 = vpop.permute.xlu0 %164  ;;  %v489_v59 = vadd.f32 %v3120_v38, %v281_v51  ;;  %v491_v60 = vadd.f32 %v3120_v38, %v283_v52 }
  0x8d   :  { %2328 = vperm.xlu1 %2767, %v144_v47   ;;  %1630 = vperm.xlu0 %2766, %v130_v48   ;;  %v618_v0 = vmax.f32 %v490_v53, 0.0  ;;  %v620_v1 = vmax.f32 %v492_v54, 0.0  ;;  %v290_v2 = vmul.f32 %v3078_v14, %v3155_v58  ;;  %v298_v4 = vmul.f32 %v3078_v14, %v3153_v57 }
  0x8e   :  { %v617_v8 = vmax.f32 %v489_v59, 0.0  ;;  %v619_v9 = vmax.f32 %v491_v60, 0.0  ;;  %v292_v10 = vmul.f32 %v3080_v15, %v3155_v58  ;;  %v300_v11 = vmul.f32 %v3080_v15, %v3153_v57 }
  0x8f   :  { %v738_v12 = vpack.c.bf16 %v618_v0, %v610_v49  ;;  %v740_v13 = vpack.c.bf16 %v620_v1, %v612_v50  ;;  %v289_v17 = vmul.f32 %v3084_v16, %v3155_v58  ;;  %v297_v18 = vmul.f32 %v3084_v16, %v3153_v57 }
  0x90   :  { %v3185_v24 = vpop.permute.xlu1 %418  ;;  %v3187_v26 = vpop.permute.xlu0 %413  ;;  %v737_v27 = vpack.c.bf16 %v617_v8, %v609_v55  ;;  %v739_v28 = vpack.c.bf16 %v619_v9, %v611_v56  ;;  %v291_v29 = vmul.f32 %v3092_v19, %v3155_v58  ;;  %v299_v30 = vmul.f32 %v3092_v19, %v3153_v57 }
  0x91   :  { %2333 = vperm.xlu1 %2767, %v145_v6   ;;  %1635 = vperm.xlu0 %2766, %v131_v7   ;;  %v498_v31 = vadd.f32 %v3187_v26, %v290_v2  ;;  %v506_v32 = vadd.f32 %v3185_v24, %v298_v4  ;;  %v500_v33 = vadd.f32 %v3187_v26, %v292_v10  ;;  %v147_v4 = vld [vmem:[%s4344_s8 + $0x60] sm:$0xff]  ;;  %v133_v6 = vld [vmem:[%s4343_s7 + $0x70] sm:$0xff] }
  0x92   :  { %929 = vmatprep.subr.bf16.mxu0 %v738_v12  ;;  %1042 = vmatprep.subr.bf16.mxu1 %v740_v13  ;;  %v508_v36 = vadd.f32 %v3185_v24, %v300_v11  ;;  %v497_v37 = vadd.f32 %v3187_v26, %v289_v17  ;;  %v505_v40 = vadd.f32 %v3185_v24, %v297_v18 }
  0x93   :  { %930 = vmatpush1.bf16.msra.mxu0 %v737_v27  ;;  %1043 = vmatpush1.bf16.msra.mxu1 %v739_v28  ;;  %v626_v44 = vmax.f32 %v498_v31, 0.0  ;;  %v634_v45 = vmax.f32 %v506_v32, 0.0  ;;  %v628_v47 = vmax.f32 %v500_v33, 0.0  ;;  %v499_v48 = vadd.f32 %v3187_v26, %v291_v29  ;;  %v148_v32 = vld [vmem:[%s4344_s8 + $0x68] sm:$0xff] }
  0x94   :  { %v3206_v49 = vpop.permute.xlu1 %179  ;;  %v3208_v50 = vpop.permute.xlu0 %174  ;;  %v636_v51 = vmax.f32 %v508_v36, 0.0  ;;  %v625_v52 = vmax.f32 %v497_v37, 0.0  ;;  %v633_v53 = vmax.f32 %v505_v40, 0.0  ;;  %v507_v54 = vadd.f32 %v3185_v24, %v299_v30 }
  0x95   :  { %2338 = vperm.xlu1 %2767, %v146_v34   ;;  %1640 = vperm.xlu0 %2766, %v132_v35   ;;  %v746_v55 = vpack.c.bf16 %v634_v45, %v626_v44  ;;  %v627_v56 = vmax.f32 %v499_v48, 0.0  ;;  %v306_v59 = vmul.f32 %v3078_v14, %v3208_v50  ;;  %v314_v60 = vmul.f32 %v3078_v14, %v3206_v49 }
  0x96   :  { %v748_v0 = vpack.c.bf16 %v636_v51, %v628_v47  ;;  %v745_v1 = vpack.c.bf16 %v633_v53, %v625_v52  ;;  %v635_v2 = vmax.f32 %v507_v54, 0.0  ;;  %v308_v7 = vmul.f32 %v3080_v15, %v3208_v50 }
  0x97   :  { %931 = vmatprep.subr.bf16.mxu0 %v746_v55  ;;  %v316_v8 = vmul.f32 %v3080_v15, %v3206_v49  ;;  %v305_v9 = vmul.f32 %v3084_v16, %v3208_v50  ;;  %v313_v10 = vmul.f32 %v3084_v16, %v3206_v49  ;;  %v307_v11 = vmul.f32 %v3092_v19, %v3208_v50 }
  0x98   :  { %1044 = vmatprep.subr.bf16.mxu1 %v748_v0  ;;  %v3231_v12 = vpop.permute.xlu1 %428  ;;  %v3233_v13 = vpop.permute.xlu0 %423  ;;  %932 = vmatpush1.bf16.msra.mxu0 %v745_v1  ;;  %v747_v17 = vpack.c.bf16 %v635_v2, %v627_v56  ;;  %v315_v18 = vmul.f32 %v3092_v19, %v3206_v49  ;;  %v3239_v27 = vadd.f32 %v3120_v38, %v3161_v61  ;;  %v614_v31 = vmax.f32 %v3126_v41, 0.0  ;;  %v134_v61 = vld [vmem:[%s4343_s7 + $0x78] sm:$0xff] }
  0x99   :  { %2343 = vperm.xlu1 %2767, %v147_v4   ;;  %1645 = vperm.xlu0 %2766, %v133_v6   ;;  %v514_v28 = vadd.f32 %v3233_v13, %v306_v59  ;;  %v522_v29 = vadd.f32 %v3231_v12, %v314_v60  ;;  %v516_v30 = vadd.f32 %v3233_v13, %v308_v7  ;;  %v150_v2 = vld [vmem:[%s4344_s8 + $0x78] sm:$0xff] }
  0x9a   :  { %1045 = vmatpush1.bf16.msra.mxu1 %v747_v17  ;;  %v524_v33 = vadd.f32 %v3231_v12, %v316_v8  ;;  %v513_v34 = vadd.f32 %v3233_v13, %v305_v9  ;;  %v521_v35 = vadd.f32 %v3231_v12, %v313_v10  ;;  %v515_v36 = vadd.f32 %v3233_v13, %v307_v11  ;;  %v149_v8 = vld [vmem:[%s4344_s8 + $0x70] sm:$0xff] }
  0x9b   :  { %v642_v37 = vmax.f32 %v514_v28, 0.0  ;;  %v650_v40 = vmax.f32 %v522_v29, 0.0  ;;  %v644_v44 = vmax.f32 %v516_v30, 0.0  ;;  %v523_v45 = vadd.f32 %v3231_v12, %v315_v18 }
  0x9c   :  { %v3256_v47 = vpop.permute.xlu1 %189  ;;  %v3258_v48 = vpop.permute.xlu0 %184  ;;  %v652_v51 = vmax.f32 %v524_v33, 0.0  ;;  %v641_v52 = vmax.f32 %v513_v34, 0.0  ;;  %v649_v53 = vmax.f32 %v521_v35, 0.0  ;;  %v643_v54 = vmax.f32 %v515_v36, 0.0 }
  0x9d   :  { %2348 = vperm.xlu1 %2767, %v148_v32   ;;  %1650 = vperm.xlu0 %2766, %v134_v61   ;;  %v754_v55 = vpack.c.bf16 %v650_v40, %v642_v37  ;;  %v651_v56 = vmax.f32 %v523_v45, 0.0  ;;  %v322_v59 = vmul.f32 %v3078_v14, %v3258_v48  ;;  %v330_v60 = vmul.f32 %v3078_v14, %v3256_v47 }
  0x9e   :  { %v756_v0 = vpack.c.bf16 %v652_v51, %v644_v44  ;;  %v753_v1 = vpack.c.bf16 %v649_v53, %v641_v52  ;;  %v324_v4 = vmul.f32 %v3080_v15, %v3258_v48  ;;  %v332_v6 = vmul.f32 %v3080_v15, %v3256_v47  ;;  %v151_v44 = vld [vmem:[#allocation4] sm:$0x1] }
  0x9f   :  { %933 = vmatprep.subr.bf16.mxu0 %v754_v55  ;;  %v755_v7 = vpack.c.bf16 %v651_v56, %v643_v54  ;;  %v321_v9 = vmul.f32 %v3084_v16, %v3258_v48  ;;  %v329_v10 = vmul.f32 %v3084_v16, %v3256_v47  ;;  %v323_v11 = vmul.f32 %v3092_v19, %v3258_v48 }
  0xa0   :  { %1046 = vmatprep.subr.bf16.mxu1 %v756_v0  ;;  %v3280_v17 = vpop.permute.xlu1 %438  ;;  %v3282_v18 = vpop.permute.xlu0 %433  ;;  %934 = vmatpush1.bf16.msra.mxu0 %v753_v1  ;;  %v331_v28 = vmul.f32 %v3092_v19, %v3256_v47  ;;  %v3288_v29 = vadd.f32 %v3120_v38, %v3165_v62  ;;  %v616_v30 = vmax.f32 %v3129_v42, 0.0  ;;  %v285_v32 = vmul.f32 %v3098_v22, %v3122_v39 }
  0xa1   :  { %1047 = vmatpush1.bf16.msra.mxu1 %v755_v7  ;;  %2358 = vperm.xlu1 %2767, %v150_v2   ;;  %v530_v61 = vadd.f32 %v3282_v18, %v322_v59  ;;  %v538_v33 = vadd.f32 %v3280_v17, %v330_v60  ;;  %v532_v34 = vadd.f32 %v3282_v18, %v324_v4  ;;  %v622_v35 = vmax.f32 %v3239_v27, 0.0 }
  0xa2   :  { %2353 = vperm.xlu0 %2766, %v149_v8   ;;  %v540_v36 = vadd.f32 %v3280_v17, %v332_v6  ;;  %v529_v62 = vadd.f32 %v3282_v18, %v321_v9  ;;  %v537_v37 = vadd.f32 %v3280_v17, %v329_v10  ;;  %v531_v40 = vadd.f32 %v3282_v18, %v323_v11 }
  0xa3   :  { %v658_v45 = vmax.f32 %v530_v61, 0.0  ;;  %v666_v51 = vmax.f32 %v538_v33, 0.0  ;;  %v660_v52 = vmax.f32 %v532_v34, 0.0  ;;  %v539_v53 = vadd.f32 %v3280_v17, %v331_v28 }
  0xa4   :  { %v3302_v54 = vpop.permute.xlu1 %199  ;;  %v3304_v55 = vpop.permute.xlu0 %194  ;;  %v668_v27 = vmax.f32 %v540_v36, 0.0  ;;  %v657_v56 = vmax.f32 %v529_v62, 0.0  ;;  %v665_v59 = vmax.f32 %v537_v37, 0.0  ;;  %v659_v60 = vmax.f32 %v531_v40, 0.0 }
  0xa5   :  { %v762_v0 = vpack.c.bf16 %v666_v51, %v658_v45  ;;  %v667_v1 = vmax.f32 %v539_v53, 0.0  ;;  %v338_v2 = vmul.f32 %v3078_v14, %v3304_v55  ;;  %v346_v4 = vmul.f32 %v3078_v14, %v3302_v54 }
  0xa6   :  { %2659 = vperm.xlu0 %2766, %v151_v44   ;;  %v764_v6 = vpack.c.bf16 %v668_v27, %v660_v52  ;;  %v761_v7 = vpack.c.bf16 %v665_v59, %v657_v56  ;;  %v340_v8 = vmul.f32 %v3080_v15, %v3304_v55  ;;  %v348_v9 = vmul.f32 %v3080_v15, %v3302_v54 }
  0xa7   :  { %935 = vmatprep.subr.bf16.mxu0 %v762_v0  ;;  %v763_v10 = vpack.c.bf16 %v667_v1, %v659_v60  ;;  %v337_v11 = vmul.f32 %v3084_v16, %v3304_v55  ;;  %v345_v28 = vmul.f32 %v3084_v16, %v3302_v54  ;;  %v339_v61 = vmul.f32 %v3092_v19, %v3304_v55 }
  0xa8   :  { %1048 = vmatprep.subr.bf16.mxu1 %v764_v6  ;;  %v3320_v33 = vpop.permute.xlu1 %448  ;;  %v3322_v34 = vpop.permute.xlu0 %443  ;;  %936 = vmatpush1.bf16.msra.mxu0 %v761_v7  ;;  %v347_v36 = vmul.f32 %v3092_v19, %v3302_v54  ;;  %v3328_v62 = vpack.c.bf16 %v622_v35, %v614_v31  ;;  %v624_v37 = vmax.f32 %v3288_v29, 0.0  ;;  %v3332_v40 = vadd.f32 %v3120_v38, %v285_v32 }
  0xa9   :  { %1049 = vmatpush1.bf16.msra.mxu1 %v763_v10  ;;  %v546_v44 = vadd.f32 %v3322_v34, %v338_v2  ;;  %v554_v45 = vadd.f32 %v3320_v33, %v346_v4  ;;  %v548_v51 = vadd.f32 %v3322_v34, %v340_v8  ;;  %v556_v52 = vadd.f32 %v3320_v33, %v348_v9 }
  0xaa   :  { %v545_v53 = vadd.f32 %v3322_v34, %v337_v11  ;;  %v553_v41 = vadd.f32 %v3320_v33, %v345_v28  ;;  %v547_v31 = vadd.f32 %v3322_v34, %v339_v61  ;;  %v555_v29 = vadd.f32 %v3320_v33, %v347_v36 }
  0xab   :  { %v674_v35 = vmax.f32 %v546_v44, 0.0  ;;  %v682_v32 = vmax.f32 %v554_v45, 0.0  ;;  %v676_v27 = vmax.f32 %v548_v51, 0.0  ;;  %v684_v56 = vmax.f32 %v556_v52, 0.0 }
  0xac   :  { %v3342_v59 = vpop.permute.xlu1 %209  ;;  %v3344_v60 = vpop.permute.xlu0 %204  ;;  %v673_v0 = vmax.f32 %v545_v53, 0.0  ;;  %v681_v1 = vmax.f32 %v553_v41, 0.0  ;;  %v675_v2 = vmax.f32 %v547_v31, 0.0  ;;  %v683_v4 = vmax.f32 %v555_v29, 0.0 }
  0xad   :  { %v770_v6 = vpack.c.bf16 %v682_v32, %v674_v35  ;;  %v772_v7 = vpack.c.bf16 %v684_v56, %v676_v27  ;;  %v354_v8 = vmul.f32 %v3078_v14, %v3344_v60  ;;  %v362_v9 = vmul.f32 %v3078_v14, %v3342_v59 }
  0xae   :  { %v769_v10 = vpack.c.bf16 %v681_v1, %v673_v0  ;;  %v771_v11 = vpack.c.bf16 %v683_v4, %v675_v2  ;;  %v356_v28 = vmul.f32 %v3080_v15, %v3344_v60  ;;  %v364_v61 = vmul.f32 %v3080_v15, %v3342_v59 }
  0xaf   :  { %937 = vmatprep.subr.bf16.mxu0 %v770_v6  ;;  %1050 = vmatprep.subr.bf16.mxu1 %v772_v7  ;;  %v353_v36 = vmul.f32 %v3084_v16, %v3344_v60  ;;  %v361_v44 = vmul.f32 %v3084_v16, %v3342_v59  ;;  %v355_v45 = vmul.f32 %v3092_v19, %v3344_v60  ;;  %v613_v51 = vmax.f32 %v3139_v46, 0.0 }
  0xb0   :  { %v3361_v52 = vpop.permute.xlu1 %458  ;;  %v3363_v53 = vpop.permute.xlu0 %453  ;;  %938 = vmatpush1.bf16.msra.mxu0 %v769_v10  ;;  %1051 = vmatpush1.bf16.msra.mxu1 %v771_v11  ;;  %v363_v41 = vmul.f32 %v3092_v19, %v3342_v59  ;;  %v3369_v31 = vpack.c.bf16 %v624_v37, %v616_v30  ;;  %v621_v29 = vmax.f32 %v3332_v40, 0.0  ;;  %v3374_v35 = vmul.f32 %v3102_v25, %v3122_v39 }
  0xb1   :  { %v562_v46 = vadd.f32 %v3363_v53, %v354_v8  ;;  %v570_v32 = vadd.f32 %v3361_v52, %v362_v9  ;;  %v564_v27 = vadd.f32 %v3363_v53, %v356_v28  ;;  %v572_v56 = vadd.f32 %v3361_v52, %v364_v61 }
  0xb2   :  { %v561_v0 = vadd.f32 %v3363_v53, %v353_v36  ;;  %v569_v42 = vadd.f32 %v3361_v52, %v361_v44  ;;  %v563_v30 = vadd.f32 %v3363_v53, %v355_v45  ;;  %v571_v37 = vadd.f32 %v3361_v52, %v363_v41 }
  0xb3   :  { %v690_v40 = vmax.f32 %v562_v46, 0.0  ;;  %v698_v1 = vmax.f32 %v570_v32, 0.0  ;;  %v692_v39 = vmax.f32 %v564_v27, 0.0  ;;  %v700_v2 = vmax.f32 %v572_v56, 0.0 }
  0xb4   :  { %v3384_v4 = vpop.permute.xlu1 %219  ;;  %v3386_v6 = vpop.permute.xlu0 %214  ;;  %v689_v7 = vmax.f32 %v561_v0, 0.0  ;;  %v697_v8 = vmax.f32 %v569_v42, 0.0  ;;  %v691_v9 = vmax.f32 %v563_v30, 0.0  ;;  %v699_v10 = vmax.f32 %v571_v37, 0.0 }
  0xb5   :  { %v778_v11 = vpack.c.bf16 %v698_v1, %v690_v40  ;;  %v780_v28 = vpack.c.bf16 %v700_v2, %v692_v39  ;;  %v370_v61 = vmul.f32 %v3078_v14, %v3386_v6  ;;  %v378_v36 = vmul.f32 %v3078_v14, %v3384_v4 }
  0xb6   :  { %v777_v44 = vpack.c.bf16 %v697_v8, %v689_v7  ;;  %v779_v45 = vpack.c.bf16 %v699_v10, %v691_v9  ;;  %v372_v41 = vmul.f32 %v3080_v15, %v3386_v6  ;;  %v380_v46 = vmul.f32 %v3080_v15, %v3384_v4 }
  0xb7   :  { %939 = vmatprep.subr.bf16.mxu0 %v778_v11  ;;  %1052 = vmatprep.subr.bf16.mxu1 %v780_v28  ;;  %v369_v32 = vmul.f32 %v3084_v16, %v3386_v6  ;;  %v377_v27 = vmul.f32 %v3084_v16, %v3384_v4  ;;  %v371_v56 = vmul.f32 %v3092_v19, %v3386_v6 }
  0xb8   :  { %v3402_v0 = vpop.permute.xlu1 %468  ;;  %v3404_v42 = vpop.permute.xlu0 %463  ;;  %940 = vmatpush1.bf16.msra.mxu0 %v777_v44  ;;  %1053 = vmatpush1.bf16.msra.mxu1 %v779_v45  ;;  %v379_v30 = vmul.f32 %v3092_v19, %v3384_v4  ;;  %v3408_v37 = vpack.c.bf16 %v621_v29, %v613_v51  ;;  %v3412_v40 = vadd.f32 %v3100_v23, %v3132_v43 }
  0xb9   :  { %v578_v1 = vadd.f32 %v3404_v42, %v370_v61  ;;  %v586_v39 = vadd.f32 %v3402_v0, %v378_v36  ;;  %v580_v2 = vadd.f32 %v3404_v42, %v372_v41  ;;  %v588_v7 = vadd.f32 %v3402_v0, %v380_v46 }
  0xba   :  { %v577_v8 = vadd.f32 %v3404_v42, %v369_v32  ;;  %v585_v9 = vadd.f32 %v3402_v0, %v377_v27  ;;  %v579_v10 = vadd.f32 %v3404_v42, %v371_v56  ;;  %v587_v51 = vadd.f32 %v3402_v0, %v379_v30 }
  0xbb   :  { %v706_v29 = vmax.f32 %v578_v1, 0.0  ;;  %v714_v11 = vmax.f32 %v586_v39, 0.0  ;;  %v708_v23 = vmax.f32 %v580_v2, 0.0  ;;  %v716_v43 = vmax.f32 %v588_v7, 0.0 }
  0xbc   :  { %v3422_v28 = vpop.permute.xlu1 %229  ;;  %v3424_v61 = vpop.permute.xlu0 %224  ;;  %v705_v36 = vmax.f32 %v577_v8, 0.0  ;;  %v713_v44 = vmax.f32 %v585_v9, 0.0  ;;  %v707_v45 = vmax.f32 %v579_v10, 0.0  ;;  %v715_v41 = vmax.f32 %v587_v51, 0.0 }
  0xbd   :  { %v786_v46 = vpack.c.bf16 %v714_v11, %v706_v29  ;;  %v788_v32 = vpack.c.bf16 %v716_v43, %v708_v23  ;;  %v386_v27 = vmul.f32 %v3078_v14, %v3424_v61  ;;  %v394_v56 = vmul.f32 %v3078_v14, %v3422_v28 }
  0xbe   :  { %v785_v30 = vpack.c.bf16 %v713_v44, %v705_v36  ;;  %v787_v1 = vpack.c.bf16 %v715_v41, %v707_v45  ;;  %v388_v39 = vmul.f32 %v3080_v15, %v3424_v61  ;;  %v396_v2 = vmul.f32 %v3080_v15, %v3422_v28 }
  0xbf   :  { %941 = vmatprep.subr.bf16.mxu0 %v786_v46  ;;  %1054 = vmatprep.subr.bf16.mxu1 %v788_v32  ;;  %v385_v7 = vmul.f32 %v3084_v16, %v3424_v61  ;;  %v393_v8 = vmul.f32 %v3084_v16, %v3422_v28  ;;  %v387_v9 = vmul.f32 %v3092_v19, %v3424_v61  ;;  %v615_v29 = vmax.f32 %v3412_v40, 0.0 }
  0xc0   :  { %v3440_v14 = vpop.permute.xlu1 %478  ;;  %v3442_v10 = vpop.permute.xlu0 %473  ;;  %942 = vmatpush1.bf16.msra.mxu0 %v785_v30  ;;  %1055 = vmatpush1.bf16.msra.mxu1 %v787_v1  ;;  %v395_v15 = vmul.f32 %v3092_v19, %v3422_v28  ;;  %v495_v51 = vadd.f32 %v3120_v38, %v3374_v35  ;;  %v294_v16 = vmul.f32 %v3094_v20, %v3155_v58 }
  0xc1   :  { %v594_v11 = vadd.f32 %v3442_v10, %v386_v27  ;;  %v602_v23 = vadd.f32 %v3440_v14, %v394_v56  ;;  %v596_v43 = vadd.f32 %v3442_v10, %v388_v39  ;;  %v604_v36 = vadd.f32 %v3440_v14, %v396_v2 }
  0xc2   :  { %v593_v44 = vadd.f32 %v3442_v10, %v385_v7  ;;  %v601_v19 = vadd.f32 %v3440_v14, %v393_v8  ;;  %v595_v45 = vadd.f32 %v3442_v10, %v387_v9  ;;  %v603_v38 = vadd.f32 %v3440_v14, %v395_v15 }
  0xc3   :  { %v722_v35 = vmax.f32 %v594_v11, 0.0  ;;  %v730_v40 = vmax.f32 %v602_v23, 0.0  ;;  %v724_v41 = vmax.f32 %v596_v43, 0.0  ;;  %v732_v46 = vmax.f32 %v604_v36, 0.0  ;;  %v3467_v11 = vld [vmem:[%s4340_s4] sm:$0xff]  }
  0xc4   :  { %v721_v32 = vmax.f32 %v593_v44, 0.0  ;;  %v729_v27 = vmax.f32 %v601_v19, 0.0  ;;  %v723_v30 = vmax.f32 %v595_v45, 0.0  ;;  %v731_v56 = vmax.f32 %v603_v38, 0.0 }
  0xc5   :  { %v794_v1 = vpack.c.bf16 %v730_v40, %v722_v35  ;;  %v796_v39 = vpack.c.bf16 %v732_v46, %v724_v41  ;;  %v623_v5 = vmax.f32 %v495_v51, 0.0  ;;  %v302_v2 = vmul.f32 %v3094_v20, %v3153_v57 }
  0xc6   :  { %v793_v7 = vpack.c.bf16 %v729_v27, %v721_v32  ;;  %v795_v8 = vpack.c.bf16 %v731_v56, %v723_v30  ;;  %v502_v9 = vadd.f32 %v3187_v26, %v294_v16  ;;  %v296_v15 = vmul.f32 %v3096_v21, %v3155_v58 }
  0xc7   :  { %943 = vmatprep.subr.bf16.mxu0 %v794_v1  ;;  %1056 = vmatprep.subr.bf16.mxu1 %v796_v39  ;;  %v743_v23 = vpack.c.bf16 %v623_v5, %v615_v29  ;;  %v510_v51 = vadd.f32 %v3185_v24, %v302_v2  ;;  %v304_v43 = vmul.f32 %v3096_v21, %v3153_v57 }
  0xc8   :  { %944 = vmatpush1.bf16.msra.mxu0 %v793_v7  ;;  %1057 = vmatpush1.bf16.msra.mxu1 %v795_v8  ;;  %v630_v36 = vmax.f32 %v502_v9, 0.0  ;;  %v504_v16 = vadd.f32 %v3187_v26, %v296_v15  ;;  %v293_v44 = vmul.f32 %v3098_v22, %v3155_v58  ;;  %v301_v19 = vmul.f32 %v3098_v22, %v3153_v57 }
  0xc9   :  { %1155 = vmatprep.subr.bf16.mxu0 %v3328_v62  ;;  %1268 = vmatprep.subr.bf16.mxu1 %v3369_v31  ;;  %v638_v5 = vmax.f32 %v510_v51, 0.0  ;;  %v512_v29 = vadd.f32 %v3185_v24, %v304_v43  ;;  %v295_v45 = vmul.f32 %v3102_v25, %v3155_v58  ;;  %v303_v38 = vmul.f32 %v3102_v25, %v3153_v57 }
  0xca   :  { %v632_v35 = vmax.f32 %v504_v16, 0.0  ;;  %v501_v40 = vadd.f32 %v3187_v26, %v293_v44  ;;  %v509_v41 = vadd.f32 %v3185_v24, %v301_v19  ;;  %v310_v46 = vmul.f32 %v3094_v20, %v3208_v50 }
  0xcb   :  { %962 = vmatmul.mubr.bf16.vlgmr.msra.gmra.mrb[0].mxu0 %v3467_v11  ;;  %1075 = vmatmul.mubr.bf16.vlgmr.msra.gmra.mrb[0].mxu1 %v3467_v11  ;;  %v750_v62 = vpack.c.bf16 %v638_v5, %v630_v36  ;;  %v640_v31 = vmax.f32 %v512_v29, 0.0  ;;  %v503_v32 = vadd.f32 %v3187_v26, %v295_v45  ;;  %v511_v58 = vadd.f32 %v3185_v24, %v303_v38 }
  0xcc   :  { %1156 = vmatpush1.bf16.msra.mxu0 %v3408_v37  ;;  %1269 = vmatpush1.bf16.msra.mxu1 %v743_v23  ;;  %v629_v57 = vmax.f32 %v501_v40, 0.0  ;;  %v637_v27 = vmax.f32 %v509_v41, 0.0  ;;  %v318_v30 = vmul.f32 %v3094_v20, %v3206_v49  ;;  %v518_v56 = vadd.f32 %v3233_v13, %v310_v46  ;;  %v3507_v23 = vld [vmem:[%s4340_s4 + $0x8] sm:$0xff]  }
  0xcd   :  { %1157 = vmatprep.subr.bf16.mxu0 %v750_v62  ;;  %v752_v1 = vpack.c.bf16 %v640_v31, %v632_v35  ;;  %v631_v39 = vmax.f32 %v503_v32, 0.0  ;;  %v639_v2 = vmax.f32 %v511_v58, 0.0  ;;  %v312_v7 = vmul.f32 %v3096_v21, %v3208_v50  ;;  %971 = vmatprep.mubr.bf16.mxu0 %v2808_v3 }
  0xce   :  { %v749_v24 = vpack.c.bf16 %v637_v27, %v629_v57  ;;  %v526_v26 = vadd.f32 %v3231_v12, %v318_v30  ;;  %v646_v37 = vmax.f32 %v518_v56, 0.0  ;;  %v320_v8 = vmul.f32 %v3096_v21, %v3206_v49  ;;  %1084 = vmatprep.mubr.bf16.mxu1 %v2808_v3 }
  0xcf   :  { %1270 = vmatprep.subr.bf16.mxu1 %v752_v1  ;;  %v751_v9 = vpack.c.bf16 %v639_v2, %v631_v39  ;;  %v520_v15 = vadd.f32 %v3233_v13, %v312_v7  ;;  %v309_v51 = vmul.f32 %v3098_v22, %v3208_v50  ;;  %v317_v43 = vmul.f32 %v3098_v22, %v3206_v49 }
  0xd0   :  { %1158 = vmatpush1.bf16.msra.mxu0 %v749_v24  ;;  %v654_v36 = vmax.f32 %v526_v26, 0.0  ;;  %v528_v16 = vadd.f32 %v3231_v12, %v320_v8  ;;  %v311_v44 = vmul.f32 %v3102_v25, %v3208_v50  ;;  %v319_v19 = vmul.f32 %v3102_v25, %v3206_v49 }
  0xd1   :  { %1271 = vmatpush1.bf16.msra.mxu1 %v751_v9  ;;  %v648_v5 = vmax.f32 %v520_v15, 0.0  ;;  %v517_v29 = vadd.f32 %v3233_v13, %v309_v51  ;;  %v525_v45 = vadd.f32 %v3231_v12, %v317_v43  ;;  %v326_v38 = vmul.f32 %v3094_v20, %v3258_v48  ;;  %v3549_v9 = vld [vmem:[%s4340_s4 + $0x10] sm:$0xff]  }
  0xd2   :  { %v758_v35 = vpack.c.bf16 %v654_v36, %v646_v37  ;;  %v656_v40 = vmax.f32 %v528_v16, 0.0  ;;  %v519_v41 = vadd.f32 %v3233_v13, %v311_v44  ;;  %v527_v46 = vadd.f32 %v3231_v12, %v319_v19 }
  0xd3   :  { %972 = vmatmul.mubr.bf16.gmra.mrb[4].mxu0 %v3507_v23  ;;  %1085 = vmatmul.mubr.bf16.gmra.mrb[4].mxu1 %v3507_v23  ;;  %v645_v49 = vmax.f32 %v517_v29, 0.0  ;;  %v653_v50 = vmax.f32 %v525_v45, 0.0  ;;  %v334_v62 = vmul.f32 %v3094_v20, %v3256_v47  ;;  %v534_v31 = vadd.f32 %v3282_v18, %v326_v38 }
  0xd4   :  { %1159 = vmatprep.subr.bf16.mxu0 %v758_v35  ;;  %v760_v32 = vpack.c.bf16 %v656_v40, %v648_v5  ;;  %v647_v58 = vmax.f32 %v519_v41, 0.0  ;;  %v655_v57 = vmax.f32 %v527_v46, 0.0  ;;  %v328_v13 = vmul.f32 %v3096_v21, %v3258_v48  ;;  %981 = vmatprep.mubr.bf16.mxu0 %v2808_v3 }
  0xd5   :  { %v757_v12 = vpack.c.bf16 %v653_v50, %v645_v49  ;;  %v542_v27 = vadd.f32 %v3280_v17, %v334_v62  ;;  %v662_v30 = vmax.f32 %v534_v31, 0.0  ;;  %v336_v56 = vmul.f32 %v3096_v21, %v3256_v47  ;;  %1094 = vmatprep.mubr.bf16.mxu1 %v2808_v3 }
  0xd6   :  { %1272 = vmatprep.subr.bf16.mxu1 %v760_v32  ;;  %v759_v1 = vpack.c.bf16 %v655_v57, %v647_v58  ;;  %v536_v39 = vadd.f32 %v3282_v18, %v328_v13  ;;  %v325_v2 = vmul.f32 %v3098_v22, %v3258_v48  ;;  %v333_v7 = vmul.f32 %v3098_v22, %v3256_v47 }
  0xd7   :  { %1160 = vmatpush1.bf16.msra.mxu0 %v757_v12  ;;  %v670_v24 = vmax.f32 %v542_v27, 0.0  ;;  %v544_v26 = vadd.f32 %v3280_v17, %v336_v56  ;;  %v327_v37 = vmul.f32 %v3102_v25, %v3258_v48  ;;  %v335_v8 = vmul.f32 %v3102_v25, %v3256_v47 }
  0xd8   :  { %1273 = vmatpush1.bf16.msra.mxu1 %v759_v1  ;;  %v664_v15 = vmax.f32 %v536_v39, 0.0  ;;  %v533_v51 = vadd.f32 %v3282_v18, %v325_v2  ;;  %v541_v43 = vadd.f32 %v3280_v17, %v333_v7  ;;  %v342_v36 = vmul.f32 %v3094_v20, %v3304_v55  ;;  %v3586_v39 = vld [vmem:[%s4340_s4 + $0x18] sm:$0xff]  }
  0xd9   :  { %v766_v16 = vpack.c.bf16 %v670_v24, %v662_v30  ;;  %v672_v44 = vmax.f32 %v544_v26, 0.0  ;;  %v535_v48 = vadd.f32 %v3282_v18, %v327_v37  ;;  %v543_v47 = vadd.f32 %v3280_v17, %v335_v8 }
  0xda   :  { %v661_v19 = vmax.f32 %v533_v51, 0.0  ;;  %v669_v5 = vmax.f32 %v541_v43, 0.0  ;;  %v350_v29 = vmul.f32 %v3094_v20, %v3302_v54  ;;  %v550_v45 = vadd.f32 %v3322_v34, %v342_v36 }
  0xdb   :  { %1161 = vmatprep.subr.bf16.mxu0 %v766_v16  ;;  %v768_v38 = vpack.c.bf16 %v672_v44, %v664_v15  ;;  %v663_v35 = vmax.f32 %v535_v48, 0.0  ;;  %v671_v40 = vmax.f32 %v543_v47, 0.0  ;;  %v344_v41 = vmul.f32 %v3096_v21, %v3304_v55  ;;  %982 = vmatmul.mubr.bf16.gmra.mrb[8].mxu0 %v3549_v9 }
  0xdc   :  { %v765_v46 = vpack.c.bf16 %v669_v5, %v661_v19  ;;  %v558_v18 = vadd.f32 %v3320_v33, %v350_v29  ;;  %v678_v17 = vmax.f32 %v550_v45, 0.0  ;;  %v352_v49 = vmul.f32 %v3096_v21, %v3302_v54  ;;  %1095 = vmatmul.mubr.bf16.gmra.mrb[8].mxu1 %v3549_v9  ;;  %991 = vmatprep.mubr.bf16.mxu0 %v2808_v3 }
  0xdd   :  { %1274 = vmatprep.subr.bf16.mxu1 %v768_v38  ;;  %v767_v50 = vpack.c.bf16 %v671_v40, %v663_v35  ;;  %v552_v62 = vadd.f32 %v3322_v34, %v344_v41  ;;  %v341_v31 = vmul.f32 %v3098_v22, %v3304_v55  ;;  %v349_v32 = vmul.f32 %v3098_v22, %v3302_v54 }
  0xde   :  { %1162 = vmatpush1.bf16.msra.mxu0 %v765_v46  ;;  %v686_v58 = vmax.f32 %v558_v18, 0.0  ;;  %v560_v57 = vadd.f32 %v3320_v33, %v352_v49  ;;  %v343_v13 = vmul.f32 %v3102_v25, %v3304_v55  ;;  %v351_v12 = vmul.f32 %v3102_v25, %v3302_v54  ;;  %1104 = vmatprep.mubr.bf16.mxu1 %v2808_v3 }
  0xdf   :  { %1275 = vmatpush1.bf16.msra.mxu1 %v767_v50  ;;  %v680_v27 = vmax.f32 %v552_v62, 0.0  ;;  %v549_v30 = vadd.f32 %v3322_v34, %v341_v31  ;;  %v557_v56 = vadd.f32 %v3320_v33, %v349_v32  ;;  %v358_v1 = vmul.f32 %v3094_v20, %v3344_v60 }
  0xe0   :  { %v774_v55 = vpack.c.bf16 %v686_v58, %v678_v17  ;;  %v688_v2 = vmax.f32 %v560_v57, 0.0  ;;  %v551_v54 = vadd.f32 %v3322_v34, %v343_v13  ;;  %v559_v7 = vadd.f32 %v3320_v33, %v351_v12 }
  0xe1   :  { %v677_v24 = vmax.f32 %v549_v30, 0.0  ;;  %v685_v26 = vmax.f32 %v557_v56, 0.0  ;;  %v366_v37 = vmul.f32 %v3094_v20, %v3342_v59  ;;  %v566_v8 = vadd.f32 %v3363_v53, %v358_v1 }
  0xe2   :  { %1163 = vmatprep.subr.bf16.mxu0 %v774_v55  ;;  %v776_v15 = vpack.c.bf16 %v688_v2, %v680_v27  ;;  %v679_v51 = vmax.f32 %v551_v54, 0.0  ;;  %v687_v43 = vmax.f32 %v559_v7, 0.0  ;;  %v360_v36 = vmul.f32 %v3096_v21, %v3344_v60 }
  0xe3   :  { %v773_v16 = vpack.c.bf16 %v685_v26, %v677_v24  ;;  %v574_v44 = vadd.f32 %v3361_v52, %v366_v37  ;;  %v694_v34 = vmax.f32 %v566_v8, 0.0  ;;  %v368_v33 = vmul.f32 %v3096_v21, %v3342_v59  ;;  %992 = vmatmul.mubr.bf16.gmra.mrb[12].mxu0 %v3586_v39 }
  0xe4   :  { %1276 = vmatprep.subr.bf16.mxu1 %v776_v15  ;;  %v775_v48 = vpack.c.bf16 %v687_v43, %v679_v51  ;;  %v568_v47 = vadd.f32 %v3363_v53, %v360_v36  ;;  %v357_v19 = vmul.f32 %v3098_v22, %v3344_v60  ;;  %v365_v5 = vmul.f32 %v3098_v22, %v3342_v59 }
  0xe5   :  { %1164 = vmatpush1.bf16.msra.mxu0 %v773_v16  ;;  %v702_v29 = vmax.f32 %v574_v44, 0.0  ;;  %v576_v45 = vadd.f32 %v3361_v52, %v368_v33  ;;  %v359_v38 = vmul.f32 %v3102_v25, %v3344_v60  ;;  %v367_v35 = vmul.f32 %v3102_v25, %v3342_v59  ;;  %1105 = vmatmul.mubr.bf16.gmra.mrb[12].mxu1 %v3586_v39 }
  0xe6   :  { %1277 = vmatpush1.bf16.msra.mxu1 %v775_v48  ;;  %v696_v40 = vmax.f32 %v568_v47, 0.0  ;;  %v565_v41 = vadd.f32 %v3363_v53, %v357_v19  ;;  %v573_v46 = vadd.f32 %v3361_v52, %v365_v5  ;;  %v374_v18 = vmul.f32 %v3094_v20, %v3386_v6  ;;  %1001 = vmatprep.mubr.bf16.mxu0 %v2808_v3 }
  0xe7   :  { %v782_v17 = vpack.c.bf16 %v702_v29, %v694_v34  ;;  %v704_v49 = vmax.f32 %v576_v45, 0.0  ;;  %v567_v60 = vadd.f32 %v3363_v53, %v359_v38  ;;  %v575_v50 = vadd.f32 %v3361_v52, %v367_v35  ;;  %1114 = vmatprep.mubr.bf16.mxu1 %v2808_v3  ;;  %v3626_v52 = vld [vmem:[%s4340_s4 + $0x20] sm:$0xff]  }
  0xe8   :  { %v693_v59 = vmax.f32 %v565_v41, 0.0  ;;  %v701_v62 = vmax.f32 %v573_v46, 0.0  ;;  %v382_v31 = vmul.f32 %v3094_v20, %v3384_v4  ;;  %v582_v32 = vadd.f32 %v3404_v42, %v374_v18 }
  0xe9   :  { %1165 = vmatprep.subr.bf16.mxu0 %v782_v17  ;;  %v784_v58 = vpack.c.bf16 %v704_v49, %v696_v40  ;;  %v695_v57 = vmax.f32 %v567_v60, 0.0  ;;  %v703_v13 = vmax.f32 %v575_v50, 0.0  ;;  %v376_v12 = vmul.f32 %v3096_v21, %v3386_v6 }
  0xea   :  { %v781_v53 = vpack.c.bf16 %v701_v62, %v693_v59  ;;  %v590_v27 = vadd.f32 %v3402_v0, %v382_v31  ;;  %v710_v30 = vmax.f32 %v582_v32, 0.0  ;;  %v384_v56 = vmul.f32 %v3096_v21, %v3384_v4 }
  0xeb   :  { %1278 = vmatprep.subr.bf16.mxu1 %v784_v58  ;;  %v783_v1 = vpack.c.bf16 %v703_v13, %v695_v57  ;;  %v584_v55 = vadd.f32 %v3404_v42, %v376_v12  ;;  %v373_v2 = vmul.f32 %v3098_v22, %v3386_v6  ;;  %v381_v54 = vmul.f32 %v3098_v22, %v3384_v4 }
  0xec   :  { %1166 = vmatpush1.bf16.msra.mxu0 %v781_v53  ;;  %v718_v7 = vmax.f32 %v590_v27, 0.0  ;;  %v592_v24 = vadd.f32 %v3402_v0, %v384_v56  ;;  %v375_v26 = vmul.f32 %v3102_v25, %v3386_v6  ;;  %v383_v37 = vmul.f32 %v3102_v25, %v3384_v4 }
  0xed   :  { %1279 = vmatpush1.bf16.msra.mxu1 %v783_v1  ;;  %v712_v8 = vmax.f32 %v584_v55, 0.0  ;;  %v581_v15 = vadd.f32 %v3404_v42, %v373_v2  ;;  %v589_v51 = vadd.f32 %v3402_v0, %v381_v54  ;;  %v390_v43 = vmul.f32 %v3094_v20, %v3424_v61  ;;  %1002 = vmatmul.mubr.bf16.gmra.mrb[16].mxu0 %v3626_v52 }
  0xee   :  { %v790_v36 = vpack.c.bf16 %v718_v7, %v710_v30  ;;  %v720_v16 = vmax.f32 %v592_v24, 0.0  ;;  %v583_v44 = vadd.f32 %v3404_v42, %v375_v26  ;;  %v591_v6 = vadd.f32 %v3402_v0, %v383_v37  ;;  %1115 = vmatmul.mubr.bf16.gmra.mrb[16].mxu1 %v3626_v52  ;;  %1011 = vmatprep.mubr.bf16.mxu0 %v2808_v3 }
  0xef   :  { %v709_v4 = vmax.f32 %v581_v15, 0.0  ;;  %v717_v34 = vmax.f32 %v589_v51, 0.0  ;;  %v398_v33 = vmul.f32 %v3094_v20, %v3422_v28  ;;  %v598_v48 = vadd.f32 %v3442_v10, %v390_v43  ;;  %1124 = vmatprep.mubr.bf16.mxu1 %v2808_v3  ;;  %v3662_v20 = vld [vmem:[%s4340_s4 + $0x28] sm:$0xff]  }
  0xf0   :  { %1167 = vmatprep.subr.bf16.mxu0 %v790_v36  ;;  %v792_v47 = vpack.c.bf16 %v720_v16, %v712_v8  ;;  %v711_v19 = vmax.f32 %v583_v44, 0.0  ;;  %v719_v5 = vmax.f32 %v591_v6, 0.0  ;;  %v392_v0 = vmul.f32 %v3096_v21, %v3424_v61 }
  0xf1   :  { %v789_v42 = vpack.c.bf16 %v717_v34, %v709_v4  ;;  %v606_v29 = vadd.f32 %v3440_v14, %v398_v33  ;;  %v726_v45 = vmax.f32 %v598_v48, 0.0  ;;  %v400_v38 = vmul.f32 %v3096_v21, %v3422_v28 }
  0xf2   :  { %1280 = vmatprep.subr.bf16.mxu1 %v792_v47  ;;  %v791_v35 = vpack.c.bf16 %v719_v5, %v711_v19  ;;  %v600_v40 = vadd.f32 %v3442_v10, %v392_v0  ;;  %v389_v41 = vmul.f32 %v3098_v22, %v3424_v61  ;;  %v397_v46 = vmul.f32 %v3098_v22, %v3422_v28 }
  0xf3   :  { %1168 = vmatpush1.bf16.msra.mxu0 %v789_v42  ;;  %v734_v18 = vmax.f32 %v606_v29, 0.0  ;;  %v608_v17 = vadd.f32 %v3440_v14, %v400_v38  ;;  %v391_v21 = vmul.f32 %v3102_v25, %v3424_v61  ;;  %v399_v49 = vmul.f32 %v3102_v25, %v3422_v28 }
  0xf4   :  { %1281 = vmatpush1.bf16.msra.mxu1 %v791_v35  ;;  %v728_v60 = vmax.f32 %v600_v40, 0.0  ;;  %v597_v50 = vadd.f32 %v3442_v10, %v389_v41  ;;  %v605_v59 = vadd.f32 %v3440_v14, %v397_v46 }
  0xf5   :  { %v798_v62 = vpack.c.bf16 %v734_v18, %v726_v45  ;;  %v736_v31 = vmax.f32 %v608_v17, 0.0  ;;  %v599_v22 = vadd.f32 %v3442_v10, %v391_v21  ;;  %v607_v32 = vadd.f32 %v3440_v14, %v399_v49  ;;  %1012 = vmatmul.mubr.bf16.gmra.mrb[20].mxu0 %v3662_v20  ;;  %v2774_v14 = vld [vmem:[%s4340_s4 + $0x30] sm:$0xff]   ;;  %v2775_v10 = vld [vmem:[%s4340_s4 + $0x38] sm:$0xff]  }
  0xf6   :  { %v725_v58 = vmax.f32 %v597_v50, 0.0  ;;  %v733_v57 = vmax.f32 %v605_v59, 0.0  ;;  %1125 = vmatmul.mubr.bf16.gmra.mrb[20].mxu1 %v3662_v20  ;;  %1021 = vmatprep.mubr.bf16.mxu0 %v2808_v3 }
  0xf7   :  { %1169 = vmatprep.subr.bf16.mxu0 %v798_v62  ;;  %v800_v25 = vpack.c.bf16 %v736_v31, %v728_v60  ;;  %v727_v28 = vmax.f32 %v599_v22, 0.0  ;;  %v735_v61 = vmax.f32 %v607_v32, 0.0  ;;  %1134 = vmatprep.mubr.bf16.mxu1 %v2808_v3 }
  0xf8   :  { %v797_v13 = vpack.c.bf16 %v733_v57, %v725_v58 }
  0xf9   :  { %1282 = vmatprep.subr.bf16.mxu1 %v800_v25  ;;  %v799_v12 = vpack.c.bf16 %v735_v61, %v727_v28 }
  0xfa   :  { %1170 = vmatpush1.bf16.msra.mxu0 %v797_v13 }
  0xfb   :  { %1283 = vmatpush1.bf16.msra.mxu1 %v799_v12 }
  0xfd   :  { %1022 = vmatmul.mubr.bf16.gmra.mrb[24].mxu0 %v2774_v14 }
  0xfe   :  { %1135 = vmatmul.mubr.bf16.gmra.mrb[24].mxu1 %v2774_v14  ;;  %1031 = vmatprep.mubr.bf16.mxu0 %v2808_v3 }
  0xff   :  { %1144 = vmatprep.mubr.bf16.mxu1 %v2808_v3 }
 0x105   :  { %1032 = vmatmul.mubr.bf16.gmra.mrb[28].mxu0 %v2775_v10 }
 0x106   :  { %1145 = vmatmul.mubr.bf16.gmra.mrb[28].mxu1 %v2775_v10  ;;  %1187 = vmatprep.mubr.bf16.mxu0 %v2808_v3 }
 0x107   :  { %1300 = vmatprep.mubr.bf16.mxu1 %v2808_v3 }
 0x10d   :  { %1188 = vmatmul.mubr.bf16.vlgmr.msra.gmra.mrb[32].mxu0 %v3467_v11 }
 0x10e   :  { %1301 = vmatmul.mubr.bf16.vlgmr.msra.gmra.mrb[32].mxu1 %v3467_v11  ;;  %1197 = vmatprep.mubr.bf16.mxu0 %v2808_v3  ;;  %v3720_v11 = vpop.permute.xlu1 %808 }
 0x10f   :  { %1310 = vmatprep.mubr.bf16.mxu1 %v2808_v3 }
 0x112   :  { %v3732_v34 = vpop.permute.xlu1 %818 }
 0x115   :  { %1198 = vmatmul.mubr.bf16.gmra.mrb[36].mxu0 %v3507_v23 }
 0x116   :  { %1311 = vmatmul.mubr.bf16.gmra.mrb[36].mxu1 %v3507_v23  ;;  %1207 = vmatprep.mubr.bf16.mxu0 %v2808_v3  ;;  %v3722_v23 = vpop.permute.xlu0 %803  ;;  %v3744_v28 = vpop.permute.xlu1 %828 }
 0x117   :  { %1320 = vmatprep.mubr.bf16.mxu1 %v2808_v3 }
 0x11a   :  { %v3734_v33 = vpop.permute.xlu0 %813 }
 0x11d   :  { %1208 = vmatmul.mubr.bf16.gmra.mrb[40].mxu0 %v3549_v9 }
 0x11e   :  { %1321 = vmatmul.mubr.bf16.gmra.mrb[40].mxu1 %v3549_v9  ;;  %1217 = vmatprep.mubr.bf16.mxu0 %v2808_v3  ;;  %v3746_v12 = vpop.permute.xlu0 %823 }
 0x11f   :  { %1330 = vmatprep.mubr.bf16.mxu1 %v2808_v3 }
 0x125   :  { %1218 = vmatmul.mubr.bf16.gmra.mrb[44].mxu0 %v3586_v39 }
 0x126   :  { %1331 = vmatmul.mubr.bf16.gmra.mrb[44].mxu1 %v3586_v39  ;;  %1227 = vmatprep.mubr.bf16.mxu0 %v2808_v3 }
 0x127   :  { %1340 = vmatprep.mubr.bf16.mxu1 %v2808_v3 }
 0x12d   :  { %1228 = vmatmul.mubr.bf16.gmra.mrb[48].mxu0 %v3626_v52 }
 0x12e   :  { %1341 = vmatmul.mubr.bf16.gmra.mrb[48].mxu1 %v3626_v52  ;;  %1237 = vmatprep.mubr.bf16.mxu0 %v2808_v3 }
 0x12f   :  { %1350 = vmatprep.mubr.bf16.mxu1 %v2808_v3 }
 0x135   :  { %1238 = vmatmul.mubr.bf16.gmra.mrb[52].mxu0 %v3662_v20 }
 0x136   :  { %1351 = vmatmul.mubr.bf16.gmra.mrb[52].mxu1 %v3662_v20  ;;  %1247 = vmatprep.mubr.bf16.mxu0 %v2808_v3 }
 0x137   :  { %1360 = vmatprep.mubr.bf16.mxu1 %v2808_v3 }
 0x13d   :  { %1248 = vmatmul.mubr.bf16.gmra.mrb[56].mxu0 %v2774_v14 }
 0x13e   :  { %1361 = vmatmul.mubr.bf16.gmra.mrb[56].mxu1 %v2774_v14  ;;  %1257 = vmatprep.mubr.bf16.mxu0 %v2808_v3 }
 0x13f   :  { %1370 = vmatprep.mubr.bf16.mxu1 %v2808_v3 }
 0x145   :  { %1258 = vmatmul.mubr.bf16.gmra.mrb[60].mxu0 %v2775_v10 }
 0x146   :  { %1371 = vmatmul.mubr.bf16.gmra.mrb[60].mxu1 %v2775_v10  ;;  %1733 = vmatprep.mubr.bf16.mxu0 %v2808_v3 }
 0x147   :  { %1846 = vmatprep.mubr.bf16.mxu1 %v2808_v3 }
 0x19e   :  { %v963_v9 = vpop.f32.mrb[0].mxu0  ;;  %v1076_v39 = vpop.f32.mrb[0].mxu1 }
 0x19f   :  { %v964_v52 = vadd.f32 %v963_v9, %v3722_v23  ;;  %v1077_v53 = vadd.f32 %v1076_v39, %v3722_v23  ;;  %v965_v27 = vpop.f32.mrb[1].mxu0  ;;  %v1078_v30 = vpop.f32.mrb[1].mxu1 }
 0x1a0   :  { %v966_v56 = vadd.f32 %v965_v27, %v3722_v23  ;;  %v1079_v1 = vadd.f32 %v1078_v30, %v3722_v23  ;;  %v967_v55 = vpop.f32.mrb[2].mxu0  ;;  %v1080_v2 = vpop.f32.mrb[2].mxu1 }
 0x1a1   :  { %v968_v54 = vadd.f32 %v967_v55, %v3720_v11  ;;  %v1081_v7 = vadd.f32 %v1080_v2, %v3720_v11  ;;  %v969_v24 = vpop.f32.mrb[3].mxu0  ;;  %v1082_v26 = vpop.f32.mrb[3].mxu1  ;;  %v1381_v15 = vmax.f32 %v964_v52, 0.0  ;;  %v1383_v51 = vmax.f32 %v1077_v53, 0.0 }
 0x1a2   :  { %v970_v37 = vadd.f32 %v969_v24, %v3720_v11  ;;  %v1083_v8 = vadd.f32 %v1082_v26, %v3720_v11  ;;  %v1382_v16 = vmax.f32 %v966_v56, 0.0  ;;  %v1384_v44 = vmax.f32 %v1079_v1, 0.0 }
 0x1a3   :  { %v1389_v43 = vmax.f32 %v968_v54, 0.0  ;;  %v1391_v36 = vmax.f32 %v1081_v7, 0.0 }
 0x1a4   :  { %v1390_v6 = vmax.f32 %v970_v37, 0.0  ;;  %v1392_v4 = vmax.f32 %v1083_v8, 0.0 }
 0x1a5   :  { %v1509_v48 = vpack.c.bf16 %v1389_v43, %v1381_v15  ;;  %v1511_v47 = vpack.c.bf16 %v1391_v36, %v1383_v51 }
 0x1a6   :  { %v1510_v19 = vpack.c.bf16 %v1390_v6, %v1382_v16  ;;  %v1512_v5 = vpack.c.bf16 %v1392_v4, %v1384_v44  ;;  %v973_v0 = vpop.f32.mrb[4].mxu0  ;;  %v1086_v42 = vpop.f32.mrb[4].mxu1 }
 0x1a7   :  { %v974_v29 = vadd.f32 %v973_v0, %v3734_v33  ;;  %v1087_v45 = vadd.f32 %v1086_v42, %v3734_v33  ;;  %v975_v38 = vpop.f32.mrb[5].mxu0  ;;  %v1088_v20 = vpop.f32.mrb[5].mxu1 }
 0x1a8   :  { %v976_v35 = vadd.f32 %v975_v38, %v3734_v33  ;;  %v1089_v40 = vadd.f32 %v1088_v20, %v3734_v33  ;;  %v977_v41 = vpop.f32.mrb[6].mxu0  ;;  %v1090_v46 = vpop.f32.mrb[6].mxu1  ;;  %1701 = vmatprep.subr.bf16.mxu0 %v1510_v19  ;;  %1814 = vmatprep.subr.bf16.mxu1 %v1512_v5 }
 0x1a9   :  { %v978_v18 = vadd.f32 %v977_v41, %v3732_v34  ;;  %v1091_v17 = vadd.f32 %v1090_v46, %v3732_v34  ;;  %v979_v21 = vpop.f32.mrb[7].mxu0  ;;  %v1092_v49 = vpop.f32.mrb[7].mxu1  ;;  %1702 = vmatpush1.bf16.msra.mxu0 %v1509_v48  ;;  %1815 = vmatpush1.bf16.msra.mxu1 %v1511_v47  ;;  %v1397_v59 = vmax.f32 %v974_v29, 0.0  ;;  %v1399_v62 = vmax.f32 %v1087_v45, 0.0 }
 0x1aa   :  { %v980_v60 = vadd.f32 %v979_v21, %v3732_v34  ;;  %v1093_v50 = vadd.f32 %v1092_v49, %v3732_v34  ;;  %v1398_v32 = vmax.f32 %v976_v35, 0.0  ;;  %v1400_v58 = vmax.f32 %v1089_v40, 0.0  ;;  %v3756_v47 = vpop.permute.xlu0 %833  ;;  %v3758_v42 = vpop.permute.xlu1 %838 }
 0x1ab   :  { %v1405_v31 = vmax.f32 %v978_v18, 0.0  ;;  %v1407_v22 = vmax.f32 %v1091_v17, 0.0 }
 0x1ac   :  { %v1406_v57 = vmax.f32 %v980_v60, 0.0  ;;  %v1408_v25 = vmax.f32 %v1093_v50, 0.0 }
 0x1ad   :  { %v1517_v61 = vpack.c.bf16 %v1405_v31, %v1397_v59  ;;  %v1519_v13 = vpack.c.bf16 %v1407_v22, %v1399_v62 }
 0x1ae   :  { %v1518_v14 = vpack.c.bf16 %v1406_v57, %v1398_v32  ;;  %v1520_v10 = vpack.c.bf16 %v1408_v25, %v1400_v58  ;;  %v983_v9 = vpop.f32.mrb[8].mxu0 }
 0x1af   :  { %v984_v39 = vadd.f32 %v983_v9, %v3746_v12  ;;  %v1096_v52 = vpop.f32.mrb[8].mxu1  ;;  %v985_v53 = vpop.f32.mrb[9].mxu0 }
 0x1b0   :  { %v1097_v27 = vadd.f32 %v1096_v52, %v3746_v12  ;;  %v986_v30 = vadd.f32 %v985_v53, %v3746_v12  ;;  %v1098_v56 = vpop.f32.mrb[9].mxu1  ;;  %v987_v1 = vpop.f32.mrb[10].mxu0  ;;  %1703 = vmatprep.subr.bf16.mxu0 %v1518_v14  ;;  %1816 = vmatprep.subr.bf16.mxu1 %v1520_v10 }
 0x1b1   :  { %v1099_v55 = vadd.f32 %v1098_v56, %v3746_v12  ;;  %v988_v2 = vadd.f32 %v987_v1, %v3744_v28  ;;  %v1100_v54 = vpop.f32.mrb[10].mxu1  ;;  %v989_v7 = vpop.f32.mrb[11].mxu0  ;;  %1704 = vmatpush1.bf16.msra.mxu0 %v1517_v61  ;;  %1817 = vmatpush1.bf16.msra.mxu1 %v1519_v13  ;;  %v1413_v8 = vmax.f32 %v984_v39, 0.0 }
 0x1b2   :  { %v1101_v24 = vadd.f32 %v1100_v54, %v3744_v28  ;;  %v990_v26 = vadd.f32 %v989_v7, %v3744_v28  ;;  %v1102_v37 = vpop.f32.mrb[11].mxu1  ;;  %v1415_v43 = vmax.f32 %v1097_v27, 0.0  ;;  %v1414_v36 = vmax.f32 %v986_v30, 0.0  ;;  %v3768_v9 = vpop.permute.xlu1 %848 }
 0x1b3   :  { %v1421_v15 = vmax.f32 %v988_v2, 0.0  ;;  %v1103_v51 = vadd.f32 %v1102_v37, %v3744_v28  ;;  %v1416_v6 = vmax.f32 %v1099_v55, 0.0  ;;  %v3770_v52 = vpop.permute.xlu0 %843 }
 0x1b4   :  { %v1423_v16 = vmax.f32 %v1101_v24, 0.0  ;;  %v1422_v44 = vmax.f32 %v990_v26, 0.0 }
 0x1b5   :  { %v1525_v4 = vpack.c.bf16 %v1421_v15, %v1413_v8  ;;  %v1424_v48 = vmax.f32 %v1103_v51, 0.0 }
 0x1b6   :  { %v1527_v19 = vpack.c.bf16 %v1423_v16, %v1415_v43  ;;  %v1526_v5 = vpack.c.bf16 %v1422_v44, %v1414_v36  ;;  %v993_v0 = vpop.f32.mrb[12].mxu0 }
 0x1b7   :  { %v1528_v29 = vpack.c.bf16 %v1424_v48, %v1416_v6  ;;  %v994_v45 = vadd.f32 %v993_v0, %v3756_v47  ;;  %v995_v38 = vpop.f32.mrb[13].mxu0 }
 0x1b8   :  { %v1106_v20 = vpop.f32.mrb[12].mxu1  ;;  %v996_v35 = vadd.f32 %v995_v38, %v3756_v47  ;;  %v997_v40 = vpop.f32.mrb[14].mxu0  ;;  %1705 = vmatprep.subr.bf16.mxu0 %v1526_v5 }
 0x1b9   :  { %v1107_v41 = vadd.f32 %v1106_v20, %v3756_v47  ;;  %v1108_v46 = vpop.f32.mrb[13].mxu1  ;;  %v998_v18 = vadd.f32 %v997_v40, %v3758_v42  ;;  %1818 = vmatprep.subr.bf16.mxu1 %v1528_v29  ;;  %v999_v17 = vpop.f32.mrb[15].mxu0  ;;  %1706 = vmatpush1.bf16.msra.mxu0 %v1525_v4  ;;  %v1429_v50 = vmax.f32 %v994_v45, 0.0 }
 0x1ba   :  { %v1109_v21 = vadd.f32 %v1108_v46, %v3756_v47  ;;  %v1110_v49 = vpop.f32.mrb[14].mxu1  ;;  %v1000_v60 = vadd.f32 %v999_v17, %v3758_v42  ;;  %1819 = vmatpush1.bf16.msra.mxu1 %v1527_v19  ;;  %v1430_v22 = vmax.f32 %v996_v35, 0.0  ;;  %v3780_v5 = vpop.permute.xlu1 %858 }
 0x1bb   :  { %v1437_v59 = vmax.f32 %v998_v18, 0.0  ;;  %v1111_v62 = vadd.f32 %v1110_v49, %v3758_v42  ;;  %v1112_v31 = vpop.f32.mrb[15].mxu1  ;;  %v1431_v57 = vmax.f32 %v1107_v41, 0.0  ;;  %v3782_v38 = vpop.permute.xlu0 %853 }
 0x1bc   :  { %v1438_v32 = vmax.f32 %v1000_v60, 0.0  ;;  %v1113_v58 = vadd.f32 %v1112_v31, %v3758_v42  ;;  %v1432_v13 = vmax.f32 %v1109_v21, 0.0 }
 0x1bd   :  { %v1533_v25 = vpack.c.bf16 %v1437_v59, %v1429_v50  ;;  %v1439_v61 = vmax.f32 %v1111_v62, 0.0 }
 0x1be   :  { %v1534_v14 = vpack.c.bf16 %v1438_v32, %v1430_v22  ;;  %v1440_v10 = vmax.f32 %v1113_v58, 0.0 }
 0x1bf   :  { %v1535_v39 = vpack.c.bf16 %v1439_v61, %v1431_v57 }
 0x1c0   :  { %v1536_v53 = vpack.c.bf16 %v1440_v10, %v1432_v13  ;;  %v1003_v27 = vpop.f32.mrb[16].mxu0  ;;  %1707 = vmatprep.subr.bf16.mxu0 %v1534_v14 }
 0x1c1   :  { %v1004_v30 = vadd.f32 %v1003_v27, %v3770_v52  ;;  %v1116_v56 = vpop.f32.mrb[16].mxu1  ;;  %v1005_v1 = vpop.f32.mrb[17].mxu0  ;;  %1708 = vmatpush1.bf16.msra.mxu0 %v1533_v25 }
 0x1c2   :  { %v1117_v55 = vadd.f32 %v1116_v56, %v3770_v52  ;;  %v1006_v2 = vadd.f32 %v1005_v1, %v3770_v52  ;;  %v1118_v54 = vpop.f32.mrb[17].mxu1  ;;  %v1007_v7 = vpop.f32.mrb[18].mxu0  ;;  %1820 = vmatprep.subr.bf16.mxu1 %v1536_v53 }
 0x1c3   :  { %v1119_v24 = vadd.f32 %v1118_v54, %v3770_v52  ;;  %v1008_v26 = vadd.f32 %v1007_v7, %v3768_v9  ;;  %v1120_v37 = vpop.f32.mrb[18].mxu1  ;;  %v1009_v8 = vpop.f32.mrb[19].mxu0  ;;  %1821 = vmatpush1.bf16.msra.mxu1 %v1535_v39  ;;  %v1445_v36 = vmax.f32 %v1004_v30, 0.0 }
 0x1c4   :  { %v1121_v15 = vadd.f32 %v1120_v37, %v3768_v9  ;;  %v1010_v51 = vadd.f32 %v1009_v8, %v3768_v9  ;;  %v1122_v43 = vpop.f32.mrb[19].mxu1  ;;  %v1447_v6 = vmax.f32 %v1117_v55, 0.0  ;;  %v1446_v4 = vmax.f32 %v1006_v2, 0.0  ;;  %v3792_v27 = vpop.permute.xlu1 %868 }
 0x1c5   :  { %v1453_v16 = vmax.f32 %v1008_v26, 0.0  ;;  %v1123_v44 = vadd.f32 %v1122_v43, %v3768_v9  ;;  %v1448_v0 = vmax.f32 %v1119_v24, 0.0  ;;  %v3794_v55 = vpop.permute.xlu0 %863 }
 0x1c6   :  { %v1455_v48 = vmax.f32 %v1121_v15, 0.0  ;;  %v1454_v19 = vmax.f32 %v1010_v51, 0.0 }
 0x1c7   :  { %v1541_v29 = vpack.c.bf16 %v1453_v16, %v1445_v36  ;;  %v1456_v45 = vmax.f32 %v1123_v44, 0.0 }
 0x1c8   :  { %v1543_v20 = vpack.c.bf16 %v1455_v48, %v1447_v6  ;;  %v1542_v35 = vpack.c.bf16 %v1454_v19, %v1446_v4  ;;  %v1013_v40 = vpop.f32.mrb[20].mxu0 }
 0x1c9   :  { %v1544_v41 = vpack.c.bf16 %v1456_v45, %v1448_v0  ;;  %v1014_v46 = vadd.f32 %v1013_v40, %v3782_v38  ;;  %v1126_v18 = vpop.f32.mrb[20].mxu1  ;;  %v1015_v17 = vpop.f32.mrb[21].mxu0 }
 0x1ca   :  { %v1127_v21 = vadd.f32 %v1126_v18, %v3782_v38  ;;  %v1016_v49 = vadd.f32 %v1015_v17, %v3782_v38  ;;  %v1128_v60 = vpop.f32.mrb[21].mxu1  ;;  %v1017_v50 = vpop.f32.mrb[22].mxu0  ;;  %1709 = vmatprep.subr.bf16.mxu0 %v1542_v35 }
 0x1cb   :  { %v1129_v59 = vadd.f32 %v1128_v60, %v3782_v38  ;;  %v1018_v62 = vadd.f32 %v1017_v50, %v3780_v5  ;;  %v1130_v31 = vpop.f32.mrb[22].mxu1  ;;  %1822 = vmatprep.subr.bf16.mxu1 %v1544_v41  ;;  %v1019_v22 = vpop.f32.mrb[23].mxu0  ;;  %1710 = vmatpush1.bf16.msra.mxu0 %v1541_v29  ;;  %v1461_v25 = vmax.f32 %v1014_v46, 0.0 }
 0x1cc   :  { %v1131_v32 = vadd.f32 %v1130_v31, %v3780_v5  ;;  %v1020_v58 = vadd.f32 %v1019_v22, %v3780_v5  ;;  %v1132_v57 = vpop.f32.mrb[23].mxu1  ;;  %1823 = vmatpush1.bf16.msra.mxu1 %v1543_v20  ;;  %v1463_v14 = vmax.f32 %v1127_v21, 0.0  ;;  %v1462_v10 = vmax.f32 %v1016_v49, 0.0  ;;  %v3804_v18 = vpop.permute.xlu1 %878 }
 0x1cd   :  { %v1469_v61 = vmax.f32 %v1018_v62, 0.0  ;;  %v1133_v13 = vadd.f32 %v1132_v57, %v3780_v5  ;;  %v1464_v30 = vmax.f32 %v1129_v59, 0.0  ;;  %v3806_v60 = vpop.permute.xlu0 %873 }
 0x1ce   :  { %v1471_v39 = vmax.f32 %v1131_v32, 0.0  ;;  %v1470_v53 = vmax.f32 %v1020_v58, 0.0 }
 0x1cf   :  { %v1549_v56 = vpack.c.bf16 %v1469_v61, %v1461_v25  ;;  %v1472_v1 = vmax.f32 %v1133_v13, 0.0 }
 0x1d0   :  { %v1551_v2 = vpack.c.bf16 %v1471_v39, %v1463_v14  ;;  %v1550_v54 = vpack.c.bf16 %v1470_v53, %v1462_v10  ;;  %v1023_v7 = vpop.f32.mrb[24].mxu0 }
 0x1d1   :  { %v1552_v24 = vpack.c.bf16 %v1472_v1, %v1464_v30  ;;  %v1024_v26 = vadd.f32 %v1023_v7, %v3794_v55  ;;  %v1136_v37 = vpop.f32.mrb[24].mxu1  ;;  %v1025_v8 = vpop.f32.mrb[25].mxu0 }
 0x1d2   :  { %v1137_v15 = vadd.f32 %v1136_v37, %v3794_v55  ;;  %v1026_v51 = vadd.f32 %v1025_v8, %v3794_v55  ;;  %v1138_v43 = vpop.f32.mrb[25].mxu1  ;;  %v1027_v36 = vpop.f32.mrb[26].mxu0  ;;  %1711 = vmatprep.subr.bf16.mxu0 %v1550_v54 }
 0x1d3   :  { %v1139_v16 = vadd.f32 %v1138_v43, %v3794_v55  ;;  %v1028_v44 = vadd.f32 %v1027_v36, %v3792_v27  ;;  %v1140_v6 = vpop.f32.mrb[26].mxu1  ;;  %1824 = vmatprep.subr.bf16.mxu1 %v1552_v24  ;;  %v1029_v4 = vpop.f32.mrb[27].mxu0  ;;  %1712 = vmatpush1.bf16.msra.mxu0 %v1549_v56  ;;  %v1477_v29 = vmax.f32 %v1024_v26, 0.0 }
 0x1d4   :  { %v1141_v48 = vadd.f32 %v1140_v6, %v3792_v27  ;;  %v1030_v19 = vadd.f32 %v1029_v4, %v3792_v27  ;;  %v1142_v0 = vpop.f32.mrb[27].mxu1  ;;  %1825 = vmatpush1.bf16.msra.mxu1 %v1551_v2  ;;  %v1479_v35 = vmax.f32 %v1137_v15, 0.0  ;;  %v1478_v40 = vmax.f32 %v1026_v51, 0.0 }
 0x1d5   :  { %v1485_v45 = vmax.f32 %v1028_v44, 0.0  ;;  %v1143_v20 = vadd.f32 %v1142_v0, %v3792_v27  ;;  %v1480_v17 = vmax.f32 %v1139_v16, 0.0 }
 0x1d6   :  { %v1487_v41 = vmax.f32 %v1141_v48, 0.0  ;;  %v1486_v46 = vmax.f32 %v1030_v19, 0.0 }
 0x1d7   :  { %v1557_v21 = vpack.c.bf16 %v1485_v45, %v1477_v29  ;;  %v1488_v49 = vmax.f32 %v1143_v20, 0.0 }
 0x1d8   :  { %v1559_v50 = vpack.c.bf16 %v1487_v41, %v1479_v35  ;;  %v1558_v59 = vpack.c.bf16 %v1486_v46, %v1478_v40  ;;  %v1033_v62 = vpop.f32.mrb[28].mxu0  ;;  %v3822_v35 = vld [vmem:[%s4342_s6] sm:$0xff]  }
 0x1d9   :  { %v1560_v31 = vpack.c.bf16 %v1488_v49, %v1480_v17  ;;  %v1034_v22 = vadd.f32 %v1033_v62, %v3806_v60  ;;  %v1146_v32 = vpop.f32.mrb[28].mxu1  ;;  %v1035_v58 = vpop.f32.mrb[29].mxu0 }
 0x1da   :  { %v1147_v57 = vadd.f32 %v1146_v32, %v3806_v60  ;;  %v1036_v25 = vadd.f32 %v1035_v58, %v3806_v60  ;;  %v1148_v61 = vpop.f32.mrb[29].mxu1  ;;  %v1037_v13 = vpop.f32.mrb[30].mxu0  ;;  %1713 = vmatprep.subr.bf16.mxu0 %v1558_v59 }
 0x1db   :  { %v1149_v14 = vadd.f32 %v1148_v61, %v3806_v60  ;;  %v1038_v10 = vadd.f32 %v1037_v13, %v3804_v18  ;;  %v1150_v39 = vpop.f32.mrb[30].mxu1  ;;  %1826 = vmatprep.subr.bf16.mxu1 %v1560_v31  ;;  %v1039_v53 = vpop.f32.mrb[31].mxu0  ;;  %1714 = vmatpush1.bf16.msra.mxu0 %v1557_v21  ;;  %v1493_v2 = vmax.f32 %v1034_v22, 0.0 }
 0x1dc   :  { %v1151_v30 = vadd.f32 %v1150_v39, %v3804_v18  ;;  %v1040_v56 = vadd.f32 %v1039_v53, %v3804_v18  ;;  %v1152_v1 = vpop.f32.mrb[31].mxu1  ;;  %1827 = vmatpush1.bf16.msra.mxu1 %v1559_v50  ;;  %v1495_v24 = vmax.f32 %v1147_v57, 0.0  ;;  %v1494_v26 = vmax.f32 %v1036_v25, 0.0 }
 0x1dd   :  { %v1501_v54 = vmax.f32 %v1038_v10, 0.0  ;;  %v1153_v7 = vadd.f32 %v1152_v1, %v3804_v18  ;;  %v1496_v15 = vmax.f32 %v1149_v14, 0.0 }
 0x1de   :  { %v1503_v37 = vmax.f32 %v1151_v30, 0.0  ;;  %v1502_v8 = vmax.f32 %v1040_v56, 0.0 }
 0x1df   :  { %v1565_v51 = vpack.c.bf16 %v1501_v54, %v1493_v2  ;;  %v1504_v43 = vmax.f32 %v1153_v7, 0.0  ;;  %v3839_v7 = vld [vmem:[%s4342_s6 + $0x8] sm:$0xff]  }
 0x1e0   :  { %v1567_v36 = vpack.c.bf16 %v1503_v37, %v1495_v24  ;;  %v1566_v16 = vpack.c.bf16 %v1502_v8, %v1494_v26  ;;  %v1189_v44 = vpop.f32.mrb[32].mxu0 }
 0x1e1   :  { %v1568_v6 = vpack.c.bf16 %v1504_v43, %v1496_v15  ;;  %v1190_v4 = vadd.f32 %v1189_v44, %v3722_v23  ;;  %v1302_v48 = vpop.f32.mrb[32].mxu1  ;;  %v1191_v19 = vpop.f32.mrb[33].mxu0 }
 0x1e2   :  { %v1303_v0 = vadd.f32 %v1302_v48, %v3722_v23  ;;  %v1192_v29 = vadd.f32 %v1191_v19, %v3722_v23  ;;  %v1304_v45 = vpop.f32.mrb[33].mxu1  ;;  %v1193_v20 = vpop.f32.mrb[34].mxu0  ;;  %1715 = vmatprep.subr.bf16.mxu0 %v1566_v16 }
 0x1e3   :  { %v1305_v40 = vadd.f32 %v1304_v45, %v3722_v23  ;;  %v1194_v41 = vadd.f32 %v1193_v20, %v3720_v11  ;;  %v1306_v46 = vpop.f32.mrb[34].mxu1  ;;  %1828 = vmatprep.subr.bf16.mxu1 %v1568_v6  ;;  %v1195_v17 = vpop.f32.mrb[35].mxu0  ;;  %1716 = vmatpush1.bf16.msra.mxu0 %v1565_v51  ;;  %v1385_v59 = vmax.f32 %v1190_v4, 0.0 }
 0x1e4   :  { %v1307_v21 = vadd.f32 %v1306_v46, %v3720_v11  ;;  %v1196_v49 = vadd.f32 %v1195_v17, %v3720_v11  ;;  %v1308_v50 = vpop.f32.mrb[35].mxu1  ;;  %1829 = vmatpush1.bf16.msra.mxu1 %v1567_v36  ;;  %v1387_v22 = vmax.f32 %v1303_v0, 0.0  ;;  %v1386_v32 = vmax.f32 %v1192_v29, 0.0 }
 0x1e5   :  { %v1393_v62 = vmax.f32 %v1194_v41, 0.0  ;;  %v1309_v31 = vadd.f32 %v1308_v50, %v3720_v11  ;;  %v1388_v57 = vmax.f32 %v1305_v40, 0.0 }
 0x1e6   :  { %v1395_v58 = vmax.f32 %v1307_v21, 0.0  ;;  %v1394_v23 = vmax.f32 %v1196_v49, 0.0  ;;  %1734 = vmatmul.mubr.bf16.vlgmr.msra.gmra.mrb[64].mxu0 %v3822_v35 }
 0x1e7   :  { %v1513_v25 = vpack.c.bf16 %v1393_v62, %v1385_v59  ;;  %v1396_v61 = vmax.f32 %v1309_v31, 0.0  ;;  %1847 = vmatmul.mubr.bf16.vlgmr.msra.gmra.mrb[64].mxu1 %v3822_v35  ;;  %1743 = vmatprep.mubr.bf16.mxu0 %v2808_v3  ;;  %v3856_v62 = vld [vmem:[%s4342_s6 + $0x10] sm:$0xff]  }
 0x1e8   :  { %v1515_v13 = vpack.c.bf16 %v1395_v58, %v1387_v22  ;;  %v1514_v14 = vpack.c.bf16 %v1394_v23, %v1386_v32  ;;  %v1199_v10 = vpop.f32.mrb[36].mxu0  ;;  %1856 = vmatprep.mubr.bf16.mxu1 %v2808_v3 }
 0x1e9   :  { %v1516_v39 = vpack.c.bf16 %v1396_v61, %v1388_v57  ;;  %v1200_v11 = vadd.f32 %v1199_v10, %v3734_v33  ;;  %v1312_v53 = vpop.f32.mrb[36].mxu1  ;;  %v1201_v30 = vpop.f32.mrb[37].mxu0 }
 0x1ea   :  { %v1313_v56 = vadd.f32 %v1312_v53, %v3734_v33  ;;  %v1202_v1 = vadd.f32 %v1201_v30, %v3734_v33  ;;  %v1314_v2 = vpop.f32.mrb[37].mxu1  ;;  %v1203_v54 = vpop.f32.mrb[38].mxu0  ;;  %1927 = vmatprep.subr.bf16.mxu0 %v1514_v14 }
 0x1eb   :  { %v1315_v24 = vadd.f32 %v1314_v2, %v3734_v33  ;;  %v1204_v26 = vadd.f32 %v1203_v54, %v3732_v34  ;;  %v1316_v37 = vpop.f32.mrb[38].mxu1  ;;  %2040 = vmatprep.subr.bf16.mxu1 %v1516_v39  ;;  %v1205_v8 = vpop.f32.mrb[39].mxu0  ;;  %1928 = vmatpush1.bf16.msra.mxu0 %v1513_v25  ;;  %v1401_v36 = vmax.f32 %v1200_v11, 0.0 }
 0x1ec   :  { %v1317_v15 = vadd.f32 %v1316_v37, %v3732_v34  ;;  %v1206_v51 = vadd.f32 %v1205_v8, %v3732_v34  ;;  %v1318_v43 = vpop.f32.mrb[39].mxu1  ;;  %2041 = vmatpush1.bf16.msra.mxu1 %v1515_v13  ;;  %v1403_v6 = vmax.f32 %v1313_v56, 0.0  ;;  %v1402_v4 = vmax.f32 %v1202_v1, 0.0 }
 0x1ed   :  { %v1409_v16 = vmax.f32 %v1204_v26, 0.0  ;;  %v1319_v44 = vadd.f32 %v1318_v43, %v3732_v34  ;;  %v1404_v19 = vmax.f32 %v1315_v24, 0.0 }
 0x1ee   :  { %v1411_v48 = vmax.f32 %v1317_v15, 0.0  ;;  %v1410_v33 = vmax.f32 %v1206_v51, 0.0  ;;  %1744 = vmatmul.mubr.bf16.gmra.mrb[68].mxu0 %v3839_v7 }
 0x1ef   :  { %v1521_v0 = vpack.c.bf16 %v1409_v16, %v1401_v36  ;;  %v1412_v29 = vmax.f32 %v1319_v44, 0.0  ;;  %1857 = vmatmul.mubr.bf16.gmra.mrb[68].mxu1 %v3839_v7  ;;  %1753 = vmatprep.mubr.bf16.mxu0 %v2808_v3  ;;  %v3873_v36 = vld [vmem:[%s4342_s6 + $0x18] sm:$0xff]  }
 0x1f0   :  { %v1523_v45 = vpack.c.bf16 %v1411_v48, %v1403_v6  ;;  %v1522_v20 = vpack.c.bf16 %v1410_v33, %v1402_v4  ;;  %v1209_v40 = vpop.f32.mrb[40].mxu0  ;;  %1866 = vmatprep.mubr.bf16.mxu1 %v2808_v3 }
 0x1f1   :  { %v1524_v41 = vpack.c.bf16 %v1412_v29, %v1404_v19  ;;  %v1210_v34 = vadd.f32 %v1209_v40, %v3746_v12  ;;  %v1322_v46 = vpop.f32.mrb[40].mxu1  ;;  %v1211_v17 = vpop.f32.mrb[41].mxu0 }
 0x1f2   :  { %v1323_v21 = vadd.f32 %v1322_v46, %v3746_v12  ;;  %v1212_v49 = vadd.f32 %v1211_v17, %v3746_v12  ;;  %v1324_v50 = vpop.f32.mrb[41].mxu1  ;;  %v1213_v59 = vpop.f32.mrb[42].mxu0  ;;  %1929 = vmatprep.subr.bf16.mxu0 %v1522_v20 }
 0x1f3   :  { %v1325_v31 = vadd.f32 %v1324_v50, %v3746_v12  ;;  %v1214_v22 = vadd.f32 %v1213_v59, %v3744_v28  ;;  %v1326_v32 = vpop.f32.mrb[42].mxu1  ;;  %2042 = vmatprep.subr.bf16.mxu1 %v1524_v41  ;;  %v1215_v58 = vpop.f32.mrb[43].mxu0  ;;  %1930 = vmatpush1.bf16.msra.mxu0 %v1521_v0  ;;  %v1417_v61 = vmax.f32 %v1210_v34, 0.0 }
 0x1f4   :  { %v1327_v23 = vadd.f32 %v1326_v32, %v3744_v28  ;;  %v1216_v57 = vadd.f32 %v1215_v58, %v3744_v28  ;;  %v1328_v25 = vpop.f32.mrb[43].mxu1  ;;  %2043 = vmatpush1.bf16.msra.mxu1 %v1523_v45  ;;  %v1419_v10 = vmax.f32 %v1323_v21, 0.0  ;;  %v1418_v39 = vmax.f32 %v1212_v49, 0.0 }
 0x1f5   :  { %v1425_v13 = vmax.f32 %v1214_v22, 0.0  ;;  %v1329_v14 = vadd.f32 %v1328_v25, %v3744_v28  ;;  %v1420_v53 = vmax.f32 %v1325_v31, 0.0  ;;  %v3890_v25 = vld [vmem:[%s4342_s6 + $0x20] sm:$0xff]  }
 0x1f6   :  { %v1427_v11 = vmax.f32 %v1327_v23, 0.0  ;;  %v1426_v12 = vmax.f32 %v1216_v57, 0.0  ;;  %1754 = vmatmul.mubr.bf16.gmra.mrb[72].mxu0 %v3856_v62 }
 0x1f7   :  { %v1529_v30 = vpack.c.bf16 %v1425_v13, %v1417_v61  ;;  %v1428_v56 = vmax.f32 %v1329_v14, 0.0  ;;  %1867 = vmatmul.mubr.bf16.gmra.mrb[72].mxu1 %v3856_v62  ;;  %1763 = vmatprep.mubr.bf16.mxu0 %v2808_v3 }
 0x1f8   :  { %v1531_v1 = vpack.c.bf16 %v1427_v11, %v1419_v10  ;;  %v1530_v2 = vpack.c.bf16 %v1426_v12, %v1418_v39  ;;  %v1219_v54 = vpop.f32.mrb[44].mxu0  ;;  %1876 = vmatprep.mubr.bf16.mxu1 %v2808_v3 }
 0x1f9   :  { %v1532_v24 = vpack.c.bf16 %v1428_v56, %v1420_v53  ;;  %v1220_v28 = vadd.f32 %v1219_v54, %v3756_v47  ;;  %v1332_v26 = vpop.f32.mrb[44].mxu1  ;;  %v1221_v37 = vpop.f32.mrb[45].mxu0 }
 0x1fa   :  { %v1333_v8 = vadd.f32 %v1332_v26, %v3756_v47  ;;  %v1222_v15 = vadd.f32 %v1221_v37, %v3756_v47  ;;  %v1334_v51 = vpop.f32.mrb[45].mxu1  ;;  %v1223_v43 = vpop.f32.mrb[46].mxu0  ;;  %1931 = vmatprep.subr.bf16.mxu0 %v1530_v2 }
 0x1fb   :  { %v1335_v16 = vadd.f32 %v1334_v51, %v3756_v47  ;;  %v1224_v44 = vadd.f32 %v1223_v43, %v3758_v42  ;;  %v1336_v6 = vpop.f32.mrb[46].mxu1  ;;  %2044 = vmatprep.subr.bf16.mxu1 %v1532_v24  ;;  %v1225_v4 = vpop.f32.mrb[47].mxu0  ;;  %1932 = vmatpush1.bf16.msra.mxu0 %v1529_v30  ;;  %v1433_v0 = vmax.f32 %v1220_v28, 0.0 }
 0x1fc   :  { %v1337_v48 = vadd.f32 %v1336_v6, %v3758_v42  ;;  %v1226_v33 = vadd.f32 %v1225_v4, %v3758_v42  ;;  %v1338_v19 = vpop.f32.mrb[47].mxu1  ;;  %2045 = vmatpush1.bf16.msra.mxu1 %v1531_v1  ;;  %v1435_v20 = vmax.f32 %v1333_v8, 0.0  ;;  %v1434_v40 = vmax.f32 %v1222_v15, 0.0 }
 0x1fd   :  { %v1441_v29 = vmax.f32 %v1224_v44, 0.0  ;;  %v1339_v45 = vadd.f32 %v1338_v19, %v3758_v42  ;;  %v1436_v34 = vmax.f32 %v1335_v16, 0.0 }
 0x1fe   :  { %v1443_v41 = vmax.f32 %v1337_v48, 0.0  ;;  %v1442_v47 = vmax.f32 %v1226_v33, 0.0  ;;  %1764 = vmatmul.mubr.bf16.gmra.mrb[76].mxu0 %v3873_v36  ;;  %v3907_v33 = vld [vmem:[%s4342_s6 + $0x28] sm:$0xff]  }
 0x1ff   :  { %v1537_v46 = vpack.c.bf16 %v1441_v29, %v1433_v0  ;;  %v1444_v17 = vmax.f32 %v1339_v45, 0.0  ;;  %1877 = vmatmul.mubr.bf16.gmra.mrb[76].mxu1 %v3873_v36  ;;  %1773 = vmatprep.mubr.bf16.mxu0 %v2808_v3 }
 0x200   :  { %v1539_v21 = vpack.c.bf16 %v1443_v41, %v1435_v20  ;;  %v1538_v49 = vpack.c.bf16 %v1442_v47, %v1434_v40  ;;  %v1229_v50 = vpop.f32.mrb[48].mxu0  ;;  %1886 = vmatprep.mubr.bf16.mxu1 %v2808_v3 }
 0x201   :  { %v1540_v59 = vpack.c.bf16 %v1444_v17, %v1436_v34  ;;  %v1230_v42 = vadd.f32 %v1229_v50, %v3770_v52  ;;  %v1342_v31 = vpop.f32.mrb[48].mxu1  ;;  %v1231_v22 = vpop.f32.mrb[49].mxu0 }
 0x202   :  { %v1343_v32 = vadd.f32 %v1342_v31, %v3770_v52  ;;  %v1232_v58 = vadd.f32 %v1231_v22, %v3770_v52  ;;  %v1344_v23 = vpop.f32.mrb[49].mxu1  ;;  %v1233_v57 = vpop.f32.mrb[50].mxu0  ;;  %1933 = vmatprep.subr.bf16.mxu0 %v1538_v49 }
 0x203   :  { %v1345_v61 = vadd.f32 %v1344_v23, %v3770_v52  ;;  %v1234_v13 = vadd.f32 %v1233_v57, %v3768_v9  ;;  %v1346_v14 = vpop.f32.mrb[50].mxu1  ;;  %2046 = vmatprep.subr.bf16.mxu1 %v1540_v59  ;;  %v1235_v10 = vpop.f32.mrb[51].mxu0  ;;  %1934 = vmatpush1.bf16.msra.mxu0 %v1537_v46  ;;  %v1449_v53 = vmax.f32 %v1230_v42, 0.0 }
 0x204   :  { %v1347_v39 = vadd.f32 %v1346_v14, %v3768_v9  ;;  %v1236_v11 = vadd.f32 %v1235_v10, %v3768_v9  ;;  %v1348_v12 = vpop.f32.mrb[51].mxu1  ;;  %2047 = vmatpush1.bf16.msra.mxu1 %v1539_v21  ;;  %v1451_v1 = vmax.f32 %v1343_v32, 0.0  ;;  %v1450_v2 = vmax.f32 %v1232_v58, 0.0 }
 0x205   :  { %v1457_v30 = vmax.f32 %v1234_v13, 0.0  ;;  %v1349_v56 = vadd.f32 %v1348_v12, %v3768_v9  ;;  %v1452_v24 = vmax.f32 %v1345_v61, 0.0 }
 0x206   :  { %v1459_v54 = vmax.f32 %v1347_v39, 0.0  ;;  %v1458_v52 = vmax.f32 %v1236_v11, 0.0  ;;  %1774 = vmatmul.mubr.bf16.gmra.mrb[80].mxu0 %v3890_v25  ;;  %v3924_v39 = vld [vmem:[%s4342_s6 + $0x30] sm:$0xff]  }
 0x207   :  { %v1545_v28 = vpack.c.bf16 %v1457_v30, %v1449_v53  ;;  %v1460_v26 = vmax.f32 %v1349_v56, 0.0  ;;  %1887 = vmatmul.mubr.bf16.gmra.mrb[80].mxu1 %v3890_v25  ;;  %1783 = vmatprep.mubr.bf16.mxu0 %v2808_v3 }
 0x208   :  { %v1547_v37 = vpack.c.bf16 %v1459_v54, %v1451_v1  ;;  %v1546_v8 = vpack.c.bf16 %v1458_v52, %v1450_v2  ;;  %v1239_v15 = vpop.f32.mrb[52].mxu0  ;;  %1896 = vmatprep.mubr.bf16.mxu1 %v2808_v3 }
 0x209   :  { %v1548_v51 = vpack.c.bf16 %v1460_v26, %v1452_v24  ;;  %v1240_v9 = vadd.f32 %v1239_v15, %v3782_v38  ;;  %v1352_v43 = vpop.f32.mrb[52].mxu1  ;;  %v1241_v16 = vpop.f32.mrb[53].mxu0 }
 0x20a   :  { %v1353_v44 = vadd.f32 %v1352_v43, %v3782_v38  ;;  %v1242_v6 = vadd.f32 %v1241_v16, %v3782_v38  ;;  %v1354_v4 = vpop.f32.mrb[53].mxu1  ;;  %v1243_v48 = vpop.f32.mrb[54].mxu0  ;;  %1935 = vmatprep.subr.bf16.mxu0 %v1546_v8 }
 0x20b   :  { %v1355_v19 = vadd.f32 %v1354_v4, %v3782_v38  ;;  %v1244_v0 = vadd.f32 %v1243_v48, %v3780_v5  ;;  %v1356_v29 = vpop.f32.mrb[54].mxu1  ;;  %2048 = vmatprep.subr.bf16.mxu1 %v1548_v51  ;;  %v1245_v45 = vpop.f32.mrb[55].mxu0  ;;  %1936 = vmatpush1.bf16.msra.mxu0 %v1545_v28  ;;  %v1465_v47 = vmax.f32 %v1240_v9, 0.0 }
 0x20c   :  { %v1357_v20 = vadd.f32 %v1356_v29, %v3780_v5  ;;  %v1246_v40 = vadd.f32 %v1245_v45, %v3780_v5  ;;  %v1358_v41 = vpop.f32.mrb[55].mxu1  ;;  %2049 = vmatpush1.bf16.msra.mxu1 %v1547_v37  ;;  %v1467_v17 = vmax.f32 %v1353_v44, 0.0  ;;  %v1466_v21 = vmax.f32 %v1242_v6, 0.0  ;;  %v2783_v45 = vld [vmem:[%s4342_s6 + $0x38] sm:$0xff]   ;;  %s2810_s6 = smov [#allocation5]  }
 0x20d   :  { %v1473_v34 = vmax.f32 %v1244_v0, 0.0  ;;  %v1359_v46 = vadd.f32 %v1358_v41, %v3780_v5  ;;  %v1468_v50 = vmax.f32 %v1355_v19, 0.0  ;;  %s2739_s30 = sshll.u32 %s2810_s6, 4  ;;  %s2740_s30 = int_to_ptr.vmem [resolvable:$true] %s2739_s30 }
 0x20e   :  { %v1475_v49 = vmax.f32 %v1357_v20, 0.0  ;;  %v1474_v38 = vmax.f32 %v1246_v40, 0.0  ;;  %1784 = vmatmul.mubr.bf16.gmra.mrb[84].mxu0 %v3907_v33  ;;  %s2784_s11 = scalar_lea.vmem %s2740_s30, 128  ;;  %p2789_p1 = scmp.lt.s32.totalorder %s2740_s30, %s2740_s30 }
 0x20f   :  { %v1553_v59 = vpack.c.bf16 %v1473_v34, %v1465_v47  ;;  %v1476_v42 = vmax.f32 %v1359_v46, 0.0  ;;  %1897 = vmatmul.mubr.bf16.gmra.mrb[84].mxu1 %v3907_v33  ;;  %1793 = vmatprep.mubr.bf16.mxu0 %v2808_v3  ;;  %p2785_p0 = scmp.ne.s32.totalorder %s2740_s30, %s2784_s11  ;;  %p2790_p2 = scmp.lt.s32.totalorder %s2784_s11, %s2784_s11 }
 0x210   :  { %v1555_v31 = vpack.c.bf16 %v1475_v49, %v1467_v17  ;;  %v1554_v22 = vpack.c.bf16 %v1474_v38, %v1466_v21  ;;  %v1249_v32 = vpop.f32.mrb[56].mxu0  ;;  %1906 = vmatprep.mubr.bf16.mxu1 %v2808_v3 }
 0x211   :  { %v1556_v58 = vpack.c.bf16 %v1476_v42, %v1468_v50  ;;  %v1250_v5 = vadd.f32 %v1249_v32, %v3794_v55  ;;  %v1362_v23 = vpop.f32.mrb[56].mxu1  ;;  %v1251_v57 = vpop.f32.mrb[57].mxu0  ;;  %p2791_p3 = por %p2790_p2, %p2789_p1 }
 0x212   :  { %v1363_v61 = vadd.f32 %v1362_v23, %v3794_v55  ;;  %v1252_v13 = vadd.f32 %v1251_v57, %v3794_v55  ;;  %v1364_v14 = vpop.f32.mrb[57].mxu1  ;;  %v1253_v10 = vpop.f32.mrb[58].mxu0  ;;  %1937 = vmatprep.subr.bf16.mxu0 %v1554_v22 }
 0x213   :  { %v1365_v11 = vadd.f32 %v1364_v14, %v3794_v55  ;;  %v1254_v12 = vadd.f32 %v1253_v10, %v3792_v27  ;;  %v1366_v53 = vpop.f32.mrb[58].mxu1  ;;  %2050 = vmatprep.subr.bf16.mxu1 %v1556_v58  ;;  %v1255_v30 = vpop.f32.mrb[59].mxu0  ;;  %1938 = vmatpush1.bf16.msra.mxu0 %v1553_v59  ;;  %v1481_v54 = vmax.f32 %v1250_v5, 0.0  ;;  %p2792_p4 = pnand %p2791_p3, %p2785_p0 }
 0x214   :  { %v1367_v56 = vadd.f32 %v1366_v53, %v3792_v27  ;;  %v1256_v1 = vadd.f32 %v1255_v30, %v3792_v27  ;;  %v1368_v2 = vpop.f32.mrb[59].mxu1  ;;  %2051 = vmatpush1.bf16.msra.mxu1 %v1555_v31  ;;  %v1483_v28 = vmax.f32 %v1363_v61, 0.0  ;;  %v1482_v26 = vmax.f32 %v1252_v13, 0.0 }
 0x215   :  { %v1489_v52 = vmax.f32 %v1254_v12, 0.0  ;;  %v1369_v24 = vadd.f32 %v1368_v2, %v3792_v27  ;;  %v1484_v8 = vmax.f32 %v1365_v11, 0.0 }
 0x216   :  { %v1491_v37 = vmax.f32 %v1367_v56, 0.0  ;;  %v1490_v55 = vmax.f32 %v1256_v1, 0.0  ;;  %1794 = vmatmul.mubr.bf16.gmra.mrb[88].mxu0 %v3924_v39 }
 0x217   :  { %v1561_v15 = vpack.c.bf16 %v1489_v52, %v1481_v54  ;;  %v1492_v51 = vmax.f32 %v1369_v24, 0.0  ;;  %1907 = vmatmul.mubr.bf16.gmra.mrb[88].mxu1 %v3924_v39  ;;  %1803 = vmatprep.mubr.bf16.mxu0 %v2808_v3 }
 0x218   :  { %v1563_v9 = vpack.c.bf16 %v1491_v37, %v1483_v28  ;;  %v1562_v43 = vpack.c.bf16 %v1490_v55, %v1482_v26  ;;  %v1259_v16 = vpop.f32.mrb[60].mxu0  ;;  %1916 = vmatprep.mubr.bf16.mxu1 %v2808_v3 }
 0x219   :  { %v1564_v44 = vpack.c.bf16 %v1492_v51, %v1484_v8  ;;  %v1260_v27 = vadd.f32 %v1259_v16, %v3806_v60  ;;  %v1372_v6 = vpop.f32.mrb[60].mxu1  ;;  %v1261_v4 = vpop.f32.mrb[61].mxu0 }
 0x21a   :  { %v1373_v48 = vadd.f32 %v1372_v6, %v3806_v60  ;;  %v1262_v19 = vadd.f32 %v1261_v4, %v3806_v60  ;;  %v1374_v0 = vpop.f32.mrb[61].mxu1  ;;  %v1263_v29 = vpop.f32.mrb[62].mxu0  ;;  %1939 = vmatprep.subr.bf16.mxu0 %v1562_v43 }
 0x21b   :  { %v1375_v20 = vadd.f32 %v1374_v0, %v3806_v60  ;;  %v1264_v40 = vadd.f32 %v1263_v29, %v3804_v18  ;;  %v1376_v41 = vpop.f32.mrb[62].mxu1  ;;  %2052 = vmatprep.subr.bf16.mxu1 %v1564_v44  ;;  %v1265_v47 = vpop.f32.mrb[63].mxu0  ;;  %1940 = vmatpush1.bf16.msra.mxu0 %v1561_v15  ;;  %v1497_v21 = vmax.f32 %v1260_v27, 0.0 }
 0x21c   :  { %v1377_v34 = vadd.f32 %v1376_v41, %v3804_v18  ;;  %v1266_v46 = vadd.f32 %v1265_v47, %v3804_v18  ;;  %v1378_v17 = vpop.f32.mrb[63].mxu1  ;;  %2053 = vmatpush1.bf16.msra.mxu1 %v1563_v9  ;;  %v1499_v50 = vmax.f32 %v1373_v48, 0.0  ;;  %v1498_v59 = vmax.f32 %v1262_v19, 0.0 }
 0x21d   :  { %v1505_v49 = vmax.f32 %v1264_v40, 0.0  ;;  %v1379_v38 = vadd.f32 %v1378_v17, %v3804_v18  ;;  %v1500_v31 = vmax.f32 %v1375_v20, 0.0  ;;  %v3976_v18 = vpop.permute.xlu0 %1575  ;;  %v4351_v47 = vsub.s32 0, %v3053_v63 }
 0x21e   :  { %v1507_v42 = vmax.f32 %v1377_v34, 0.0  ;;  %v1506_v60 = vmax.f32 %v1266_v46, 0.0  ;;  %1804 = vmatmul.mubr.bf16.gmra.mrb[92].mxu0 %v2783_v45 }
 0x21f   :  { %v1569_v22 = vpack.c.bf16 %v1505_v49, %v1497_v21  ;;  %v1508_v32 = vmax.f32 %v1379_v38, 0.0  ;;  %1917 = vmatmul.mubr.bf16.gmra.mrb[92].mxu1 %v2783_v45  ;;  %1959 = vmatprep.mubr.bf16.mxu0 %v2808_v3 }
 0x220   :  { %v1571_v58 = vpack.c.bf16 %v1507_v42, %v1499_v50  ;;  %v1570_v5 = vpack.c.bf16 %v1506_v60, %v1498_v59  ;;  %2072 = vmatprep.mubr.bf16.mxu1 %v2808_v3 }
 0x221   :  { %v1572_v23 = vpack.c.bf16 %v1508_v32, %v1500_v31 }
 0x222   :  { %1941 = vmatprep.subr.bf16.mxu0 %v1570_v5 }
 0x223   :  { %2054 = vmatprep.subr.bf16.mxu1 %v1572_v23  ;;  %1942 = vmatpush1.bf16.msra.mxu0 %v1569_v22 }
 0x224   :  { %2055 = vmatpush1.bf16.msra.mxu1 %v1571_v58 }
 0x226   :  { %1960 = vmatmul.mubr.bf16.vlgmr.msra.gmra.mrb[96].mxu0 %v3822_v35 }
 0x227   :  { %2073 = vmatmul.mubr.bf16.vlgmr.msra.gmra.mrb[96].mxu1 %v3822_v35  ;;  %1969 = vmatprep.mubr.bf16.mxu0 %v2808_v3  ;;  %v3978_v35 = vpop.permute.xlu0 %1585 }
 0x228   :  { %2082 = vmatprep.mubr.bf16.mxu1 %v2808_v3 }
 0x22e   :  { %1970 = vmatmul.mubr.bf16.gmra.mrb[100].mxu0 %v3839_v7 }
 0x22f   :  { %2083 = vmatmul.mubr.bf16.gmra.mrb[100].mxu1 %v3839_v7  ;;  %1979 = vmatprep.mubr.bf16.mxu0 %v2808_v3  ;;  %v3980_v7 = vpop.permute.xlu0 %2283 }
 0x230   :  { %2092 = vmatprep.mubr.bf16.mxu1 %v2808_v3 }
 0x236   :  { %1980 = vmatmul.mubr.bf16.gmra.mrb[104].mxu0 %v3856_v62 }
 0x237   :  { %2093 = vmatmul.mubr.bf16.gmra.mrb[104].mxu1 %v3856_v62  ;;  %1989 = vmatprep.mubr.bf16.mxu0 %v2808_v3  ;;  %v3982_v62 = vpop.permute.xlu0 %1595 }
 0x238   :  { %2102 = vmatprep.mubr.bf16.mxu1 %v2808_v3 }
 0x23e   :  { %1990 = vmatmul.mubr.bf16.gmra.mrb[108].mxu0 %v3873_v36 }
 0x23f   :  { %2103 = vmatmul.mubr.bf16.gmra.mrb[108].mxu1 %v3873_v36  ;;  %1999 = vmatprep.mubr.bf16.mxu0 %v2808_v3  ;;  %v3984_v36 = vpop.permute.xlu0 %1600 }
 0x240   :  { %2112 = vmatprep.mubr.bf16.mxu1 %v2808_v3 }
 0x246   :  { %2000 = vmatmul.mubr.bf16.gmra.mrb[112].mxu0 %v3890_v25 }
 0x247   :  { %2113 = vmatmul.mubr.bf16.gmra.mrb[112].mxu1 %v3890_v25  ;;  %2009 = vmatprep.mubr.bf16.mxu0 %v2808_v3  ;;  %v3986_v25 = vpop.permute.xlu0 %1605 }
 0x248   :  { %2122 = vmatprep.mubr.bf16.mxu1 %v2808_v3 }
 0x24e   :  { %2010 = vmatmul.mubr.bf16.gmra.mrb[116].mxu0 %v3907_v33 }
 0x24f   :  { %2123 = vmatmul.mubr.bf16.gmra.mrb[116].mxu1 %v3907_v33  ;;  %2019 = vmatprep.mubr.bf16.mxu0 %v2808_v3  ;;  %v3988_v33 = vpop.permute.xlu0 %1610 }
 0x250   :  { %2132 = vmatprep.mubr.bf16.mxu1 %v2808_v3 }
 0x253   :  { %v3990_v57 = vpop.permute.xlu0 %1615 }
 0x256   :  { %2020 = vmatmul.mubr.bf16.gmra.mrb[120].mxu0 %v3924_v39 }
 0x257   :  { %2133 = vmatmul.mubr.bf16.gmra.mrb[120].mxu1 %v3924_v39  ;;  %2029 = vmatprep.mubr.bf16.mxu0 %v2808_v3  ;;  %v3992_v61 = vpop.permute.xlu0 %1620 }
 0x258   :  { %2142 = vmatprep.mubr.bf16.mxu1 %v2808_v3  ;;  %v3994_v3 = vpop.permute.xlu1 %1580 }
 0x25b   :  { %v3996_v13 = vpop.permute.xlu0 %1625 }
 0x25c   :  { %v3998_v14 = vpop.permute.xlu1 %1590 }
 0x25e   :  { %2030 = vmatmul.mubr.bf16.gmra.mrb[124].mxu0 %v2783_v45 }
 0x25f   :  { %2143 = vmatmul.mubr.bf16.gmra.mrb[124].mxu1 %v2783_v45  ;;  %v4000_v10 = vpop.permute.xlu0 %1630 }
 0x260   :  { %v4002_v39 = vpop.permute.xlu1 %2288 }
 0x263   :  { %v4004_v11 = vpop.permute.xlu0 %1635 }
 0x264   :  { %v4006_v12 = vpop.permute.xlu1 %2293 }
 0x267   :  { %v4008_v53 = vpop.permute.xlu0 %1640 }
 0x268   :  { %v4010_v30 = vpop.permute.xlu1 %2298 }
 0x26b   :  { %v4012_v56 = vpop.permute.xlu0 %1645 }
 0x26c   :  { %v4014_v1 = vpop.permute.xlu1 %2303 }
 0x26f   :  { %v4016_v2 = vpop.permute.xlu0 %1650 }
 0x270   :  { %v4018_v54 = vpop.permute.xlu1 %2308 }
 0x273   :  { %v4020_v52 = vpop.permute.xlu0 %2353 }
 0x274   :  { %v4022_v24 = vpop.permute.xlu1 %2313 }
 0x277   :  { %v2660_v28 = vpop.permute.xlu0 %2659 }
 0x278   :  { %v4034_v34 = vrot.slane %v2660_v28, %v4351_v47  ;;  %v4039_v59 = vpop.permute.xlu1 %2318 }
 0x27a   :  { %4352 = vst [vmem:[#allocation9_spill] sm:$0xff] %v4034_v34 }
 0x2b9   :  { %v1735_v26 = vpop.f32.mrb[64].mxu0 }
 0x2ba   :  { %v1736_v37 = vadd.f32 %v1735_v26, %v3976_v18  ;;  %v1848_v55 = vpop.f32.mrb[64].mxu1  ;;  %v1737_v8 = vpop.f32.mrb[65].mxu0 }
 0x2bb   :  { %v1849_v15 = vadd.f32 %v1848_v55, %v3976_v18  ;;  %v1738_v51 = vadd.f32 %v1737_v8, %v3976_v18  ;;  %v1850_v9 = vpop.f32.mrb[65].mxu1  ;;  %v1739_v43 = vpop.f32.mrb[66].mxu0 }
 0x2bc   :  { %v2153_v16 = vmax.f32 %v1736_v37, 0.0  ;;  %v1851_v44 = vadd.f32 %v1850_v9, %v3976_v18  ;;  %v1740_v27 = vadd.f32 %v1739_v43, %v3994_v3  ;;  %v1852_v6 = vpop.f32.mrb[66].mxu1  ;;  %v1741_v4 = vpop.f32.mrb[67].mxu0  ;;  %v2809_v37 = vmov 1966171168  }
 0x2bd   :  { %v2155_v48 = vmax.f32 %v1849_v15, 0.0  ;;  %v2154_v19 = vmax.f32 %v1738_v51, 0.0  ;;  %v1853_v0 = vadd.f32 %v1852_v6, %v3994_v3  ;;  %v1742_v29 = vadd.f32 %v1741_v4, %v3994_v3  ;;  %v1854_v45 = vpop.f32.mrb[67].mxu1 }
 0x2be   :  { %v2156_v20 = vmax.f32 %v1851_v44, 0.0  ;;  %v2161_v40 = vmax.f32 %v1740_v27, 0.0  ;;  %v1855_v41 = vadd.f32 %v1854_v45, %v3994_v3  ;;  %v2361_v46 = vmul.f32 %v3980_v7, %v2153_v16 }
 0x2bf   :  { %v2163_v17 = vmax.f32 %v1853_v0, 0.0  ;;  %v2162_v21 = vmax.f32 %v1742_v29, 0.0  ;;  %v2363_v49 = vmul.f32 %v3980_v7, %v2155_v48  ;;  %v2362_v42 = vmul.f32 %v3980_v7, %v2154_v19 }
 0x2c0   :  { %v2369_v38 = vmul.f32 %v4002_v39, %v2161_v40  ;;  %v2164_v50 = vmax.f32 %v1855_v41, 0.0  ;;  %v2364_v60 = vmul.f32 %v3980_v7, %v2156_v20  ;;  %v4047_v55 = vunpack.c.l.s4 %v2809_v37 }
 0x2c1   :  { %v2371_v31 = vmul.f32 %v4002_v39, %v2163_v17  ;;  %v2370_v22 = vmul.f32 %v4002_v39, %v2162_v21  ;;  %v1745_v32 = vpop.f32.mrb[68].mxu0 }
 0x2c2   :  { %v2489_v58 = vadd.f32 %v2369_v38, %v2361_v46  ;;  %v2372_v5 = vmul.f32 %v4002_v39, %v2164_v50  ;;  %v1746_v23 = vadd.f32 %v1745_v32, %v3978_v35  ;;  %v1858_v28 = vpop.f32.mrb[68].mxu1  ;;  %v1747_v26 = vpop.f32.mrb[69].mxu0  ;;  %4353 = vst [vmem:[#allocation10_spill] sm:$0xff] %v4047_v55 }
 0x2c3   :  { %v2531_v8 = vadd.f32 %v2371_v31, %v2363_v49  ;;  %v2510_v15 = vadd.f32 %v2370_v22, %v2362_v42  ;;  %v1859_v51 = vadd.f32 %v1858_v28, %v3978_v35  ;;  %v1748_v9 = vadd.f32 %v1747_v26, %v3978_v35  ;;  %v1860_v43 = vpop.f32.mrb[69].mxu1  ;;  %v1749_v16 = vpop.f32.mrb[70].mxu0 }
 0x2c4   :  { %v2552_v44 = vadd.f32 %v2372_v5, %v2364_v60  ;;  %v2169_v27 = vmax.f32 %v1746_v23, 0.0  ;;  %v1861_v6 = vadd.f32 %v1860_v43, %v3978_v35  ;;  %v1750_v4 = vadd.f32 %v1749_v16, %v3998_v14  ;;  %v1862_v48 = vpop.f32.mrb[70].mxu1  ;;  %v1751_v19 = vpop.f32.mrb[71].mxu0 }
 0x2c5   :  { %v2171_v0 = vmax.f32 %v1859_v51, 0.0  ;;  %v2170_v29 = vmax.f32 %v1748_v9, 0.0  ;;  %v1863_v45 = vadd.f32 %v1862_v48, %v3998_v14  ;;  %v1752_v20 = vadd.f32 %v1751_v19, %v3998_v14  ;;  %v1864_v40 = vpop.f32.mrb[71].mxu1  ;;  %v4061_v32 = vpop.permute.xlu1 %2323 }
 0x2c6   :  { %v2377_v41 = vmul.f32 %v4006_v12, %v2169_v27  ;;  %v2172_v47 = vmax.f32 %v1861_v6, 0.0  ;;  %v2177_v46 = vmax.f32 %v1750_v4, 0.0  ;;  %v1865_v17 = vadd.f32 %v1864_v40, %v3998_v14 }
 0x2c7   :  { %v2379_v21 = vmul.f32 %v4006_v12, %v2171_v0  ;;  %v2378_v49 = vmul.f32 %v4006_v12, %v2170_v29  ;;  %v2179_v38 = vmax.f32 %v1863_v45, 0.0  ;;  %v2178_v50 = vmax.f32 %v1752_v20, 0.0 }
 0x2c8   :  { %v2490_v42 = vadd.f32 %v2489_v58, %v2377_v41  ;;  %v2380_v60 = vmul.f32 %v4006_v12, %v2172_v47  ;;  %v2385_v31 = vmul.f32 %v4010_v30, %v2177_v46  ;;  %v2180_v22 = vmax.f32 %v1865_v17, 0.0 }
 0x2c9   :  { %v2532_v5 = vadd.f32 %v2531_v8, %v2379_v21  ;;  %v2511_v23 = vadd.f32 %v2510_v15, %v2378_v49  ;;  %v2387_v28 = vmul.f32 %v4010_v30, %v2179_v38  ;;  %v2386_v26 = vmul.f32 %v4010_v30, %v2178_v50  ;;  %v1755_v37 = vpop.f32.mrb[72].mxu0 }
 0x2ca   :  { %v2553_v51 = vadd.f32 %v2552_v44, %v2380_v60  ;;  %v2491_v9 = vadd.f32 %v2490_v42, %v2385_v31  ;;  %v2388_v43 = vmul.f32 %v4010_v30, %v2180_v22  ;;  %v1756_v58 = vadd.f32 %v1755_v37, %v3982_v62  ;;  %v1868_v16 = vpop.f32.mrb[72].mxu1  ;;  %v1757_v27 = vpop.f32.mrb[73].mxu0 }
 0x2cb   :  { %v2533_v6 = vadd.f32 %v2532_v5, %v2387_v28  ;;  %v2512_v4 = vadd.f32 %v2511_v23, %v2386_v26  ;;  %v1869_v48 = vadd.f32 %v1868_v16, %v3982_v62  ;;  %v1758_v8 = vadd.f32 %v1757_v27, %v3982_v62  ;;  %v1870_v15 = vpop.f32.mrb[73].mxu1  ;;  %v1759_v19 = vpop.f32.mrb[74].mxu0 }
 0x2cc   :  { %v2554_v0 = vadd.f32 %v2553_v51, %v2388_v43  ;;  %v2185_v29 = vmax.f32 %v1756_v58, 0.0  ;;  %v1871_v45 = vadd.f32 %v1870_v15, %v3982_v62  ;;  %v1760_v44 = vadd.f32 %v1759_v19, %v3984_v36  ;;  %v1872_v20 = vpop.f32.mrb[74].mxu1  ;;  %v1761_v40 = vpop.f32.mrb[75].mxu0 }
 0x2cd   :  { %v2187_v41 = vmax.f32 %v1869_v48, 0.0  ;;  %v2186_v47 = vmax.f32 %v1758_v8, 0.0  ;;  %v1873_v46 = vadd.f32 %v1872_v20, %v3984_v36  ;;  %v1762_v17 = vadd.f32 %v1761_v40, %v3984_v36  ;;  %v1874_v21 = vpop.f32.mrb[75].mxu1  ;;  %v4079_v51 = vpop.permute.xlu1 %2328 }
 0x2ce   :  { %v2393_v49 = vmul.f32 %v4014_v1, %v2185_v29  ;;  %v2188_v38 = vmax.f32 %v1871_v45, 0.0  ;;  %v2193_v50 = vmax.f32 %v1760_v44, 0.0  ;;  %v1875_v42 = vadd.f32 %v1874_v21, %v3984_v36 }
 0x2cf   :  { %v2395_v60 = vmul.f32 %v4014_v1, %v2187_v41  ;;  %v2394_v31 = vmul.f32 %v4014_v1, %v2186_v47  ;;  %v2195_v22 = vmax.f32 %v1873_v46, 0.0  ;;  %v2194_v5 = vmax.f32 %v1762_v17, 0.0 }
 0x2d0   :  { %v2492_v23 = vadd.f32 %v2491_v9, %v2393_v49  ;;  %v2396_v28 = vmul.f32 %v4014_v1, %v2188_v38  ;;  %v2401_v26 = vmul.f32 %v4018_v54, %v2193_v50  ;;  %v2196_v37 = vmax.f32 %v1875_v42, 0.0 }
 0x2d1   :  { %v2534_v43 = vadd.f32 %v2533_v6, %v2395_v60  ;;  %v2513_v58 = vadd.f32 %v2512_v4, %v2394_v31  ;;  %v2403_v16 = vmul.f32 %v4018_v54, %v2195_v22  ;;  %v2402_v27 = vmul.f32 %v4018_v54, %v2194_v5  ;;  %v1765_v48 = vpop.f32.mrb[76].mxu0 }
 0x2d2   :  { %v2555_v8 = vadd.f32 %v2554_v0, %v2396_v28  ;;  %v2493_v15 = vadd.f32 %v2492_v23, %v2401_v26  ;;  %v2404_v19 = vmul.f32 %v4018_v54, %v2196_v37  ;;  %v1766_v9 = vadd.f32 %v1765_v48, %v3986_v25  ;;  %v1878_v29 = vpop.f32.mrb[76].mxu1  ;;  %v1767_v45 = vpop.f32.mrb[77].mxu0 }
 0x2d3   :  { %v2535_v44 = vadd.f32 %v2534_v43, %v2403_v16  ;;  %v2514_v20 = vadd.f32 %v2513_v58, %v2402_v27  ;;  %v1879_v40 = vadd.f32 %v1878_v29, %v3986_v25  ;;  %v1768_v6 = vadd.f32 %v1767_v45, %v3986_v25  ;;  %v1880_v4 = vpop.f32.mrb[77].mxu1  ;;  %v1769_v41 = vpop.f32.mrb[78].mxu0 }
 0x2d4   :  { %v2556_v47 = vadd.f32 %v2555_v8, %v2404_v19  ;;  %v2201_v46 = vmax.f32 %v1766_v9, 0.0  ;;  %v1881_v17 = vadd.f32 %v1880_v4, %v3986_v25  ;;  %v1770_v0 = vadd.f32 %v1769_v41, %v3988_v33  ;;  %v1882_v21 = vpop.f32.mrb[78].mxu1  ;;  %v1771_v49 = vpop.f32.mrb[79].mxu0 }
 0x2d5   :  { %v2203_v38 = vmax.f32 %v1879_v40, 0.0  ;;  %v2202_v50 = vmax.f32 %v1768_v6, 0.0  ;;  %v1883_v42 = vadd.f32 %v1882_v21, %v3988_v33  ;;  %v1772_v60 = vadd.f32 %v1771_v49, %v3988_v33  ;;  %v1884_v31 = vpop.f32.mrb[79].mxu1  ;;  %v4097_v19 = vpop.permute.xlu1 %2333 }
 0x2d6   :  { %v2409_v22 = vmul.f32 %v4022_v24, %v2201_v46  ;;  %v2204_v5 = vmax.f32 %v1881_v17, 0.0  ;;  %v2209_v23 = vmax.f32 %v1770_v0, 0.0  ;;  %v1885_v28 = vadd.f32 %v1884_v31, %v3988_v33 }
 0x2d7   :  { %v2411_v26 = vmul.f32 %v4022_v24, %v2203_v38  ;;  %v2410_v37 = vmul.f32 %v4022_v24, %v2202_v50  ;;  %v2211_v43 = vmax.f32 %v1883_v42, 0.0  ;;  %v2210_v58 = vmax.f32 %v1772_v60, 0.0 }
 0x2d8   :  { %v2494_v16 = vadd.f32 %v2493_v15, %v2409_v22  ;;  %v2412_v27 = vmul.f32 %v4022_v24, %v2204_v5  ;;  %v2417_v48 = vmul.f32 %v4039_v59, %v2209_v23  ;;  %v2212_v8 = vmax.f32 %v1885_v28, 0.0 }
 0x2d9   :  { %v2536_v9 = vadd.f32 %v2535_v44, %v2411_v26  ;;  %v2515_v29 = vadd.f32 %v2514_v20, %v2410_v37  ;;  %v2419_v45 = vmul.f32 %v4039_v59, %v2211_v43  ;;  %v2418_v40 = vmul.f32 %v4039_v59, %v2210_v58  ;;  %v1775_v6 = vpop.f32.mrb[80].mxu0 }
 0x2da   :  { %v2557_v4 = vadd.f32 %v2556_v47, %v2412_v27  ;;  %v2495_v41 = vadd.f32 %v2494_v16, %v2417_v48  ;;  %v2420_v46 = vmul.f32 %v4039_v59, %v2212_v8  ;;  %v1776_v15 = vadd.f32 %v1775_v6, %v3990_v57  ;;  %v1888_v17 = vpop.f32.mrb[80].mxu1  ;;  %v1777_v0 = vpop.f32.mrb[81].mxu0 }
 0x2db   :  { %v2537_v21 = vadd.f32 %v2536_v9, %v2419_v45  ;;  %v2516_v49 = vadd.f32 %v2515_v29, %v2418_v40  ;;  %v1889_v38 = vadd.f32 %v1888_v17, %v3990_v57  ;;  %v1778_v44 = vadd.f32 %v1777_v0, %v3990_v57  ;;  %v1890_v20 = vpop.f32.mrb[81].mxu1  ;;  %v1779_v50 = vpop.f32.mrb[82].mxu0 }
 0x2dc   :  { %v2558_v42 = vadd.f32 %v2557_v4, %v2420_v46  ;;  %v2217_v60 = vmax.f32 %v1776_v15, 0.0  ;;  %v1891_v31 = vadd.f32 %v1890_v20, %v3990_v57  ;;  %v1780_v47 = vadd.f32 %v1779_v50, %v3992_v61  ;;  %v1892_v22 = vpop.f32.mrb[82].mxu1  ;;  %v1781_v5 = vpop.f32.mrb[83].mxu0 }
 0x2dd   :  { %v2219_v23 = vmax.f32 %v1889_v38, 0.0  ;;  %v2218_v28 = vmax.f32 %v1778_v44, 0.0  ;;  %v1893_v26 = vadd.f32 %v1892_v22, %v3992_v61  ;;  %v1782_v37 = vadd.f32 %v1781_v5, %v3992_v61  ;;  %v1894_v43 = vpop.f32.mrb[83].mxu1  ;;  %v4115_v15 = vpop.permute.xlu1 %2338 }
 0x2de   :  { %v2425_v58 = vmul.f32 %v4061_v32, %v2217_v60  ;;  %v2220_v16 = vmax.f32 %v1891_v31, 0.0  ;;  %v2225_v27 = vmax.f32 %v1780_v47, 0.0  ;;  %v1895_v48 = vadd.f32 %v1894_v43, %v3992_v61 }
 0x2df   :  { %v2427_v8 = vmul.f32 %v4061_v32, %v2219_v23  ;;  %v2426_v9 = vmul.f32 %v4061_v32, %v2218_v28  ;;  %v2227_v29 = vmax.f32 %v1893_v26, 0.0  ;;  %v2226_v45 = vmax.f32 %v1782_v37, 0.0 }
 0x2e0   :  { %v2496_v40 = vadd.f32 %v2495_v41, %v2425_v58  ;;  %v2428_v6 = vmul.f32 %v4061_v32, %v2220_v16  ;;  %v2433_v4 = vmul.f32 %v4079_v51, %v2225_v27  ;;  %v2228_v46 = vmax.f32 %v1895_v48, 0.0 }
 0x2e1   :  { %v2538_v17 = vadd.f32 %v2537_v21, %v2427_v8  ;;  %v2517_v0 = vadd.f32 %v2516_v49, %v2426_v9  ;;  %v2435_v38 = vmul.f32 %v4079_v51, %v2227_v29  ;;  %v2434_v44 = vmul.f32 %v4079_v51, %v2226_v45  ;;  %v1785_v20 = vpop.f32.mrb[84].mxu0 }
 0x2e2   :  { %v2559_v50 = vadd.f32 %v2558_v42, %v2428_v6  ;;  %v2497_v60 = vadd.f32 %v2496_v40, %v2433_v4  ;;  %v2436_v31 = vmul.f32 %v4079_v51, %v2228_v46  ;;  %v1786_v41 = vadd.f32 %v1785_v20, %v3996_v13  ;;  %v1898_v47 = vpop.f32.mrb[84].mxu1  ;;  %v1787_v22 = vpop.f32.mrb[85].mxu0 }
 0x2e3   :  { %v2539_v5 = vadd.f32 %v2538_v17, %v2435_v38  ;;  %v2518_v23 = vadd.f32 %v2517_v0, %v2434_v44  ;;  %v1899_v28 = vadd.f32 %v1898_v47, %v3996_v13  ;;  %v1788_v21 = vadd.f32 %v1787_v22, %v3996_v13  ;;  %v1900_v49 = vpop.f32.mrb[85].mxu1  ;;  %v1789_v26 = vpop.f32.mrb[86].mxu0 }
 0x2e4   :  { %v2560_v37 = vadd.f32 %v2559_v50, %v2436_v31  ;;  %v2233_v43 = vmax.f32 %v1786_v41, 0.0  ;;  %v1901_v58 = vadd.f32 %v1900_v49, %v3996_v13  ;;  %v1790_v42 = vadd.f32 %v1789_v26, %v4000_v10  ;;  %v1902_v16 = vpop.f32.mrb[86].mxu1  ;;  %v1791_v27 = vpop.f32.mrb[87].mxu0 }
 0x2e5   :  { %v2235_v48 = vmax.f32 %v1899_v28, 0.0  ;;  %v2234_v8 = vmax.f32 %v1788_v21, 0.0  ;;  %v1903_v9 = vadd.f32 %v1902_v16, %v4000_v10  ;;  %v1792_v29 = vadd.f32 %v1791_v27, %v4000_v10  ;;  %v1904_v45 = vpop.f32.mrb[87].mxu1  ;;  %v4133_v47 = vpop.permute.xlu1 %2343 }
 0x2e6   :  { %v2441_v40 = vmul.f32 %v4097_v19, %v2233_v43  ;;  %v2236_v6 = vmax.f32 %v1901_v58, 0.0  ;;  %v2241_v4 = vmax.f32 %v1790_v42, 0.0  ;;  %v1905_v46 = vadd.f32 %v1904_v45, %v4000_v10 }
 0x2e7   :  { %v2443_v17 = vmul.f32 %v4097_v19, %v2235_v48  ;;  %v2442_v0 = vmul.f32 %v4097_v19, %v2234_v8  ;;  %v2243_v38 = vmax.f32 %v1903_v9, 0.0  ;;  %v2242_v44 = vmax.f32 %v1792_v29, 0.0 }
 0x2e8   :  { %v2498_v20 = vadd.f32 %v2497_v60, %v2441_v40  ;;  %v2444_v50 = vmul.f32 %v4097_v19, %v2236_v6  ;;  %v2449_v31 = vmul.f32 %v4115_v15, %v2241_v4  ;;  %v2244_v41 = vmax.f32 %v1905_v46, 0.0 }
 0x2e9   :  { %v2540_v22 = vadd.f32 %v2539_v5, %v2443_v17  ;;  %v2519_v28 = vadd.f32 %v2518_v23, %v2442_v0  ;;  %v2451_v21 = vmul.f32 %v4115_v15, %v2243_v38  ;;  %v2450_v49 = vmul.f32 %v4115_v15, %v2242_v44  ;;  %v1795_v26 = vpop.f32.mrb[88].mxu0 }
 0x2ea   :  { %v2561_v43 = vadd.f32 %v2560_v37, %v2444_v50  ;;  %v2499_v58 = vadd.f32 %v2498_v20, %v2449_v31  ;;  %v2452_v42 = vmul.f32 %v4115_v15, %v2244_v41  ;;  %v1796_v60 = vadd.f32 %v1795_v26, %v4004_v11  ;;  %v1908_v16 = vpop.f32.mrb[88].mxu1  ;;  %v1797_v27 = vpop.f32.mrb[89].mxu0 }
 0x2eb   :  { %v2541_v48 = vadd.f32 %v2540_v22, %v2451_v21  ;;  %v2520_v8 = vadd.f32 %v2519_v28, %v2450_v49  ;;  %v1909_v9 = vadd.f32 %v1908_v16, %v4004_v11  ;;  %v1798_v5 = vadd.f32 %v1797_v27, %v4004_v11  ;;  %v1910_v23 = vpop.f32.mrb[89].mxu1  ;;  %v1799_v29 = vpop.f32.mrb[90].mxu0 }
 0x2ec   :  { %v2562_v45 = vadd.f32 %v2561_v43, %v2452_v42  ;;  %v2249_v40 = vmax.f32 %v1796_v60, 0.0  ;;  %v1911_v6 = vadd.f32 %v1910_v23, %v4004_v11  ;;  %v1800_v37 = vadd.f32 %v1799_v29, %v4008_v53  ;;  %v1912_v4 = vpop.f32.mrb[90].mxu1  ;;  %v1801_v46 = vpop.f32.mrb[91].mxu0 }
 0x2ed   :  { %v2251_v17 = vmax.f32 %v1909_v9, 0.0  ;;  %v2250_v0 = vmax.f32 %v1798_v5, 0.0  ;;  %v1913_v38 = vadd.f32 %v1912_v4, %v4008_v53  ;;  %v1802_v44 = vadd.f32 %v1801_v46, %v4008_v53  ;;  %v1914_v20 = vpop.f32.mrb[91].mxu1  ;;  %v4147_v28 = vpop.permute.xlu1 %2348 }
 0x2ee   :  { %v2457_v50 = vmul.f32 %v4133_v47, %v2249_v40  ;;  %v2252_v31 = vmax.f32 %v1911_v6, 0.0  ;;  %v2257_v41 = vmax.f32 %v1800_v37, 0.0  ;;  %v1915_v22 = vadd.f32 %v1914_v20, %v4008_v53 }
 0x2ef   :  { %v2459_v21 = vmul.f32 %v4133_v47, %v2251_v17  ;;  %v2458_v49 = vmul.f32 %v4133_v47, %v2250_v0  ;;  %v2259_v26 = vmax.f32 %v1913_v38, 0.0  ;;  %v2258_v43 = vmax.f32 %v1802_v44, 0.0 }
 0x2f0   :  { %v2500_v42 = vadd.f32 %v2499_v58, %v2457_v50  ;;  %v2460_v60 = vmul.f32 %v4133_v47, %v2252_v31  ;;  %v2465_v16 = vmul.f32 %v4147_v28, %v2257_v41  ;;  %v2260_v27 = vmax.f32 %v1915_v22, 0.0 }
 0x2f1   :  { %v2542_v9 = vadd.f32 %v2541_v48, %v2459_v21  ;;  %v2521_v5 = vadd.f32 %v2520_v8, %v2458_v49  ;;  %v2467_v23 = vmul.f32 %v4147_v28, %v2259_v26  ;;  %v2466_v29 = vmul.f32 %v4147_v28, %v2258_v43  ;;  %v1805_v40 = vpop.f32.mrb[92].mxu0 }
 0x2f2   :  { %v2563_v6 = vadd.f32 %v2562_v45, %v2460_v60  ;;  %v2501_v37 = vadd.f32 %v2500_v42, %v2465_v16  ;;  %v2468_v4 = vmul.f32 %v4147_v28, %v2260_v27  ;;  %v1806_v46 = vadd.f32 %v1805_v40, %v4012_v56  ;;  %v1918_v17 = vpop.f32.mrb[92].mxu1  ;;  %v1807_v58 = vpop.f32.mrb[93].mxu0 }
 0x2f3   :  { %v2543_v0 = vadd.f32 %v2542_v9, %v2467_v23  ;;  %v2522_v38 = vadd.f32 %v2521_v5, %v2466_v29  ;;  %v1919_v44 = vadd.f32 %v1918_v17, %v4012_v56  ;;  %v1808_v48 = vadd.f32 %v1807_v58, %v4012_v56  ;;  %v1920_v8 = vpop.f32.mrb[93].mxu1  ;;  %v1809_v20 = vpop.f32.mrb[94].mxu0 }
 0x2f4   :  { %v2564_v50 = vadd.f32 %v2563_v6, %v2468_v4  ;;  %v2265_v31 = vmax.f32 %v1806_v46, 0.0  ;;  %v1921_v41 = vadd.f32 %v1920_v8, %v4012_v56  ;;  %v1810_v45 = vadd.f32 %v1809_v20, %v4016_v2  ;;  %v1922_v22 = vpop.f32.mrb[94].mxu1  ;;  %v1811_v21 = vpop.f32.mrb[95].mxu0 }
 0x2f5   :  { %v2267_v49 = vmax.f32 %v1919_v44, 0.0  ;;  %v2266_v26 = vmax.f32 %v1808_v48, 0.0  ;;  %v1923_v43 = vadd.f32 %v1922_v22, %v4016_v2  ;;  %v1812_v42 = vadd.f32 %v1811_v21, %v4016_v2  ;;  %v1924_v60 = vpop.f32.mrb[95].mxu1  ;;  %v4165_v23 = vpop.permute.xlu1 %2358 }
 0x2f6   :  { %v2473_v16 = vmul.f32 %v4020_v52, %v2265_v31  ;;  %v2268_v27 = vmax.f32 %v1921_v41, 0.0  ;;  %v2273_v9 = vmax.f32 %v1810_v45, 0.0  ;;  %v1925_v5 = vadd.f32 %v1924_v60, %v4016_v2 }
 0x2f7   :  { %v2475_v29 = vmul.f32 %v4020_v52, %v2267_v49  ;;  %v2474_v40 = vmul.f32 %v4020_v52, %v2266_v26  ;;  %v2275_v6 = vmax.f32 %v1923_v43, 0.0  ;;  %v2274_v4 = vmax.f32 %v1812_v42, 0.0 }
 0x2f8   :  { %v2502_v46 = vadd.f32 %v2501_v37, %v2473_v16  ;;  %v2476_v17 = vmul.f32 %v4020_v52, %v2268_v27  ;;  %v2481_v58 = vmul.f32 %v4165_v23, %v2273_v9  ;;  %v2276_v44 = vmax.f32 %v1925_v5, 0.0 }
 0x2f9   :  { %v2544_v48 = vadd.f32 %v2543_v0, %v2475_v29  ;;  %v2523_v8 = vadd.f32 %v2522_v38, %v2474_v40  ;;  %v2483_v20 = vmul.f32 %v4165_v23, %v2275_v6  ;;  %v2482_v31 = vmul.f32 %v4165_v23, %v2274_v4  ;;  %v1961_v41 = vpop.f32.mrb[96].mxu0 }
 0x2fa   :  { %v2565_v45 = vadd.f32 %v2564_v50, %v2476_v17  ;;  %v2503_v22 = vadd.f32 %v2502_v46, %v2481_v58  ;;  %v2484_v21 = vmul.f32 %v4165_v23, %v2276_v44  ;;  %v1962_v49 = vadd.f32 %v1961_v41, %v3976_v18  ;;  %v2074_v26 = vpop.f32.mrb[96].mxu1  ;;  %v1963_v37 = vpop.f32.mrb[97].mxu0 }
 0x2fb   :  { %v2545_v43 = vadd.f32 %v2544_v48, %v2483_v20  ;;  %v2524_v42 = vadd.f32 %v2523_v8, %v2482_v31  ;;  %v2075_v60 = vadd.f32 %v2074_v26, %v3976_v18  ;;  %v1964_v0 = vadd.f32 %v1963_v37, %v3976_v18  ;;  %v2076_v38 = vpop.f32.mrb[97].mxu1  ;;  %v1965_v16 = vpop.f32.mrb[98].mxu0 }
 0x2fc   :  { %v2504_v27 = vrot.slane %v2503_v22, 4  ;;  %v2566_v9 = vadd.f32 %v2565_v45, %v2484_v21  ;;  %v2157_v5 = vmax.f32 %v1962_v49, 0.0  ;;  %v2077_v50 = vadd.f32 %v2076_v38, %v3976_v18  ;;  %v2078_v29 = vpop.f32.mrb[98].mxu1  ;;  %v1967_v40 = vpop.f32.mrb[99].mxu0 }
 0x2fd   :  { %v2546_v6 = vrot.slane %v2545_v43, 4  ;;  %v2525_v4 = vrot.slane %v2524_v42, 4  ;;  %v2159_v46 = vmax.f32 %v2075_v60, 0.0  ;;  %v2158_v17 = vmax.f32 %v1964_v0, 0.0  ;;  %v2080_v58 = vpop.f32.mrb[99].mxu1 }
 0x2fe   :  { %v2505_v44 = vadd.f32 %v2504_v27, %v2503_v22  ;;  %v2567_v48 = vrot.slane %v2566_v9, 4  ;;  %v2365_v8 = vmul.f32 %v3980_v7, %v2157_v5  ;;  %v2160_v20 = vmax.f32 %v2077_v50, 0.0 }
 0x2ff   :  { %v2547_v31 = vadd.f32 %v2546_v6, %v2545_v43  ;;  %v2526_v41 = vadd.f32 %v2525_v4, %v2524_v42  ;;  %v2367_v26 = vmul.f32 %v3980_v7, %v2159_v46  ;;  %v2366_v45 = vmul.f32 %v3980_v7, %v2158_v17 }
 0x300   :  { %v2506_v21 = vrot.slane %v2505_v44, 2  ;;  %v2568_v18 = vadd.f32 %v2567_v48, %v2566_v9  ;;  %v2368_v49 = vmul.f32 %v3980_v7, %v2160_v20  ;;  %v1966_v37 = vadd.f32 %v1965_v16, %v3994_v3 }
 0x301   :  { %v2548_v60 = vrot.slane %v2547_v31, 2  ;;  %v2527_v0 = vrot.slane %v2526_v41, 2  ;;  %v2079_v22 = vadd.f32 %v2078_v29, %v3994_v3  ;;  %v1968_v38 = vadd.f32 %v1967_v40, %v3994_v3  ;;  %v1971_v27 = vpop.f32.mrb[100].mxu0 }
 0x302   :  { %v2507_v5 = vadd.f32 %v2506_v21, %v2505_v44  ;;  %v2569_v43 = vrot.slane %v2568_v18, 2  ;;  %v2165_v42 = vmax.f32 %v1966_v37, 0.0  ;;  %v2081_v50 = vadd.f32 %v2080_v58, %v3994_v3  ;;  %v2084_v6 = vpop.f32.mrb[100].mxu1  ;;  %v1973_v4 = vpop.f32.mrb[101].mxu0 }
 0x303   :  { %v2549_v46 = vadd.f32 %v2548_v60, %v2547_v31  ;;  %v2528_v9 = vadd.f32 %v2527_v0, %v2526_v41  ;;  %v2167_v17 = vmax.f32 %v2079_v22, 0.0  ;;  %v2166_v7 = vmax.f32 %v1968_v38, 0.0  ;;  %v2086_v48 = vpop.f32.mrb[101].mxu1  ;;  %v1975_v16 = vpop.f32.mrb[102].mxu0 }
 0x304   :  { %v2508_v20 = vrot.slane %v2507_v5, 1  ;;  %v2570_v63 = vadd.f32 %v2569_v43, %v2568_v18  ;;  %v2373_v29 = vmul.f32 %v4002_v39, %v2165_v42  ;;  %v2168_v55 = vmax.f32 %v2081_v50, 0.0  ;;  %v2088_v40 = vpop.f32.mrb[102].mxu1  ;;  %v1977_v34 = vpop.f32.mrb[103].mxu0 }
 0x305   :  { %v2550_v44 = vrot.slane %v2549_v46, 1  ;;  %v2529_v21 = vrot.slane %v2528_v9, 1  ;;  %v2375_v37 = vmul.f32 %v4002_v39, %v2167_v17  ;;  %v2374_v3 = vmul.f32 %v4002_v39, %v2166_v7  ;;  %v2090_v58 = vpop.f32.mrb[103].mxu1 }
 0x306   :  { %v4189_v31 = vadd.f32 %v2508_v20, %v2507_v5  ;;  %v2571_v41 = vrot.slane %v2570_v63, 1  ;;  %v2573_v60 = vadd.f32 %v2373_v29, %v2365_v8  ;;  %v2376_v0 = vmul.f32 %v4002_v39, %v2168_v55 }
 0x307   :  { %v4192_v22 = vadd.f32 %v2550_v44, %v2549_v46  ;;  %v4194_v18 = vadd.f32 %v2529_v21, %v2528_v9  ;;  %v2615_v38 = vadd.f32 %v2375_v37, %v2367_v26  ;;  %v2594_v43 = vadd.f32 %v2374_v3, %v2366_v45 }
 0x308   :  { %v4196_v42 = vadd.f32 %v2571_v41, %v2570_v63  ;;  %v2636_v50 = vadd.f32 %v2376_v0, %v2368_v49  ;;  %v1972_v17 = vadd.f32 %v1971_v27, %v3978_v35  ;;  %v2085_v7 = vadd.f32 %v2084_v6, %v3978_v35 }
 0x309   :  { %v1974_v5 = vadd.f32 %v1973_v4, %v3978_v35  ;;  %v2087_v20 = vadd.f32 %v2086_v48, %v3978_v35  ;;  %v1976_v8 = vadd.f32 %v1975_v16, %v3998_v14  ;;  %v2089_v39 = vadd.f32 %v2088_v40, %v3998_v14  ;;  %v1981_v55 = vpop.f32.mrb[104].mxu0 }
 0x30a   :  { %v2173_v46 = vmax.f32 %v1972_v17, 0.0  ;;  %v2175_v9 = vmax.f32 %v2085_v7, 0.0  ;;  %v1978_v26 = vadd.f32 %v1977_v34, %v3998_v14  ;;  %v2091_v63 = vadd.f32 %v2090_v58, %v3998_v14  ;;  %v2094_v45 = vpop.f32.mrb[104].mxu1  ;;  %v1983_v49 = vpop.f32.mrb[105].mxu0 }
 0x30b   :  { %v2174_v27 = vmax.f32 %v1974_v5, 0.0  ;;  %v2176_v29 = vmax.f32 %v2087_v20, 0.0  ;;  %v2181_v6 = vmax.f32 %v1976_v8, 0.0  ;;  %v2183_v44 = vmax.f32 %v2089_v39, 0.0  ;;  %v2096_v4 = vpop.f32.mrb[105].mxu1  ;;  %v1985_v21 = vpop.f32.mrb[106].mxu0 }
 0x30c   :  { %v2381_v35 = vmul.f32 %v4006_v12, %v2173_v46  ;;  %v2383_v48 = vmul.f32 %v4006_v12, %v2175_v9  ;;  %v2182_v16 = vmax.f32 %v1978_v26, 0.0  ;;  %v2184_v40 = vmax.f32 %v2091_v63, 0.0  ;;  %v2098_v37 = vpop.f32.mrb[106].mxu1  ;;  %v1987_v3 = vpop.f32.mrb[107].mxu0 }
 0x30d   :  { %v2382_v34 = vmul.f32 %v4006_v12, %v2174_v27  ;;  %v2384_v14 = vmul.f32 %v4006_v12, %v2176_v29  ;;  %v2389_v58 = vmul.f32 %v4010_v30, %v2181_v6  ;;  %v2391_v41 = vmul.f32 %v4010_v30, %v2183_v44  ;;  %v2100_v0 = vpop.f32.mrb[107].mxu1 }
 0x30e   :  { %v2574_v17 = vadd.f32 %v2573_v60, %v2381_v35  ;;  %v2616_v7 = vadd.f32 %v2615_v38, %v2383_v48  ;;  %v2390_v5 = vmul.f32 %v4010_v30, %v2182_v16  ;;  %v2392_v20 = vmul.f32 %v4010_v30, %v2184_v40 }
 0x30f   :  { %v2595_v8 = vadd.f32 %v2594_v43, %v2382_v34  ;;  %v2637_v39 = vadd.f32 %v2636_v50, %v2384_v14  ;;  %v1982_v46 = vadd.f32 %v1981_v55, %v3982_v62  ;;  %v2095_v9 = vadd.f32 %v2094_v45, %v3982_v62 }
 0x310   :  { %v2575_v26 = vadd.f32 %v2574_v17, %v2389_v58  ;;  %v2617_v63 = vadd.f32 %v2616_v7, %v2391_v41  ;;  %v1984_v12 = vadd.f32 %v1983_v49, %v3982_v62  ;;  %v2097_v27 = vadd.f32 %v2096_v4, %v3982_v62 }
 0x311   :  { %v2596_v29 = vadd.f32 %v2595_v8, %v2390_v5  ;;  %v2638_v6 = vadd.f32 %v2637_v39, %v2392_v20  ;;  %v2189_v60 = vmax.f32 %v1982_v46, 0.0  ;;  %v2191_v38 = vmax.f32 %v2095_v9, 0.0  ;;  %v1991_v44 = vpop.f32.mrb[108].mxu0 }
 0x312   :  { %v2190_v35 = vmax.f32 %v1984_v12, 0.0  ;;  %v2192_v48 = vmax.f32 %v2097_v27, 0.0  ;;  %v1986_v30 = vadd.f32 %v1985_v21, %v3984_v36  ;;  %v2099_v43 = vadd.f32 %v2098_v37, %v3984_v36  ;;  %v2104_v50 = vpop.f32.mrb[108].mxu1  ;;  %v1993_v55 = vpop.f32.mrb[109].mxu0 }
 0x313   :  { %v2397_v45 = vmul.f32 %v4014_v1, %v2189_v60  ;;  %v2399_v16 = vmul.f32 %v4014_v1, %v2191_v38  ;;  %v1988_v49 = vadd.f32 %v1987_v3, %v3984_v36  ;;  %v2101_v62 = vadd.f32 %v2100_v0, %v3984_v36  ;;  %v2106_v4 = vpop.f32.mrb[109].mxu1  ;;  %v1995_v40 = vpop.f32.mrb[110].mxu0 }
 0x314   :  { %v2398_v34 = vmul.f32 %v4014_v1, %v2190_v35  ;;  %v2400_v14 = vmul.f32 %v4014_v1, %v2192_v48  ;;  %v2197_v58 = vmax.f32 %v1986_v30, 0.0  ;;  %v2199_v21 = vmax.f32 %v2099_v43, 0.0  ;;  %v2108_v41 = vpop.f32.mrb[110].mxu1  ;;  %v1997_v37 = vpop.f32.mrb[111].mxu0 }
 0x315   :  { %v2576_v17 = vadd.f32 %v2575_v26, %v2397_v45  ;;  %v2618_v7 = vadd.f32 %v2617_v63, %v2399_v16  ;;  %v2198_v5 = vmax.f32 %v1988_v49, 0.0  ;;  %v2200_v20 = vmax.f32 %v2101_v62, 0.0  ;;  %v2110_v8 = vpop.f32.mrb[111].mxu1 }
 0x316   :  { %v2597_v39 = vadd.f32 %v2596_v29, %v2398_v34  ;;  %v2639_v46 = vadd.f32 %v2638_v6, %v2400_v14  ;;  %v2405_v3 = vmul.f32 %v4018_v54, %v2197_v58  ;;  %v2407_v36 = vmul.f32 %v4018_v54, %v2199_v21 }
 0x317   :  { %v2406_v0 = vmul.f32 %v4018_v54, %v2198_v5  ;;  %v2408_v9 = vmul.f32 %v4018_v54, %v2200_v20  ;;  %v1992_v1 = vadd.f32 %v1991_v44, %v3986_v25  ;;  %v2105_v12 = vadd.f32 %v2104_v50, %v3986_v25 }
 0x318   :  { %v2577_v27 = vadd.f32 %v2576_v17, %v2405_v3  ;;  %v2619_v26 = vadd.f32 %v2618_v7, %v2407_v36  ;;  %v1994_v63 = vadd.f32 %v1993_v55, %v3986_v25  ;;  %v2107_v60 = vadd.f32 %v2106_v4, %v3986_v25 }
 0x319   :  { %v2598_v29 = vadd.f32 %v2597_v39, %v2406_v0  ;;  %v2640_v6 = vadd.f32 %v2639_v46, %v2408_v9  ;;  %v2205_v38 = vmax.f32 %v1992_v1, 0.0  ;;  %v2207_v35 = vmax.f32 %v2105_v12, 0.0  ;;  %v2001_v48 = vpop.f32.mrb[112].mxu0 }
 0x31a   :  { %v2206_v30 = vmax.f32 %v1994_v63, 0.0  ;;  %v2208_v43 = vmax.f32 %v2107_v60, 0.0  ;;  %v1996_v45 = vadd.f32 %v1995_v40, %v3988_v33  ;;  %v2109_v54 = vadd.f32 %v2108_v41, %v3988_v33  ;;  %v2114_v44 = vpop.f32.mrb[112].mxu1  ;;  %v2003_v16 = vpop.f32.mrb[113].mxu0 }
 0x31b   :  { %v2413_v50 = vmul.f32 %v4022_v24, %v2205_v38  ;;  %v2415_v49 = vmul.f32 %v4022_v24, %v2207_v35  ;;  %v1998_v55 = vadd.f32 %v1997_v37, %v3988_v33  ;;  %v2111_v25 = vadd.f32 %v2110_v8, %v3988_v33  ;;  %v2116_v62 = vpop.f32.mrb[113].mxu1  ;;  %v2005_v4 = vpop.f32.mrb[114].mxu0 }
 0x31c   :  { %v2414_v34 = vmul.f32 %v4022_v24, %v2206_v30  ;;  %v2416_v14 = vmul.f32 %v4022_v24, %v2208_v43  ;;  %v2213_v58 = vmax.f32 %v1996_v45, 0.0  ;;  %v2215_v40 = vmax.f32 %v2109_v54, 0.0  ;;  %v2118_v21 = vpop.f32.mrb[114].mxu1  ;;  %v2007_v41 = vpop.f32.mrb[115].mxu0 }
 0x31d   :  { %v2578_v17 = vadd.f32 %v2577_v27, %v2413_v50  ;;  %v2620_v7 = vadd.f32 %v2619_v26, %v2415_v49  ;;  %v2214_v5 = vmax.f32 %v1998_v55, 0.0  ;;  %v2216_v20 = vmax.f32 %v2111_v25, 0.0  ;;  %v2120_v39 = vpop.f32.mrb[115].mxu1 }
 0x31e   :  { %v2599_v46 = vadd.f32 %v2598_v29, %v2414_v34  ;;  %v2641_v3 = vadd.f32 %v2640_v6, %v2416_v14  ;;  %v2421_v37 = vmul.f32 %v4039_v59, %v2213_v58  ;;  %v2423_v33 = vmul.f32 %v4039_v59, %v2215_v40 }
 0x31f   :  { %v2422_v8 = vmul.f32 %v4039_v59, %v2214_v5  ;;  %v2424_v36 = vmul.f32 %v4039_v59, %v2216_v20  ;;  %v2002_v24 = vadd.f32 %v2001_v48, %v3990_v57  ;;  %v2115_v0 = vadd.f32 %v2114_v44, %v3990_v57 }
 0x320   :  { %v2579_v9 = vadd.f32 %v2578_v17, %v2421_v37  ;;  %v2621_v1 = vadd.f32 %v2620_v7, %v2423_v33  ;;  %v2004_v12 = vadd.f32 %v2003_v16, %v3990_v57  ;;  %v2117_v27 = vadd.f32 %v2116_v62, %v3990_v57 }
 0x321   :  { %v2600_v26 = vadd.f32 %v2599_v46, %v2422_v8  ;;  %v2642_v63 = vadd.f32 %v2641_v3, %v2424_v36  ;;  %v2221_v60 = vmax.f32 %v2002_v24, 0.0  ;;  %v2223_v29 = vmax.f32 %v2115_v0, 0.0  ;;  %v2011_v6 = vpop.f32.mrb[116].mxu0 }
 0x322   :  { %v2222_v38 = vmax.f32 %v2004_v12, 0.0  ;;  %v2224_v35 = vmax.f32 %v2117_v27, 0.0  ;;  %v2006_v30 = vadd.f32 %v2005_v4, %v3992_v61  ;;  %v2119_v59 = vadd.f32 %v2118_v21, %v3992_v61  ;;  %v2124_v48 = vpop.f32.mrb[116].mxu1  ;;  %v2013_v43 = vpop.f32.mrb[117].mxu0 }
 0x323   :  { %v2429_v45 = vmul.f32 %v4061_v32, %v2221_v60  ;;  %v2431_v54 = vmul.f32 %v4061_v32, %v2223_v29  ;;  %v2008_v44 = vadd.f32 %v2007_v41, %v3992_v61  ;;  %v2121_v57 = vadd.f32 %v2120_v39, %v3992_v61  ;;  %v2126_v16 = vpop.f32.mrb[117].mxu1  ;;  %v2015_v50 = vpop.f32.mrb[118].mxu0 }
 0x324   :  { %v2430_v49 = vmul.f32 %v4061_v32, %v2222_v38  ;;  %v2432_v55 = vmul.f32 %v4061_v32, %v2224_v35  ;;  %v2229_v25 = vmax.f32 %v2006_v30, 0.0  ;;  %v2231_v62 = vmax.f32 %v2119_v59, 0.0  ;;  %v2128_v4 = vpop.f32.mrb[118].mxu1  ;;  %v2017_v34 = vpop.f32.mrb[119].mxu0 }
 0x325   :  { %v2580_v14 = vadd.f32 %v2579_v9, %v2429_v45  ;;  %v2622_v58 = vadd.f32 %v2621_v1, %v2431_v54  ;;  %v2230_v40 = vmax.f32 %v2008_v44, 0.0  ;;  %v2232_v21 = vmax.f32 %v2121_v57, 0.0  ;;  %v2130_v17 = vpop.f32.mrb[119].mxu1 }
 0x326   :  { %v2601_v7 = vadd.f32 %v2600_v26, %v2430_v49  ;;  %v2643_v5 = vadd.f32 %v2642_v63, %v2432_v55  ;;  %v2437_v41 = vmul.f32 %v4079_v51, %v2229_v25  ;;  %v2439_v61 = vmul.f32 %v4079_v51, %v2231_v62 }
 0x327   :  { %v2438_v20 = vmul.f32 %v4079_v51, %v2230_v40  ;;  %v2440_v39 = vmul.f32 %v4079_v51, %v2232_v21  ;;  %v2012_v32 = vadd.f32 %v2011_v6, %v3996_v13  ;;  %v2125_v46 = vadd.f32 %v2124_v48, %v3996_v13 }
 0x328   :  { %v2581_v3 = vadd.f32 %v2580_v14, %v2437_v41  ;;  %v2623_v37 = vadd.f32 %v2622_v58, %v2439_v61  ;;  %v2014_v33 = vadd.f32 %v2013_v43, %v3996_v13  ;;  %v2127_v8 = vadd.f32 %v2126_v16, %v3996_v13 }
 0x329   :  { %v2602_v36 = vadd.f32 %v2601_v7, %v2438_v20  ;;  %v2644_v24 = vadd.f32 %v2643_v5, %v2440_v39  ;;  %v2237_v0 = vmax.f32 %v2012_v32, 0.0  ;;  %v2239_v9 = vmax.f32 %v2125_v46, 0.0  ;;  %v2021_v1 = vpop.f32.mrb[120].mxu0 }
 0x32a   :  { %v2238_v12 = vmax.f32 %v2014_v33, 0.0  ;;  %v2240_v27 = vmax.f32 %v2127_v8, 0.0  ;;  %v2016_v26 = vadd.f32 %v2015_v50, %v4000_v10  ;;  %v2129_v51 = vadd.f32 %v2128_v4, %v4000_v10  ;;  %v2134_v63 = vpop.f32.mrb[120].mxu1  ;;  %v2023_v60 = vpop.f32.mrb[121].mxu0 }
 0x32b   :  { %v2445_v29 = vmul.f32 %v4097_v19, %v2237_v0  ;;  %v2447_v6 = vmul.f32 %v4097_v19, %v2239_v9  ;;  %v2018_v38 = vadd.f32 %v2017_v34, %v4000_v10  ;;  %v2131_v13 = vadd.f32 %v2130_v17, %v4000_v10  ;;  %v2136_v35 = vpop.f32.mrb[121].mxu1  ;;  %v2025_v30 = vpop.f32.mrb[122].mxu0 }
 0x32c   :  { %v2446_v59 = vmul.f32 %v4097_v19, %v2238_v12  ;;  %v2448_v48 = vmul.f32 %v4097_v19, %v2240_v27  ;;  %v2245_v43 = vmax.f32 %v2016_v26, 0.0  ;;  %v2247_v45 = vmax.f32 %v2129_v51, 0.0  ;;  %v2138_v54 = vpop.f32.mrb[122].mxu1  ;;  %v2027_v44 = vpop.f32.mrb[123].mxu0 }
 0x32d   :  { %v2582_v57 = vadd.f32 %v2581_v3, %v2445_v29  ;;  %v2624_v16 = vadd.f32 %v2623_v37, %v2447_v6  ;;  %v2246_v50 = vmax.f32 %v2018_v38, 0.0  ;;  %v2248_v49 = vmax.f32 %v2131_v13, 0.0  ;;  %v2140_v55 = vpop.f32.mrb[123].mxu1 }
 0x32e   :  { %v2603_v25 = vadd.f32 %v2602_v36, %v2446_v59  ;;  %v2645_v62 = vadd.f32 %v2644_v24, %v2448_v48  ;;  %v2453_v4 = vmul.f32 %v4115_v15, %v2245_v43  ;;  %v2455_v10 = vmul.f32 %v4115_v15, %v2247_v45 }
 0x32f   :  { %v2454_v34 = vmul.f32 %v4115_v15, %v2246_v50  ;;  %v2456_v14 = vmul.f32 %v4115_v15, %v2248_v49  ;;  %v2022_v19 = vadd.f32 %v2021_v1, %v4004_v11  ;;  %v2135_v58 = vadd.f32 %v2134_v63, %v4004_v11 }
 0x330   :  { %v2583_v40 = vadd.f32 %v2582_v57, %v2453_v4  ;;  %v2625_v21 = vadd.f32 %v2624_v16, %v2455_v10  ;;  %v2024_v17 = vadd.f32 %v2023_v60, %v4004_v11  ;;  %v2137_v7 = vadd.f32 %v2136_v35, %v4004_v11 }
 0x331   :  { %v2604_v5 = vadd.f32 %v2603_v25, %v2454_v34  ;;  %v2646_v41 = vadd.f32 %v2645_v62, %v2456_v14  ;;  %v2253_v61 = vmax.f32 %v2022_v19, 0.0  ;;  %v2255_v20 = vmax.f32 %v2135_v58, 0.0  ;;  %v2031_v39 = vpop.f32.mrb[124].mxu0 }
 0x332   :  { %v2254_v32 = vmax.f32 %v2024_v17, 0.0  ;;  %v2256_v46 = vmax.f32 %v2137_v7, 0.0  ;;  %v2026_v3 = vadd.f32 %v2025_v30, %v4008_v53  ;;  %v2139_v15 = vadd.f32 %v2138_v54, %v4008_v53  ;;  %v2144_v37 = vpop.f32.mrb[124].mxu1  ;;  %v2033_v33 = vpop.f32.mrb[125].mxu0 }
 0x333   :  { %v2461_v8 = vmul.f32 %v4133_v47, %v2253_v61  ;;  %v2463_v36 = vmul.f32 %v4133_v47, %v2255_v20  ;;  %v2028_v24 = vadd.f32 %v2027_v44, %v4008_v53  ;;  %v2141_v11 = vadd.f32 %v2140_v55, %v4008_v53  ;;  %v2146_v0 = vpop.f32.mrb[125].mxu1  ;;  %v2035_v9 = vpop.f32.mrb[126].mxu0 }
 0x334   :  { %v2462_v1 = vmul.f32 %v4133_v47, %v2254_v32  ;;  %v2464_v12 = vmul.f32 %v4133_v47, %v2256_v46  ;;  %v2261_v27 = vmax.f32 %v2026_v3, 0.0  ;;  %v2263_v26 = vmax.f32 %v2139_v15, 0.0  ;;  %v2148_v51 = vpop.f32.mrb[126].mxu1  ;;  %v2037_v63 = vpop.f32.mrb[127].mxu0  ;;  %v4354_v15 = vld [vmem:[#allocation9_spill] sm:$0xff] }
 0x335   :  { %v2584_v60 = vadd.f32 %v2583_v40, %v2461_v8  ;;  %v2626_v29 = vadd.f32 %v2625_v21, %v2463_v36  ;;  %v2262_v6 = vmax.f32 %v2028_v24, 0.0  ;;  %v2264_v38 = vmax.f32 %v2141_v11, 0.0  ;;  %v2150_v13 = vpop.f32.mrb[127].mxu1 }
 0x336   :  { %v2605_v35 = vadd.f32 %v2604_v5, %v2462_v1  ;;  %v2647_v30 = vadd.f32 %v2646_v41, %v2464_v12  ;;  %v2469_v59 = vmul.f32 %v4147_v28, %v2261_v27  ;;  %v2471_v53 = vmul.f32 %v4147_v28, %v2263_v26  ;;  %v4355_v1 = vld [vmem:[#allocation10_spill] sm:$0xff] }
 0x337   :  { %v2470_v48 = vmul.f32 %v4147_v28, %v2262_v6  ;;  %v2472_v43 = vmul.f32 %v4147_v28, %v2264_v38  ;;  %v2032_v47 = vadd.f32 %v2031_v39, %v4012_v56  ;;  %v2145_v45 = vadd.f32 %v2144_v37, %v4012_v56 }
 0x338   :  { %v2585_v54 = vadd.f32 %v2584_v60, %v2469_v59  ;;  %v2627_v44 = vadd.f32 %v2626_v29, %v2471_v53  ;;  %v2034_v57 = vadd.f32 %v2033_v33, %v4012_v56  ;;  %v2147_v16 = vadd.f32 %v2146_v0, %v4012_v56 }
 0x339   :  { %v2606_v50 = vadd.f32 %v2605_v35, %v2470_v48  ;;  %v2648_v49 = vadd.f32 %v2647_v30, %v2472_v43  ;;  %v2269_v55 = vmax.f32 %v2032_v47, 0.0  ;;  %v2271_v25 = vmax.f32 %v2145_v45, 0.0 }
 0x33a   :  { %v2270_v62 = vmax.f32 %v2034_v57, 0.0  ;;  %v2272_v4 = vmax.f32 %v2147_v16, 0.0  ;;  %v2036_v10 = vadd.f32 %v2035_v9, %v4016_v2  ;;  %v2149_v28 = vadd.f32 %v2148_v51, %v4016_v2 }
 0x33b   :  { %v2477_v34 = vmul.f32 %v4020_v52, %v2269_v55  ;;  %v2479_v14 = vmul.f32 %v4020_v52, %v2271_v25  ;;  %v2038_v19 = vadd.f32 %v2037_v63, %v4016_v2  ;;  %v2151_v58 = vadd.f32 %v2150_v13, %v4016_v2  ;;  %v4356_v63 = vld [vmem:[#allocation8_spill] sm:$0xff] }
 0x33c   :  { %v2478_v56 = vmul.f32 %v4020_v52, %v2270_v62  ;;  %v2480_v40 = vmul.f32 %v4020_v52, %v2272_v4  ;;  %v2277_v21 = vmax.f32 %v2036_v10, 0.0  ;;  %v2279_v17 = vmax.f32 %v2149_v28, 0.0 }
 0x33d   :  { %v2586_v7 = vadd.f32 %v2585_v54, %v2477_v34  ;;  %v2628_v5 = vadd.f32 %v2627_v44, %v2479_v14  ;;  %v2278_v41 = vmax.f32 %v2038_v19, 0.0  ;;  %v2280_v61 = vmax.f32 %v2151_v58, 0.0 }
 0x33e   :  { %v2607_v20 = vadd.f32 %v2606_v50, %v2478_v56  ;;  %v2649_v39 = vadd.f32 %v2648_v49, %v2480_v40  ;;  %v2485_v32 = vmul.f32 %v4165_v23, %v2277_v21  ;;  %v2487_v46 = vmul.f32 %v4165_v23, %v2279_v17 }
 0x33f   :  { %v2486_v3 = vmul.f32 %v4165_v23, %v2278_v41  ;;  %v2488_v2 = vmul.f32 %v4165_v23, %v2280_v61  ;;  %v2666_v37 = vadd.f32 %v4354_v15, %v4189_v31  ;;  %v2667_v52 = vadd.f32 %v4354_v15, %v4194_v18 }
 0x340   :  { %v2587_v33 = vadd.f32 %v2586_v7, %v2485_v32  ;;  %v2629_v8 = vadd.f32 %v2628_v5, %v2487_v46  ;;  %v2668_v36 = vadd.f32 %v4354_v15, %v4192_v22  ;;  %v2669_v24 = vadd.f32 %v4354_v15, %v4196_v42 }
 0x341   :  { %v2608_v11 = vadd.f32 %v2607_v20, %v2486_v3  ;;  %v2650_v0 = vadd.f32 %v2649_v39, %v2488_v2  ;;  %v2682_v9 = vcombine.low %v2666_v37, %v2667_v52  ;;  %v2688_v12 = vunpack.c.0.s8 %v4355_v1 }
 0x342   :  { %v2588_v23 = vrot.slane %v2587_v33, 4  ;;  %v2630_v27 = vrot.slane %v2629_v8, 4  ;;  %v2683_v26 = vcombine.low %v2668_v36, %v2669_v24 }
 0x343   :  { %v2609_v31 = vrot.slane %v2608_v11, 4  ;;  %v2651_v51 = vrot.slane %v2650_v0, 4  ;;  %v2691_v18 = vsub.s32 %v2688_v12, %v4356_v63 }
 0x344   :  { %v2589_v60 = vadd.f32 %v2588_v23, %v2587_v33  ;;  %v2631_v29 = vadd.f32 %v2630_v27, %v2629_v8 }
 0x345   :  { %v2610_v6 = vadd.f32 %v2609_v31, %v2608_v11  ;;  %v2652_v38 = vadd.f32 %v2651_v51, %v2650_v0  ;;  %v2692_v22 = vrot.slane %v2682_v9, %v2691_v18  ;;  %v2699_v13 = vrot.slane %v2683_v26, %v2691_v18 }
 0x346   :  { %v2590_v35 = vrot.slane %v2589_v60, 2  ;;  %v2632_v42 = vrot.slane %v2631_v29, 2 }
 0x347   :  { %v2611_v30 = vrot.slane %v2610_v6, 2  ;;  %v2653_v59 = vrot.slane %v2652_v38, 2  ;;  %v2714_v53 = vcombine.low %v2692_v22, %v2699_v13 }
 0x348   :  { %v2591_v48 = vadd.f32 %v2590_v35, %v2589_v60  ;;  %v2633_v43 = vadd.f32 %v2632_v42, %v2631_v29 }
 0x349   :  { %v2612_v47 = vadd.f32 %v2611_v30, %v2610_v6  ;;  %v2654_v45 = vadd.f32 %v2653_v59, %v2652_v38  ;;  %v2722_v40 = vrot.slane %v2714_v53, %v2691_v18 }
 0x34a   :  { %v2592_v54 = vrot.slane %v2591_v48, 1  ;;  %v2634_v44 = vrot.slane %v2633_v43, 1 }
 0x34b   :  { %v2613_v57 = vrot.slane %v2612_v47, 1  ;;  %v2655_v16 = vrot.slane %v2654_v45, 1 }
 0x34c   :  { %v2593_v50 = vadd.f32 %v2592_v54, %v2591_v48  ;;  %v2635_v49 = vadd.f32 %v2634_v44, %v2633_v43 }
 0x34d   :  { %v2614_v55 = vadd.f32 %v2613_v57, %v2612_v47  ;;  %v2656_v25 = vadd.f32 %v2655_v16, %v2654_v45 }
 0x34e   :  { %v2670_v62 = vadd.f32 %v4354_v15, %v2593_v50  ;;  %v2672_v4 = vadd.f32 %v4354_v15, %v2635_v49 }
 0x34f   :  { %v2671_v10 = vadd.f32 %v4354_v15, %v2614_v55  ;;  %v2673_v28 = vadd.f32 %v4354_v15, %v2656_v25 }
 0x351   :  { %v2684_v34 = vcombine.low %v2670_v62, %v2671_v10  ;;  %v2685_v14 = vcombine.low %v2672_v4, %v2673_v28 }
 0x353   :  { %v2706_v19 = vrot.slane %v2684_v34, %v2691_v18  ;;  %v2713_v58 = vrot.slane %v2685_v14, %v2691_v18 }
 0x355   :  { %v2715_v56 = vcombine.low %v2706_v19, %v2713_v58 }
 0x357   :  { %v2729_v21 = vrot.slane %v2715_v56, %v2691_v18 }
 0x359   :  { %v2730_v17 = vcombine.low %v2722_v40, %v2729_v21 }
 0x35b   :  { %2732 = vst [vmem:[#allocation5] sm:$0xff] %v2730_v17 }
 0x35c   :  { %2795 = shalt.err (!%p2792_p4)
}
 0x35d   :  { %s2796_s14 = scalar_lea.hbm %s4346_s10, 128 }
 0x35e   :  { %p2797_p5 = scmp.ne.s32.totalorder %s4346_s10, %s2796_s14  ;;  %p2800_p6 = scmp.lt.u32.totalorder %s2796_s14, %s4346_s10 }
 0x360   :  { %p2802_p7 = pnand %p2800_p6, %p2797_p5 }
 0x362   :  { %2805 = shalt.err (!%p2802_p7)
}
 0x363   :  { %2742 = dma.vmem_to_hbm [thread:$0]  %s2740_s30, 128, %s4346_s10, [#allocation6]  }
 0x364   :  { %2806 = dma.done.wait [#allocation6], 128  }
 0x365   :  { %2807 = vsyncadd [#allocation6], 4294967168 }
 0x366   :  { %2746 = vsyncpa [#allocation6], 1 }

// kernel: tpu_custom_call.1
= control target key start
LH: loop header
LB: loop body
LE: loop exit
PB: predicated region body
PF: predicated region fallthrough
CT: control target
= control target key end

     0   :  { %s4336_s0 = inlined_call_operand.<no memory space> [shape: s32[1], index: 0, kind: input, shape index: {}]   ;;  %s4337_s1 = inlined_call_operand.vmem [shape: f32[1,1,1024], index: 1, kind: input, shape index: {}]   ;;  %s4338_s2 = inlined_call_operand.vmem [shape: f32[128,1], index: 2, kind: input, shape index: {}]   ;;  %s4339_s3 = inlined_call_operand.vmem [shape: f32[128,1], index: 3, kind: input, shape index: {}]   ;;  %s4340_s4 = inlined_call_operand.vmem [shape: bf16[128,128], index: 4, kind: input, shape index: {}]   ;;  %s4341_s5 = inlined_call_operand.vmem [shape: f32[128,1], index: 5, kind: input, shape index: {}]   ;;  %s4342_s6 = inlined_call_operand.vmem [shape: bf16[128,128], index: 6, kind: input, shape index: {}]   ;;  %s4343_s7 = inlined_call_operand.vmem [shape: f32[128,1], index: 7, kind: input, shape index: {}]   ;;  %s4344_s8 = inlined_call_operand.vmem [shape: f32[128,1], index: 8, kind: input, shape index: {}]   ;;  %s4345_s9 = inlined_call_operand.<no memory space> [shape: f32[1,1], index: 9, kind: input, shape index: {}]   ;;  %s4346_s10 = inlined_call_operand.hbm [shape: f32[1,1,1024], index: 10, kind: output, shape index: {}]  }
   0x1   :  { %v16_v0 = vstv %s4345_s9 }
   0x2   :  { %17 = vst [vmem:[#allocation4] sm:$0x1] %v16_v0 }
   0x3   :  { %v55_v1 = vld [vmem:[%s4339_s3] sm:$0xff]  ;;  %v2808_v3 = vmov 0   ;;  %v56_v4 = vld [vmem:[%s4339_s3 + $0x8] sm:$0xff]  ;;  %v42_v6 = vld [vmem:[%s4338_s2 + $0x18] sm:$0xff] }
   0x4   :  { %v39_v2 = vld [vmem:[%s4338_s2] sm:$0xff]  ;;  %2767 = vset.pattern.permute.xlu1 %v2808_v3  ;;  %2766 = vset.pattern.permute.xlu0 %v2808_v3  ;;  %v40_v5 = vld [vmem:[%s4338_s2 + $0x8] sm:$0xff]  ;;  %v41_v7 = vld [vmem:[%s4338_s2 + $0x10] sm:$0xff] }
   0x5   :  { %403 = vperm.xlu1 %2767, %v55_v1   ;;  %154 = vperm.xlu0 %2766, %v39_v2   ;;  %v58_v8 = vld [vmem:[%s4339_s3 + $0x18] sm:$0xff]  ;;  %v57_v9 = vld [vmem:[%s4339_s3 + $0x10] sm:$0xff]  ;;  %v44_v10 = vld [vmem:[%s4338_s2 + $0x28] sm:$0xff] }
   0x6   :  { %961 = vmatprep.mubr.bf16.mxu0 %v2808_v3  ;;  %1074 = vmatprep.mubr.bf16.mxu1 %v2808_v3  ;;  %v43_v11 = vld [vmem:[%s4338_s2 + $0x20] sm:$0xff]  ;;  %v60_v12 = vld [vmem:[%s4339_s3 + $0x28] sm:$0xff]  ;;  %v46_v14 = vld [vmem:[%s4338_s2 + $0x38] sm:$0xff] }
   0x7   :  { %v59_v13 = vld [vmem:[%s4339_s3 + $0x20] sm:$0xff]  ;;  %v45_v15 = vld [vmem:[%s4338_s2 + $0x30] sm:$0xff]  ;;  %v62_v16 = vld [vmem:[%s4339_s3 + $0x38] sm:$0xff] }
   0x8   :  { %v61_v17 = vld [vmem:[%s4339_s3 + $0x30] sm:$0xff]  ;;  %v48_v18 = vld [vmem:[%s4338_s2 + $0x48] sm:$0xff]  ;;  %v47_v19 = vld [vmem:[%s4338_s2 + $0x40] sm:$0xff] }
   0x9   :  { %408 = vperm.xlu1 %2767, %v56_v4   ;;  %159 = vperm.xlu0 %2766, %v40_v5   ;;  %v64_v20 = vld [vmem:[%s4339_s3 + $0x48] sm:$0xff]  ;;  %v63_v21 = vld [vmem:[%s4339_s3 + $0x40] sm:$0xff] }
   0xd   :  { %169 = vperm.xlu1 %2767, %v42_v6   ;;  %164 = vperm.xlu0 %2766, %v41_v7  }
  0x11   :  { %418 = vperm.xlu1 %2767, %v58_v8   ;;  %413 = vperm.xlu0 %2766, %v57_v9  }
  0x15   :  { %179 = vperm.xlu1 %2767, %v44_v10   ;;  %174 = vperm.xlu0 %2766, %v43_v11  }
  0x19   :  { %428 = vperm.xlu1 %2767, %v60_v12   ;;  %423 = vperm.xlu0 %2766, %v59_v13  }
  0x1d   :  { %189 = vperm.xlu1 %2767, %v46_v14   ;;  %184 = vperm.xlu0 %2766, %v45_v15  }
  0x21   :  { %438 = vperm.xlu1 %2767, %v62_v16   ;;  %433 = vperm.xlu0 %2766, %v61_v17  }
  0x25   :  { %199 = vperm.xlu1 %2767, %v48_v18   ;;  %194 = vperm.xlu0 %2766, %v47_v19  }
  0x29   :  { %448 = vperm.xlu1 %2767, %v64_v20   ;;  %443 = vperm.xlu0 %2766, %v63_v21  }
  0x2a   :  { %18 = vsyncpa [#allocation6], 0  ;;  %v50_v22 = vld [vmem:[%s4338_s2 + $0x58] sm:$0xff]  ;;  %v49_v23 = vld [vmem:[%s4338_s2 + $0x50] sm:$0xff]  ;;  %v233_v60 = vlaneseq }
  0x2b   :  { %v66_v24 = vld [vmem:[%s4339_s3 + $0x58] sm:$0xff]  ;;  %v65_v25 = vld [vmem:[%s4339_s3 + $0x50] sm:$0xff]  ;;  %v52_v26 = vld [vmem:[%s4338_s2 + $0x68] sm:$0xff] }
  0x2c   :  { %v51_v27 = vld [vmem:[%s4338_s2 + $0x60] sm:$0xff]  ;;  %v68_v28 = vld [vmem:[%s4339_s3 + $0x68] sm:$0xff]  ;;  %v54_v30 = vld [vmem:[%s4338_s2 + $0x78] sm:$0xff]  ;;  %v3053_v63 = vshrl.u32 %v233_v60, 7 }
  0x2d   :  { %209 = vperm.xlu1 %2767, %v50_v22   ;;  %204 = vperm.xlu0 %2766, %v49_v23   ;;  %v67_v29 = vld [vmem:[%s4339_s3 + $0x60] sm:$0xff]  ;;  %v53_v31 = vld [vmem:[%s4338_s2 + $0x70] sm:$0xff]  ;;  %v70_v32 = vld [vmem:[%s4339_s3 + $0x78] sm:$0xff] }
  0x2e   :  { %v69_v33 = vld [vmem:[%s4339_s3 + $0x70] sm:$0xff]  ;;  %v88_v34 = vld [vmem:[%s4341_s5 + $0x8] sm:$0xff]  ;;  %v87_v35 = vld [vmem:[%s4341_s5] sm:$0xff]  ;;  %4350 = vst [vmem:[#allocation8_spill] sm:$0xff] %v3053_v63  ;;  %v239_v2 = vsub.s32 1, %v3053_v63  ;;  %v247_v4 = vsub.s32 3, %v3053_v63 }
  0x2f   :  { %v90_v36 = vld [vmem:[%s4341_s5 + $0x18] sm:$0xff]  ;;  %v89_v37 = vld [vmem:[%s4341_s5 + $0x10] sm:$0xff]  ;;  %v92_v38 = vld [vmem:[%s4341_s5 + $0x28] sm:$0xff]  ;;  %v4347_v5 = vsub.s32 0, %v3053_v63  ;;  %v243_v6 = vsub.s32 2, %v3053_v63  ;;  %v255_v10 = vsub.s32 5, %v3053_v63 }
  0x30   :  { %v91_v39 = vld [vmem:[%s4341_s5 + $0x20] sm:$0xff]  ;;  %v94_v40 = vld [vmem:[%s4341_s5 + $0x38] sm:$0xff]  ;;  %v93_v41 = vld [vmem:[%s4341_s5 + $0x30] sm:$0xff]  ;;  %v263_v11 = vsub.s32 7, %v3053_v63  ;;  %v251_v12 = vsub.s32 4, %v3053_v63  ;;  %v259_v13 = vsub.s32 6, %v3053_v63 }
  0x31   :  { %458 = vperm.xlu1 %2767, %v66_v24   ;;  %453 = vperm.xlu0 %2766, %v65_v25   ;;  %v96_v42 = vld [vmem:[%s4341_s5 + $0x48] sm:$0xff]  ;;  %v95_v43 = vld [vmem:[%s4341_s5 + $0x40] sm:$0xff]  ;;  %v98_v44 = vld [vmem:[%s4341_s5 + $0x58] sm:$0xff] }
  0x32   :  { %v97_v45 = vld [vmem:[%s4341_s5 + $0x50] sm:$0xff]  ;;  %v100_v46 = vld [vmem:[%s4341_s5 + $0x68] sm:$0xff]  ;;  %v99_v47 = vld [vmem:[%s4341_s5 + $0x60] sm:$0xff] }
  0x33   :  { %v102_v48 = vld [vmem:[%s4341_s5 + $0x78] sm:$0xff]  ;;  %v101_v49 = vld [vmem:[%s4341_s5 + $0x70] sm:$0xff]  ;;  %v120_v50 = vld [vmem:[%s4343_s7 + $0x8] sm:$0xff] }
  0x34   :  { %v119_v51 = vld [vmem:[%s4343_s7] sm:$0xff]  ;;  %v122_v52 = vld [vmem:[%s4343_s7 + $0x18] sm:$0xff]  ;;  %v121_v53 = vld [vmem:[%s4343_s7 + $0x10] sm:$0xff] }
  0x35   :  { %219 = vperm.xlu1 %2767, %v52_v26   ;;  %214 = vperm.xlu0 %2766, %v51_v27   ;;  %v136_v54 = vld [vmem:[%s4344_s8 + $0x8] sm:$0xff]  ;;  %v135_v55 = vld [vmem:[%s4344_s8] sm:$0xff]  ;;  %v137_v56 = vld [vmem:[%s4344_s8 + $0x10] sm:$0xff] }
  0x36   :  { %v123_v57 = vld [vmem:[%s4343_s7 + $0x20] sm:$0xff]  ;;  %v138_v58 = vld [vmem:[%s4344_s8 + $0x18] sm:$0xff]  ;;  %v124_v59 = vld [vmem:[%s4343_s7 + $0x28] sm:$0xff] }
  0x37   :  { %v139_v61 = vld [vmem:[%s4344_s8 + $0x20] sm:$0xff]  ;;  %v125_v62 = vld [vmem:[%s4343_s7 + $0x30] sm:$0xff]  ;;  %v140_v0 = vld [vmem:[%s4344_s8 + $0x28] sm:$0xff] }
  0x38   :  { %v126_v1 = vld [vmem:[%s4343_s7 + $0x38] sm:$0xff]  ;;  %v141_v7 = vld [vmem:[%s4344_s8 + $0x30] sm:$0xff]  ;;  %v127_v8 = vld [vmem:[%s4343_s7 + $0x40] sm:$0xff] }
  0x39   :  { %468 = vperm.xlu1 %2767, %v68_v28   ;;  %463 = vperm.xlu0 %2766, %v67_v29   ;;  %v38_v9 = vld [vmem:[%s4337_s1] sm:$0xff]  ;;  %v142_v17 = vld [vmem:[%s4344_s8 + $0x38] sm:$0xff]  ;;  %v128_v18 = vld [vmem:[%s4343_s7 + $0x48] sm:$0xff] }
  0x3a   :  { %v3078_v14 = vrot.slane %v38_v9, %v239_v2  ;;  %v3080_v15 = vrot.slane %v38_v9, %v247_v4  ;;  %v3084_v16 = vrot.slane %v38_v9, %v4347_v5  ;;  %v3092_v19 = vrot.slane %v38_v9, %v243_v6  ;;  %v143_v29 = vld [vmem:[%s4344_s8 + $0x40] sm:$0xff]  ;;  %v145_v6 = vld [vmem:[%s4344_s8 + $0x50] sm:$0xff] }
  0x3b   :  { %v3094_v20 = vrot.slane %v38_v9, %v255_v10  ;;  %v3096_v21 = vrot.slane %v38_v9, %v263_v11  ;;  %v3098_v22 = vrot.slane %v38_v9, %v251_v12  ;;  %v3102_v25 = vrot.slane %v38_v9, %v259_v13 }
  0x3d   :  { %229 = vperm.xlu1 %2767, %v54_v30   ;;  %224 = vperm.xlu0 %2766, %v53_v31   ;;  %v129_v30 = vld [vmem:[%s4343_s7 + $0x50] sm:$0xff] }
  0x41   :  { %478 = vperm.xlu1 %2767, %v70_v32   ;;  %473 = vperm.xlu0 %2766, %v69_v33  }
  0x45   :  { %808 = vperm.xlu1 %2767, %v88_v34   ;;  %803 = vperm.xlu0 %2766, %v87_v35  }
  0x49   :  { %818 = vperm.xlu1 %2767, %v90_v36   ;;  %813 = vperm.xlu0 %2766, %v89_v37  }
  0x4d   :  { %828 = vperm.xlu1 %2767, %v92_v38   ;;  %823 = vperm.xlu0 %2766, %v91_v39  }
  0x51   :  { %838 = vperm.xlu1 %2767, %v94_v40   ;;  %833 = vperm.xlu0 %2766, %v93_v41  }
  0x55   :  { %848 = vperm.xlu1 %2767, %v96_v42   ;;  %843 = vperm.xlu0 %2766, %v95_v43  }
  0x59   :  { %858 = vperm.xlu1 %2767, %v98_v44   ;;  %853 = vperm.xlu0 %2766, %v97_v45  }
  0x5d   :  { %868 = vperm.xlu1 %2767, %v100_v46   ;;  %863 = vperm.xlu0 %2766, %v99_v47   ;;  %v144_v47 = vld [vmem:[%s4344_s8 + $0x48] sm:$0xff] }
  0x61   :  { %878 = vperm.xlu1 %2767, %v102_v48   ;;  %873 = vperm.xlu0 %2766, %v101_v49   ;;  %v130_v48 = vld [vmem:[%s4343_s7 + $0x58] sm:$0xff] }
  0x65   :  { %1580 = vperm.xlu1 %2767, %v120_v50   ;;  %1575 = vperm.xlu0 %2766, %v119_v51  }
  0x69   :  { %1590 = vperm.xlu1 %2767, %v122_v52   ;;  %1585 = vperm.xlu0 %2766, %v121_v53  }
  0x6d   :  { %2288 = vperm.xlu1 %2767, %v136_v54   ;;  %2283 = vperm.xlu0 %2766, %v135_v55  }
  0x71   :  { %2293 = vperm.xlu1 %2767, %v137_v56   ;;  %1595 = vperm.xlu0 %2766, %v123_v57  }
  0x75   :  { %2298 = vperm.xlu1 %2767, %v138_v58   ;;  %1600 = vperm.xlu0 %2766, %v124_v59  }
  0x79   :  { %2303 = vperm.xlu1 %2767, %v139_v61   ;;  %1605 = vperm.xlu0 %2766, %v125_v62  }
  0x7d   :  { %2308 = vperm.xlu1 %2767, %v140_v0   ;;  %1610 = vperm.xlu0 %2766, %v126_v1  }
  0x81   :  { %2313 = vperm.xlu1 %2767, %v141_v7   ;;  %1615 = vperm.xlu0 %2766, %v127_v8   ;;  %v131_v7 = vld [vmem:[%s4343_s7 + $0x60] sm:$0xff] }
  0x84   :  { %v3100_v23 = vpop.permute.xlu1 %403  ;;  %v155_v24 = vpop.permute.xlu0 %154 }
  0x85   :  { %2318 = vperm.xlu1 %2767, %v142_v17   ;;  %1620 = vperm.xlu0 %2766, %v128_v18   ;;  %v274_v26 = vmul.f32 %v3078_v14, %v155_v24  ;;  %v276_v27 = vmul.f32 %v3080_v15, %v155_v24  ;;  %v273_v28 = vmul.f32 %v3084_v16, %v155_v24 }
  0x86   :  { %v275_v31 = vmul.f32 %v3092_v19, %v155_v24  ;;  %v278_v32 = vmul.f32 %v3094_v20, %v155_v24  ;;  %v280_v33 = vmul.f32 %v3096_v21, %v155_v24  ;;  %v277_v34 = vmul.f32 %v3098_v22, %v155_v24 }
  0x87   :  { %v482_v35 = vadd.f32 %v3100_v23, %v274_v26  ;;  %v484_v36 = vadd.f32 %v3100_v23, %v276_v27  ;;  %v481_v37 = vadd.f32 %v3100_v23, %v273_v28  ;;  %v3132_v43 = vmul.f32 %v3102_v25, %v155_v24 }
  0x88   :  { %v3120_v38 = vpop.permute.xlu1 %408  ;;  %v3122_v39 = vpop.permute.xlu0 %159  ;;  %v483_v40 = vadd.f32 %v3100_v23, %v275_v31  ;;  %v3126_v41 = vadd.f32 %v3100_v23, %v278_v32  ;;  %v3129_v42 = vadd.f32 %v3100_v23, %v280_v33  ;;  %v3139_v46 = vadd.f32 %v3100_v23, %v277_v34  ;;  %v146_v34 = vld [vmem:[%s4344_s8 + $0x58] sm:$0xff] }
  0x89   :  { %2323 = vperm.xlu1 %2767, %v143_v29   ;;  %1625 = vperm.xlu0 %2766, %v129_v30   ;;  %v282_v44 = vmul.f32 %v3078_v14, %v3122_v39  ;;  %v284_v45 = vmul.f32 %v3080_v15, %v3122_v39  ;;  %v610_v49 = vmax.f32 %v482_v35, 0.0  ;;  %v612_v50 = vmax.f32 %v484_v36, 0.0  ;;  %v132_v35 = vld [vmem:[%s4343_s7 + $0x68] sm:$0xff] }
  0x8a   :  { %v281_v51 = vmul.f32 %v3084_v16, %v3122_v39  ;;  %v283_v52 = vmul.f32 %v3092_v19, %v3122_v39  ;;  %v609_v55 = vmax.f32 %v481_v37, 0.0  ;;  %v611_v56 = vmax.f32 %v483_v40, 0.0 }
  0x8b   :  { %v490_v53 = vadd.f32 %v3120_v38, %v282_v44  ;;  %v492_v54 = vadd.f32 %v3120_v38, %v284_v45  ;;  %v3161_v61 = vmul.f32 %v3094_v20, %v3122_v39  ;;  %v3165_v62 = vmul.f32 %v3096_v21, %v3122_v39 }
  0x8c   :  { %v3153_v57 = vpop.permute.xlu1 %169  ;;  %v3155_v58 = vpop.permute.xlu0 %164  ;;  %v489_v59 = vadd.f32 %v3120_v38, %v281_v51  ;;  %v491_v60 = vadd.f32 %v3120_v38, %v283_v52 }
  0x8d   :  { %2328 = vperm.xlu1 %2767, %v144_v47   ;;  %1630 = vperm.xlu0 %2766, %v130_v48   ;;  %v618_v0 = vmax.f32 %v490_v53, 0.0  ;;  %v620_v1 = vmax.f32 %v492_v54, 0.0  ;;  %v290_v2 = vmul.f32 %v3078_v14, %v3155_v58  ;;  %v298_v4 = vmul.f32 %v3078_v14, %v3153_v57 }
  0x8e   :  { %v617_v8 = vmax.f32 %v489_v59, 0.0  ;;  %v619_v9 = vmax.f32 %v491_v60, 0.0  ;;  %v292_v10 = vmul.f32 %v3080_v15, %v3155_v58  ;;  %v300_v11 = vmul.f32 %v3080_v15, %v3153_v57 }
  0x8f   :  { %v738_v12 = vpack.c.bf16 %v618_v0, %v610_v49  ;;  %v740_v13 = vpack.c.bf16 %v620_v1, %v612_v50  ;;  %v289_v17 = vmul.f32 %v3084_v16, %v3155_v58  ;;  %v297_v18 = vmul.f32 %v3084_v16, %v3153_v57 }
  0x90   :  { %v3185_v24 = vpop.permute.xlu1 %418  ;;  %v3187_v26 = vpop.permute.xlu0 %413  ;;  %v737_v27 = vpack.c.bf16 %v617_v8, %v609_v55  ;;  %v739_v28 = vpack.c.bf16 %v619_v9, %v611_v56  ;;  %v291_v29 = vmul.f32 %v3092_v19, %v3155_v58  ;;  %v299_v30 = vmul.f32 %v3092_v19, %v3153_v57 }
  0x91   :  { %2333 = vperm.xlu1 %2767, %v145_v6   ;;  %1635 = vperm.xlu0 %2766, %v131_v7   ;;  %v498_v31 = vadd.f32 %v3187_v26, %v290_v2  ;;  %v506_v32 = vadd.f32 %v3185_v24, %v298_v4  ;;  %v500_v33 = vadd.f32 %v3187_v26, %v292_v10  ;;  %v147_v4 = vld [vmem:[%s4344_s8 + $0x60] sm:$0xff]  ;;  %v133_v6 = vld [vmem:[%s4343_s7 + $0x70] sm:$0xff] }
  0x92   :  { %929 = vmatprep.subr.bf16.mxu0 %v738_v12  ;;  %1042 = vmatprep.subr.bf16.mxu1 %v740_v13  ;;  %v508_v36 = vadd.f32 %v3185_v24, %v300_v11  ;;  %v497_v37 = vadd.f32 %v3187_v26, %v289_v17  ;;  %v505_v40 = vadd.f32 %v3185_v24, %v297_v18 }
  0x93   :  { %930 = vmatpush1.bf16.msra.mxu0 %v737_v27  ;;  %1043 = vmatpush1.bf16.msra.mxu1 %v739_v28  ;;  %v626_v44 = vmax.f32 %v498_v31, 0.0  ;;  %v634_v45 = vmax.f32 %v506_v32, 0.0  ;;  %v628_v47 = vmax.f32 %v500_v33, 0.0  ;;  %v499_v48 = vadd.f32 %v3187_v26, %v291_v29  ;;  %v148_v32 = vld [vmem:[%s4344_s8 + $0x68] sm:$0xff] }
  0x94   :  { %v3206_v49 = vpop.permute.xlu1 %179  ;;  %v3208_v50 = vpop.permute.xlu0 %174  ;;  %v636_v51 = vmax.f32 %v508_v36, 0.0  ;;  %v625_v52 = vmax.f32 %v497_v37, 0.0  ;;  %v633_v53 = vmax.f32 %v505_v40, 0.0  ;;  %v507_v54 = vadd.f32 %v3185_v24, %v299_v30 }
  0x95   :  { %2338 = vperm.xlu1 %2767, %v146_v34   ;;  %1640 = vperm.xlu0 %2766, %v132_v35   ;;  %v746_v55 = vpack.c.bf16 %v634_v45, %v626_v44  ;;  %v627_v56 = vmax.f32 %v499_v48, 0.0  ;;  %v306_v59 = vmul.f32 %v3078_v14, %v3208_v50  ;;  %v314_v60 = vmul.f32 %v3078_v14, %v3206_v49 }
  0x96   :  { %v748_v0 = vpack.c.bf16 %v636_v51, %v628_v47  ;;  %v745_v1 = vpack.c.bf16 %v633_v53, %v625_v52  ;;  %v635_v2 = vmax.f32 %v507_v54, 0.0  ;;  %v308_v7 = vmul.f32 %v3080_v15, %v3208_v50 }
  0x97   :  { %931 = vmatprep.subr.bf16.mxu0 %v746_v55  ;;  %v316_v8 = vmul.f32 %v3080_v15, %v3206_v49  ;;  %v305_v9 = vmul.f32 %v3084_v16, %v3208_v50  ;;  %v313_v10 = vmul.f32 %v3084_v16, %v3206_v49  ;;  %v307_v11 = vmul.f32 %v3092_v19, %v3208_v50 }
  0x98   :  { %1044 = vmatprep.subr.bf16.mxu1 %v748_v0  ;;  %v3231_v12 = vpop.permute.xlu1 %428  ;;  %v3233_v13 = vpop.permute.xlu0 %423  ;;  %932 = vmatpush1.bf16.msra.mxu0 %v745_v1  ;;  %v747_v17 = vpack.c.bf16 %v635_v2, %v627_v56  ;;  %v315_v18 = vmul.f32 %v3092_v19, %v3206_v49  ;;  %v3239_v27 = vadd.f32 %v3120_v38, %v3161_v61  ;;  %v614_v31 = vmax.f32 %v3126_v41, 0.0  ;;  %v134_v61 = vld [vmem:[%s4343_s7 + $0x78] sm:$0xff] }
  0x99   :  { %2343 = vperm.xlu1 %2767, %v147_v4   ;;  %1645 = vperm.xlu0 %2766, %v133_v6   ;;  %v514_v28 = vadd.f32 %v3233_v13, %v306_v59  ;;  %v522_v29 = vadd.f32 %v3231_v12, %v314_v60  ;;  %v516_v30 = vadd.f32 %v3233_v13, %v308_v7  ;;  %v150_v2 = vld [vmem:[%s4344_s8 + $0x78] sm:$0xff] }
  0x9a   :  { %1045 = vmatpush1.bf16.msra.mxu1 %v747_v17  ;;  %v524_v33 = vadd.f32 %v3231_v12, %v316_v8  ;;  %v513_v34 = vadd.f32 %v3233_v13, %v305_v9  ;;  %v521_v35 = vadd.f32 %v3231_v12, %v313_v10  ;;  %v515_v36 = vadd.f32 %v3233_v13, %v307_v11  ;;  %v149_v8 = vld [vmem:[%s4344_s8 + $0x70] sm:$0xff] }
  0x9b   :  { %v642_v37 = vmax.f32 %v514_v28, 0.0  ;;  %v650_v40 = vmax.f32 %v522_v29, 0.0  ;;  %v644_v44 = vmax.f32 %v516_v30, 0.0  ;;  %v523_v45 = vadd.f32 %v3231_v12, %v315_v18 }
  0x9c   :  { %v3256_v47 = vpop.permute.xlu1 %189  ;;  %v3258_v48 = vpop.permute.xlu0 %184  ;;  %v652_v51 = vmax.f32 %v524_v33, 0.0  ;;  %v641_v52 = vmax.f32 %v513_v34, 0.0  ;;  %v649_v53 = vmax.f32 %v521_v35, 0.0  ;;  %v643_v54 = vmax.f32 %v515_v36, 0.0 }
  0x9d   :  { %2348 = vperm.xlu1 %2767, %v148_v32   ;;  %1650 = vperm.xlu0 %2766, %v134_v61   ;;  %v754_v55 = vpack.c.bf16 %v650_v40, %v642_v37  ;;  %v651_v56 = vmax.f32 %v523_v45, 0.0  ;;  %v322_v59 = vmul.f32 %v3078_v14, %v3258_v48  ;;  %v330_v60 = vmul.f32 %v3078_v14, %v3256_v47 }
  0x9e   :  { %v756_v0 = vpack.c.bf16 %v652_v51, %v644_v44  ;;  %v753_v1 = vpack.c.bf16 %v649_v53, %v641_v52  ;;  %v324_v4 = vmul.f32 %v3080_v15, %v3258_v48  ;;  %v332_v6 = vmul.f32 %v3080_v15, %v3256_v47  ;;  %v151_v44 = vld [vmem:[#allocation4] sm:$0x1] }
  0x9f   :  { %933 = vmatprep.subr.bf16.mxu0 %v754_v55  ;;  %v755_v7 = vpack.c.bf16 %v651_v56, %v643_v54  ;;  %v321_v9 = vmul.f32 %v3084_v16, %v3258_v48  ;;  %v329_v10 = vmul.f32 %v3084_v16, %v3256_v47  ;;  %v323_v11 = vmul.f32 %v3092_v19, %v3258_v48 }
  0xa0   :  { %1046 = vmatprep.subr.bf16.mxu1 %v756_v0  ;;  %v3280_v17 = vpop.permute.xlu1 %438  ;;  %v3282_v18 = vpop.permute.xlu0 %433  ;;  %934 = vmatpush1.bf16.msra.mxu0 %v753_v1  ;;  %v331_v28 = vmul.f32 %v3092_v19, %v3256_v47  ;;  %v3288_v29 = vadd.f32 %v3120_v38, %v3165_v62  ;;  %v616_v30 = vmax.f32 %v3129_v42, 0.0  ;;  %v285_v32 = vmul.f32 %v3098_v22, %v3122_v39 }
  0xa1   :  { %1047 = vmatpush1.bf16.msra.mxu1 %v755_v7  ;;  %2358 = vperm.xlu1 %2767, %v150_v2   ;;  %v530_v61 = vadd.f32 %v3282_v18, %v322_v59  ;;  %v538_v33 = vadd.f32 %v3280_v17, %v330_v60  ;;  %v532_v34 = vadd.f32 %v3282_v18, %v324_v4  ;;  %v622_v35 = vmax.f32 %v3239_v27, 0.0 }
  0xa2   :  { %2353 = vperm.xlu0 %2766, %v149_v8   ;;  %v540_v36 = vadd.f32 %v3280_v17, %v332_v6  ;;  %v529_v62 = vadd.f32 %v3282_v18, %v321_v9  ;;  %v537_v37 = vadd.f32 %v3280_v17, %v329_v10  ;;  %v531_v40 = vadd.f32 %v3282_v18, %v323_v11 }
  0xa3   :  { %v658_v45 = vmax.f32 %v530_v61, 0.0  ;;  %v666_v51 = vmax.f32 %v538_v33, 0.0  ;;  %v660_v52 = vmax.f32 %v532_v34, 0.0  ;;  %v539_v53 = vadd.f32 %v3280_v17, %v331_v28 }
  0xa4   :  { %v3302_v54 = vpop.permute.xlu1 %199  ;;  %v3304_v55 = vpop.permute.xlu0 %194  ;;  %v668_v27 = vmax.f32 %v540_v36, 0.0  ;;  %v657_v56 = vmax.f32 %v529_v62, 0.0  ;;  %v665_v59 = vmax.f32 %v537_v37, 0.0  ;;  %v659_v60 = vmax.f32 %v531_v40, 0.0 }
  0xa5   :  { %v762_v0 = vpack.c.bf16 %v666_v51, %v658_v45  ;;  %v667_v1 = vmax.f32 %v539_v53, 0.0  ;;  %v338_v2 = vmul.f32 %v3078_v14, %v3304_v55  ;;  %v346_v4 = vmul.f32 %v3078_v14, %v3302_v54 }
  0xa6   :  { %2659 = vperm.xlu0 %2766, %v151_v44   ;;  %v764_v6 = vpack.c.bf16 %v668_v27, %v660_v52  ;;  %v761_v7 = vpack.c.bf16 %v665_v59, %v657_v56  ;;  %v340_v8 = vmul.f32 %v3080_v15, %v3304_v55  ;;  %v348_v9 = vmul.f32 %v3080_v15, %v3302_v54 }
  0xa7   :  { %935 = vmatprep.subr.bf16.mxu0 %v762_v0  ;;  %v763_v10 = vpack.c.bf16 %v667_v1, %v659_v60  ;;  %v337_v11 = vmul.f32 %v3084_v16, %v3304_v55  ;;  %v345_v28 = vmul.f32 %v3084_v16, %v3302_v54  ;;  %v339_v61 = vmul.f32 %v3092_v19, %v3304_v55 }
  0xa8   :  { %1048 = vmatprep.subr.bf16.mxu1 %v764_v6  ;;  %v3320_v33 = vpop.permute.xlu1 %448  ;;  %v3322_v34 = vpop.permute.xlu0 %443  ;;  %936 = vmatpush1.bf16.msra.mxu0 %v761_v7  ;;  %v347_v36 = vmul.f32 %v3092_v19, %v3302_v54  ;;  %v3328_v62 = vpack.c.bf16 %v622_v35, %v614_v31  ;;  %v624_v37 = vmax.f32 %v3288_v29, 0.0  ;;  %v3332_v40 = vadd.f32 %v3120_v38, %v285_v32 }
  0xa9   :  { %1049 = vmatpush1.bf16.msra.mxu1 %v763_v10  ;;  %v546_v44 = vadd.f32 %v3322_v34, %v338_v2  ;;  %v554_v45 = vadd.f32 %v3320_v33, %v346_v4  ;;  %v548_v51 = vadd.f32 %v3322_v34, %v340_v8  ;;  %v556_v52 = vadd.f32 %v3320_v33, %v348_v9 }
  0xaa   :  { %v545_v53 = vadd.f32 %v3322_v34, %v337_v11  ;;  %v553_v41 = vadd.f32 %v3320_v33, %v345_v28  ;;  %v547_v31 = vadd.f32 %v3322_v34, %v339_v61  ;;  %v555_v29 = vadd.f32 %v3320_v33, %v347_v36 }
  0xab   :  { %v674_v35 = vmax.f32 %v546_v44, 0.0  ;;  %v682_v32 = vmax.f32 %v554_v45, 0.0  ;;  %v676_v27 = vmax.f32 %v548_v51, 0.0  ;;  %v684_v56 = vmax.f32 %v556_v52, 0.0 }
  0xac   :  { %v3342_v59 = vpop.permute.xlu1 %209  ;;  %v3344_v60 = vpop.permute.xlu0 %204  ;;  %v673_v0 = vmax.f32 %v545_v53, 0.0  ;;  %v681_v1 = vmax.f32 %v553_v41, 0.0  ;;  %v675_v2 = vmax.f32 %v547_v31, 0.0  ;;  %v683_v4 = vmax.f32 %v555_v29, 0.0 }
  0xad   :  { %v770_v6 = vpack.c.bf16 %v682_v32, %v674_v35  ;;  %v772_v7 = vpack.c.bf16 %v684_v56, %v676_v27  ;;  %v354_v8 = vmul.f32 %v3078_v14, %v3344_v60  ;;  %v362_v9 = vmul.f32 %v3078_v14, %v3342_v59 }
  0xae   :  { %v769_v10 = vpack.c.bf16 %v681_v1, %v673_v0  ;;  %v771_v11 = vpack.c.bf16 %v683_v4, %v675_v2  ;;  %v356_v28 = vmul.f32 %v3080_v15, %v3344_v60  ;;  %v364_v61 = vmul.f32 %v3080_v15, %v3342_v59 }
  0xaf   :  { %937 = vmatprep.subr.bf16.mxu0 %v770_v6  ;;  %1050 = vmatprep.subr.bf16.mxu1 %v772_v7  ;;  %v353_v36 = vmul.f32 %v3084_v16, %v3344_v60  ;;  %v361_v44 = vmul.f32 %v3084_v16, %v3342_v59  ;;  %v355_v45 = vmul.f32 %v3092_v19, %v3344_v60  ;;  %v613_v51 = vmax.f32 %v3139_v46, 0.0 }
  0xb0   :  { %v3361_v52 = vpop.permute.xlu1 %458  ;;  %v3363_v53 = vpop.permute.xlu0 %453  ;;  %938 = vmatpush1.bf16.msra.mxu0 %v769_v10  ;;  %1051 = vmatpush1.bf16.msra.mxu1 %v771_v11  ;;  %v363_v41 = vmul.f32 %v3092_v19, %v3342_v59  ;;  %v3369_v31 = vpack.c.bf16 %v624_v37, %v616_v30  ;;  %v621_v29 = vmax.f32 %v3332_v40, 0.0  ;;  %v3374_v35 = vmul.f32 %v3102_v25, %v3122_v39 }
  0xb1   :  { %v562_v46 = vadd.f32 %v3363_v53, %v354_v8  ;;  %v570_v32 = vadd.f32 %v3361_v52, %v362_v9  ;;  %v564_v27 = vadd.f32 %v3363_v53, %v356_v28  ;;  %v572_v56 = vadd.f32 %v3361_v52, %v364_v61 }
  0xb2   :  { %v561_v0 = vadd.f32 %v3363_v53, %v353_v36  ;;  %v569_v42 = vadd.f32 %v3361_v52, %v361_v44  ;;  %v563_v30 = vadd.f32 %v3363_v53, %v355_v45  ;;  %v571_v37 = vadd.f32 %v3361_v52, %v363_v41 }
  0xb3   :  { %v690_v40 = vmax.f32 %v562_v46, 0.0  ;;  %v698_v1 = vmax.f32 %v570_v32, 0.0  ;;  %v692_v39 = vmax.f32 %v564_v27, 0.0  ;;  %v700_v2 = vmax.f32 %v572_v56, 0.0 }
  0xb4   :  { %v3384_v4 = vpop.permute.xlu1 %219  ;;  %v3386_v6 = vpop.permute.xlu0 %214  ;;  %v689_v7 = vmax.f32 %v561_v0, 0.0  ;;  %v697_v8 = vmax.f32 %v569_v42, 0.0  ;;  %v691_v9 = vmax.f32 %v563_v30, 0.0  ;;  %v699_v10 = vmax.f32 %v571_v37, 0.0 }
  0xb5   :  { %v778_v11 = vpack.c.bf16 %v698_v1, %v690_v40  ;;  %v780_v28 = vpack.c.bf16 %v700_v2, %v692_v39  ;;  %v370_v61 = vmul.f32 %v3078_v14, %v3386_v6  ;;  %v378_v36 = vmul.f32 %v3078_v14, %v3384_v4 }
  0xb6   :  { %v777_v44 = vpack.c.bf16 %v697_v8, %v689_v7  ;;  %v779_v45 = vpack.c.bf16 %v699_v10, %v691_v9  ;;  %v372_v41 = vmul.f32 %v3080_v15, %v3386_v6  ;;  %v380_v46 = vmul.f32 %v3080_v15, %v3384_v4 }
  0xb7   :  { %939 = vmatprep.subr.bf16.mxu0 %v778_v11  ;;  %1052 = vmatprep.subr.bf16.mxu1 %v780_v28  ;;  %v369_v32 = vmul.f32 %v3084_v16, %v3386_v6  ;;  %v377_v27 = vmul.f32 %v3084_v16, %v3384_v4  ;;  %v371_v56 = vmul.f32 %v3092_v19, %v3386_v6 }
  0xb8   :  { %v3402_v0 = vpop.permute.xlu1 %468  ;;  %v3404_v42 = vpop.permute.xlu0 %463  ;;  %940 = vmatpush1.bf16.msra.mxu0 %v777_v44  ;;  %1053 = vmatpush1.bf16.msra.mxu1 %v779_v45  ;;  %v379_v30 = vmul.f32 %v3092_v19, %v3384_v4  ;;  %v3408_v37 = vpack.c.bf16 %v621_v29, %v613_v51  ;;  %v3412_v40 = vadd.f32 %v3100_v23, %v3132_v43 }
  0xb9   :  { %v578_v1 = vadd.f32 %v3404_v42, %v370_v61  ;;  %v586_v39 = vadd.f32 %v3402_v0, %v378_v36  ;;  %v580_v2 = vadd.f32 %v3404_v42, %v372_v41  ;;  %v588_v7 = vadd.f32 %v3402_v0, %v380_v46 }
  0xba   :  { %v577_v8 = vadd.f32 %v3404_v42, %v369_v32  ;;  %v585_v9 = vadd.f32 %v3402_v0, %v377_v27  ;;  %v579_v10 = vadd.f32 %v3404_v42, %v371_v56  ;;  %v587_v51 = vadd.f32 %v3402_v0, %v379_v30 }
  0xbb   :  { %v706_v29 = vmax.f32 %v578_v1, 0.0  ;;  %v714_v11 = vmax.f32 %v586_v39, 0.0  ;;  %v708_v23 = vmax.f32 %v580_v2, 0.0  ;;  %v716_v43 = vmax.f32 %v588_v7, 0.0 }
  0xbc   :  { %v3422_v28 = vpop.permute.xlu1 %229  ;;  %v3424_v61 = vpop.permute.xlu0 %224  ;;  %v705_v36 = vmax.f32 %v577_v8, 0.0  ;;  %v713_v44 = vmax.f32 %v585_v9, 0.0  ;;  %v707_v45 = vmax.f32 %v579_v10, 0.0  ;;  %v715_v41 = vmax.f32 %v587_v51, 0.0 }
  0xbd   :  { %v786_v46 = vpack.c.bf16 %v714_v11, %v706_v29  ;;  %v788_v32 = vpack.c.bf16 %v716_v43, %v708_v23  ;;  %v386_v27 = vmul.f32 %v3078_v14, %v3424_v61  ;;  %v394_v56 = vmul.f32 %v3078_v14, %v3422_v28 }
  0xbe   :  { %v785_v30 = vpack.c.bf16 %v713_v44, %v705_v36  ;;  %v787_v1 = vpack.c.bf16 %v715_v41, %v707_v45  ;;  %v388_v39 = vmul.f32 %v3080_v15, %v3424_v61  ;;  %v396_v2 = vmul.f32 %v3080_v15, %v3422_v28 }
  0xbf   :  { %941 = vmatprep.subr.bf16.mxu0 %v786_v46  ;;  %1054 = vmatprep.subr.bf16.mxu1 %v788_v32  ;;  %v385_v7 = vmul.f32 %v3084_v16, %v3424_v61  ;;  %v393_v8 = vmul.f32 %v3084_v16, %v3422_v28  ;;  %v387_v9 = vmul.f32 %v3092_v19, %v3424_v61  ;;  %v615_v29 = vmax.f32 %v3412_v40, 0.0 }
  0xc0   :  { %v3440_v14 = vpop.permute.xlu1 %478  ;;  %v3442_v10 = vpop.permute.xlu0 %473  ;;  %942 = vmatpush1.bf16.msra.mxu0 %v785_v30  ;;  %1055 = vmatpush1.bf16.msra.mxu1 %v787_v1  ;;  %v395_v15 = vmul.f32 %v3092_v19, %v3422_v28  ;;  %v495_v51 = vadd.f32 %v3120_v38, %v3374_v35  ;;  %v294_v16 = vmul.f32 %v3094_v20, %v3155_v58 }
  0xc1   :  { %v594_v11 = vadd.f32 %v3442_v10, %v386_v27  ;;  %v602_v23 = vadd.f32 %v3440_v14, %v394_v56  ;;  %v596_v43 = vadd.f32 %v3442_v10, %v388_v39  ;;  %v604_v36 = vadd.f32 %v3440_v14, %v396_v2 }
  0xc2   :  { %v593_v44 = vadd.f32 %v3442_v10, %v385_v7  ;;  %v601_v19 = vadd.f32 %v3440_v14, %v393_v8  ;;  %v595_v45 = vadd.f32 %v3442_v10, %v387_v9  ;;  %v603_v38 = vadd.f32 %v3440_v14, %v395_v15 }
  0xc3   :  { %v722_v35 = vmax.f32 %v594_v11, 0.0  ;;  %v730_v40 = vmax.f32 %v602_v23, 0.0  ;;  %v724_v41 = vmax.f32 %v596_v43, 0.0  ;;  %v732_v46 = vmax.f32 %v604_v36, 0.0  ;;  %v3467_v11 = vld [vmem:[%s4340_s4] sm:$0xff]  }
  0xc4   :  { %v721_v32 = vmax.f32 %v593_v44, 0.0  ;;  %v729_v27 = vmax.f32 %v601_v19, 0.0  ;;  %v723_v30 = vmax.f32 %v595_v45, 0.0  ;;  %v731_v56 = vmax.f32 %v603_v38, 0.0 }
  0xc5   :  { %v794_v1 = vpack.c.bf16 %v730_v40, %v722_v35  ;;  %v796_v39 = vpack.c.bf16 %v732_v46, %v724_v41  ;;  %v623_v5 = vmax.f32 %v495_v51, 0.0  ;;  %v302_v2 = vmul.f32 %v3094_v20, %v3153_v57 }
  0xc6   :  { %v793_v7 = vpack.c.bf16 %v729_v27, %v721_v32  ;;  %v795_v8 = vpack.c.bf16 %v731_v56, %v723_v30  ;;  %v502_v9 = vadd.f32 %v3187_v26, %v294_v16  ;;  %v296_v15 = vmul.f32 %v3096_v21, %v3155_v58 }
  0xc7   :  { %943 = vmatprep.subr.bf16.mxu0 %v794_v1  ;;  %1056 = vmatprep.subr.bf16.mxu1 %v796_v39  ;;  %v743_v23 = vpack.c.bf16 %v623_v5, %v615_v29  ;;  %v510_v51 = vadd.f32 %v3185_v24, %v302_v2  ;;  %v304_v43 = vmul.f32 %v3096_v21, %v3153_v57 }
  0xc8   :  { %944 = vmatpush1.bf16.msra.mxu0 %v793_v7  ;;  %1057 = vmatpush1.bf16.msra.mxu1 %v795_v8  ;;  %v630_v36 = vmax.f32 %v502_v9, 0.0  ;;  %v504_v16 = vadd.f32 %v3187_v26, %v296_v15  ;;  %v293_v44 = vmul.f32 %v3098_v22, %v3155_v58  ;;  %v301_v19 = vmul.f32 %v3098_v22, %v3153_v57 }
  0xc9   :  { %1155 = vmatprep.subr.bf16.mxu0 %v3328_v62  ;;  %1268 = vmatprep.subr.bf16.mxu1 %v3369_v31  ;;  %v638_v5 = vmax.f32 %v510_v51, 0.0  ;;  %v512_v29 = vadd.f32 %v3185_v24, %v304_v43  ;;  %v295_v45 = vmul.f32 %v3102_v25, %v3155_v58  ;;  %v303_v38 = vmul.f32 %v3102_v25, %v3153_v57 }
  0xca   :  { %v632_v35 = vmax.f32 %v504_v16, 0.0  ;;  %v501_v40 = vadd.f32 %v3187_v26, %v293_v44  ;;  %v509_v41 = vadd.f32 %v3185_v24, %v301_v19  ;;  %v310_v46 = vmul.f32 %v3094_v20, %v3208_v50 }
  0xcb   :  { %962 = vmatmul.mubr.bf16.vlgmr.msra.gmra.mrb[0].mxu0 %v3467_v11  ;;  %1075 = vmatmul.mubr.bf16.vlgmr.msra.gmra.mrb[0].mxu1 %v3467_v11  ;;  %v750_v62 = vpack.c.bf16 %v638_v5, %v630_v36  ;;  %v640_v31 = vmax.f32 %v512_v29, 0.0  ;;  %v503_v32 = vadd.f32 %v3187_v26, %v295_v45  ;;  %v511_v58 = vadd.f32 %v3185_v24, %v303_v38 }
  0xcc   :  { %1156 = vmatpush1.bf16.msra.mxu0 %v3408_v37  ;;  %1269 = vmatpush1.bf16.msra.mxu1 %v743_v23  ;;  %v629_v57 = vmax.f32 %v501_v40, 0.0  ;;  %v637_v27 = vmax.f32 %v509_v41, 0.0  ;;  %v318_v30 = vmul.f32 %v3094_v20, %v3206_v49  ;;  %v518_v56 = vadd.f32 %v3233_v13, %v310_v46  ;;  %v3507_v23 = vld [vmem:[%s4340_s4 + $0x8] sm:$0xff]  }
  0xcd   :  { %1157 = vmatprep.subr.bf16.mxu0 %v750_v62  ;;  %v752_v1 = vpack.c.bf16 %v640_v31, %v632_v35  ;;  %v631_v39 = vmax.f32 %v503_v32, 0.0  ;;  %v639_v2 = vmax.f32 %v511_v58, 0.0  ;;  %v312_v7 = vmul.f32 %v3096_v21, %v3208_v50  ;;  %971 = vmatprep.mubr.bf16.mxu0 %v2808_v3 }
  0xce   :  { %v749_v24 = vpack.c.bf16 %v637_v27, %v629_v57  ;;  %v526_v26 = vadd.f32 %v3231_v12, %v318_v30  ;;  %v646_v37 = vmax.f32 %v518_v56, 0.0  ;;  %v320_v8 = vmul.f32 %v3096_v21, %v3206_v49  ;;  %1084 = vmatprep.mubr.bf16.mxu1 %v2808_v3 }
  0xcf   :  { %1270 = vmatprep.subr.bf16.mxu1 %v752_v1  ;;  %v751_v9 = vpack.c.bf16 %v639_v2, %v631_v39  ;;  %v520_v15 = vadd.f32 %v3233_v13, %v312_v7  ;;  %v309_v51 = vmul.f32 %v3098_v22, %v3208_v50  ;;  %v317_v43 = vmul.f32 %v3098_v22, %v3206_v49 }
  0xd0   :  { %1158 = vmatpush1.bf16.msra.mxu0 %v749_v24  ;;  %v654_v36 = vmax.f32 %v526_v26, 0.0  ;;  %v528_v16 = vadd.f32 %v3231_v12, %v320_v8  ;;  %v311_v44 = vmul.f32 %v3102_v25, %v3208_v50  ;;  %v319_v19 = vmul.f32 %v3102_v25, %v3206_v49 }
  0xd1   :  { %1271 = vmatpush1.bf16.msra.mxu1 %v751_v9  ;;  %v648_v5 = vmax.f32 %v520_v15, 0.0  ;;  %v517_v29 = vadd.f32 %v3233_v13, %v309_v51  ;;  %v525_v45 = vadd.f32 %v3231_v12, %v317_v43  ;;  %v326_v38 = vmul.f32 %v3094_v20, %v3258_v48  ;;  %v3549_v9 = vld [vmem:[%s4340_s4 + $0x10] sm:$0xff]  }
  0xd2   :  { %v758_v35 = vpack.c.bf16 %v654_v36, %v646_v37  ;;  %v656_v40 = vmax.f32 %v528_v16, 0.0  ;;  %v519_v41 = vadd.f32 %v3233_v13, %v311_v44  ;;  %v527_v46 = vadd.f32 %v3231_v12, %v319_v19 }
  0xd3   :  { %972 = vmatmul.mubr.bf16.gmra.mrb[4].mxu0 %v3507_v23  ;;  %1085 = vmatmul.mubr.bf16.gmra.mrb[4].mxu1 %v3507_v23  ;;  %v645_v49 = vmax.f32 %v517_v29, 0.0  ;;  %v653_v50 = vmax.f32 %v525_v45, 0.0  ;;  %v334_v62 = vmul.f32 %v3094_v20, %v3256_v47  ;;  %v534_v31 = vadd.f32 %v3282_v18, %v326_v38 }
  0xd4   :  { %1159 = vmatprep.subr.bf16.mxu0 %v758_v35  ;;  %v760_v32 = vpack.c.bf16 %v656_v40, %v648_v5  ;;  %v647_v58 = vmax.f32 %v519_v41, 0.0  ;;  %v655_v57 = vmax.f32 %v527_v46, 0.0  ;;  %v328_v13 = vmul.f32 %v3096_v21, %v3258_v48  ;;  %981 = vmatprep.mubr.bf16.mxu0 %v2808_v3 }
  0xd5   :  { %v757_v12 = vpack.c.bf16 %v653_v50, %v645_v49  ;;  %v542_v27 = vadd.f32 %v3280_v17, %v334_v62  ;;  %v662_v30 = vmax.f32 %v534_v31, 0.0  ;;  %v336_v56 = vmul.f32 %v3096_v21, %v3256_v47  ;;  %1094 = vmatprep.mubr.bf16.mxu1 %v2808_v3 }
  0xd6   :  { %1272 = vmatprep.subr.bf16.mxu1 %v760_v32  ;;  %v759_v1 = vpack.c.bf16 %v655_v57, %v647_v58  ;;  %v536_v39 = vadd.f32 %v3282_v18, %v328_v13  ;;  %v325_v2 = vmul.f32 %v3098_v22, %v3258_v48  ;;  %v333_v7 = vmul.f32 %v3098_v22, %v3256_v47 }
  0xd7   :  { %1160 = vmatpush1.bf16.msra.mxu0 %v757_v12  ;;  %v670_v24 = vmax.f32 %v542_v27, 0.0  ;;  %v544_v26 = vadd.f32 %v3280_v17, %v336_v56  ;;  %v327_v37 = vmul.f32 %v3102_v25, %v3258_v48  ;;  %v335_v8 = vmul.f32 %v3102_v25, %v3256_v47 }
  0xd8   :  { %1273 = vmatpush1.bf16.msra.mxu1 %v759_v1  ;;  %v664_v15 = vmax.f32 %v536_v39, 0.0  ;;  %v533_v51 = vadd.f32 %v3282_v18, %v325_v2  ;;  %v541_v43 = vadd.f32 %v3280_v17, %v333_v7  ;;  %v342_v36 = vmul.f32 %v3094_v20, %v3304_v55  ;;  %v3586_v39 = vld [vmem:[%s4340_s4 + $0x18] sm:$0xff]  }
  0xd9   :  { %v766_v16 = vpack.c.bf16 %v670_v24, %v662_v30  ;;  %v672_v44 = vmax.f32 %v544_v26, 0.0  ;;  %v535_v48 = vadd.f32 %v3282_v18, %v327_v37  ;;  %v543_v47 = vadd.f32 %v3280_v17, %v335_v8 }
  0xda   :  { %v661_v19 = vmax.f32 %v533_v51, 0.0  ;;  %v669_v5 = vmax.f32 %v541_v43, 0.0  ;;  %v350_v29 = vmul.f32 %v3094_v20, %v3302_v54  ;;  %v550_v45 = vadd.f32 %v3322_v34, %v342_v36 }
  0xdb   :  { %1161 = vmatprep.subr.bf16.mxu0 %v766_v16  ;;  %v768_v38 = vpack.c.bf16 %v672_v44, %v664_v15  ;;  %v663_v35 = vmax.f32 %v535_v48, 0.0  ;;  %v671_v40 = vmax.f32 %v543_v47, 0.0  ;;  %v344_v41 = vmul.f32 %v3096_v21, %v3304_v55  ;;  %982 = vmatmul.mubr.bf16.gmra.mrb[8].mxu0 %v3549_v9 }
  0xdc   :  { %v765_v46 = vpack.c.bf16 %v669_v5, %v661_v19  ;;  %v558_v18 = vadd.f32 %v3320_v33, %v350_v29  ;;  %v678_v17 = vmax.f32 %v550_v45, 0.0  ;;  %v352_v49 = vmul.f32 %v3096_v21, %v3302_v54  ;;  %1095 = vmatmul.mubr.bf16.gmra.mrb[8].mxu1 %v3549_v9  ;;  %991 = vmatprep.mubr.bf16.mxu0 %v2808_v3 }
  0xdd   :  { %1274 = vmatprep.subr.bf16.mxu1 %v768_v38  ;;  %v767_v50 = vpack.c.bf16 %v671_v40, %v663_v35  ;;  %v552_v62 = vadd.f32 %v3322_v34, %v344_v41  ;;  %v341_v31 = vmul.f32 %v3098_v22, %v3304_v55  ;;  %v349_v32 = vmul.f32 %v3098_v22, %v3302_v54 }
  0xde   :  { %1162 = vmatpush1.bf16.msra.mxu0 %v765_v46  ;;  %v686_v58 = vmax.f32 %v558_v18, 0.0  ;;  %v560_v57 = vadd.f32 %v3320_v33, %v352_v49  ;;  %v343_v13 = vmul.f32 %v3102_v25, %v3304_v55  ;;  %v351_v12 = vmul.f32 %v3102_v25, %v3302_v54  ;;  %1104 = vmatprep.mubr.bf16.mxu1 %v2808_v3 }
  0xdf   :  { %1275 = vmatpush1.bf16.msra.mxu1 %v767_v50  ;;  %v680_v27 = vmax.f32 %v552_v62, 0.0  ;;  %v549_v30 = vadd.f32 %v3322_v34, %v341_v31  ;;  %v557_v56 = vadd.f32 %v3320_v33, %v349_v32  ;;  %v358_v1 = vmul.f32 %v3094_v20, %v3344_v60 }
  0xe0   :  { %v774_v55 = vpack.c.bf16 %v686_v58, %v678_v17  ;;  %v688_v2 = vmax.f32 %v560_v57, 0.0  ;;  %v551_v54 = vadd.f32 %v3322_v34, %v343_v13  ;;  %v559_v7 = vadd.f32 %v3320_v33, %v351_v12 }
  0xe1   :  { %v677_v24 = vmax.f32 %v549_v30, 0.0  ;;  %v685_v26 = vmax.f32 %v557_v56, 0.0  ;;  %v366_v37 = vmul.f32 %v3094_v20, %v3342_v59  ;;  %v566_v8 = vadd.f32 %v3363_v53, %v358_v1 }
  0xe2   :  { %1163 = vmatprep.subr.bf16.mxu0 %v774_v55  ;;  %v776_v15 = vpack.c.bf16 %v688_v2, %v680_v27  ;;  %v679_v51 = vmax.f32 %v551_v54, 0.0  ;;  %v687_v43 = vmax.f32 %v559_v7, 0.0  ;;  %v360_v36 = vmul.f32 %v3096_v21, %v3344_v60 }
  0xe3   :  { %v773_v16 = vpack.c.bf16 %v685_v26, %v677_v24  ;;  %v574_v44 = vadd.f32 %v3361_v52, %v366_v37  ;;  %v694_v34 = vmax.f32 %v566_v8, 0.0  ;;  %v368_v33 = vmul.f32 %v3096_v21, %v3342_v59  ;;  %992 = vmatmul.mubr.bf16.gmra.mrb[12].mxu0 %v3586_v39 }
  0xe4   :  { %1276 = vmatprep.subr.bf16.mxu1 %v776_v15  ;;  %v775_v48 = vpack.c.bf16 %v687_v43, %v679_v51  ;;  %v568_v47 = vadd.f32 %v3363_v53, %v360_v36  ;;  %v357_v19 = vmul.f32 %v3098_v22, %v3344_v60  ;;  %v365_v5 = vmul.f32 %v3098_v22, %v3342_v59 }
  0xe5   :  { %1164 = vmatpush1.bf16.msra.mxu0 %v773_v16  ;;  %v702_v29 = vmax.f32 %v574_v44, 0.0  ;;  %v576_v45 = vadd.f32 %v3361_v52, %v368_v33  ;;  %v359_v38 = vmul.f32 %v3102_v25, %v3344_v60  ;;  %v367_v35 = vmul.f32 %v3102_v25, %v3342_v59  ;;  %1105 = vmatmul.mubr.bf16.gmra.mrb[12].mxu1 %v3586_v39 }
  0xe6   :  { %1277 = vmatpush1.bf16.msra.mxu1 %v775_v48  ;;  %v696_v40 = vmax.f32 %v568_v47, 0.0  ;;  %v565_v41 = vadd.f32 %v3363_v53, %v357_v19  ;;  %v573_v46 = vadd.f32 %v3361_v52, %v365_v5  ;;  %v374_v18 = vmul.f32 %v3094_v20, %v3386_v6  ;;  %1001 = vmatprep.mubr.bf16.mxu0 %v2808_v3 }
  0xe7   :  { %v782_v17 = vpack.c.bf16 %v702_v29, %v694_v34  ;;  %v704_v49 = vmax.f32 %v576_v45, 0.0  ;;  %v567_v60 = vadd.f32 %v3363_v53, %v359_v38  ;;  %v575_v50 = vadd.f32 %v3361_v52, %v367_v35  ;;  %1114 = vmatprep.mubr.bf16.mxu1 %v2808_v3  ;;  %v3626_v52 = vld [vmem:[%s4340_s4 + $0x20] sm:$0xff]  }
  0xe8   :  { %v693_v59 = vmax.f32 %v565_v41, 0.0  ;;  %v701_v62 = vmax.f32 %v573_v46, 0.0  ;;  %v382_v31 = vmul.f32 %v3094_v20, %v3384_v4  ;;  %v582_v32 = vadd.f32 %v3404_v42, %v374_v18 }
  0xe9   :  { %1165 = vmatprep.subr.bf16.mxu0 %v782_v17  ;;  %v784_v58 = vpack.c.bf16 %v704_v49, %v696_v40  ;;  %v695_v57 = vmax.f32 %v567_v60, 0.0  ;;  %v703_v13 = vmax.f32 %v575_v50, 0.0  ;;  %v376_v12 = vmul.f32 %v3096_v21, %v3386_v6 }
  0xea   :  { %v781_v53 = vpack.c.bf16 %v701_v62, %v693_v59  ;;  %v590_v27 = vadd.f32 %v3402_v0, %v382_v31  ;;  %v710_v30 = vmax.f32 %v582_v32, 0.0  ;;  %v384_v56 = vmul.f32 %v3096_v21, %v3384_v4 }
  0xeb   :  { %1278 = vmatprep.subr.bf16.mxu1 %v784_v58  ;;  %v783_v1 = vpack.c.bf16 %v703_v13, %v695_v57  ;;  %v584_v55 = vadd.f32 %v3404_v42, %v376_v12  ;;  %v373_v2 = vmul.f32 %v3098_v22, %v3386_v6  ;;  %v381_v54 = vmul.f32 %v3098_v22, %v3384_v4 }
  0xec   :  { %1166 = vmatpush1.bf16.msra.mxu0 %v781_v53  ;;  %v718_v7 = vmax.f32 %v590_v27, 0.0  ;;  %v592_v24 = vadd.f32 %v3402_v0, %v384_v56  ;;  %v375_v26 = vmul.f32 %v3102_v25, %v3386_v6  ;;  %v383_v37 = vmul.f32 %v3102_v25, %v3384_v4 }
  0xed   :  { %1279 = vmatpush1.bf16.msra.mxu1 %v783_v1  ;;  %v712_v8 = vmax.f32 %v584_v55, 0.0  ;;  %v581_v15 = vadd.f32 %v3404_v42, %v373_v2  ;;  %v589_v51 = vadd.f32 %v3402_v0, %v381_v54  ;;  %v390_v43 = vmul.f32 %v3094_v20, %v3424_v61  ;;  %1002 = vmatmul.mubr.bf16.gmra.mrb[16].mxu0 %v3626_v52 }
  0xee   :  { %v790_v36 = vpack.c.bf16 %v718_v7, %v710_v30  ;;  %v720_v16 = vmax.f32 %v592_v24, 0.0  ;;  %v583_v44 = vadd.f32 %v3404_v42, %v375_v26  ;;  %v591_v6 = vadd.f32 %v3402_v0, %v383_v37  ;;  %1115 = vmatmul.mubr.bf16.gmra.mrb[16].mxu1 %v3626_v52  ;;  %1011 = vmatprep.mubr.bf16.mxu0 %v2808_v3 }
  0xef   :  { %v709_v4 = vmax.f32 %v581_v15, 0.0  ;;  %v717_v34 = vmax.f32 %v589_v51, 0.0  ;;  %v398_v33 = vmul.f32 %v3094_v20, %v3422_v28  ;;  %v598_v48 = vadd.f32 %v3442_v10, %v390_v43  ;;  %1124 = vmatprep.mubr.bf16.mxu1 %v2808_v3  ;;  %v3662_v20 = vld [vmem:[%s4340_s4 + $0x28] sm:$0xff]  }
  0xf0   :  { %1167 = vmatprep.subr.bf16.mxu0 %v790_v36  ;;  %v792_v47 = vpack.c.bf16 %v720_v16, %v712_v8  ;;  %v711_v19 = vmax.f32 %v583_v44, 0.0  ;;  %v719_v5 = vmax.f32 %v591_v6, 0.0  ;;  %v392_v0 = vmul.f32 %v3096_v21, %v3424_v61 }
  0xf1   :  { %v789_v42 = vpack.c.bf16 %v717_v34, %v709_v4  ;;  %v606_v29 = vadd.f32 %v3440_v14, %v398_v33  ;;  %v726_v45 = vmax.f32 %v598_v48, 0.0  ;;  %v400_v38 = vmul.f32 %v3096_v21, %v3422_v28 }
  0xf2   :  { %1280 = vmatprep.subr.bf16.mxu1 %v792_v47  ;;  %v791_v35 = vpack.c.bf16 %v719_v5, %v711_v19  ;;  %v600_v40 = vadd.f32 %v3442_v10, %v392_v0  ;;  %v389_v41 = vmul.f32 %v3098_v22, %v3424_v61  ;;  %v397_v46 = vmul.f32 %v3098_v22, %v3422_v28 }
  0xf3   :  { %1168 = vmatpush1.bf16.msra.mxu0 %v789_v42  ;;  %v734_v18 = vmax.f32 %v606_v29, 0.0  ;;  %v608_v17 = vadd.f32 %v3440_v14, %v400_v38  ;;  %v391_v21 = vmul.f32 %v3102_v25, %v3424_v61  ;;  %v399_v49 = vmul.f32 %v3102_v25, %v3422_v28 }
  0xf4   :  { %1281 = vmatpush1.bf16.msra.mxu1 %v791_v35  ;;  %v728_v60 = vmax.f32 %v600_v40, 0.0  ;;  %v597_v50 = vadd.f32 %v3442_v10, %v389_v41  ;;  %v605_v59 = vadd.f32 %v3440_v14, %v397_v46 }
  0xf5   :  { %v798_v62 = vpack.c.bf16 %v734_v18, %v726_v45  ;;  %v736_v31 = vmax.f32 %v608_v17, 0.0  ;;  %v599_v22 = vadd.f32 %v3442_v10, %v391_v21  ;;  %v607_v32 = vadd.f32 %v3440_v14, %v399_v49  ;;  %1012 = vmatmul.mubr.bf16.gmra.mrb[20].mxu0 %v3662_v20  ;;  %v2774_v14 = vld [vmem:[%s4340_s4 + $0x30] sm:$0xff]   ;;  %v2775_v10 = vld [vmem:[%s4340_s4 + $0x38] sm:$0xff]  }
  0xf6   :  { %v725_v58 = vmax.f32 %v597_v50, 0.0  ;;  %v733_v57 = vmax.f32 %v605_v59, 0.0  ;;  %1125 = vmatmul.mubr.bf16.gmra.mrb[20].mxu1 %v3662_v20  ;;  %1021 = vmatprep.mubr.bf16.mxu0 %v2808_v3 }
  0xf7   :  { %1169 = vmatprep.subr.bf16.mxu0 %v798_v62  ;;  %v800_v25 = vpack.c.bf16 %v736_v31, %v728_v60  ;;  %v727_v28 = vmax.f32 %v599_v22, 0.0  ;;  %v735_v61 = vmax.f32 %v607_v32, 0.0  ;;  %1134 = vmatprep.mubr.bf16.mxu1 %v2808_v3 }
  0xf8   :  { %v797_v13 = vpack.c.bf16 %v733_v57, %v725_v58 }
  0xf9   :  { %1282 = vmatprep.subr.bf16.mxu1 %v800_v25  ;;  %v799_v12 = vpack.c.bf16 %v735_v61, %v727_v28 }
  0xfa   :  { %1170 = vmatpush1.bf16.msra.mxu0 %v797_v13 }
  0xfb   :  { %1283 = vmatpush1.bf16.msra.mxu1 %v799_v12 }
  0xfd   :  { %1022 = vmatmul.mubr.bf16.gmra.mrb[24].mxu0 %v2774_v14 }
  0xfe   :  { %1135 = vmatmul.mubr.bf16.gmra.mrb[24].mxu1 %v2774_v14  ;;  %1031 = vmatprep.mubr.bf16.mxu0 %v2808_v3 }
  0xff   :  { %1144 = vmatprep.mubr.bf16.mxu1 %v2808_v3 }
 0x105   :  { %1032 = vmatmul.mubr.bf16.gmra.mrb[28].mxu0 %v2775_v10 }
 0x106   :  { %1145 = vmatmul.mubr.bf16.gmra.mrb[28].mxu1 %v2775_v10  ;;  %1187 = vmatprep.mubr.bf16.mxu0 %v2808_v3 }
 0x107   :  { %1300 = vmatprep.mubr.bf16.mxu1 %v2808_v3 }
 0x10d   :  { %1188 = vmatmul.mubr.bf16.vlgmr.msra.gmra.mrb[32].mxu0 %v3467_v11 }
 0x10e   :  { %1301 = vmatmul.mubr.bf16.vlgmr.msra.gmra.mrb[32].mxu1 %v3467_v11  ;;  %1197 = vmatprep.mubr.bf16.mxu0 %v2808_v3  ;;  %v3720_v11 = vpop.permute.xlu1 %808 }
 0x10f   :  { %1310 = vmatprep.mubr.bf16.mxu1 %v2808_v3 }
 0x112   :  { %v3732_v34 = vpop.permute.xlu1 %818 }
 0x115   :  { %1198 = vmatmul.mubr.bf16.gmra.mrb[36].mxu0 %v3507_v23 }
 0x116   :  { %1311 = vmatmul.mubr.bf16.gmra.mrb[36].mxu1 %v3507_v23  ;;  %1207 = vmatprep.mubr.bf16.mxu0 %v2808_v3  ;;  %v3722_v23 = vpop.permute.xlu0 %803  ;;  %v3744_v28 = vpop.permute.xlu1 %828 }
 0x117   :  { %1320 = vmatprep.mubr.bf16.mxu1 %v2808_v3 }
 0x11a   :  { %v3734_v33 = vpop.permute.xlu0 %813 }
 0x11d   :  { %1208 = vmatmul.mubr.bf16.gmra.mrb[40].mxu0 %v3549_v9 }
 0x11e   :  { %1321 = vmatmul.mubr.bf16.gmra.mrb[40].mxu1 %v3549_v9  ;;  %1217 = vmatprep.mubr.bf16.mxu0 %v2808_v3  ;;  %v3746_v12 = vpop.permute.xlu0 %823 }
 0x11f   :  { %1330 = vmatprep.mubr.bf16.mxu1 %v2808_v3 }
 0x125   :  { %1218 = vmatmul.mubr.bf16.gmra.mrb[44].mxu0 %v3586_v39 }
 0x126   :  { %1331 = vmatmul.mubr.bf16.gmra.mrb[44].mxu1 %v3586_v39  ;;  %1227 = vmatprep.mubr.bf16.mxu0 %v2808_v3 }
 0x127   :  { %1340 = vmatprep.mubr.bf16.mxu1 %v2808_v3 }
 0x12d   :  { %1228 = vmatmul.mubr.bf16.gmra.mrb[48].mxu0 %v3626_v52 }
 0x12e   :  { %1341 = vmatmul.mubr.bf16.gmra.mrb[48].mxu1 %v3626_v52  ;;  %1237 = vmatprep.mubr.bf16.mxu0 %v2808_v3 }
 0x12f   :  { %1350 = vmatprep.mubr.bf16.mxu1 %v2808_v3 }
 0x135   :  { %1238 = vmatmul.mubr.bf16.gmra.mrb[52].mxu0 %v3662_v20 }
 0x136   :  { %1351 = vmatmul.mubr.bf16.gmra.mrb[52].mxu1 %v3662_v20  ;;  %1247 = vmatprep.mubr.bf16.mxu0 %v2808_v3 }
 0x137   :  { %1360 = vmatprep.mubr.bf16.mxu1 %v2808_v3 }
 0x13d   :  { %1248 = vmatmul.mubr.bf16.gmra.mrb[56].mxu0 %v2774_v14 }
 0x13e   :  { %1361 = vmatmul.mubr.bf16.gmra.mrb[56].mxu1 %v2774_v14  ;;  %1257 = vmatprep.mubr.bf16.mxu0 %v2808_v3 }
 0x13f   :  { %1370 = vmatprep.mubr.bf16.mxu1 %v2808_v3 }
 0x145   :  { %1258 = vmatmul.mubr.bf16.gmra.mrb[60].mxu0 %v2775_v10 }
 0x146   :  { %1371 = vmatmul.mubr.bf16.gmra.mrb[60].mxu1 %v2775_v10  ;;  %1733 = vmatprep.mubr.bf16.mxu0 %v2808_v3 }
 0x147   :  { %1846 = vmatprep.mubr.bf16.mxu1 %v2808_v3 }
 0x19e   :  { %v963_v9 = vpop.f32.mrb[0].mxu0  ;;  %v1076_v39 = vpop.f32.mrb[0].mxu1 }
 0x19f   :  { %v964_v52 = vadd.f32 %v963_v9, %v3722_v23  ;;  %v1077_v53 = vadd.f32 %v1076_v39, %v3722_v23  ;;  %v965_v27 = vpop.f32.mrb[1].mxu0  ;;  %v1078_v30 = vpop.f32.mrb[1].mxu1 }
 0x1a0   :  { %v966_v56 = vadd.f32 %v965_v27, %v3722_v23  ;;  %v1079_v1 = vadd.f32 %v1078_v30, %v3722_v23  ;;  %v967_v55 = vpop.f32.mrb[2].mxu0  ;;  %v1080_v2 = vpop.f32.mrb[2].mxu1 }
 0x1a1   :  { %v968_v54 = vadd.f32 %v967_v55, %v3720_v11  ;;  %v1081_v7 = vadd.f32 %v1080_v2, %v3720_v11  ;;  %v969_v24 = vpop.f32.mrb[3].mxu0  ;;  %v1082_v26 = vpop.f32.mrb[3].mxu1  ;;  %v1381_v15 = vmax.f32 %v964_v52, 0.0  ;;  %v1383_v51 = vmax.f32 %v1077_v53, 0.0 }
 0x1a2   :  { %v970_v37 = vadd.f32 %v969_v24, %v3720_v11  ;;  %v1083_v8 = vadd.f32 %v1082_v26, %v3720_v11  ;;  %v1382_v16 = vmax.f32 %v966_v56, 0.0  ;;  %v1384_v44 = vmax.f32 %v1079_v1, 0.0 }
 0x1a3   :  { %v1389_v43 = vmax.f32 %v968_v54, 0.0  ;;  %v1391_v36 = vmax.f32 %v1081_v7, 0.0 }
 0x1a4   :  { %v1390_v6 = vmax.f32 %v970_v37, 0.0  ;;  %v1392_v4 = vmax.f32 %v1083_v8, 0.0 }
 0x1a5   :  { %v1509_v48 = vpack.c.bf16 %v1389_v43, %v1381_v15  ;;  %v1511_v47 = vpack.c.bf16 %v1391_v36, %v1383_v51 }
 0x1a6   :  { %v1510_v19 = vpack.c.bf16 %v1390_v6, %v1382_v16  ;;  %v1512_v5 = vpack.c.bf16 %v1392_v4, %v1384_v44  ;;  %v973_v0 = vpop.f32.mrb[4].mxu0  ;;  %v1086_v42 = vpop.f32.mrb[4].mxu1 }
 0x1a7   :  { %v974_v29 = vadd.f32 %v973_v0, %v3734_v33  ;;  %v1087_v45 = vadd.f32 %v1086_v42, %v3734_v33  ;;  %v975_v38 = vpop.f32.mrb[5].mxu0  ;;  %v1088_v20 = vpop.f32.mrb[5].mxu1 }
 0x1a8   :  { %v976_v35 = vadd.f32 %v975_v38, %v3734_v33  ;;  %v1089_v40 = vadd.f32 %v1088_v20, %v3734_v33  ;;  %v977_v41 = vpop.f32.mrb[6].mxu0  ;;  %v1090_v46 = vpop.f32.mrb[6].mxu1  ;;  %1701 = vmatprep.subr.bf16.mxu0 %v1510_v19  ;;  %1814 = vmatprep.subr.bf16.mxu1 %v1512_v5 }
 0x1a9   :  { %v978_v18 = vadd.f32 %v977_v41, %v3732_v34  ;;  %v1091_v17 = vadd.f32 %v1090_v46, %v3732_v34  ;;  %v979_v21 = vpop.f32.mrb[7].mxu0  ;;  %v1092_v49 = vpop.f32.mrb[7].mxu1  ;;  %1702 = vmatpush1.bf16.msra.mxu0 %v1509_v48  ;;  %1815 = vmatpush1.bf16.msra.mxu1 %v1511_v47  ;;  %v1397_v59 = vmax.f32 %v974_v29, 0.0  ;;  %v1399_v62 = vmax.f32 %v1087_v45, 0.0 }
 0x1aa   :  { %v980_v60 = vadd.f32 %v979_v21, %v3732_v34  ;;  %v1093_v50 = vadd.f32 %v1092_v49, %v3732_v34  ;;  %v1398_v32 = vmax.f32 %v976_v35, 0.0  ;;  %v1400_v58 = vmax.f32 %v1089_v40, 0.0  ;;  %v3756_v47 = vpop.permute.xlu0 %833  ;;  %v3758_v42 = vpop.permute.xlu1 %838 }
 0x1ab   :  { %v1405_v31 = vmax.f32 %v978_v18, 0.0  ;;  %v1407_v22 = vmax.f32 %v1091_v17, 0.0 }
 0x1ac   :  { %v1406_v57 = vmax.f32 %v980_v60, 0.0  ;;  %v1408_v25 = vmax.f32 %v1093_v50, 0.0 }
 0x1ad   :  { %v1517_v61 = vpack.c.bf16 %v1405_v31, %v1397_v59  ;;  %v1519_v13 = vpack.c.bf16 %v1407_v22, %v1399_v62 }
 0x1ae   :  { %v1518_v14 = vpack.c.bf16 %v1406_v57, %v1398_v32  ;;  %v1520_v10 = vpack.c.bf16 %v1408_v25, %v1400_v58  ;;  %v983_v9 = vpop.f32.mrb[8].mxu0 }
 0x1af   :  { %v984_v39 = vadd.f32 %v983_v9, %v3746_v12  ;;  %v1096_v52 = vpop.f32.mrb[8].mxu1  ;;  %v985_v53 = vpop.f32.mrb[9].mxu0 }
 0x1b0   :  { %v1097_v27 = vadd.f32 %v1096_v52, %v3746_v12  ;;  %v986_v30 = vadd.f32 %v985_v53, %v3746_v12  ;;  %v1098_v56 = vpop.f32.mrb[9].mxu1  ;;  %v987_v1 = vpop.f32.mrb[10].mxu0  ;;  %1703 = vmatprep.subr.bf16.mxu0 %v1518_v14  ;;  %1816 = vmatprep.subr.bf16.mxu1 %v1520_v10 }
 0x1b1   :  { %v1099_v55 = vadd.f32 %v1098_v56, %v3746_v12  ;;  %v988_v2 = vadd.f32 %v987_v1, %v3744_v28  ;;  %v1100_v54 = vpop.f32.mrb[10].mxu1  ;;  %v989_v7 = vpop.f32.mrb[11].mxu0  ;;  %1704 = vmatpush1.bf16.msra.mxu0 %v1517_v61  ;;  %1817 = vmatpush1.bf16.msra.mxu1 %v1519_v13  ;;  %v1413_v8 = vmax.f32 %v984_v39, 0.0 }
 0x1b2   :  { %v1101_v24 = vadd.f32 %v1100_v54, %v3744_v28  ;;  %v990_v26 = vadd.f32 %v989_v7, %v3744_v28  ;;  %v1102_v37 = vpop.f32.mrb[11].mxu1  ;;  %v1415_v43 = vmax.f32 %v1097_v27, 0.0  ;;  %v1414_v36 = vmax.f32 %v986_v30, 0.0  ;;  %v3768_v9 = vpop.permute.xlu1 %848 }
 0x1b3   :  { %v1421_v15 = vmax.f32 %v988_v2, 0.0  ;;  %v1103_v51 = vadd.f32 %v1102_v37, %v3744_v28  ;;  %v1416_v6 = vmax.f32 %v1099_v55, 0.0  ;;  %v3770_v52 = vpop.permute.xlu0 %843 }
 0x1b4   :  { %v1423_v16 = vmax.f32 %v1101_v24, 0.0  ;;  %v1422_v44 = vmax.f32 %v990_v26, 0.0 }
 0x1b5   :  { %v1525_v4 = vpack.c.bf16 %v1421_v15, %v1413_v8  ;;  %v1424_v48 = vmax.f32 %v1103_v51, 0.0 }
 0x1b6   :  { %v1527_v19 = vpack.c.bf16 %v1423_v16, %v1415_v43  ;;  %v1526_v5 = vpack.c.bf16 %v1422_v44, %v1414_v36  ;;  %v993_v0 = vpop.f32.mrb[12].mxu0 }
 0x1b7   :  { %v1528_v29 = vpack.c.bf16 %v1424_v48, %v1416_v6  ;;  %v994_v45 = vadd.f32 %v993_v0, %v3756_v47  ;;  %v995_v38 = vpop.f32.mrb[13].mxu0 }
 0x1b8   :  { %v1106_v20 = vpop.f32.mrb[12].mxu1  ;;  %v996_v35 = vadd.f32 %v995_v38, %v3756_v47  ;;  %v997_v40 = vpop.f32.mrb[14].mxu0  ;;  %1705 = vmatprep.subr.bf16.mxu0 %v1526_v5 }
 0x1b9   :  { %v1107_v41 = vadd.f32 %v1106_v20, %v3756_v47  ;;  %v1108_v46 = vpop.f32.mrb[13].mxu1  ;;  %v998_v18 = vadd.f32 %v997_v40, %v3758_v42  ;;  %1818 = vmatprep.subr.bf16.mxu1 %v1528_v29  ;;  %v999_v17 = vpop.f32.mrb[15].mxu0  ;;  %1706 = vmatpush1.bf16.msra.mxu0 %v1525_v4  ;;  %v1429_v50 = vmax.f32 %v994_v45, 0.0 }
 0x1ba   :  { %v1109_v21 = vadd.f32 %v1108_v46, %v3756_v47  ;;  %v1110_v49 = vpop.f32.mrb[14].mxu1  ;;  %v1000_v60 = vadd.f32 %v999_v17, %v3758_v42  ;;  %1819 = vmatpush1.bf16.msra.mxu1 %v1527_v19  ;;  %v1430_v22 = vmax.f32 %v996_v35, 0.0  ;;  %v3780_v5 = vpop.permute.xlu1 %858 }
 0x1bb   :  { %v1437_v59 = vmax.f32 %v998_v18, 0.0  ;;  %v1111_v62 = vadd.f32 %v1110_v49, %v3758_v42  ;;  %v1112_v31 = vpop.f32.mrb[15].mxu1  ;;  %v1431_v57 = vmax.f32 %v1107_v41, 0.0  ;;  %v3782_v38 = vpop.permute.xlu0 %853 }
 0x1bc   :  { %v1438_v32 = vmax.f32 %v1000_v60, 0.0  ;;  %v1113_v58 = vadd.f32 %v1112_v31, %v3758_v42  ;;  %v1432_v13 = vmax.f32 %v1109_v21, 0.0 }
 0x1bd   :  { %v1533_v25 = vpack.c.bf16 %v1437_v59, %v1429_v50  ;;  %v1439_v61 = vmax.f32 %v1111_v62, 0.0 }
 0x1be   :  { %v1534_v14 = vpack.c.bf16 %v1438_v32, %v1430_v22  ;;  %v1440_v10 = vmax.f32 %v1113_v58, 0.0 }
 0x1bf   :  { %v1535_v39 = vpack.c.bf16 %v1439_v61, %v1431_v57 }
 0x1c0   :  { %v1536_v53 = vpack.c.bf16 %v1440_v10, %v1432_v13  ;;  %v1003_v27 = vpop.f32.mrb[16].mxu0  ;;  %1707 = vmatprep.subr.bf16.mxu0 %v1534_v14 }
 0x1c1   :  { %v1004_v30 = vadd.f32 %v1003_v27, %v3770_v52  ;;  %v1116_v56 = vpop.f32.mrb[16].mxu1  ;;  %v1005_v1 = vpop.f32.mrb[17].mxu0  ;;  %1708 = vmatpush1.bf16.msra.mxu0 %v1533_v25 }
 0x1c2   :  { %v1117_v55 = vadd.f32 %v1116_v56, %v3770_v52  ;;  %v1006_v2 = vadd.f32 %v1005_v1, %v3770_v52  ;;  %v1118_v54 = vpop.f32.mrb[17].mxu1  ;;  %v1007_v7 = vpop.f32.mrb[18].mxu0  ;;  %1820 = vmatprep.subr.bf16.mxu1 %v1536_v53 }
 0x1c3   :  { %v1119_v24 = vadd.f32 %v1118_v54, %v3770_v52  ;;  %v1008_v26 = vadd.f32 %v1007_v7, %v3768_v9  ;;  %v1120_v37 = vpop.f32.mrb[18].mxu1  ;;  %v1009_v8 = vpop.f32.mrb[19].mxu0  ;;  %1821 = vmatpush1.bf16.msra.mxu1 %v1535_v39  ;;  %v1445_v36 = vmax.f32 %v1004_v30, 0.0 }
 0x1c4   :  { %v1121_v15 = vadd.f32 %v1120_v37, %v3768_v9  ;;  %v1010_v51 = vadd.f32 %v1009_v8, %v3768_v9  ;;  %v1122_v43 = vpop.f32.mrb[19].mxu1  ;;  %v1447_v6 = vmax.f32 %v1117_v55, 0.0  ;;  %v1446_v4 = vmax.f32 %v1006_v2, 0.0  ;;  %v3792_v27 = vpop.permute.xlu1 %868 }
 0x1c5   :  { %v1453_v16 = vmax.f32 %v1008_v26, 0.0  ;;  %v1123_v44 = vadd.f32 %v1122_v43, %v3768_v9  ;;  %v1448_v0 = vmax.f32 %v1119_v24, 0.0  ;;  %v3794_v55 = vpop.permute.xlu0 %863 }
 0x1c6   :  { %v1455_v48 = vmax.f32 %v1121_v15, 0.0  ;;  %v1454_v19 = vmax.f32 %v1010_v51, 0.0 }
 0x1c7   :  { %v1541_v29 = vpack.c.bf16 %v1453_v16, %v1445_v36  ;;  %v1456_v45 = vmax.f32 %v1123_v44, 0.0 }
 0x1c8   :  { %v1543_v20 = vpack.c.bf16 %v1455_v48, %v1447_v6  ;;  %v1542_v35 = vpack.c.bf16 %v1454_v19, %v1446_v4  ;;  %v1013_v40 = vpop.f32.mrb[20].mxu0 }
 0x1c9   :  { %v1544_v41 = vpack.c.bf16 %v1456_v45, %v1448_v0  ;;  %v1014_v46 = vadd.f32 %v1013_v40, %v3782_v38  ;;  %v1126_v18 = vpop.f32.mrb[20].mxu1  ;;  %v1015_v17 = vpop.f32.mrb[21].mxu0 }
 0x1ca   :  { %v1127_v21 = vadd.f32 %v1126_v18, %v3782_v38  ;;  %v1016_v49 = vadd.f32 %v1015_v17, %v3782_v38  ;;  %v1128_v60 = vpop.f32.mrb[21].mxu1  ;;  %v1017_v50 = vpop.f32.mrb[22].mxu0  ;;  %1709 = vmatprep.subr.bf16.mxu0 %v1542_v35 }
 0x1cb   :  { %v1129_v59 = vadd.f32 %v1128_v60, %v3782_v38  ;;  %v1018_v62 = vadd.f32 %v1017_v50, %v3780_v5  ;;  %v1130_v31 = vpop.f32.mrb[22].mxu1  ;;  %1822 = vmatprep.subr.bf16.mxu1 %v1544_v41  ;;  %v1019_v22 = vpop.f32.mrb[23].mxu0  ;;  %1710 = vmatpush1.bf16.msra.mxu0 %v1541_v29  ;;  %v1461_v25 = vmax.f32 %v1014_v46, 0.0 }
 0x1cc   :  { %v1131_v32 = vadd.f32 %v1130_v31, %v3780_v5  ;;  %v1020_v58 = vadd.f32 %v1019_v22, %v3780_v5  ;;  %v1132_v57 = vpop.f32.mrb[23].mxu1  ;;  %1823 = vmatpush1.bf16.msra.mxu1 %v1543_v20  ;;  %v1463_v14 = vmax.f32 %v1127_v21, 0.0  ;;  %v1462_v10 = vmax.f32 %v1016_v49, 0.0  ;;  %v3804_v18 = vpop.permute.xlu1 %878 }
 0x1cd   :  { %v1469_v61 = vmax.f32 %v1018_v62, 0.0  ;;  %v1133_v13 = vadd.f32 %v1132_v57, %v3780_v5  ;;  %v1464_v30 = vmax.f32 %v1129_v59, 0.0  ;;  %v3806_v60 = vpop.permute.xlu0 %873 }
 0x1ce   :  { %v1471_v39 = vmax.f32 %v1131_v32, 0.0  ;;  %v1470_v53 = vmax.f32 %v1020_v58, 0.0 }
 0x1cf   :  { %v1549_v56 = vpack.c.bf16 %v1469_v61, %v1461_v25  ;;  %v1472_v1 = vmax.f32 %v1133_v13, 0.0 }
 0x1d0   :  { %v1551_v2 = vpack.c.bf16 %v1471_v39, %v1463_v14  ;;  %v1550_v54 = vpack.c.bf16 %v1470_v53, %v1462_v10  ;;  %v1023_v7 = vpop.f32.mrb[24].mxu0 }
 0x1d1   :  { %v1552_v24 = vpack.c.bf16 %v1472_v1, %v1464_v30  ;;  %v1024_v26 = vadd.f32 %v1023_v7, %v3794_v55  ;;  %v1136_v37 = vpop.f32.mrb[24].mxu1  ;;  %v1025_v8 = vpop.f32.mrb[25].mxu0 }
 0x1d2   :  { %v1137_v15 = vadd.f32 %v1136_v37, %v3794_v55  ;;  %v1026_v51 = vadd.f32 %v1025_v8, %v3794_v55  ;;  %v1138_v43 = vpop.f32.mrb[25].mxu1  ;;  %v1027_v36 = vpop.f32.mrb[26].mxu0  ;;  %1711 = vmatprep.subr.bf16.mxu0 %v1550_v54 }
 0x1d3   :  { %v1139_v16 = vadd.f32 %v1138_v43, %v3794_v55  ;;  %v1028_v44 = vadd.f32 %v1027_v36, %v3792_v27  ;;  %v1140_v6 = vpop.f32.mrb[26].mxu1  ;;  %1824 = vmatprep.subr.bf16.mxu1 %v1552_v24  ;;  %v1029_v4 = vpop.f32.mrb[27].mxu0  ;;  %1712 = vmatpush1.bf16.msra.mxu0 %v1549_v56  ;;  %v1477_v29 = vmax.f32 %v1024_v26, 0.0 }
 0x1d4   :  { %v1141_v48 = vadd.f32 %v1140_v6, %v3792_v27  ;;  %v1030_v19 = vadd.f32 %v1029_v4, %v3792_v27  ;;  %v1142_v0 = vpop.f32.mrb[27].mxu1  ;;  %1825 = vmatpush1.bf16.msra.mxu1 %v1551_v2  ;;  %v1479_v35 = vmax.f32 %v1137_v15, 0.0  ;;  %v1478_v40 = vmax.f32 %v1026_v51, 0.0 }
 0x1d5   :  { %v1485_v45 = vmax.f32 %v1028_v44, 0.0  ;;  %v1143_v20 = vadd.f32 %v1142_v0, %v3792_v27  ;;  %v1480_v17 = vmax.f32 %v1139_v16, 0.0 }
 0x1d6   :  { %v1487_v41 = vmax.f32 %v1141_v48, 0.0  ;;  %v1486_v46 = vmax.f32 %v1030_v19, 0.0 }
 0x1d7   :  { %v1557_v21 = vpack.c.bf16 %v1485_v45, %v1477_v29  ;;  %v1488_v49 = vmax.f32 %v1143_v20, 0.0 }
 0x1d8   :  { %v1559_v50 = vpack.c.bf16 %v1487_v41, %v1479_v35  ;;  %v1558_v59 = vpack.c.bf16 %v1486_v46, %v1478_v40  ;;  %v1033_v62 = vpop.f32.mrb[28].mxu0  ;;  %v3822_v35 = vld [vmem:[%s4342_s6] sm:$0xff]  }
 0x1d9   :  { %v1560_v31 = vpack.c.bf16 %v1488_v49, %v1480_v17  ;;  %v1034_v22 = vadd.f32 %v1033_v62, %v3806_v60  ;;  %v1146_v32 = vpop.f32.mrb[28].mxu1  ;;  %v1035_v58 = vpop.f32.mrb[29].mxu0 }
 0x1da   :  { %v1147_v57 = vadd.f32 %v1146_v32, %v3806_v60  ;;  %v1036_v25 = vadd.f32 %v1035_v58, %v3806_v60  ;;  %v1148_v61 = vpop.f32.mrb[29].mxu1  ;;  %v1037_v13 = vpop.f32.mrb[30].mxu0  ;;  %1713 = vmatprep.subr.bf16.mxu0 %v1558_v59 }
 0x1db   :  { %v1149_v14 = vadd.f32 %v1148_v61, %v3806_v60  ;;  %v1038_v10 = vadd.f32 %v1037_v13, %v3804_v18  ;;  %v1150_v39 = vpop.f32.mrb[30].mxu1  ;;  %1826 = vmatprep.subr.bf16.mxu1 %v1560_v31  ;;  %v1039_v53 = vpop.f32.mrb[31].mxu0  ;;  %1714 = vmatpush1.bf16.msra.mxu0 %v1557_v21  ;;  %v1493_v2 = vmax.f32 %v1034_v22, 0.0 }
 0x1dc   :  { %v1151_v30 = vadd.f32 %v1150_v39, %v3804_v18  ;;  %v1040_v56 = vadd.f32 %v1039_v53, %v3804_v18  ;;  %v1152_v1 = vpop.f32.mrb[31].mxu1  ;;  %1827 = vmatpush1.bf16.msra.mxu1 %v1559_v50  ;;  %v1495_v24 = vmax.f32 %v1147_v57, 0.0  ;;  %v1494_v26 = vmax.f32 %v1036_v25, 0.0 }
 0x1dd   :  { %v1501_v54 = vmax.f32 %v1038_v10, 0.0  ;;  %v1153_v7 = vadd.f32 %v1152_v1, %v3804_v18  ;;  %v1496_v15 = vmax.f32 %v1149_v14, 0.0 }
 0x1de   :  { %v1503_v37 = vmax.f32 %v1151_v30, 0.0  ;;  %v1502_v8 = vmax.f32 %v1040_v56, 0.0 }
 0x1df   :  { %v1565_v51 = vpack.c.bf16 %v1501_v54, %v1493_v2  ;;  %v1504_v43 = vmax.f32 %v1153_v7, 0.0  ;;  %v3839_v7 = vld [vmem:[%s4342_s6 + $0x8] sm:$0xff]  }
 0x1e0   :  { %v1567_v36 = vpack.c.bf16 %v1503_v37, %v1495_v24  ;;  %v1566_v16 = vpack.c.bf16 %v1502_v8, %v1494_v26  ;;  %v1189_v44 = vpop.f32.mrb[32].mxu0 }
 0x1e1   :  { %v1568_v6 = vpack.c.bf16 %v1504_v43, %v1496_v15  ;;  %v1190_v4 = vadd.f32 %v1189_v44, %v3722_v23  ;;  %v1302_v48 = vpop.f32.mrb[32].mxu1  ;;  %v1191_v19 = vpop.f32.mrb[33].mxu0 }
 0x1e2   :  { %v1303_v0 = vadd.f32 %v1302_v48, %v3722_v23  ;;  %v1192_v29 = vadd.f32 %v1191_v19, %v3722_v23  ;;  %v1304_v45 = vpop.f32.mrb[33].mxu1  ;;  %v1193_v20 = vpop.f32.mrb[34].mxu0  ;;  %1715 = vmatprep.subr.bf16.mxu0 %v1566_v16 }
 0x1e3   :  { %v1305_v40 = vadd.f32 %v1304_v45, %v3722_v23  ;;  %v1194_v41 = vadd.f32 %v1193_v20, %v3720_v11  ;;  %v1306_v46 = vpop.f32.mrb[34].mxu1  ;;  %1828 = vmatprep.subr.bf16.mxu1 %v1568_v6  ;;  %v1195_v17 = vpop.f32.mrb[35].mxu0  ;;  %1716 = vmatpush1.bf16.msra.mxu0 %v1565_v51  ;;  %v1385_v59 = vmax.f32 %v1190_v4, 0.0 }
 0x1e4   :  { %v1307_v21 = vadd.f32 %v1306_v46, %v3720_v11  ;;  %v1196_v49 = vadd.f32 %v1195_v17, %v3720_v11  ;;  %v1308_v50 = vpop.f32.mrb[35].mxu1  ;;  %1829 = vmatpush1.bf16.msra.mxu1 %v1567_v36  ;;  %v1387_v22 = vmax.f32 %v1303_v0, 0.0  ;;  %v1386_v32 = vmax.f32 %v1192_v29, 0.0 }
 0x1e5   :  { %v1393_v62 = vmax.f32 %v1194_v41, 0.0  ;;  %v1309_v31 = vadd.f32 %v1308_v50, %v3720_v11  ;;  %v1388_v57 = vmax.f32 %v1305_v40, 0.0 }
 0x1e6   :  { %v1395_v58 = vmax.f32 %v1307_v21, 0.0  ;;  %v1394_v23 = vmax.f32 %v1196_v49, 0.0  ;;  %1734 = vmatmul.mubr.bf16.vlgmr.msra.gmra.mrb[64].mxu0 %v3822_v35 }
 0x1e7   :  { %v1513_v25 = vpack.c.bf16 %v1393_v62, %v1385_v59  ;;  %v1396_v61 = vmax.f32 %v1309_v31, 0.0  ;;  %1847 = vmatmul.mubr.bf16.vlgmr.msra.gmra.mrb[64].mxu1 %v3822_v35  ;;  %1743 = vmatprep.mubr.bf16.mxu0 %v2808_v3  ;;  %v3856_v62 = vld [vmem:[%s4342_s6 + $0x10] sm:$0xff]  }
 0x1e8   :  { %v1515_v13 = vpack.c.bf16 %v1395_v58, %v1387_v22  ;;  %v1514_v14 = vpack.c.bf16 %v1394_v23, %v1386_v32  ;;  %v1199_v10 = vpop.f32.mrb[36].mxu0  ;;  %1856 = vmatprep.mubr.bf16.mxu1 %v2808_v3 }
 0x1e9   :  { %v1516_v39 = vpack.c.bf16 %v1396_v61, %v1388_v57  ;;  %v1200_v11 = vadd.f32 %v1199_v10, %v3734_v33  ;;  %v1312_v53 = vpop.f32.mrb[36].mxu1  ;;  %v1201_v30 = vpop.f32.mrb[37].mxu0 }
 0x1ea   :  { %v1313_v56 = vadd.f32 %v1312_v53, %v3734_v33  ;;  %v1202_v1 = vadd.f32 %v1201_v30, %v3734_v33  ;;  %v1314_v2 = vpop.f32.mrb[37].mxu1  ;;  %v1203_v54 = vpop.f32.mrb[38].mxu0  ;;  %1927 = vmatprep.subr.bf16.mxu0 %v1514_v14 }
 0x1eb   :  { %v1315_v24 = vadd.f32 %v1314_v2, %v3734_v33  ;;  %v1204_v26 = vadd.f32 %v1203_v54, %v3732_v34  ;;  %v1316_v37 = vpop.f32.mrb[38].mxu1  ;;  %2040 = vmatprep.subr.bf16.mxu1 %v1516_v39  ;;  %v1205_v8 = vpop.f32.mrb[39].mxu0  ;;  %1928 = vmatpush1.bf16.msra.mxu0 %v1513_v25  ;;  %v1401_v36 = vmax.f32 %v1200_v11, 0.0 }
 0x1ec   :  { %v1317_v15 = vadd.f32 %v1316_v37, %v3732_v34  ;;  %v1206_v51 = vadd.f32 %v1205_v8, %v3732_v34  ;;  %v1318_v43 = vpop.f32.mrb[39].mxu1  ;;  %2041 = vmatpush1.bf16.msra.mxu1 %v1515_v13  ;;  %v1403_v6 = vmax.f32 %v1313_v56, 0.0  ;;  %v1402_v4 = vmax.f32 %v1202_v1, 0.0 }
 0x1ed   :  { %v1409_v16 = vmax.f32 %v1204_v26, 0.0  ;;  %v1319_v44 = vadd.f32 %v1318_v43, %v3732_v34  ;;  %v1404_v19 = vmax.f32 %v1315_v24, 0.0 }
 0x1ee   :  { %v1411_v48 = vmax.f32 %v1317_v15, 0.0  ;;  %v1410_v33 = vmax.f32 %v1206_v51, 0.0  ;;  %1744 = vmatmul.mubr.bf16.gmra.mrb[68].mxu0 %v3839_v7 }
 0x1ef   :  { %v1521_v0 = vpack.c.bf16 %v1409_v16, %v1401_v36  ;;  %v1412_v29 = vmax.f32 %v1319_v44, 0.0  ;;  %1857 = vmatmul.mubr.bf16.gmra.mrb[68].mxu1 %v3839_v7  ;;  %1753 = vmatprep.mubr.bf16.mxu0 %v2808_v3  ;;  %v3873_v36 = vld [vmem:[%s4342_s6 + $0x18] sm:$0xff]  }
 0x1f0   :  { %v1523_v45 = vpack.c.bf16 %v1411_v48, %v1403_v6  ;;  %v1522_v20 = vpack.c.bf16 %v1410_v33, %v1402_v4  ;;  %v1209_v40 = vpop.f32.mrb[40].mxu0  ;;  %1866 = vmatprep.mubr.bf16.mxu1 %v2808_v3 }
 0x1f1   :  { %v1524_v41 = vpack.c.bf16 %v1412_v29, %v1404_v19  ;;  %v1210_v34 = vadd.f32 %v1209_v40, %v3746_v12  ;;  %v1322_v46 = vpop.f32.mrb[40].mxu1  ;;  %v1211_v17 = vpop.f32.mrb[41].mxu0 }
 0x1f2   :  { %v1323_v21 = vadd.f32 %v1322_v46, %v3746_v12  ;;  %v1212_v49 = vadd.f32 %v1211_v17, %v3746_v12  ;;  %v1324_v50 = vpop.f32.mrb[41].mxu1  ;;  %v1213_v59 = vpop.f32.mrb[42].mxu0  ;;  %1929 = vmatprep.subr.bf16.mxu0 %v1522_v20 }
 0x1f3   :  { %v1325_v31 = vadd.f32 %v1324_v50, %v3746_v12  ;;  %v1214_v22 = vadd.f32 %v1213_v59, %v3744_v28  ;;  %v1326_v32 = vpop.f32.mrb[42].mxu1  ;;  %2042 = vmatprep.subr.bf16.mxu1 %v1524_v41  ;;  %v1215_v58 = vpop.f32.mrb[43].mxu0  ;;  %1930 = vmatpush1.bf16.msra.mxu0 %v1521_v0  ;;  %v1417_v61 = vmax.f32 %v1210_v34, 0.0 }
 0x1f4   :  { %v1327_v23 = vadd.f32 %v1326_v32, %v3744_v28  ;;  %v1216_v57 = vadd.f32 %v1215_v58, %v3744_v28  ;;  %v1328_v25 = vpop.f32.mrb[43].mxu1  ;;  %2043 = vmatpush1.bf16.msra.mxu1 %v1523_v45  ;;  %v1419_v10 = vmax.f32 %v1323_v21, 0.0  ;;  %v1418_v39 = vmax.f32 %v1212_v49, 0.0 }
 0x1f5   :  { %v1425_v13 = vmax.f32 %v1214_v22, 0.0  ;;  %v1329_v14 = vadd.f32 %v1328_v25, %v3744_v28  ;;  %v1420_v53 = vmax.f32 %v1325_v31, 0.0  ;;  %v3890_v25 = vld [vmem:[%s4342_s6 + $0x20] sm:$0xff]  }
 0x1f6   :  { %v1427_v11 = vmax.f32 %v1327_v23, 0.0  ;;  %v1426_v12 = vmax.f32 %v1216_v57, 0.0  ;;  %1754 = vmatmul.mubr.bf16.gmra.mrb[72].mxu0 %v3856_v62 }
 0x1f7   :  { %v1529_v30 = vpack.c.bf16 %v1425_v13, %v1417_v61  ;;  %v1428_v56 = vmax.f32 %v1329_v14, 0.0  ;;  %1867 = vmatmul.mubr.bf16.gmra.mrb[72].mxu1 %v3856_v62  ;;  %1763 = vmatprep.mubr.bf16.mxu0 %v2808_v3 }
 0x1f8   :  { %v1531_v1 = vpack.c.bf16 %v1427_v11, %v1419_v10  ;;  %v1530_v2 = vpack.c.bf16 %v1426_v12, %v1418_v39  ;;  %v1219_v54 = vpop.f32.mrb[44].mxu0  ;;  %1876 = vmatprep.mubr.bf16.mxu1 %v2808_v3 }
 0x1f9   :  { %v1532_v24 = vpack.c.bf16 %v1428_v56, %v1420_v53  ;;  %v1220_v28 = vadd.f32 %v1219_v54, %v3756_v47  ;;  %v1332_v26 = vpop.f32.mrb[44].mxu1  ;;  %v1221_v37 = vpop.f32.mrb[45].mxu0 }
 0x1fa   :  { %v1333_v8 = vadd.f32 %v1332_v26, %v3756_v47  ;;  %v1222_v15 = vadd.f32 %v1221_v37, %v3756_v47  ;;  %v1334_v51 = vpop.f32.mrb[45].mxu1  ;;  %v1223_v43 = vpop.f32.mrb[46].mxu0  ;;  %1931 = vmatprep.subr.bf16.mxu0 %v1530_v2 }
 0x1fb   :  { %v1335_v16 = vadd.f32 %v1334_v51, %v3756_v47  ;;  %v1224_v44 = vadd.f32 %v1223_v43, %v3758_v42  ;;  %v1336_v6 = vpop.f32.mrb[46].mxu1  ;;  %2044 = vmatprep.subr.bf16.mxu1 %v1532_v24  ;;  %v1225_v4 = vpop.f32.mrb[47].mxu0  ;;  %1932 = vmatpush1.bf16.msra.mxu0 %v1529_v30  ;;  %v1433_v0 = vmax.f32 %v1220_v28, 0.0 }
 0x1fc   :  { %v1337_v48 = vadd.f32 %v1336_v6, %v3758_v42  ;;  %v1226_v33 = vadd.f32 %v1225_v4, %v3758_v42  ;;  %v1338_v19 = vpop.f32.mrb[47].mxu1  ;;  %2045 = vmatpush1.bf16.msra.mxu1 %v1531_v1  ;;  %v1435_v20 = vmax.f32 %v1333_v8, 0.0  ;;  %v1434_v40 = vmax.f32 %v1222_v15, 0.0 }
 0x1fd   :  { %v1441_v29 = vmax.f32 %v1224_v44, 0.0  ;;  %v1339_v45 = vadd.f32 %v1338_v19, %v3758_v42  ;;  %v1436_v34 = vmax.f32 %v1335_v16, 0.0 }
 0x1fe   :  { %v1443_v41 = vmax.f32 %v1337_v48, 0.0  ;;  %v1442_v47 = vmax.f32 %v1226_v33, 0.0  ;;  %1764 = vmatmul.mubr.bf16.gmra.mrb[76].mxu0 %v3873_v36  ;;  %v3907_v33 = vld [vmem:[%s4342_s6 + $0x28] sm:$0xff]  }
 0x1ff   :  { %v1537_v46 = vpack.c.bf16 %v1441_v29, %v1433_v0  ;;  %v1444_v17 = vmax.f32 %v1339_v45, 0.0  ;;  %1877 = vmatmul.mubr.bf16.gmra.mrb[76].mxu1 %v3873_v36  ;;  %1773 = vmatprep.mubr.bf16.mxu0 %v2808_v3 }
 0x200   :  { %v1539_v21 = vpack.c.bf16 %v1443_v41, %v1435_v20  ;;  %v1538_v49 = vpack.c.bf16 %v1442_v47, %v1434_v40  ;;  %v1229_v50 = vpop.f32.mrb[48].mxu0  ;;  %1886 = vmatprep.mubr.bf16.mxu1 %v2808_v3 }
 0x201   :  { %v1540_v59 = vpack.c.bf16 %v1444_v17, %v1436_v34  ;;  %v1230_v42 = vadd.f32 %v1229_v50, %v3770_v52  ;;  %v1342_v31 = vpop.f32.mrb[48].mxu1  ;;  %v1231_v22 = vpop.f32.mrb[49].mxu0 }
 0x202   :  { %v1343_v32 = vadd.f32 %v1342_v31, %v3770_v52  ;;  %v1232_v58 = vadd.f32 %v1231_v22, %v3770_v52  ;;  %v1344_v23 = vpop.f32.mrb[49].mxu1  ;;  %v1233_v57 = vpop.f32.mrb[50].mxu0  ;;  %1933 = vmatprep.subr.bf16.mxu0 %v1538_v49 }
 0x203   :  { %v1345_v61 = vadd.f32 %v1344_v23, %v3770_v52  ;;  %v1234_v13 = vadd.f32 %v1233_v57, %v3768_v9  ;;  %v1346_v14 = vpop.f32.mrb[50].mxu1  ;;  %2046 = vmatprep.subr.bf16.mxu1 %v1540_v59  ;;  %v1235_v10 = vpop.f32.mrb[51].mxu0  ;;  %1934 = vmatpush1.bf16.msra.mxu0 %v1537_v46  ;;  %v1449_v53 = vmax.f32 %v1230_v42, 0.0 }
 0x204   :  { %v1347_v39 = vadd.f32 %v1346_v14, %v3768_v9  ;;  %v1236_v11 = vadd.f32 %v1235_v10, %v3768_v9  ;;  %v1348_v12 = vpop.f32.mrb[51].mxu1  ;;  %2047 = vmatpush1.bf16.msra.mxu1 %v1539_v21  ;;  %v1451_v1 = vmax.f32 %v1343_v32, 0.0  ;;  %v1450_v2 = vmax.f32 %v1232_v58, 0.0 }
 0x205   :  { %v1457_v30 = vmax.f32 %v1234_v13, 0.0  ;;  %v1349_v56 = vadd.f32 %v1348_v12, %v3768_v9  ;;  %v1452_v24 = vmax.f32 %v1345_v61, 0.0 }
 0x206   :  { %v1459_v54 = vmax.f32 %v1347_v39, 0.0  ;;  %v1458_v52 = vmax.f32 %v1236_v11, 0.0  ;;  %1774 = vmatmul.mubr.bf16.gmra.mrb[80].mxu0 %v3890_v25  ;;  %v3924_v39 = vld [vmem:[%s4342_s6 + $0x30] sm:$0xff]  }
 0x207   :  { %v1545_v28 = vpack.c.bf16 %v1457_v30, %v1449_v53  ;;  %v1460_v26 = vmax.f32 %v1349_v56, 0.0  ;;  %1887 = vmatmul.mubr.bf16.gmra.mrb[80].mxu1 %v3890_v25  ;;  %1783 = vmatprep.mubr.bf16.mxu0 %v2808_v3 }
 0x208   :  { %v1547_v37 = vpack.c.bf16 %v1459_v54, %v1451_v1  ;;  %v1546_v8 = vpack.c.bf16 %v1458_v52, %v1450_v2  ;;  %v1239_v15 = vpop.f32.mrb[52].mxu0  ;;  %1896 = vmatprep.mubr.bf16.mxu1 %v2808_v3 }
 0x209   :  { %v1548_v51 = vpack.c.bf16 %v1460_v26, %v1452_v24  ;;  %v1240_v9 = vadd.f32 %v1239_v15, %v3782_v38  ;;  %v1352_v43 = vpop.f32.mrb[52].mxu1  ;;  %v1241_v16 = vpop.f32.mrb[53].mxu0 }
 0x20a   :  { %v1353_v44 = vadd.f32 %v1352_v43, %v3782_v38  ;;  %v1242_v6 = vadd.f32 %v1241_v16, %v3782_v38  ;;  %v1354_v4 = vpop.f32.mrb[53].mxu1  ;;  %v1243_v48 = vpop.f32.mrb[54].mxu0  ;;  %1935 = vmatprep.subr.bf16.mxu0 %v1546_v8 }
 0x20b   :  { %v1355_v19 = vadd.f32 %v1354_v4, %v3782_v38  ;;  %v1244_v0 = vadd.f32 %v1243_v48, %v3780_v5  ;;  %v1356_v29 = vpop.f32.mrb[54].mxu1  ;;  %2048 = vmatprep.subr.bf16.mxu1 %v1548_v51  ;;  %v1245_v45 = vpop.f32.mrb[55].mxu0  ;;  %1936 = vmatpush1.bf16.msra.mxu0 %v1545_v28  ;;  %v1465_v47 = vmax.f32 %v1240_v9, 0.0 }
 0x20c   :  { %v1357_v20 = vadd.f32 %v1356_v29, %v3780_v5  ;;  %v1246_v40 = vadd.f32 %v1245_v45, %v3780_v5  ;;  %v1358_v41 = vpop.f32.mrb[55].mxu1  ;;  %2049 = vmatpush1.bf16.msra.mxu1 %v1547_v37  ;;  %v1467_v17 = vmax.f32 %v1353_v44, 0.0  ;;  %v1466_v21 = vmax.f32 %v1242_v6, 0.0  ;;  %v2783_v45 = vld [vmem:[%s4342_s6 + $0x38] sm:$0xff]   ;;  %s2810_s6 = smov [#allocation5]  }
 0x20d   :  { %v1473_v34 = vmax.f32 %v1244_v0, 0.0  ;;  %v1359_v46 = vadd.f32 %v1358_v41, %v3780_v5  ;;  %v1468_v50 = vmax.f32 %v1355_v19, 0.0  ;;  %s2739_s30 = sshll.u32 %s2810_s6, 4  ;;  %s2740_s30 = int_to_ptr.vmem [resolvable:$true] %s2739_s30 }
 0x20e   :  { %v1475_v49 = vmax.f32 %v1357_v20, 0.0  ;;  %v1474_v38 = vmax.f32 %v1246_v40, 0.0  ;;  %1784 = vmatmul.mubr.bf16.gmra.mrb[84].mxu0 %v3907_v33  ;;  %s2784_s11 = scalar_lea.vmem %s2740_s30, 128  ;;  %p2789_p1 = scmp.lt.s32.totalorder %s2740_s30, %s2740_s30 }
 0x20f   :  { %v1553_v59 = vpack.c.bf16 %v1473_v34, %v1465_v47  ;;  %v1476_v42 = vmax.f32 %v1359_v46, 0.0  ;;  %1897 = vmatmul.mubr.bf16.gmra.mrb[84].mxu1 %v3907_v33  ;;  %1793 = vmatprep.mubr.bf16.mxu0 %v2808_v3  ;;  %p2785_p0 = scmp.ne.s32.totalorder %s2740_s30, %s2784_s11  ;;  %p2790_p2 = scmp.lt.s32.totalorder %s2784_s11, %s2784_s11 }
 0x210   :  { %v1555_v31 = vpack.c.bf16 %v1475_v49, %v1467_v17  ;;  %v1554_v22 = vpack.c.bf16 %v1474_v38, %v1466_v21  ;;  %v1249_v32 = vpop.f32.mrb[56].mxu0  ;;  %1906 = vmatprep.mubr.bf16.mxu1 %v2808_v3 }
 0x211   :  { %v1556_v58 = vpack.c.bf16 %v1476_v42, %v1468_v50  ;;  %v1250_v5 = vadd.f32 %v1249_v32, %v3794_v55  ;;  %v1362_v23 = vpop.f32.mrb[56].mxu1  ;;  %v1251_v57 = vpop.f32.mrb[57].mxu0  ;;  %p2791_p3 = por %p2790_p2, %p2789_p1 }
 0x212   :  { %v1363_v61 = vadd.f32 %v1362_v23, %v3794_v55  ;;  %v1252_v13 = vadd.f32 %v1251_v57, %v3794_v55  ;;  %v1364_v14 = vpop.f32.mrb[57].mxu1  ;;  %v1253_v10 = vpop.f32.mrb[58].mxu0  ;;  %1937 = vmatprep.subr.bf16.mxu0 %v1554_v22 }
 0x213   :  { %v1365_v11 = vadd.f32 %v1364_v14, %v3794_v55  ;;  %v1254_v12 = vadd.f32 %v1253_v10, %v3792_v27  ;;  %v1366_v53 = vpop.f32.mrb[58].mxu1  ;;  %2050 = vmatprep.subr.bf16.mxu1 %v1556_v58  ;;  %v1255_v30 = vpop.f32.mrb[59].mxu0  ;;  %1938 = vmatpush1.bf16.msra.mxu0 %v1553_v59  ;;  %v1481_v54 = vmax.f32 %v1250_v5, 0.0  ;;  %p2792_p4 = pnand %p2791_p3, %p2785_p0 }
 0x214   :  { %v1367_v56 = vadd.f32 %v1366_v53, %v3792_v27  ;;  %v1256_v1 = vadd.f32 %v1255_v30, %v3792_v27  ;;  %v1368_v2 = vpop.f32.mrb[59].mxu1  ;;  %2051 = vmatpush1.bf16.msra.mxu1 %v1555_v31  ;;  %v1483_v28 = vmax.f32 %v1363_v61, 0.0  ;;  %v1482_v26 = vmax.f32 %v1252_v13, 0.0 }
 0x215   :  { %v1489_v52 = vmax.f32 %v1254_v12, 0.0  ;;  %v1369_v24 = vadd.f32 %v1368_v2, %v3792_v27  ;;  %v1484_v8 = vmax.f32 %v1365_v11, 0.0 }
 0x216   :  { %v1491_v37 = vmax.f32 %v1367_v56, 0.0  ;;  %v1490_v55 = vmax.f32 %v1256_v1, 0.0  ;;  %1794 = vmatmul.mubr.bf16.gmra.mrb[88].mxu0 %v3924_v39 }
 0x217   :  { %v1561_v15 = vpack.c.bf16 %v1489_v52, %v1481_v54  ;;  %v1492_v51 = vmax.f32 %v1369_v24, 0.0  ;;  %1907 = vmatmul.mubr.bf16.gmra.mrb[88].mxu1 %v3924_v39  ;;  %1803 = vmatprep.mubr.bf16.mxu0 %v2808_v3 }
 0x218   :  { %v1563_v9 = vpack.c.bf16 %v1491_v37, %v1483_v28  ;;  %v1562_v43 = vpack.c.bf16 %v1490_v55, %v1482_v26  ;;  %v1259_v16 = vpop.f32.mrb[60].mxu0  ;;  %1916 = vmatprep.mubr.bf16.mxu1 %v2808_v3 }
 0x219   :  { %v1564_v44 = vpack.c.bf16 %v1492_v51, %v1484_v8  ;;  %v1260_v27 = vadd.f32 %v1259_v16, %v3806_v60  ;;  %v1372_v6 = vpop.f32.mrb[60].mxu1  ;;  %v1261_v4 = vpop.f32.mrb[61].mxu0 }
 0x21a   :  { %v1373_v48 = vadd.f32 %v1372_v6, %v3806_v60  ;;  %v1262_v19 = vadd.f32 %v1261_v4, %v3806_v60  ;;  %v1374_v0 = vpop.f32.mrb[61].mxu1  ;;  %v1263_v29 = vpop.f32.mrb[62].mxu0  ;;  %1939 = vmatprep.subr.bf16.mxu0 %v1562_v43 }
 0x21b   :  { %v1375_v20 = vadd.f32 %v1374_v0, %v3806_v60  ;;  %v1264_v40 = vadd.f32 %v1263_v29, %v3804_v18  ;;  %v1376_v41 = vpop.f32.mrb[62].mxu1  ;;  %2052 = vmatprep.subr.bf16.mxu1 %v1564_v44  ;;  %v1265_v47 = vpop.f32.mrb[63].mxu0  ;;  %1940 = vmatpush1.bf16.msra.mxu0 %v1561_v15  ;;  %v1497_v21 = vmax.f32 %v1260_v27, 0.0 }
 0x21c   :  { %v1377_v34 = vadd.f32 %v1376_v41, %v3804_v18  ;;  %v1266_v46 = vadd.f32 %v1265_v47, %v3804_v18  ;;  %v1378_v17 = vpop.f32.mrb[63].mxu1  ;;  %2053 = vmatpush1.bf16.msra.mxu1 %v1563_v9  ;;  %v1499_v50 = vmax.f32 %v1373_v48, 0.0  ;;  %v1498_v59 = vmax.f32 %v1262_v19, 0.0 }
 0x21d   :  { %v1505_v49 = vmax.f32 %v1264_v40, 0.0  ;;  %v1379_v38 = vadd.f32 %v1378_v17, %v3804_v18  ;;  %v1500_v31 = vmax.f32 %v1375_v20, 0.0  ;;  %v3976_v18 = vpop.permute.xlu0 %1575  ;;  %v4351_v47 = vsub.s32 0, %v3053_v63 }
 0x21e   :  { %v1507_v42 = vmax.f32 %v1377_v34, 0.0  ;;  %v1506_v60 = vmax.f32 %v1266_v46, 0.0  ;;  %1804 = vmatmul.mubr.bf16.gmra.mrb[92].mxu0 %v2783_v45 }
 0x21f   :  { %v1569_v22 = vpack.c.bf16 %v1505_v49, %v1497_v21  ;;  %v1508_v32 = vmax.f32 %v1379_v38, 0.0  ;;  %1917 = vmatmul.mubr.bf16.gmra.mrb[92].mxu1 %v2783_v45  ;;  %1959 = vmatprep.mubr.bf16.mxu0 %v2808_v3 }
 0x220   :  { %v1571_v58 = vpack.c.bf16 %v1507_v42, %v1499_v50  ;;  %v1570_v5 = vpack.c.bf16 %v1506_v60, %v1498_v59  ;;  %2072 = vmatprep.mubr.bf16.mxu1 %v2808_v3 }
 0x221   :  { %v1572_v23 = vpack.c.bf16 %v1508_v32, %v1500_v31 }
 0x222   :  { %1941 = vmatprep.subr.bf16.mxu0 %v1570_v5 }
 0x223   :  { %2054 = vmatprep.subr.bf16.mxu1 %v1572_v23  ;;  %1942 = vmatpush1.bf16.msra.mxu0 %v1569_v22 }
 0x224   :  { %2055 = vmatpush1.bf16.msra.mxu1 %v1571_v58 }
 0x226   :  { %1960 = vmatmul.mubr.bf16.vlgmr.msra.gmra.mrb[96].mxu0 %v3822_v35 }
 0x227   :  { %2073 = vmatmul.mubr.bf16.vlgmr.msra.gmra.mrb[96].mxu1 %v3822_v35  ;;  %1969 = vmatprep.mubr.bf16.mxu0 %v2808_v3  ;;  %v3978_v35 = vpop.permute.xlu0 %1585 }
 0x228   :  { %2082 = vmatprep.mubr.bf16.mxu1 %v2808_v3 }
 0x22e   :  { %1970 = vmatmul.mubr.bf16.gmra.mrb[100].mxu0 %v3839_v7 }
 0x22f   :  { %2083 = vmatmul.mubr.bf16.gmra.mrb[100].mxu1 %v3839_v7  ;;  %1979 = vmatprep.mubr.bf16.mxu0 %v2808_v3  ;;  %v3980_v7 = vpop.permute.xlu0 %2283 }
 0x230   :  { %2092 = vmatprep.mubr.bf16.mxu1 %v2808_v3 }
 0x236   :  { %1980 = vmatmul.mubr.bf16.gmra.mrb[104].mxu0 %v3856_v62 }
 0x237   :  { %2093 = vmatmul.mubr.bf16.gmra.mrb[104].mxu1 %v3856_v62  ;;  %1989 = vmatprep.mubr.bf16.mxu0 %v2808_v3  ;;  %v3982_v62 = vpop.permute.xlu0 %1595 }
 0x238   :  { %2102 = vmatprep.mubr.bf16.mxu1 %v2808_v3 }
 0x23e   :  { %1990 = vmatmul.mubr.bf16.gmra.mrb[108].mxu0 %v3873_v36 }
 0x23f   :  { %2103 = vmatmul.mubr.bf16.gmra.mrb[108].mxu1 %v3873_v36  ;;  %1999 = vmatprep.mubr.bf16.mxu0 %v2808_v3  ;;  %v3984_v36 = vpop.permute.xlu0 %1600 }
 0x240   :  { %2112 = vmatprep.mubr.bf16.mxu1 %v2808_v3 }
 0x246   :  { %2000 = vmatmul.mubr.bf16.gmra.mrb[112].mxu0 %v3890_v25 }
 0x247   :  { %2113 = vmatmul.mubr.bf16.gmra.mrb[112].mxu1 %v3890_v25  ;;  %2009 = vmatprep.mubr.bf16.mxu0 %v2808_v3  ;;  %v3986_v25 = vpop.permute.xlu0 %1605 }
 0x248   :  { %2122 = vmatprep.mubr.bf16.mxu1 %v2808_v3 }
 0x24e   :  { %2010 = vmatmul.mubr.bf16.gmra.mrb[116].mxu0 %v3907_v33 }
 0x24f   :  { %2123 = vmatmul.mubr.bf16.gmra.mrb[116].mxu1 %v3907_v33  ;;  %2019 = vmatprep.mubr.bf16.mxu0 %v2808_v3  ;;  %v3988_v33 = vpop.permute.xlu0 %1610 }
 0x250   :  { %2132 = vmatprep.mubr.bf16.mxu1 %v2808_v3 }
 0x253   :  { %v3990_v57 = vpop.permute.xlu0 %1615 }
 0x256   :  { %2020 = vmatmul.mubr.bf16.gmra.mrb[120].mxu0 %v3924_v39 }
 0x257   :  { %2133 = vmatmul.mubr.bf16.gmra.mrb[120].mxu1 %v3924_v39  ;;  %2029 = vmatprep.mubr.bf16.mxu0 %v2808_v3  ;;  %v3992_v61 = vpop.permute.xlu0 %1620 }
 0x258   :  { %2142 = vmatprep.mubr.bf16.mxu1 %v2808_v3  ;;  %v3994_v3 = vpop.permute.xlu1 %1580 }
 0x25b   :  { %v3996_v13 = vpop.permute.xlu0 %1625 }
 0x25c   :  { %v3998_v14 = vpop.permute.xlu1 %1590 }
 0x25e   :  { %2030 = vmatmul.mubr.bf16.gmra.mrb[124].mxu0 %v2783_v45 }
 0x25f   :  { %2143 = vmatmul.mubr.bf16.gmra.mrb[124].mxu1 %v2783_v45  ;;  %v4000_v10 = vpop.permute.xlu0 %1630 }
 0x260   :  { %v4002_v39 = vpop.permute.xlu1 %2288 }
 0x263   :  { %v4004_v11 = vpop.permute.xlu0 %1635 }
 0x264   :  { %v4006_v12 = vpop.permute.xlu1 %2293 }
 0x267   :  { %v4008_v53 = vpop.permute.xlu0 %1640 }
 0x268   :  { %v4010_v30 = vpop.permute.xlu1 %2298 }
 0x26b   :  { %v4012_v56 = vpop.permute.xlu0 %1645 }
 0x26c   :  { %v4014_v1 = vpop.permute.xlu1 %2303 }
 0x26f   :  { %v4016_v2 = vpop.permute.xlu0 %1650 }
 0x270   :  { %v4018_v54 = vpop.permute.xlu1 %2308 }
 0x273   :  { %v4020_v52 = vpop.permute.xlu0 %2353 }
 0x274   :  { %v4022_v24 = vpop.permute.xlu1 %2313 }
 0x277   :  { %v2660_v28 = vpop.permute.xlu0 %2659 }
 0x278   :  { %v4034_v34 = vrot.slane %v2660_v28, %v4351_v47  ;;  %v4039_v59 = vpop.permute.xlu1 %2318 }
 0x27a   :  { %4352 = vst [vmem:[#allocation9_spill] sm:$0xff] %v4034_v34 }
 0x2b9   :  { %v1735_v26 = vpop.f32.mrb[64].mxu0 }
 0x2ba   :  { %v1736_v37 = vadd.f32 %v1735_v26, %v3976_v18  ;;  %v1848_v55 = vpop.f32.mrb[64].mxu1  ;;  %v1737_v8 = vpop.f32.mrb[65].mxu0 }
 0x2bb   :  { %v1849_v15 = vadd.f32 %v1848_v55, %v3976_v18  ;;  %v1738_v51 = vadd.f32 %v1737_v8, %v3976_v18  ;;  %v1850_v9 = vpop.f32.mrb[65].mxu1  ;;  %v1739_v43 = vpop.f32.mrb[66].mxu0 }
 0x2bc   :  { %v2153_v16 = vmax.f32 %v1736_v37, 0.0  ;;  %v1851_v44 = vadd.f32 %v1850_v9, %v3976_v18  ;;  %v1740_v27 = vadd.f32 %v1739_v43, %v3994_v3  ;;  %v1852_v6 = vpop.f32.mrb[66].mxu1  ;;  %v1741_v4 = vpop.f32.mrb[67].mxu0  ;;  %v2809_v37 = vmov 1966171168  }
 0x2bd   :  { %v2155_v48 = vmax.f32 %v1849_v15, 0.0  ;;  %v2154_v19 = vmax.f32 %v1738_v51, 0.0  ;;  %v1853_v0 = vadd.f32 %v1852_v6, %v3994_v3  ;;  %v1742_v29 = vadd.f32 %v1741_v4, %v3994_v3  ;;  %v1854_v45 = vpop.f32.mrb[67].mxu1 }
 0x2be   :  { %v2156_v20 = vmax.f32 %v1851_v44, 0.0  ;;  %v2161_v40 = vmax.f32 %v1740_v27, 0.0  ;;  %v1855_v41 = vadd.f32 %v1854_v45, %v3994_v3  ;;  %v2361_v46 = vmul.f32 %v3980_v7, %v2153_v16 }
 0x2bf   :  { %v2163_v17 = vmax.f32 %v1853_v0, 0.0  ;;  %v2162_v21 = vmax.f32 %v1742_v29, 0.0  ;;  %v2363_v49 = vmul.f32 %v3980_v7, %v2155_v48  ;;  %v2362_v42 = vmul.f32 %v3980_v7, %v2154_v19 }
 0x2c0   :  { %v2369_v38 = vmul.f32 %v4002_v39, %v2161_v40  ;;  %v2164_v50 = vmax.f32 %v1855_v41, 0.0  ;;  %v2364_v60 = vmul.f32 %v3980_v7, %v2156_v20  ;;  %v4047_v55 = vunpack.c.l.s4 %v2809_v37 }
 0x2c1   :  { %v2371_v31 = vmul.f32 %v4002_v39, %v2163_v17  ;;  %v2370_v22 = vmul.f32 %v4002_v39, %v2162_v21  ;;  %v1745_v32 = vpop.f32.mrb[68].mxu0 }
 0x2c2   :  { %v2489_v58 = vadd.f32 %v2369_v38, %v2361_v46  ;;  %v2372_v5 = vmul.f32 %v4002_v39, %v2164_v50  ;;  %v1746_v23 = vadd.f32 %v1745_v32, %v3978_v35  ;;  %v1858_v28 = vpop.f32.mrb[68].mxu1  ;;  %v1747_v26 = vpop.f32.mrb[69].mxu0  ;;  %4353 = vst [vmem:[#allocation10_spill] sm:$0xff] %v4047_v55 }
 0x2c3   :  { %v2531_v8 = vadd.f32 %v2371_v31, %v2363_v49  ;;  %v2510_v15 = vadd.f32 %v2370_v22, %v2362_v42  ;;  %v1859_v51 = vadd.f32 %v1858_v28, %v3978_v35  ;;  %v1748_v9 = vadd.f32 %v1747_v26, %v3978_v35  ;;  %v1860_v43 = vpop.f32.mrb[69].mxu1  ;;  %v1749_v16 = vpop.f32.mrb[70].mxu0 }
 0x2c4   :  { %v2552_v44 = vadd.f32 %v2372_v5, %v2364_v60  ;;  %v2169_v27 = vmax.f32 %v1746_v23, 0.0  ;;  %v1861_v6 = vadd.f32 %v1860_v43, %v3978_v35  ;;  %v1750_v4 = vadd.f32 %v1749_v16, %v3998_v14  ;;  %v1862_v48 = vpop.f32.mrb[70].mxu1  ;;  %v1751_v19 = vpop.f32.mrb[71].mxu0 }
 0x2c5   :  { %v2171_v0 = vmax.f32 %v1859_v51, 0.0  ;;  %v2170_v29 = vmax.f32 %v1748_v9, 0.0  ;;  %v1863_v45 = vadd.f32 %v1862_v48, %v3998_v14  ;;  %v1752_v20 = vadd.f32 %v1751_v19, %v3998_v14  ;;  %v1864_v40 = vpop.f32.mrb[71].mxu1  ;;  %v4061_v32 = vpop.permute.xlu1 %2323 }
 0x2c6   :  { %v2377_v41 = vmul.f32 %v4006_v12, %v2169_v27  ;;  %v2172_v47 = vmax.f32 %v1861_v6, 0.0  ;;  %v2177_v46 = vmax.f32 %v1750_v4, 0.0  ;;  %v1865_v17 = vadd.f32 %v1864_v40, %v3998_v14 }
 0x2c7   :  { %v2379_v21 = vmul.f32 %v4006_v12, %v2171_v0  ;;  %v2378_v49 = vmul.f32 %v4006_v12, %v2170_v29  ;;  %v2179_v38 = vmax.f32 %v1863_v45, 0.0  ;;  %v2178_v50 = vmax.f32 %v1752_v20, 0.0 }
 0x2c8   :  { %v2490_v42 = vadd.f32 %v2489_v58, %v2377_v41  ;;  %v2380_v60 = vmul.f32 %v4006_v12, %v2172_v47  ;;  %v2385_v31 = vmul.f32 %v4010_v30, %v2177_v46  ;;  %v2180_v22 = vmax.f32 %v1865_v17, 0.0 }
 0x2c9   :  { %v2532_v5 = vadd.f32 %v2531_v8, %v2379_v21  ;;  %v2511_v23 = vadd.f32 %v2510_v15, %v2378_v49  ;;  %v2387_v28 = vmul.f32 %v4010_v30, %v2179_v38  ;;  %v2386_v26 = vmul.f32 %v4010_v30, %v2178_v50  ;;  %v1755_v37 = vpop.f32.mrb[72].mxu0 }
 0x2ca   :  { %v2553_v51 = vadd.f32 %v2552_v44, %v2380_v60  ;;  %v2491_v9 = vadd.f32 %v2490_v42, %v2385_v31  ;;  %v2388_v43 = vmul.f32 %v4010_v30, %v2180_v22  ;;  %v1756_v58 = vadd.f32 %v1755_v37, %v3982_v62  ;;  %v1868_v16 = vpop.f32.mrb[72].mxu1  ;;  %v1757_v27 = vpop.f32.mrb[73].mxu0 }
 0x2cb   :  { %v2533_v6 = vadd.f32 %v2532_v5, %v2387_v28  ;;  %v2512_v4 = vadd.f32 %v2511_v23, %v2386_v26  ;;  %v1869_v48 = vadd.f32 %v1868_v16, %v3982_v62  ;;  %v1758_v8 = vadd.f32 %v1757_v27, %v3982_v62  ;;  %v1870_v15 = vpop.f32.mrb[73].mxu1  ;;  %v1759_v19 = vpop.f32.mrb[74].mxu0 }
 0x2cc   :  { %v2554_v0 = vadd.f32 %v2553_v51, %v2388_v43  ;;  %v2185_v29 = vmax.f32 %v1756_v58, 0.0  ;;  %v1871_v45 = vadd.f32 %v1870_v15, %v3982_v62  ;;  %v1760_v44 = vadd.f32 %v1759_v19, %v3984_v36  ;;  %v1872_v20 = vpop.f32.mrb[74].mxu1  ;;  %v1761_v40 = vpop.f32.mrb[75].mxu0 }
 0x2cd   :  { %v2187_v41 = vmax.f32 %v1869_v48, 0.0  ;;  %v2186_v47 = vmax.f32 %v1758_v8, 0.0  ;;  %v1873_v46 = vadd.f32 %v1872_v20, %v3984_v36  ;;  %v1762_v17 = vadd.f32 %v1761_v40, %v3984_v36  ;;  %v1874_v21 = vpop.f32.mrb[75].mxu1  ;;  %v4079_v51 = vpop.permute.xlu1 %2328 }
 0x2ce   :  { %v2393_v49 = vmul.f32 %v4014_v1, %v2185_v29  ;;  %v2188_v38 = vmax.f32 %v1871_v45, 0.0  ;;  %v2193_v50 = vmax.f32 %v1760_v44, 0.0  ;;  %v1875_v42 = vadd.f32 %v1874_v21, %v3984_v36 }
 0x2cf   :  { %v2395_v60 = vmul.f32 %v4014_v1, %v2187_v41  ;;  %v2394_v31 = vmul.f32 %v4014_v1, %v2186_v47  ;;  %v2195_v22 = vmax.f32 %v1873_v46, 0.0  ;;  %v2194_v5 = vmax.f32 %v1762_v17, 0.0 }
 0x2d0   :  { %v2492_v23 = vadd.f32 %v2491_v9, %v2393_v49  ;;  %v2396_v28 = vmul.f32 %v4014_v1, %v2188_v38  ;;  %v2401_v26 = vmul.f32 %v4018_v54, %v2193_v50  ;;  %v2196_v37 = vmax.f32 %v1875_v42, 0.0 }
 0x2d1   :  { %v2534_v43 = vadd.f32 %v2533_v6, %v2395_v60  ;;  %v2513_v58 = vadd.f32 %v2512_v4, %v2394_v31  ;;  %v2403_v16 = vmul.f32 %v4018_v54, %v2195_v22  ;;  %v2402_v27 = vmul.f32 %v4018_v54, %v2194_v5  ;;  %v1765_v48 = vpop.f32.mrb[76].mxu0 }
 0x2d2   :  { %v2555_v8 = vadd.f32 %v2554_v0, %v2396_v28  ;;  %v2493_v15 = vadd.f32 %v2492_v23, %v2401_v26  ;;  %v2404_v19 = vmul.f32 %v4018_v54, %v2196_v37  ;;  %v1766_v9 = vadd.f32 %v1765_v48, %v3986_v25  ;;  %v1878_v29 = vpop.f32.mrb[76].mxu1  ;;  %v1767_v45 = vpop.f32.mrb[77].mxu0 }
 0x2d3   :  { %v2535_v44 = vadd.f32 %v2534_v43, %v2403_v16  ;;  %v2514_v20 = vadd.f32 %v2513_v58, %v2402_v27  ;;  %v1879_v40 = vadd.f32 %v1878_v29, %v3986_v25  ;;  %v1768_v6 = vadd.f32 %v1767_v45, %v3986_v25  ;;  %v1880_v4 = vpop.f32.mrb[77].mxu1  ;;  %v1769_v41 = vpop.f32.mrb[78].mxu0 }
 0x2d4   :  { %v2556_v47 = vadd.f32 %v2555_v8, %v2404_v19  ;;  %v2201_v46 = vmax.f32 %v1766_v9, 0.0  ;;  %v1881_v17 = vadd.f32 %v1880_v4, %v3986_v25  ;;  %v1770_v0 = vadd.f32 %v1769_v41, %v3988_v33  ;;  %v1882_v21 = vpop.f32.mrb[78].mxu1  ;;  %v1771_v49 = vpop.f32.mrb[79].mxu0 }
 0x2d5   :  { %v2203_v38 = vmax.f32 %v1879_v40, 0.0  ;;  %v2202_v50 = vmax.f32 %v1768_v6, 0.0  ;;  %v1883_v42 = vadd.f32 %v1882_v21, %v3988_v33  ;;  %v1772_v60 = vadd.f32 %v1771_v49, %v3988_v33  ;;  %v1884_v31 = vpop.f32.mrb[79].mxu1  ;;  %v4097_v19 = vpop.permute.xlu1 %2333 }
 0x2d6   :  { %v2409_v22 = vmul.f32 %v4022_v24, %v2201_v46  ;;  %v2204_v5 = vmax.f32 %v1881_v17, 0.0  ;;  %v2209_v23 = vmax.f32 %v1770_v0, 0.0  ;;  %v1885_v28 = vadd.f32 %v1884_v31, %v3988_v33 }
 0x2d7   :  { %v2411_v26 = vmul.f32 %v4022_v24, %v2203_v38  ;;  %v2410_v37 = vmul.f32 %v4022_v24, %v2202_v50  ;;  %v2211_v43 = vmax.f32 %v1883_v42, 0.0  ;;  %v2210_v58 = vmax.f32 %v1772_v60, 0.0 }
 0x2d8   :  { %v2494_v16 = vadd.f32 %v2493_v15, %v2409_v22  ;;  %v2412_v27 = vmul.f32 %v4022_v24, %v2204_v5  ;;  %v2417_v48 = vmul.f32 %v4039_v59, %v2209_v23  ;;  %v2212_v8 = vmax.f32 %v1885_v28, 0.0 }
 0x2d9   :  { %v2536_v9 = vadd.f32 %v2535_v44, %v2411_v26  ;;  %v2515_v29 = vadd.f32 %v2514_v20, %v2410_v37  ;;  %v2419_v45 = vmul.f32 %v4039_v59, %v2211_v43  ;;  %v2418_v40 = vmul.f32 %v4039_v59, %v2210_v58  ;;  %v1775_v6 = vpop.f32.mrb[80].mxu0 }
 0x2da   :  { %v2557_v4 = vadd.f32 %v2556_v47, %v2412_v27  ;;  %v2495_v41 = vadd.f32 %v2494_v16, %v2417_v48  ;;  %v2420_v46 = vmul.f32 %v4039_v59, %v2212_v8  ;;  %v1776_v15 = vadd.f32 %v1775_v6, %v3990_v57  ;;  %v1888_v17 = vpop.f32.mrb[80].mxu1  ;;  %v1777_v0 = vpop.f32.mrb[81].mxu0 }
 0x2db   :  { %v2537_v21 = vadd.f32 %v2536_v9, %v2419_v45  ;;  %v2516_v49 = vadd.f32 %v2515_v29, %v2418_v40  ;;  %v1889_v38 = vadd.f32 %v1888_v17, %v3990_v57  ;;  %v1778_v44 = vadd.f32 %v1777_v0, %v3990_v57  ;;  %v1890_v20 = vpop.f32.mrb[81].mxu1  ;;  %v1779_v50 = vpop.f32.mrb[82].mxu0 }
 0x2dc   :  { %v2558_v42 = vadd.f32 %v2557_v4, %v2420_v46  ;;  %v2217_v60 = vmax.f32 %v1776_v15, 0.0  ;;  %v1891_v31 = vadd.f32 %v1890_v20, %v3990_v57  ;;  %v1780_v47 = vadd.f32 %v1779_v50, %v3992_v61  ;;  %v1892_v22 = vpop.f32.mrb[82].mxu1  ;;  %v1781_v5 = vpop.f32.mrb[83].mxu0 }
 0x2dd   :  { %v2219_v23 = vmax.f32 %v1889_v38, 0.0  ;;  %v2218_v28 = vmax.f32 %v1778_v44, 0.0  ;;  %v1893_v26 = vadd.f32 %v1892_v22, %v3992_v61  ;;  %v1782_v37 = vadd.f32 %v1781_v5, %v3992_v61  ;;  %v1894_v43 = vpop.f32.mrb[83].mxu1  ;;  %v4115_v15 = vpop.permute.xlu1 %2338 }
 0x2de   :  { %v2425_v58 = vmul.f32 %v4061_v32, %v2217_v60  ;;  %v2220_v16 = vmax.f32 %v1891_v31, 0.0  ;;  %v2225_v27 = vmax.f32 %v1780_v47, 0.0  ;;  %v1895_v48 = vadd.f32 %v1894_v43, %v3992_v61 }
 0x2df   :  { %v2427_v8 = vmul.f32 %v4061_v32, %v2219_v23  ;;  %v2426_v9 = vmul.f32 %v4061_v32, %v2218_v28  ;;  %v2227_v29 = vmax.f32 %v1893_v26, 0.0  ;;  %v2226_v45 = vmax.f32 %v1782_v37, 0.0 }
 0x2e0   :  { %v2496_v40 = vadd.f32 %v2495_v41, %v2425_v58  ;;  %v2428_v6 = vmul.f32 %v4061_v32, %v2220_v16  ;;  %v2433_v4 = vmul.f32 %v4079_v51, %v2225_v27  ;;  %v2228_v46 = vmax.f32 %v1895_v48, 0.0 }
 0x2e1   :  { %v2538_v17 = vadd.f32 %v2537_v21, %v2427_v8  ;;  %v2517_v0 = vadd.f32 %v2516_v49, %v2426_v9  ;;  %v2435_v38 = vmul.f32 %v4079_v51, %v2227_v29  ;;  %v2434_v44 = vmul.f32 %v4079_v51, %v2226_v45  ;;  %v1785_v20 = vpop.f32.mrb[84].mxu0 }
 0x2e2   :  { %v2559_v50 = vadd.f32 %v2558_v42, %v2428_v6  ;;  %v2497_v60 = vadd.f32 %v2496_v40, %v2433_v4  ;;  %v2436_v31 = vmul.f32 %v4079_v51, %v2228_v46  ;;  %v1786_v41 = vadd.f32 %v1785_v20, %v3996_v13  ;;  %v1898_v47 = vpop.f32.mrb[84].mxu1  ;;  %v1787_v22 = vpop.f32.mrb[85].mxu0 }
 0x2e3   :  { %v2539_v5 = vadd.f32 %v2538_v17, %v2435_v38  ;;  %v2518_v23 = vadd.f32 %v2517_v0, %v2434_v44  ;;  %v1899_v28 = vadd.f32 %v1898_v47, %v3996_v13  ;;  %v1788_v21 = vadd.f32 %v1787_v22, %v3996_v13  ;;  %v1900_v49 = vpop.f32.mrb[85].mxu1  ;;  %v1789_v26 = vpop.f32.mrb[86].mxu0 }
 0x2e4   :  { %v2560_v37 = vadd.f32 %v2559_v50, %v2436_v31  ;;  %v2233_v43 = vmax.f32 %v1786_v41, 0.0  ;;  %v1901_v58 = vadd.f32 %v1900_v49, %v3996_v13  ;;  %v1790_v42 = vadd.f32 %v1789_v26, %v4000_v10  ;;  %v1902_v16 = vpop.f32.mrb[86].mxu1  ;;  %v1791_v27 = vpop.f32.mrb[87].mxu0 }
 0x2e5   :  { %v2235_v48 = vmax.f32 %v1899_v28, 0.0  ;;  %v2234_v8 = vmax.f32 %v1788_v21, 0.0  ;;  %v1903_v9 = vadd.f32 %v1902_v16, %v4000_v10  ;;  %v1792_v29 = vadd.f32 %v1791_v27, %v4000_v10  ;;  %v1904_v45 = vpop.f32.mrb[87].mxu1  ;;  %v4133_v47 = vpop.permute.xlu1 %2343 }
 0x2e6   :  { %v2441_v40 = vmul.f32 %v4097_v19, %v2233_v43  ;;  %v2236_v6 = vmax.f32 %v1901_v58, 0.0  ;;  %v2241_v4 = vmax.f32 %v1790_v42, 0.0  ;;  %v1905_v46 = vadd.f32 %v1904_v45, %v4000_v10 }
 0x2e7   :  { %v2443_v17 = vmul.f32 %v4097_v19, %v2235_v48  ;;  %v2442_v0 = vmul.f32 %v4097_v19, %v2234_v8  ;;  %v2243_v38 = vmax.f32 %v1903_v9, 0.0  ;;  %v2242_v44 = vmax.f32 %v1792_v29, 0.0 }
 0x2e8   :  { %v2498_v20 = vadd.f32 %v2497_v60, %v2441_v40  ;;  %v2444_v50 = vmul.f32 %v4097_v19, %v2236_v6  ;;  %v2449_v31 = vmul.f32 %v4115_v15, %v2241_v4  ;;  %v2244_v41 = vmax.f32 %v1905_v46, 0.0 }
 0x2e9   :  { %v2540_v22 = vadd.f32 %v2539_v5, %v2443_v17  ;;  %v2519_v28 = vadd.f32 %v2518_v23, %v2442_v0  ;;  %v2451_v21 = vmul.f32 %v4115_v15, %v2243_v38  ;;  %v2450_v49 = vmul.f32 %v4115_v15, %v2242_v44  ;;  %v1795_v26 = vpop.f32.mrb[88].mxu0 }
 0x2ea   :  { %v2561_v43 = vadd.f32 %v2560_v37, %v2444_v50  ;;  %v2499_v58 = vadd.f32 %v2498_v20, %v2449_v31  ;;  %v2452_v42 = vmul.f32 %v4115_v15, %v2244_v41  ;;  %v1796_v60 = vadd.f32 %v1795_v26, %v4004_v11  ;;  %v1908_v16 = vpop.f32.mrb[88].mxu1  ;;  %v1797_v27 = vpop.f32.mrb[89].mxu0 }
 0x2eb   :  { %v2541_v48 = vadd.f32 %v2540_v22, %v2451_v21  ;;  %v2520_v8 = vadd.f32 %v2519_v28, %v2450_v49  ;;  %v1909_v9 = vadd.f32 %v1908_v16, %v4004_v11  ;;  %v1798_v5 = vadd.f32 %v1797_v27, %v4004_v11  ;;  %v1910_v23 = vpop.f32.mrb[89].mxu1  ;;  %v1799_v29 = vpop.f32.mrb[90].mxu0 }
 0x2ec   :  { %v2562_v45 = vadd.f32 %v2561_v43, %v2452_v42  ;;  %v2249_v40 = vmax.f32 %v1796_v60, 0.0  ;;  %v1911_v6 = vadd.f32 %v1910_v23, %v4004_v11  ;;  %v1800_v37 = vadd.f32 %v1799_v29, %v4008_v53  ;;  %v1912_v4 = vpop.f32.mrb[90].mxu1  ;;  %v1801_v46 = vpop.f32.mrb[91].mxu0 }
 0x2ed   :  { %v2251_v17 = vmax.f32 %v1909_v9, 0.0  ;;  %v2250_v0 = vmax.f32 %v1798_v5, 0.0  ;;  %v1913_v38 = vadd.f32 %v1912_v4, %v4008_v53  ;;  %v1802_v44 = vadd.f32 %v1801_v46, %v4008_v53  ;;  %v1914_v20 = vpop.f32.mrb[91].mxu1  ;;  %v4147_v28 = vpop.permute.xlu1 %2348 }
 0x2ee   :  { %v2457_v50 = vmul.f32 %v4133_v47, %v2249_v40  ;;  %v2252_v31 = vmax.f32 %v1911_v6, 0.0  ;;  %v2257_v41 = vmax.f32 %v1800_v37, 0.0  ;;  %v1915_v22 = vadd.f32 %v1914_v20, %v4008_v53 }
 0x2ef   :  { %v2459_v21 = vmul.f32 %v4133_v47, %v2251_v17  ;;  %v2458_v49 = vmul.f32 %v4133_v47, %v2250_v0  ;;  %v2259_v26 = vmax.f32 %v1913_v38, 0.0  ;;  %v2258_v43 = vmax.f32 %v1802_v44, 0.0 }
 0x2f0   :  { %v2500_v42 = vadd.f32 %v2499_v58, %v2457_v50  ;;  %v2460_v60 = vmul.f32 %v4133_v47, %v2252_v31  ;;  %v2465_v16 = vmul.f32 %v4147_v28, %v2257_v41  ;;  %v2260_v27 = vmax.f32 %v1915_v22, 0.0 }
 0x2f1   :  { %v2542_v9 = vadd.f32 %v2541_v48, %v2459_v21  ;;  %v2521_v5 = vadd.f32 %v2520_v8, %v2458_v49  ;;  %v2467_v23 = vmul.f32 %v4147_v28, %v2259_v26  ;;  %v2466_v29 = vmul.f32 %v4147_v28, %v2258_v43  ;;  %v1805_v40 = vpop.f32.mrb[92].mxu0 }
 0x2f2   :  { %v2563_v6 = vadd.f32 %v2562_v45, %v2460_v60  ;;  %v2501_v37 = vadd.f32 %v2500_v42, %v2465_v16  ;;  %v2468_v4 = vmul.f32 %v4147_v28, %v2260_v27  ;;  %v1806_v46 = vadd.f32 %v1805_v40, %v4012_v56  ;;  %v1918_v17 = vpop.f32.mrb[92].mxu1  ;;  %v1807_v58 = vpop.f32.mrb[93].mxu0 }
 0x2f3   :  { %v2543_v0 = vadd.f32 %v2542_v9, %v2467_v23  ;;  %v2522_v38 = vadd.f32 %v2521_v5, %v2466_v29  ;;  %v1919_v44 = vadd.f32 %v1918_v17, %v4012_v56  ;;  %v1808_v48 = vadd.f32 %v1807_v58, %v4012_v56  ;;  %v1920_v8 = vpop.f32.mrb[93].mxu1  ;;  %v1809_v20 = vpop.f32.mrb[94].mxu0 }
 0x2f4   :  { %v2564_v50 = vadd.f32 %v2563_v6, %v2468_v4  ;;  %v2265_v31 = vmax.f32 %v1806_v46, 0.0  ;;  %v1921_v41 = vadd.f32 %v1920_v8, %v4012_v56  ;;  %v1810_v45 = vadd.f32 %v1809_v20, %v4016_v2  ;;  %v1922_v22 = vpop.f32.mrb[94].mxu1  ;;  %v1811_v21 = vpop.f32.mrb[95].mxu0 }
 0x2f5   :  { %v2267_v49 = vmax.f32 %v1919_v44, 0.0  ;;  %v2266_v26 = vmax.f32 %v1808_v48, 0.0  ;;  %v1923_v43 = vadd.f32 %v1922_v22, %v4016_v2  ;;  %v1812_v42 = vadd.f32 %v1811_v21, %v4016_v2  ;;  %v1924_v60 = vpop.f32.mrb[95].mxu1  ;;  %v4165_v23 = vpop.permute.xlu1 %2358 }
 0x2f6   :  { %v2473_v16 = vmul.f32 %v4020_v52, %v2265_v31  ;;  %v2268_v27 = vmax.f32 %v1921_v41, 0.0  ;;  %v2273_v9 = vmax.f32 %v1810_v45, 0.0  ;;  %v1925_v5 = vadd.f32 %v1924_v60, %v4016_v2 }
 0x2f7   :  { %v2475_v29 = vmul.f32 %v4020_v52, %v2267_v49  ;;  %v2474_v40 = vmul.f32 %v4020_v52, %v2266_v26  ;;  %v2275_v6 = vmax.f32 %v1923_v43, 0.0  ;;  %v2274_v4 = vmax.f32 %v1812_v42, 0.0 }
 0x2f8   :  { %v2502_v46 = vadd.f32 %v2501_v37, %v2473_v16  ;;  %v2476_v17 = vmul.f32 %v4020_v52, %v2268_v27  ;;  %v2481_v58 = vmul.f32 %v4165_v23, %v2273_v9  ;;  %v2276_v44 = vmax.f32 %v1925_v5, 0.0 }
 0x2f9   :  { %v2544_v48 = vadd.f32 %v2543_v0, %v2475_v29  ;;  %v2523_v8 = vadd.f32 %v2522_v38, %v2474_v40  ;;  %v2483_v20 = vmul.f32 %v4165_v23, %v2275_v6  ;;  %v2482_v31 = vmul.f32 %v4165_v23, %v2274_v4  ;;  %v1961_v41 = vpop.f32.mrb[96].mxu0 }
 0x2fa   :  { %v2565_v45 = vadd.f32 %v2564_v50, %v2476_v17  ;;  %v2503_v22 = vadd.f32 %v2502_v46, %v2481_v58  ;;  %v2484_v21 = vmul.f32 %v4165_v23, %v2276_v44  ;;  %v1962_v49 = vadd.f32 %v1961_v41, %v3976_v18  ;;  %v2074_v26 = vpop.f32.mrb[96].mxu1  ;;  %v1963_v37 = vpop.f32.mrb[97].mxu0 }
 0x2fb   :  { %v2545_v43 = vadd.f32 %v2544_v48, %v2483_v20  ;;  %v2524_v42 = vadd.f32 %v2523_v8, %v2482_v31  ;;  %v2075_v60 = vadd.f32 %v2074_v26, %v3976_v18  ;;  %v1964_v0 = vadd.f32 %v1963_v37, %v3976_v18  ;;  %v2076_v38 = vpop.f32.mrb[97].mxu1  ;;  %v1965_v16 = vpop.f32.mrb[98].mxu0 }
 0x2fc   :  { %v2504_v27 = vrot.slane %v2503_v22, 4  ;;  %v2566_v9 = vadd.f32 %v2565_v45, %v2484_v21  ;;  %v2157_v5 = vmax.f32 %v1962_v49, 0.0  ;;  %v2077_v50 = vadd.f32 %v2076_v38, %v3976_v18  ;;  %v2078_v29 = vpop.f32.mrb[98].mxu1  ;;  %v1967_v40 = vpop.f32.mrb[99].mxu0 }
 0x2fd   :  { %v2546_v6 = vrot.slane %v2545_v43, 4  ;;  %v2525_v4 = vrot.slane %v2524_v42, 4  ;;  %v2159_v46 = vmax.f32 %v2075_v60, 0.0  ;;  %v2158_v17 = vmax.f32 %v1964_v0, 0.0  ;;  %v2080_v58 = vpop.f32.mrb[99].mxu1 }
 0x2fe   :  { %v2505_v44 = vadd.f32 %v2504_v27, %v2503_v22  ;;  %v2567_v48 = vrot.slane %v2566_v9, 4  ;;  %v2365_v8 = vmul.f32 %v3980_v7, %v2157_v5  ;;  %v2160_v20 = vmax.f32 %v2077_v50, 0.0 }
 0x2ff   :  { %v2547_v31 = vadd.f32 %v2546_v6, %v2545_v43  ;;  %v2526_v41 = vadd.f32 %v2525_v4, %v2524_v42  ;;  %v2367_v26 = vmul.f32 %v3980_v7, %v2159_v46  ;;  %v2366_v45 = vmul.f32 %v3980_v7, %v2158_v17 }
 0x300   :  { %v2506_v21 = vrot.slane %v2505_v44, 2  ;;  %v2568_v18 = vadd.f32 %v2567_v48, %v2566_v9  ;;  %v2368_v49 = vmul.f32 %v3980_v7, %v2160_v20  ;;  %v1966_v37 = vadd.f32 %v1965_v16, %v3994_v3 }
 0x301   :  { %v2548_v60 = vrot.slane %v2547_v31, 2  ;;  %v2527_v0 = vrot.slane %v2526_v41, 2  ;;  %v2079_v22 = vadd.f32 %v2078_v29, %v3994_v3  ;;  %v1968_v38 = vadd.f32 %v1967_v40, %v3994_v3  ;;  %v1971_v27 = vpop.f32.mrb[100].mxu0 }
 0x302   :  { %v2507_v5 = vadd.f32 %v2506_v21, %v2505_v44  ;;  %v2569_v43 = vrot.slane %v2568_v18, 2  ;;  %v2165_v42 = vmax.f32 %v1966_v37, 0.0  ;;  %v2081_v50 = vadd.f32 %v2080_v58, %v3994_v3  ;;  %v2084_v6 = vpop.f32.mrb[100].mxu1  ;;  %v1973_v4 = vpop.f32.mrb[101].mxu0 }
 0x303   :  { %v2549_v46 = vadd.f32 %v2548_v60, %v2547_v31  ;;  %v2528_v9 = vadd.f32 %v2527_v0, %v2526_v41  ;;  %v2167_v17 = vmax.f32 %v2079_v22, 0.0  ;;  %v2166_v7 = vmax.f32 %v1968_v38, 0.0  ;;  %v2086_v48 = vpop.f32.mrb[101].mxu1  ;;  %v1975_v16 = vpop.f32.mrb[102].mxu0 }
 0x304   :  { %v2508_v20 = vrot.slane %v2507_v5, 1  ;;  %v2570_v63 = vadd.f32 %v2569_v43, %v2568_v18  ;;  %v2373_v29 = vmul.f32 %v4002_v39, %v2165_v42  ;;  %v2168_v55 = vmax.f32 %v2081_v50, 0.0  ;;  %v2088_v40 = vpop.f32.mrb[102].mxu1  ;;  %v1977_v34 = vpop.f32.mrb[103].mxu0 }
 0x305   :  { %v2550_v44 = vrot.slane %v2549_v46, 1  ;;  %v2529_v21 = vrot.slane %v2528_v9, 1  ;;  %v2375_v37 = vmul.f32 %v4002_v39, %v2167_v17  ;;  %v2374_v3 = vmul.f32 %v4002_v39, %v2166_v7  ;;  %v2090_v58 = vpop.f32.mrb[103].mxu1 }
 0x306   :  { %v4189_v31 = vadd.f32 %v2508_v20, %v2507_v5  ;;  %v2571_v41 = vrot.slane %v2570_v63, 1  ;;  %v2573_v60 = vadd.f32 %v2373_v29, %v2365_v8  ;;  %v2376_v0 = vmul.f32 %v4002_v39, %v2168_v55 }
 0x307   :  { %v4192_v22 = vadd.f32 %v2550_v44, %v2549_v46  ;;  %v4194_v18 = vadd.f32 %v2529_v21, %v2528_v9  ;;  %v2615_v38 = vadd.f32 %v2375_v37, %v2367_v26  ;;  %v2594_v43 = vadd.f32 %v2374_v3, %v2366_v45 }
 0x308   :  { %v4196_v42 = vadd.f32 %v2571_v41, %v2570_v63  ;;  %v2636_v50 = vadd.f32 %v2376_v0, %v2368_v49  ;;  %v1972_v17 = vadd.f32 %v1971_v27, %v3978_v35  ;;  %v2085_v7 = vadd.f32 %v2084_v6, %v3978_v35 }
 0x309   :  { %v1974_v5 = vadd.f32 %v1973_v4, %v3978_v35  ;;  %v2087_v20 = vadd.f32 %v2086_v48, %v3978_v35  ;;  %v1976_v8 = vadd.f32 %v1975_v16, %v3998_v14  ;;  %v2089_v39 = vadd.f32 %v2088_v40, %v3998_v14  ;;  %v1981_v55 = vpop.f32.mrb[104].mxu0 }
 0x30a   :  { %v2173_v46 = vmax.f32 %v1972_v17, 0.0  ;;  %v2175_v9 = vmax.f32 %v2085_v7, 0.0  ;;  %v1978_v26 = vadd.f32 %v1977_v34, %v3998_v14  ;;  %v2091_v63 = vadd.f32 %v2090_v58, %v3998_v14  ;;  %v2094_v45 = vpop.f32.mrb[104].mxu1  ;;  %v1983_v49 = vpop.f32.mrb[105].mxu0 }
 0x30b   :  { %v2174_v27 = vmax.f32 %v1974_v5, 0.0  ;;  %v2176_v29 = vmax.f32 %v2087_v20, 0.0  ;;  %v2181_v6 = vmax.f32 %v1976_v8, 0.0  ;;  %v2183_v44 = vmax.f32 %v2089_v39, 0.0  ;;  %v2096_v4 = vpop.f32.mrb[105].mxu1  ;;  %v1985_v21 = vpop.f32.mrb[106].mxu0 }
 0x30c   :  { %v2381_v35 = vmul.f32 %v4006_v12, %v2173_v46  ;;  %v2383_v48 = vmul.f32 %v4006_v12, %v2175_v9  ;;  %v2182_v16 = vmax.f32 %v1978_v26, 0.0  ;;  %v2184_v40 = vmax.f32 %v2091_v63, 0.0  ;;  %v2098_v37 = vpop.f32.mrb[106].mxu1  ;;  %v1987_v3 = vpop.f32.mrb[107].mxu0 }
 0x30d   :  { %v2382_v34 = vmul.f32 %v4006_v12, %v2174_v27  ;;  %v2384_v14 = vmul.f32 %v4006_v12, %v2176_v29  ;;  %v2389_v58 = vmul.f32 %v4010_v30, %v2181_v6  ;;  %v2391_v41 = vmul.f32 %v4010_v30, %v2183_v44  ;;  %v2100_v0 = vpop.f32.mrb[107].mxu1 }
 0x30e   :  { %v2574_v17 = vadd.f32 %v2573_v60, %v2381_v35  ;;  %v2616_v7 = vadd.f32 %v2615_v38, %v2383_v48  ;;  %v2390_v5 = vmul.f32 %v4010_v30, %v2182_v16  ;;  %v2392_v20 = vmul.f32 %v4010_v30, %v2184_v40 }
 0x30f   :  { %v2595_v8 = vadd.f32 %v2594_v43, %v2382_v34  ;;  %v2637_v39 = vadd.f32 %v2636_v50, %v2384_v14  ;;  %v1982_v46 = vadd.f32 %v1981_v55, %v3982_v62  ;;  %v2095_v9 = vadd.f32 %v2094_v45, %v3982_v62 }
 0x310   :  { %v2575_v26 = vadd.f32 %v2574_v17, %v2389_v58  ;;  %v2617_v63 = vadd.f32 %v2616_v7, %v2391_v41  ;;  %v1984_v12 = vadd.f32 %v1983_v49, %v3982_v62  ;;  %v2097_v27 = vadd.f32 %v2096_v4, %v3982_v62 }
 0x311   :  { %v2596_v29 = vadd.f32 %v2595_v8, %v2390_v5  ;;  %v2638_v6 = vadd.f32 %v2637_v39, %v2392_v20  ;;  %v2189_v60 = vmax.f32 %v1982_v46, 0.0  ;;  %v2191_v38 = vmax.f32 %v2095_v9, 0.0  ;;  %v1991_v44 = vpop.f32.mrb[108].mxu0 }
 0x312   :  { %v2190_v35 = vmax.f32 %v1984_v12, 0.0  ;;  %v2192_v48 = vmax.f32 %v2097_v27, 0.0  ;;  %v1986_v30 = vadd.f32 %v1985_v21, %v3984_v36  ;;  %v2099_v43 = vadd.f32 %v2098_v37, %v3984_v36  ;;  %v2104_v50 = vpop.f32.mrb[108].mxu1  ;;  %v1993_v55 = vpop.f32.mrb[109].mxu0 }
 0x313   :  { %v2397_v45 = vmul.f32 %v4014_v1, %v2189_v60  ;;  %v2399_v16 = vmul.f32 %v4014_v1, %v2191_v38  ;;  %v1988_v49 = vadd.f32 %v1987_v3, %v3984_v36  ;;  %v2101_v62 = vadd.f32 %v2100_v0, %v3984_v36  ;;  %v2106_v4 = vpop.f32.mrb[109].mxu1  ;;  %v1995_v40 = vpop.f32.mrb[110].mxu0 }
 0x314   :  { %v2398_v34 = vmul.f32 %v4014_v1, %v2190_v35  ;;  %v2400_v14 = vmul.f32 %v4014_v1, %v2192_v48  ;;  %v2197_v58 = vmax.f32 %v1986_v30, 0.0  ;;  %v2199_v21 = vmax.f32 %v2099_v43, 0.0  ;;  %v2108_v41 = vpop.f32.mrb[110].mxu1  ;;  %v1997_v37 = vpop.f32.mrb[111].mxu0 }
 0x315   :  { %v2576_v17 = vadd.f32 %v2575_v26, %v2397_v45  ;;  %v2618_v7 = vadd.f32 %v2617_v63, %v2399_v16  ;;  %v2198_v5 = vmax.f32 %v1988_v49, 0.0  ;;  %v2200_v20 = vmax.f32 %v2101_v62, 0.0  ;;  %v2110_v8 = vpop.f32.mrb[111].mxu1 }
 0x316   :  { %v2597_v39 = vadd.f32 %v2596_v29, %v2398_v34  ;;  %v2639_v46 = vadd.f32 %v2638_v6, %v2400_v14  ;;  %v2405_v3 = vmul.f32 %v4018_v54, %v2197_v58  ;;  %v2407_v36 = vmul.f32 %v4018_v54, %v2199_v21 }
 0x317   :  { %v2406_v0 = vmul.f32 %v4018_v54, %v2198_v5  ;;  %v2408_v9 = vmul.f32 %v4018_v54, %v2200_v20  ;;  %v1992_v1 = vadd.f32 %v1991_v44, %v3986_v25  ;;  %v2105_v12 = vadd.f32 %v2104_v50, %v3986_v25 }
 0x318   :  { %v2577_v27 = vadd.f32 %v2576_v17, %v2405_v3  ;;  %v2619_v26 = vadd.f32 %v2618_v7, %v2407_v36  ;;  %v1994_v63 = vadd.f32 %v1993_v55, %v3986_v25  ;;  %v2107_v60 = vadd.f32 %v2106_v4, %v3986_v25 }
 0x319   :  { %v2598_v29 = vadd.f32 %v2597_v39, %v2406_v0  ;;  %v2640_v6 = vadd.f32 %v2639_v46, %v2408_v9  ;;  %v2205_v38 = vmax.f32 %v1992_v1, 0.0  ;;  %v2207_v35 = vmax.f32 %v2105_v12, 0.0  ;;  %v2001_v48 = vpop.f32.mrb[112].mxu0 }
 0x31a   :  { %v2206_v30 = vmax.f32 %v1994_v63, 0.0  ;;  %v2208_v43 = vmax.f32 %v2107_v60, 0.0  ;;  %v1996_v45 = vadd.f32 %v1995_v40, %v3988_v33  ;;  %v2109_v54 = vadd.f32 %v2108_v41, %v3988_v33  ;;  %v2114_v44 = vpop.f32.mrb[112].mxu1  ;;  %v2003_v16 = vpop.f32.mrb[113].mxu0 }
 0x31b   :  { %v2413_v50 = vmul.f32 %v4022_v24, %v2205_v38  ;;  %v2415_v49 = vmul.f32 %v4022_v24, %v2207_v35  ;;  %v1998_v55 = vadd.f32 %v1997_v37, %v3988_v33  ;;  %v2111_v25 = vadd.f32 %v2110_v8, %v3988_v33  ;;  %v2116_v62 = vpop.f32.mrb[113].mxu1  ;;  %v2005_v4 = vpop.f32.mrb[114].mxu0 }
 0x31c   :  { %v2414_v34 = vmul.f32 %v4022_v24, %v2206_v30  ;;  %v2416_v14 = vmul.f32 %v4022_v24, %v2208_v43  ;;  %v2213_v58 = vmax.f32 %v1996_v45, 0.0  ;;  %v2215_v40 = vmax.f32 %v2109_v54, 0.0  ;;  %v2118_v21 = vpop.f32.mrb[114].mxu1  ;;  %v2007_v41 = vpop.f32.mrb[115].mxu0 }
 0x31d   :  { %v2578_v17 = vadd.f32 %v2577_v27, %v2413_v50  ;;  %v2620_v7 = vadd.f32 %v2619_v26, %v2415_v49  ;;  %v2214_v5 = vmax.f32 %v1998_v55, 0.0  ;;  %v2216_v20 = vmax.f32 %v2111_v25, 0.0  ;;  %v2120_v39 = vpop.f32.mrb[115].mxu1 }
 0x31e   :  { %v2599_v46 = vadd.f32 %v2598_v29, %v2414_v34  ;;  %v2641_v3 = vadd.f32 %v2640_v6, %v2416_v14  ;;  %v2421_v37 = vmul.f32 %v4039_v59, %v2213_v58  ;;  %v2423_v33 = vmul.f32 %v4039_v59, %v2215_v40 }
 0x31f   :  { %v2422_v8 = vmul.f32 %v4039_v59, %v2214_v5  ;;  %v2424_v36 = vmul.f32 %v4039_v59, %v2216_v20  ;;  %v2002_v24 = vadd.f32 %v2001_v48, %v3990_v57  ;;  %v2115_v0 = vadd.f32 %v2114_v44, %v3990_v57 }
 0x320   :  { %v2579_v9 = vadd.f32 %v2578_v17, %v2421_v37  ;;  %v2621_v1 = vadd.f32 %v2620_v7, %v2423_v33  ;;  %v2004_v12 = vadd.f32 %v2003_v16, %v3990_v57  ;;  %v2117_v27 = vadd.f32 %v2116_v62, %v3990_v57 }
 0x321   :  { %v2600_v26 = vadd.f32 %v2599_v46, %v2422_v8  ;;  %v2642_v63 = vadd.f32 %v2641_v3, %v2424_v36  ;;  %v2221_v60 = vmax.f32 %v2002_v24, 0.0  ;;  %v2223_v29 = vmax.f32 %v2115_v0, 0.0  ;;  %v2011_v6 = vpop.f32.mrb[116].mxu0 }
 0x322   :  { %v2222_v38 = vmax.f32 %v2004_v12, 0.0  ;;  %v2224_v35 = vmax.f32 %v2117_v27, 0.0  ;;  %v2006_v30 = vadd.f32 %v2005_v4, %v3992_v61  ;;  %v2119_v59 = vadd.f32 %v2118_v21, %v3992_v61  ;;  %v2124_v48 = vpop.f32.mrb[116].mxu1  ;;  %v2013_v43 = vpop.f32.mrb[117].mxu0 }
 0x323   :  { %v2429_v45 = vmul.f32 %v4061_v32, %v2221_v60  ;;  %v2431_v54 = vmul.f32 %v4061_v32, %v2223_v29  ;;  %v2008_v44 = vadd.f32 %v2007_v41, %v3992_v61  ;;  %v2121_v57 = vadd.f32 %v2120_v39, %v3992_v61  ;;  %v2126_v16 = vpop.f32.mrb[117].mxu1  ;;  %v2015_v50 = vpop.f32.mrb[118].mxu0 }
 0x324   :  { %v2430_v49 = vmul.f32 %v4061_v32, %v2222_v38  ;;  %v2432_v55 = vmul.f32 %v4061_v32, %v2224_v35  ;;  %v2229_v25 = vmax.f32 %v2006_v30, 0.0  ;;  %v2231_v62 = vmax.f32 %v2119_v59, 0.0  ;;  %v2128_v4 = vpop.f32.mrb[118].mxu1  ;;  %v2017_v34 = vpop.f32.mrb[119].mxu0 }
 0x325   :  { %v2580_v14 = vadd.f32 %v2579_v9, %v2429_v45  ;;  %v2622_v58 = vadd.f32 %v2621_v1, %v2431_v54  ;;  %v2230_v40 = vmax.f32 %v2008_v44, 0.0  ;;  %v2232_v21 = vmax.f32 %v2121_v57, 0.0  ;;  %v2130_v17 = vpop.f32.mrb[119].mxu1 }
 0x326   :  { %v2601_v7 = vadd.f32 %v2600_v26, %v2430_v49  ;;  %v2643_v5 = vadd.f32 %v2642_v63, %v2432_v55  ;;  %v2437_v41 = vmul.f32 %v4079_v51, %v2229_v25  ;;  %v2439_v61 = vmul.f32 %v4079_v51, %v2231_v62 }
 0x327   :  { %v2438_v20 = vmul.f32 %v4079_v51, %v2230_v40  ;;  %v2440_v39 = vmul.f32 %v4079_v51, %v2232_v21  ;;  %v2012_v32 = vadd.f32 %v2011_v6, %v3996_v13  ;;  %v2125_v46 = vadd.f32 %v2124_v48, %v3996_v13 }
 0x328   :  { %v2581_v3 = vadd.f32 %v2580_v14, %v2437_v41  ;;  %v2623_v37 = vadd.f32 %v2622_v58, %v2439_v61  ;;  %v2014_v33 = vadd.f32 %v2013_v43, %v3996_v13  ;;  %v2127_v8 = vadd.f32 %v2126_v16, %v3996_v13 }
 0x329   :  { %v2602_v36 = vadd.f32 %v2601_v7, %v2438_v20  ;;  %v2644_v24 = vadd.f32 %v2643_v5, %v2440_v39  ;;  %v2237_v0 = vmax.f32 %v2012_v32, 0.0  ;;  %v2239_v9 = vmax.f32 %v2125_v46, 0.0  ;;  %v2021_v1 = vpop.f32.mrb[120].mxu0 }
 0x32a   :  { %v2238_v12 = vmax.f32 %v2014_v33, 0.0  ;;  %v2240_v27 = vmax.f32 %v2127_v8, 0.0  ;;  %v2016_v26 = vadd.f32 %v2015_v50, %v4000_v10  ;;  %v2129_v51 = vadd.f32 %v2128_v4, %v4000_v10  ;;  %v2134_v63 = vpop.f32.mrb[120].mxu1  ;;  %v2023_v60 = vpop.f32.mrb[121].mxu0 }
 0x32b   :  { %v2445_v29 = vmul.f32 %v4097_v19, %v2237_v0  ;;  %v2447_v6 = vmul.f32 %v4097_v19, %v2239_v9  ;;  %v2018_v38 = vadd.f32 %v2017_v34, %v4000_v10  ;;  %v2131_v13 = vadd.f32 %v2130_v17, %v4000_v10  ;;  %v2136_v35 = vpop.f32.mrb[121].mxu1  ;;  %v2025_v30 = vpop.f32.mrb[122].mxu0 }
 0x32c   :  { %v2446_v59 = vmul.f32 %v4097_v19, %v2238_v12  ;;  %v2448_v48 = vmul.f32 %v4097_v19, %v2240_v27  ;;  %v2245_v43 = vmax.f32 %v2016_v26, 0.0  ;;  %v2247_v45 = vmax.f32 %v2129_v51, 0.0  ;;  %v2138_v54 = vpop.f32.mrb[122].mxu1  ;;  %v2027_v44 = vpop.f32.mrb[123].mxu0 }
 0x32d   :  { %v2582_v57 = vadd.f32 %v2581_v3, %v2445_v29  ;;  %v2624_v16 = vadd.f32 %v2623_v37, %v2447_v6  ;;  %v2246_v50 = vmax.f32 %v2018_v38, 0.0  ;;  %v2248_v49 = vmax.f32 %v2131_v13, 0.0  ;;  %v2140_v55 = vpop.f32.mrb[123].mxu1 }
 0x32e   :  { %v2603_v25 = vadd.f32 %v2602_v36, %v2446_v59  ;;  %v2645_v62 = vadd.f32 %v2644_v24, %v2448_v48  ;;  %v2453_v4 = vmul.f32 %v4115_v15, %v2245_v43  ;;  %v2455_v10 = vmul.f32 %v4115_v15, %v2247_v45 }
 0x32f   :  { %v2454_v34 = vmul.f32 %v4115_v15, %v2246_v50  ;;  %v2456_v14 = vmul.f32 %v4115_v15, %v2248_v49  ;;  %v2022_v19 = vadd.f32 %v2021_v1, %v4004_v11  ;;  %v2135_v58 = vadd.f32 %v2134_v63, %v4004_v11 }
 0x330   :  { %v2583_v40 = vadd.f32 %v2582_v57, %v2453_v4  ;;  %v2625_v21 = vadd.f32 %v2624_v16, %v2455_v10  ;;  %v2024_v17 = vadd.f32 %v2023_v60, %v4004_v11  ;;  %v2137_v7 = vadd.f32 %v2136_v35, %v4004_v11 }
 0x331   :  { %v2604_v5 = vadd.f32 %v2603_v25, %v2454_v34  ;;  %v2646_v41 = vadd.f32 %v2645_v62, %v2456_v14  ;;  %v2253_v61 = vmax.f32 %v2022_v19, 0.0  ;;  %v2255_v20 = vmax.f32 %v2135_v58, 0.0  ;;  %v2031_v39 = vpop.f32.mrb[124].mxu0 }
 0x332   :  { %v2254_v32 = vmax.f32 %v2024_v17, 0.0  ;;  %v2256_v46 = vmax.f32 %v2137_v7, 0.0  ;;  %v2026_v3 = vadd.f32 %v2025_v30, %v4008_v53  ;;  %v2139_v15 = vadd.f32 %v2138_v54, %v4008_v53  ;;  %v2144_v37 = vpop.f32.mrb[124].mxu1  ;;  %v2033_v33 = vpop.f32.mrb[125].mxu0 }
 0x333   :  { %v2461_v8 = vmul.f32 %v4133_v47, %v2253_v61  ;;  %v2463_v36 = vmul.f32 %v4133_v47, %v2255_v20  ;;  %v2028_v24 = vadd.f32 %v2027_v44, %v4008_v53  ;;  %v2141_v11 = vadd.f32 %v2140_v55, %v4008_v53  ;;  %v2146_v0 = vpop.f32.mrb[125].mxu1  ;;  %v2035_v9 = vpop.f32.mrb[126].mxu0 }
 0x334   :  { %v2462_v1 = vmul.f32 %v4133_v47, %v2254_v32  ;;  %v2464_v12 = vmul.f32 %v4133_v47, %v2256_v46  ;;  %v2261_v27 = vmax.f32 %v2026_v3, 0.0  ;;  %v2263_v26 = vmax.f32 %v2139_v15, 0.0  ;;  %v2148_v51 = vpop.f32.mrb[126].mxu1  ;;  %v2037_v63 = vpop.f32.mrb[127].mxu0  ;;  %v4354_v15 = vld [vmem:[#allocation9_spill] sm:$0xff] }
 0x335   :  { %v2584_v60 = vadd.f32 %v2583_v40, %v2461_v8  ;;  %v2626_v29 = vadd.f32 %v2625_v21, %v2463_v36  ;;  %v2262_v6 = vmax.f32 %v2028_v24, 0.0  ;;  %v2264_v38 = vmax.f32 %v2141_v11, 0.0  ;;  %v2150_v13 = vpop.f32.mrb[127].mxu1 }
 0x336   :  { %v2605_v35 = vadd.f32 %v2604_v5, %v2462_v1  ;;  %v2647_v30 = vadd.f32 %v2646_v41, %v2464_v12  ;;  %v2469_v59 = vmul.f32 %v4147_v28, %v2261_v27  ;;  %v2471_v53 = vmul.f32 %v4147_v28, %v2263_v26  ;;  %v4355_v1 = vld [vmem:[#allocation10_spill] sm:$0xff] }
 0x337   :  { %v2470_v48 = vmul.f32 %v4147_v28, %v2262_v6  ;;  %v2472_v43 = vmul.f32 %v4147_v28, %v2264_v38  ;;  %v2032_v47 = vadd.f32 %v2031_v39, %v4012_v56  ;;  %v2145_v45 = vadd.f32 %v2144_v37, %v4012_v56 }
 0x338   :  { %v2585_v54 = vadd.f32 %v2584_v60, %v2469_v59  ;;  %v2627_v44 = vadd.f32 %v2626_v29, %v2471_v53  ;;  %v2034_v57 = vadd.f32 %v2033_v33, %v4012_v56  ;;  %v2147_v16 = vadd.f32 %v2146_v0, %v4012_v56 }
 0x339   :  { %v2606_v50 = vadd.f32 %v2605_v35, %v2470_v48  ;;  %v2648_v49 = vadd.f32 %v2647_v30, %v2472_v43  ;;  %v2269_v55 = vmax.f32 %v2032_v47, 0.0  ;;  %v2271_v25 = vmax.f32 %v2145_v45, 0.0 }
 0x33a   :  { %v2270_v62 = vmax.f32 %v2034_v57, 0.0  ;;  %v2272_v4 = vmax.f32 %v2147_v16, 0.0  ;;  %v2036_v10 = vadd.f32 %v2035_v9, %v4016_v2  ;;  %v2149_v28 = vadd.f32 %v2148_v51, %v4016_v2 }
 0x33b   :  { %v2477_v34 = vmul.f32 %v4020_v52, %v2269_v55  ;;  %v2479_v14 = vmul.f32 %v4020_v52, %v2271_v25  ;;  %v2038_v19 = vadd.f32 %v2037_v63, %v4016_v2  ;;  %v2151_v58 = vadd.f32 %v2150_v13, %v4016_v2  ;;  %v4356_v63 = vld [vmem:[#allocation8_spill] sm:$0xff] }
 0x33c   :  { %v2478_v56 = vmul.f32 %v4020_v52, %v2270_v62  ;;  %v2480_v40 = vmul.f32 %v4020_v52, %v2272_v4  ;;  %v2277_v21 = vmax.f32 %v2036_v10, 0.0  ;;  %v2279_v17 = vmax.f32 %v2149_v28, 0.0 }
 0x33d   :  { %v2586_v7 = vadd.f32 %v2585_v54, %v2477_v34  ;;  %v2628_v5 = vadd.f32 %v2627_v44, %v2479_v14  ;;  %v2278_v41 = vmax.f32 %v2038_v19, 0.0  ;;  %v2280_v61 = vmax.f32 %v2151_v58, 0.0 }
 0x33e   :  { %v2607_v20 = vadd.f32 %v2606_v50, %v2478_v56  ;;  %v2649_v39 = vadd.f32 %v2648_v49, %v2480_v40  ;;  %v2485_v32 = vmul.f32 %v4165_v23, %v2277_v21  ;;  %v2487_v46 = vmul.f32 %v4165_v23, %v2279_v17 }
 0x33f   :  { %v2486_v3 = vmul.f32 %v4165_v23, %v2278_v41  ;;  %v2488_v2 = vmul.f32 %v4165_v23, %v2280_v61  ;;  %v2666_v37 = vadd.f32 %v4354_v15, %v4189_v31  ;;  %v2667_v52 = vadd.f32 %v4354_v15, %v4194_v18 }
 0x340   :  { %v2587_v33 = vadd.f32 %v2586_v7, %v2485_v32  ;;  %v2629_v8 = vadd.f32 %v2628_v5, %v2487_v46  ;;  %v2668_v36 = vadd.f32 %v4354_v15, %v4192_v22  ;;  %v2669_v24 = vadd.f32 %v4354_v15, %v4196_v42 }
 0x341   :  { %v2608_v11 = vadd.f32 %v2607_v20, %v2486_v3  ;;  %v2650_v0 = vadd.f32 %v2649_v39, %v2488_v2  ;;  %v2682_v9 = vcombine.low %v2666_v37, %v2667_v52  ;;  %v2688_v12 = vunpack.c.0.s8 %v4355_v1 }
 0x342   :  { %v2588_v23 = vrot.slane %v2587_v33, 4  ;;  %v2630_v27 = vrot.slane %v2629_v8, 4  ;;  %v2683_v26 = vcombine.low %v2668_v36, %v2669_v24 }
 0x343   :  { %v2609_v31 = vrot.slane %v2608_v11, 4  ;;  %v2651_v51 = vrot.slane %v2650_v0, 4  ;;  %v2691_v18 = vsub.s32 %v2688_v12, %v4356_v63 }
 0x344   :  { %v2589_v60 = vadd.f32 %v2588_v23, %v2587_v33  ;;  %v2631_v29 = vadd.f32 %v2630_v27, %v2629_v8 }
 0x345   :  { %v2610_v6 = vadd.f32 %v2609_v31, %v2608_v11  ;;  %v2652_v38 = vadd.f32 %v2651_v51, %v2650_v0  ;;  %v2692_v22 = vrot.slane %v2682_v9, %v2691_v18  ;;  %v2699_v13 = vrot.slane %v2683_v26, %v2691_v18 }
 0x346   :  { %v2590_v35 = vrot.slane %v2589_v60, 2  ;;  %v2632_v42 = vrot.slane %v2631_v29, 2 }
 0x347   :  { %v2611_v30 = vrot.slane %v2610_v6, 2  ;;  %v2653_v59 = vrot.slane %v2652_v38, 2  ;;  %v2714_v53 = vcombine.low %v2692_v22, %v2699_v13 }
 0x348   :  { %v2591_v48 = vadd.f32 %v2590_v35, %v2589_v60  ;;  %v2633_v43 = vadd.f32 %v2632_v42, %v2631_v29 }
 0x349   :  { %v2612_v47 = vadd.f32 %v2611_v30, %v2610_v6  ;;  %v2654_v45 = vadd.f32 %v2653_v59, %v2652_v38  ;;  %v2722_v40 = vrot.slane %v2714_v53, %v2691_v18 }
 0x34a   :  { %v2592_v54 = vrot.slane %v2591_v48, 1  ;;  %v2634_v44 = vrot.slane %v2633_v43, 1 }
 0x34b   :  { %v2613_v57 = vrot.slane %v2612_v47, 1  ;;  %v2655_v16 = vrot.slane %v2654_v45, 1 }
 0x34c   :  { %v2593_v50 = vadd.f32 %v2592_v54, %v2591_v48  ;;  %v2635_v49 = vadd.f32 %v2634_v44, %v2633_v43 }
 0x34d   :  { %v2614_v55 = vadd.f32 %v2613_v57, %v2612_v47  ;;  %v2656_v25 = vadd.f32 %v2655_v16, %v2654_v45 }
 0x34e   :  { %v2670_v62 = vadd.f32 %v4354_v15, %v2593_v50  ;;  %v2672_v4 = vadd.f32 %v4354_v15, %v2635_v49 }
 0x34f   :  { %v2671_v10 = vadd.f32 %v4354_v15, %v2614_v55  ;;  %v2673_v28 = vadd.f32 %v4354_v15, %v2656_v25 }
 0x351   :  { %v2684_v34 = vcombine.low %v2670_v62, %v2671_v10  ;;  %v2685_v14 = vcombine.low %v2672_v4, %v2673_v28 }
 0x353   :  { %v2706_v19 = vrot.slane %v2684_v34, %v2691_v18  ;;  %v2713_v58 = vrot.slane %v2685_v14, %v2691_v18 }
 0x355   :  { %v2715_v56 = vcombine.low %v2706_v19, %v2713_v58 }
 0x357   :  { %v2729_v21 = vrot.slane %v2715_v56, %v2691_v18 }
 0x359   :  { %v2730_v17 = vcombine.low %v2722_v40, %v2729_v21 }
 0x35b   :  { %2732 = vst [vmem:[#allocation5] sm:$0xff] %v2730_v17 }
 0x35c   :  { %2795 = shalt.err (!%p2792_p4)
}
 0x35d   :  { %s2796_s14 = scalar_lea.hbm %s4346_s10, 128 }
 0x35e   :  { %p2797_p5 = scmp.ne.s32.totalorder %s4346_s10, %s2796_s14  ;;  %p2800_p6 = scmp.lt.u32.totalorder %s2796_s14, %s4346_s10 }
 0x360   :  { %p2802_p7 = pnand %p2800_p6, %p2797_p5 }
 0x362   :  { %2805 = shalt.err (!%p2802_p7)
}
 0x363   :  { %2742 = dma.vmem_to_hbm [thread:$0]  %s2740_s30, 128, %s4346_s10, [#allocation6]  }
 0x364   :  { %2806 = dma.done.wait [#allocation6], 128  }
 0x365   :  { %2807 = vsyncadd [#allocation6], 4294967168 }
 0x366   :  { %2746 = vsyncpa [#allocation6], 1 }

</bundles_post_ra>
